<compile_context>
chip_gen: v7x
topology: tpu7x:2x2x1
jax: 0.10.0
libtpu: 0.0.40
codegen_flags: <defaults>
</compile_context>

<pallas_src>
import math
from functools import partial

import numpy as np
import jax
import jax.numpy as jnp
from jax.experimental import pallas as pl
from jax.experimental.pallas import tpu as pltpu

# Kept at "highest" so the kernel matches the f32 reference to 2e-4.
# (On v6e/v7x this could be relaxed to default/bf16 for ~3x fewer MXU passes if the
#  accuracy budget allows; on v5e f32 is preferred anyway.)
jax.config.update("jax_default_matmul_precision", "highest")

# ---------------- model configuration (small, consistent with the module) -------------
STATE_SIZE = 6
ACTION_SIZE = 4
REWARD_SIZE = 3
FEATURE_SIZE = 32
SEQUENCE_SIZE = 8          # max sequence length (positional encoding / causal mask size)
NUM_LAYERS = 2
NUM_HEADS = 4
HEAD_SIZE = FEATURE_SIZE // NUM_HEADS
HEAD_OUT = REWARD_SIZE + STATE_SIZE
LN_EPS = 1e-5


# ------------------------------- Pallas kernel ----------------------------------------
def rollout_kernel(seq0_ref, present0_ref, fa_ref, pos_ref,
                   wsin_ref, bsin_ref,
                   ln1g_ref, ln1b_ref,
                   wqkv_ref, bqkv_ref,
                   wo_ref, bo_ref,
                   ln2g_ref, ln2b_ref,
                   wm_ref, bm_ref,
                   lnfg_ref, lnfb_ref,
                   whead_ref, bhead_ref,
                   out_ref,
                   seq_scratch, pres_scratch,
                   *, hist_len):
    i = pl.program_id(0)                      # rollout step
    B = present0_ref.shape[0]
    S = SEQUENCE_SIZE
    F = FEATURE_SIZE
    HS = HEAD_SIZE
    scale = 1.0 / math.sqrt(HS)
    row = hist_len + i                        # position of the token appended this step

    # ---- one-time init of the persistent VMEM state (history embeddings + present) ----
    @pl.when(i == 0)
    def _():
        seq_scratch[...] = seq0_ref[...]
        pres_scratch[...] = present0_ref[...]

    # ---- append the new token (present_emb + action_emb) at position `row` -------------
    tok = pres_scratch[...] + fa_ref[0]                               # (B, F)
    pos_sel = jax.lax.broadcasted_iota(jnp.int32, (S, 1), 0) == row   # (S, 1) bool
    for b in range(B):                                                # B=2, static unroll
        rs_ = slice(b * S, (b + 1) * S)
        seq_scratch[rs_, :] = jnp.where(pos_sel, tok[b:b + 1, :], seq_scratch[rs_, :])

    # ---- embed: tanh(seq) + positional encoding (flattened (B*S, F)) -------------------
    h = jnp.tanh(seq_scratch[...]) + pos_ref[...]                     # (B*S, F)

    # causal mask (S, S): -inf above the diagonal
    rr = jax.lax.broadcasted_iota(jnp.int32, (S, S), 0)
    cc = jax.lax.broadcasted_iota(jnp.int32, (S, S), 1)
    causal = jnp.where(cc > rr, -jnp.inf, 0.0).astype(jnp.float32)

    def layernorm(v, g, b_):
        mu = jnp.mean(v, axis=-1, keepdims=True)
        var = jnp.mean(jnp.square(v - mu), axis=-1, keepdims=True)
        return (v - mu) * jax.lax.rsqrt(var + LN_EPS) * g + b_

    # ---- transformer decoder layers ----------------------------------------------------
    for j in range(NUM_LAYERS):
        # attention block (pre-LN); fused QKV projection: (B*S, F) @ (F, 3F)
        q_in = layernorm(h, ln1g_ref[j:j + 1], ln1b_ref[j:j + 1])
        qkv = (jnp.dot(q_in, wqkv_ref[j], preferred_element_type=jnp.float32)
               + bqkv_ref[j:j + 1])                                   # (B*S, 3F)
        woj = wo_ref[j]                                               # (F, F)

        attn_parts = []
        for b in range(B):
            rs_ = slice(b * S, (b + 1) * S)
            ob = None
            for hh in range(NUM_HEADS):
                q_sl = slice(hh * HS, (hh + 1) * HS)
                k_sl = slice(F + hh * HS, F + (hh + 1) * HS)
                v_sl = slice(2 * F + hh * HS, 2 * F + (hh + 1) * HS)
                Qh = qkv[rs_, q_sl]                                   # (S, HS)
                Kh = qkv[rs_, k_sl]
                Vh = qkv[rs_, v_sl]
                sc = jax.lax.dot_general(
                    Qh, Kh, (((1,), (1,)), ((), ())),
                    preferred_element_type=jnp.float32) * scale + causal   # (S, S)
                # scores are bounded (pre-LN inputs, S=8): no max-subtraction needed
                p = jnp.exp(sc)
                p = p * (1.0 / jnp.sum(p, axis=-1, keepdims=True))
                ctx = jnp.dot(p, Vh, preferred_element_type=jnp.float32)   # (S, HS)
                # fold the head directly into the output projection (no lane concat)
                contrib = jnp.dot(ctx, woj[hh * HS:(hh + 1) * HS, :],
                                  preferred_element_type=jnp.float32)      # (S, F)
                ob = contrib if ob is None else ob + contrib
            attn_parts.append(ob)
        attn = jnp.concatenate(attn_parts, axis=0)                    # (B*S, F)
        h = h + attn + bo_ref[j:j + 1]

        # feed-forward block (single linear, pre-LN)
        m = layernorm(h, ln2g_ref[j:j + 1], ln2b_ref[j:j + 1])
        h = h + jnp.dot(m, wm_ref[j], preferred_element_type=jnp.float32) + bm_ref[j:j + 1]

    # ---- heads on the last valid row only ----------------------------------------------
    last_rows = []
    for b in range(B):
        rs_ = slice(b * S, (b + 1) * S)
        hb = jnp.where(pos_sel, h[rs_, :], 0.0)                       # (S, F)
        last_rows.append(jnp.sum(hb, axis=0, keepdims=True))          # (1, F)
    h_last = jnp.concatenate(last_rows, axis=0)                       # (B, F)
    h_last = layernorm(h_last, lnfg_ref[...], lnfb_ref[...])

    out = jnp.tanh(jnp.dot(h_last, whead_ref[...],
                           preferred_element_type=jnp.float32) + bhead_ref[...])  # (B, 9)
    out_ref[0] = out

    # ---- feed predicted state back through state_linear for the next step --------------
    s_next = out[:, REWARD_SIZE:]                                     # (B, STATE_SIZE)
    pres_scratch[...] = (jnp.dot(s_next, wsin_ref[...],
                                 preferred_element_type=jnp.float32) + bsin_ref[...])


# ------------------------------- wrapper ------------------------------------------------
@partial(jax.jit, static_argnames=("hist_len",))
def _forward_impl(params, history_s, history_a, present_s, future_a, *, hist_len):
    B = present_s.shape[0]
    Fsteps = future_a.shape[1]
    S = SEQUENCE_SIZE
    F = FEATURE_SIZE

    def lin(x, w, b):
        return jnp.dot(x, w) + b

    present0 = lin(present_s, params['w_state_in'], params['b_state_in'])   # (B, F)
    fa_emb = lin(future_a, params['w_action_in'], params['b_action_in'])    # (B, Fsteps, F)
    fa_emb = jnp.transpose(fa_emb, (1, 0, 2))                               # (Fsteps, B, F)

    seq0 = jnp.zeros((B, S, F), jnp.float32)
    if hist_len > 0:
        hist = (lin(history_s, params['w_state_in'], params['b_state_in'])
                + lin(history_a, params['w_action_in'], params['b_action_in']))
        seq0 = seq0.at[:, :hist_len, :].set(hist)
    seq0 = seq0.reshape(B * S, F)

    pos_flat = jnp.tile(params['pos'], (B, 1))                              # (B*S, F)

    kernel = partial(rollout_kernel, hist_len=hist_len)

    inputs = (seq0, present0, fa_emb, pos_flat,
              params['w_state_in'], params['b_state_in'],
              params['ln1g'], params['ln1b'],
              params['wqkv'], params['bqkv'],
              params['wo'], params['bo'],
              params['ln2g'], params['ln2b'],
              params['wm'], params['bm'],
              params['lnfg'], params['lnfb'],
              params['w_head'], params['b_head'])

    in_specs = []
    for idx, a in enumerate(inputs):
        if idx == 2:  # fa_emb: stream one rollout step's action embedding per grid step
            in_specs.append(pl.BlockSpec((1, B, F), lambda i: (i, 0, 0)))
        else:         # parameters / initial state: same (whole-array) block every step
            in_specs.append(pl.BlockSpec(a.shape, lambda i, nd=a.ndim: (0,) * nd))

    out = pl.pallas_call(
        kernel,
        out_shape=jax.ShapeDtypeStruct((Fsteps, B, HEAD_OUT), jnp.float32),
        grid_spec=pltpu.PrefetchScalarGridSpec(
            num_scalar_prefetch=0,
            grid=(Fsteps,),
            in_specs=in_specs,
            out_specs=pl.BlockSpec((1, B, HEAD_OUT), lambda i: (i, 0, 0)),
            scratch_shapes=[pltpu.VMEM((B * S, F), jnp.float32),   # embedded sequence
                            pltpu.VMEM((B, F), jnp.float32)]),     # fed-back present emb
        compiler_params=pltpu.CompilerParams(
            dimension_semantics=("arbitrary",)),                   # sequential rollout
    )(*inputs)

    future_r = jnp.transpose(out[:, :, :REWARD_SIZE], (1, 0, 2))    # (B, Fsteps, 3)
    future_s = jnp.transpose(out[:, :, REWARD_SIZE:], (1, 0, 2))    # (B, Fsteps, 6)
    return future_r, future_s


def forward(params, history_s, history_a, present_s, future_a):
    H = history_s.shape[1]
    Fsteps = future_a.shape[1]
    assert H + Fsteps <= SEQUENCE_SIZE
    return _forward_impl(params, history_s, history_a, present_s, future_a, hist_len=H)


# ------------------------------- parameters -------------------------------------------
def generate_positional_encoding(sequence_size, feature_size):
    pe = np.zeros((sequence_size, feature_size), np.float32)
    for pos in range(sequence_size):
        for i in range(0, feature_size, 2):
            pe[pos, i] = math.sin(pos / 10000 ** (2 * i / feature_size))
            if i + 1 < feature_size:
                pe[pos, i + 1] = math.cos(pos / 10000 ** (2 * i / feature_size))
    return jnp.asarray(pe)


def init_params(key):
    def linear(k, in_f, out_f):
        kw, kb = jax.random.split(k)
        limit = math.sqrt(6.0 / (in_f + out_f))                  # glorot_uniform weights
        w = jax.random.uniform(kw, (in_f, out_f), jnp.float32, -limit, limit)
        bb = 1.0 / math.sqrt(in_f)                               # PyTorch default bias init
        b = jax.random.uniform(kb, (out_f,), jnp.float32, -bb, bb)
        return w, b

    F = FEATURE_SIZE
    keys = jax.random.split(key, 4 + 5 * NUM_LAYERS)
    it = iter(keys)
    p = {}
    w, b = linear(next(it), STATE_SIZE, F)
    p['w_state_in'], p['b_state_in'] = w, b[None, :]
    w, b = linear(next(it), ACTION_SIZE, F)
    p['w_action_in'], p['b_action_in'] = w, b[None, :]

    stacks = {n: [] for n in ['wq', 'bq', 'wk', 'bk', 'wv', 'bv', 'wo', 'bo', 'wm', 'bm']}
    for _ in range(NUM_LAYERS):
        for wn, bn in [('wq', 'bq'), ('wk', 'bk'), ('wv', 'bv'), ('wo', 'bo'), ('wm', 'bm')]:
            w, b = linear(next(it), F, F)
            stacks[wn].append(w)
            stacks[bn].append(b)
    for n, vals in stacks.items():
        p[n] = jnp.stack(vals)

    p['ln1g'] = jnp.ones((NUM_LAYERS, F), jnp.float32)
    p['ln1b'] = jnp.zeros((NUM_LAYERS, F), jnp.float32)
    p['ln2g'] = jnp.ones((NUM_LAYERS, F), jnp.float32)
    p['ln2b'] = jnp.zeros((NUM_LAYERS, F), jnp.float32)
    p['lnfg'] = jnp.ones((1, F), jnp.float32)
    p['lnfb'] = jnp.zeros((1, F), jnp.float32)

    p['wr'], br = linear(next(it), F, REWARD_SIZE)
    p['br'] = br[None, :]
    p['ws'], bs = linear(next(it), F, STATE_SIZE)
    p['bs'] = bs[None, :]
    p['pos'] = generate_positional_encoding(SEQUENCE_SIZE, F)

    # fused weights used by the Pallas kernel
    p['wqkv'] = jnp.concatenate([p['wq'], p['wk'], p['wv']], axis=2)   # (L, F, 3F)
    p['bqkv'] = jnp.concatenate([p['bq'], p['bk'], p['bv']], axis=1)   # (L, 3F)
    p['w_head'] = jnp.concatenate([p['wr'], p['ws']], axis=1)          # (F, 9)
    p['b_head'] = jnp.concatenate([p['br'], p['bs']], axis=1)          # (1, 9)
    return p


# ------------------------------- pure-JAX reference ------------------------------------
def reference_forward(params, history_s, history_a, present_s, future_a):
    B = present_s.shape[0]
    H = history_s.shape[1]
    Fsteps = future_a.shape[1]
    scale = 1.0 / math.sqrt(HEAD_SIZE)

    def lin(x, w, b):
        return jnp.dot(x, w) + b

    def layernorm(v, g, b):
        mu = jnp.mean(v, -1, keepdims=True)
        var = jnp.mean(jnp.square(v - mu), -1, keepdims=True)
        return (v - mu) * jax.lax.rsqrt(var + LN_EPS) * g + b

    if H > 0:
        seq = (lin(history_s, params['w_state_in'], params['b_state_in'])
               + lin(history_a, params['w_action_in'], params['b_action_in']))
    else:
        seq = jnp.zeros((B, 0, FEATURE_SIZE), jnp.float32)
    present = lin(present_s[:, None, :], params['w_state_in'], params['b_state_in'])
    fa = lin(future_a, params['w_action_in'], params['b_action_in'])

    rs, ss = [], []
    for i in range(Fsteps):
        seq = jnp.concatenate([seq, present + fa[:, i:i + 1]], axis=1)
        long = seq.shape[1]
        h = jnp.tanh(seq) + params['pos'][:long]
        rowi = jnp.arange(long)[:, None]
        coli = jnp.arange(long)[None, :]
        causal = jnp.where(coli > rowi, -jnp.inf, 0.0).astype(jnp.float32)
        for j in range(NUM_LAYERS):
            q_in = layernorm(h, params['ln1g'][j], params['ln1b'][j])
            Q = q_in @ params['wq'][j] + params['bq'][j]
            K = q_in @ params['wk'][j] + params['bk'][j]
            V = q_in @ params['wv'][j] + params['bv'][j]
            Qh = Q.reshape(B, long, NUM_HEADS, HEAD_SIZE).transpose(0, 2, 1, 3)
            Kh = K.reshape(B, long, NUM_HEADS, HEAD_SIZE).transpose(0, 2, 1, 3)
            Vh = V.reshape(B, long, NUM_HEADS, HEAD_SIZE).transpose(0, 2, 1, 3)
            scores = jnp.einsum('bhqd,bhkd->bhqk', Qh, Kh) * scale + causal
            scores = scores - jnp.max(scores, -1, keepdims=True)
            pexp = jnp.exp(scores)
            probs = pexp / jnp.sum(pexp, -1, keepdims=True)
            o = jnp.einsum('bhqk,bhkd->bhqd', probs, Vh)
            o = o.transpose(0, 2, 1, 3).reshape(B, long, FEATURE_SIZE)
            h = h + (o @ params['wo'][j] + params['bo'][j])
            m = layernorm(h, params['ln2g'][j], params['ln2b'][j])
            h = h + (m @ params['wm'][j] + params['bm'][j])
        h = layernorm(h, params['lnfg'][0], params['lnfb'][0])
        r = jnp.tanh(h[:, -1] @ params['wr'] + params['br'][0])
        s = jnp.tanh(h[:, -1] @ params['ws'] + params['bs'][0])
        rs.append(r)
        ss.append(s)
        present = lin(s[:, None, :], params['w_state_in'], params['b_state_in'])
    return jnp.stack(rs, 1), jnp.stack(ss, 1)


# ------------------------------------ main ----------------------------------------------
if __name__ == "__main__":
    key = jax.random.PRNGKey(0)
    kp, k1, k2, k3, k4 = jax.random.split(key, 5)
    params = init_params(kp)

    B, H, Fs = 2, 3, 4
    history_s = jax.random.normal(k1, (B, H, STATE_SIZE), jnp.float32)
    history_a = jax.random.normal(k2, (B, H, ACTION_SIZE), jnp.float32)
    present_s = jax.random.normal(k3, (B, STATE_SIZE), jnp.float32)
    future_a = jax.random.normal(k4, (B, Fs, ACTION_SIZE), jnp.float32)

    future_r, future_s = forward(params, history_s, history_a, present_s, future_a)
    (future_r, future_s) = jax.block_until_ready((future_r, future_s))

    ref_r, ref_s = reference_forward(params, history_s, history_a, present_s, future_a)
    np.testing.assert_allclose(np.asarray(future_r), np.asarray(ref_r), atol=2e-4, rtol=2e-4)
    np.testing.assert_allclose(np.asarray(future_s), np.asarray(ref_s), atol=2e-4, rtol=2e-4)
    assert future_r.shape == (B, Fs, REWARD_SIZE) and future_s.shape == (B, Fs, STATE_SIZE)

    print("KERNEL_OK")
</pallas_src>

<mosaic_0001>
module attributes {stable_mosaic.version = 11 : i64} {
  func.func @rollout_kernel(%arg0: i32, %arg1: memref<16x32xf32, #tpu.memory_space<vmem>>, %arg2: memref<2x32xf32, #tpu.memory_space<vmem>>, %arg3: memref<1x2x32xf32, #tpu.memory_space<vmem>>, %arg4: memref<16x32xf32, #tpu.memory_space<vmem>>, %arg5: memref<6x32xf32, #tpu.memory_space<vmem>>, %arg6: memref<1x32xf32, #tpu.memory_space<vmem>>, %arg7: memref<2x32xf32, #tpu.memory_space<vmem>>, %arg8: memref<2x32xf32, #tpu.memory_space<vmem>>, %arg9: memref<2x32x96xf32, #tpu.memory_space<vmem>>, %arg10: memref<2x96xf32, #tpu.memory_space<vmem>>, %arg11: memref<2x32x32xf32, #tpu.memory_space<vmem>>, %arg12: memref<2x32xf32, #tpu.memory_space<vmem>>, %arg13: memref<2x32xf32, #tpu.memory_space<vmem>>, %arg14: memref<2x32xf32, #tpu.memory_space<vmem>>, %arg15: memref<2x32x32xf32, #tpu.memory_space<vmem>>, %arg16: memref<2x32xf32, #tpu.memory_space<vmem>>, %arg17: memref<1x32xf32, #tpu.memory_space<vmem>>, %arg18: memref<1x32xf32, #tpu.memory_space<vmem>>, %arg19: memref<32x9xf32, #tpu.memory_space<vmem>>, %arg20: memref<1x9xf32, #tpu.memory_space<vmem>>, %arg21: memref<1x2x9xf32, #tpu.memory_space<vmem>>, %arg22: memref<16x32xf32, #tpu.memory_space<vmem>>, %arg23: memref<2x32xf32, #tpu.memory_space<vmem>>) attributes {dimension_semantics = [#tpu.dimension_semantics<arbitrary>], iteration_bounds = array<i64: 4>, scalar_prefetch = 0 : i64, scratch_operands = 2 : i64, tpu.core_type = #tpu.core_type<tc>, window_params = [{pipeline_mode = #tpu.pipeline_mode<synchronous>, transform_indices = @transform_0, window_bounds = array<i64: 16, 32>}, {pipeline_mode = #tpu.pipeline_mode<synchronous>, transform_indices = @transform_1, window_bounds = array<i64: 2, 32>}, {transform_indices = @transform_2, window_bounds = array<i64: 1, 2, 32>}, {pipeline_mode = #tpu.pipeline_mode<synchronous>, transform_indices = @transform_3, window_bounds = array<i64: 16, 32>}, {pipeline_mode = #tpu.pipeline_mode<synchronous>, transform_indices = @transform_4, window_bounds = array<i64: 6, 32>}, {pipeline_mode = #tpu.pipeline_mode<synchronous>, transform_indices = @transform_5, window_bounds = array<i64: 1, 32>}, {pipeline_mode = #tpu.pipeline_mode<synchronous>, transform_indices = @transform_6, window_bounds = array<i64: 2, 32>}, {pipeline_mode = #tpu.pipeline_mode<synchronous>, transform_indices = @transform_7, window_bounds = array<i64: 2, 32>}, {pipeline_mode = #tpu.pipeline_mode<synchronous>, transform_indices = @transform_8, window_bounds = array<i64: 2, 32, 96>}, {pipeline_mode = #tpu.pipeline_mode<synchronous>, transform_indices = @transform_9, window_bounds = array<i64: 2, 96>}, {pipeline_mode = #tpu.pipeline_mode<synchronous>, transform_indices = @transform_10, window_bounds = array<i64: 2, 32, 32>}, {pipeline_mode = #tpu.pipeline_mode<synchronous>, transform_indices = @transform_11, window_bounds = array<i64: 2, 32>}, {pipeline_mode = #tpu.pipeline_mode<synchronous>, transform_indices = @transform_12, window_bounds = array<i64: 2, 32>}, {pipeline_mode = #tpu.pipeline_mode<synchronous>, transform_indices = @transform_13, window_bounds = array<i64: 2, 32>}, {pipeline_mode = #tpu.pipeline_mode<synchronous>, transform_indices = @transform_14, window_bounds = array<i64: 2, 32, 32>}, {pipeline_mode = #tpu.pipeline_mode<synchronous>, transform_indices = @transform_15, window_bounds = array<i64: 2, 32>}, {pipeline_mode = #tpu.pipeline_mode<synchronous>, transform_indices = @transform_16, window_bounds = array<i64: 1, 32>}, {pipeline_mode = #tpu.pipeline_mode<synchronous>, transform_indices = @transform_17, window_bounds = array<i64: 1, 32>}, {pipeline_mode = #tpu.pipeline_mode<synchronous>, transform_indices = @transform_18, window_bounds = array<i64: 32, 9>}, {pipeline_mode = #tpu.pipeline_mode<synchronous>, transform_indices = @transform_19, window_bounds = array<i64: 1, 9>}, {transform_indices = @transform_20, window_bounds = array<i64: 1, 2, 9>}]} {
    %c3_i32 = arith.constant 3 : i32
    %0 = arith.addi %c3_i32, %arg0 : i32
    %c0_i32 = arith.constant 0 : i32
    %1 = arith.cmpi eq, %arg0, %c0_i32 : i32
    %2 = arith.extui %1 : i1 to i32
    %c0_i32_0 = arith.constant 0 : i32
    %3 = arith.cmpi ne, %2, %c0_i32_0 : i32
    scf.if %3 {
      %c0_210 = arith.constant 0 : index
      %c0_211 = arith.constant 0 : index
      %512 = vector.load %arg1[%c0_210, %c0_211] : memref<16x32xf32, #tpu.memory_space<vmem>>, vector<16x32xf32>
      %c0_212 = arith.constant 0 : index
      %c0_213 = arith.constant 0 : index
      %513 = vector.load %arg22[%c0_212, %c0_213] : memref<16x32xf32, #tpu.memory_space<vmem>>, vector<16x32xf32>
      tpu.vector_store %arg22[%c0_212, %c0_213], %512 {strides = array<i32>} : memref<16x32xf32, #tpu.memory_space<vmem>>, vector<16x32xf32>,
      %c0_214 = arith.constant 0 : index
      %c0_215 = arith.constant 0 : index
      %514 = vector.load %arg2[%c0_214, %c0_215] : memref<2x32xf32, #tpu.memory_space<vmem>>, vector<2x32xf32>
      %c0_216 = arith.constant 0 : index
      %c0_217 = arith.constant 0 : index
      %515 = vector.load %arg23[%c0_216, %c0_217] : memref<2x32xf32, #tpu.memory_space<vmem>>, vector<2x32xf32>
      tpu.vector_store %arg23[%c0_216, %c0_217], %514 {strides = array<i32>} : memref<2x32xf32, #tpu.memory_space<vmem>>, vector<2x32xf32>,
    } else {
    }
    %c0 = arith.constant 0 : index
    %c0_1 = arith.constant 0 : index
    %4 = vector.load %arg23[%c0, %c0_1] : memref<2x32xf32, #tpu.memory_space<vmem>>, vector<2x32xf32>
    %c0_2 = arith.constant 0 : index
    %c0_3 = arith.constant 0 : index
    %c0_4 = arith.constant 0 : index
    %5 = vector.load %arg3[%c0_2, %c0_3, %c0_4] : memref<1x2x32xf32, #tpu.memory_space<vmem>>, vector<1x2x32xf32>
    %6 = vector.shape_cast %5 : vector<1x2x32xf32> to vector<2x32xf32>
    %7 = arith.addf %4, %6 : vector<2x32xf32>
    %8 = tpu.iota {dimensions = array<i32: 0>} : vector<8x1xi32>
    %9 = vector.broadcast %0 : i32 to vector<8x1xi32>
    %10 = arith.cmpi eq, %8, %9 : vector<8x1xi32>
    %11 = vector.extract_strided_slice %7 {offsets = [0, 0], sizes = [1, 32], strides = [1, 1]} : vector<2x32xf32> to vector<1x32xf32>
    %c0_5 = arith.constant 0 : index
    %c0_6 = arith.constant 0 : index
    %12 = vector.load %arg22[%c0_5, %c0_6] : memref<16x32xf32, #tpu.memory_space<vmem>>, vector<8x32xf32>
    %13 = vector.shape_cast %10 : vector<8x1xi1> to vector<8x1xi1>
    %14 = vector.broadcast %13 : vector<8x1xi1> to vector<8x32xi1>
    %15 = vector.shape_cast %11 : vector<1x32xf32> to vector<1x32xf32>
    %16 = vector.broadcast %15 : vector<1x32xf32> to vector<8x32xf32>
    %17 = arith.select %14, %16, %12 : vector<8x32xi1>, vector<8x32xf32>
    %c0_7 = arith.constant 0 : index
    %c0_8 = arith.constant 0 : index
    %18 = vector.load %arg22[%c0_7, %c0_8] : memref<16x32xf32, #tpu.memory_space<vmem>>, vector<8x32xf32>
    tpu.vector_store %arg22[%c0_7, %c0_8], %17 {strides = array<i32>} : memref<16x32xf32, #tpu.memory_space<vmem>>, vector<8x32xf32>,
    %19 = vector.extract_strided_slice %7 {offsets = [1, 0], sizes = [1, 32], strides = [1, 1]} : vector<2x32xf32> to vector<1x32xf32>
    %c8 = arith.constant 8 : index
    %c0_9 = arith.constant 0 : index
    %20 = vector.load %arg22[%c8, %c0_9] : memref<16x32xf32, #tpu.memory_space<vmem>>, vector<8x32xf32>
    %21 = vector.shape_cast %10 : vector<8x1xi1> to vector<8x1xi1>
    %22 = vector.broadcast %21 : vector<8x1xi1> to vector<8x32xi1>
    %23 = vector.shape_cast %19 : vector<1x32xf32> to vector<1x32xf32>
    %24 = vector.broadcast %23 : vector<1x32xf32> to vector<8x32xf32>
    %25 = arith.select %22, %24, %20 : vector<8x32xi1>, vector<8x32xf32>
    %c8_10 = arith.constant 8 : index
    %c0_11 = arith.constant 0 : index
    %26 = vector.load %arg22[%c8_10, %c0_11] : memref<16x32xf32, #tpu.memory_space<vmem>>, vector<8x32xf32>
    tpu.vector_store %arg22[%c8_10, %c0_11], %25 {strides = array<i32>} : memref<16x32xf32, #tpu.memory_space<vmem>>, vector<8x32xf32>,
    %c0_12 = arith.constant 0 : index
    %c0_13 = arith.constant 0 : index
    %27 = vector.load %arg22[%c0_12, %c0_13] : memref<16x32xf32, #tpu.memory_space<vmem>>, vector<16x32xf32>
    %28 = math.tanh %27 : vector<16x32xf32>
    %c0_14 = arith.constant 0 : index
    %c0_15 = arith.constant 0 : index
    %29 = vector.load %arg4[%c0_14, %c0_15] : memref<16x32xf32, #tpu.memory_space<vmem>>, vector<16x32xf32>
    %30 = arith.addf %28, %29 : vector<16x32xf32>
    %31 = tpu.iota {dimensions = array<i32: 0>} : vector<8x8xi32>
    %32 = tpu.iota {dimensions = array<i32: 1>} : vector<8x8xi32>
    %33 = arith.cmpi sgt, %32, %31 : vector<8x8xi32>
    %cst = arith.constant 0xFF800000 : f32
    %cst_16 = arith.constant 0.000000e+00 : f32
    %34 = vector.broadcast %cst : f32 to vector<8x8xf32>
    %35 = vector.broadcast %cst_16 : f32 to vector<8x8xf32>
    %36 = arith.select %33, %34, %35 : vector<8x8xi1>, vector<8x8xf32>
    %c0_17 = arith.constant 0 : index
    %c0_18 = arith.constant 0 : index
    %37 = vector.load %arg7[%c0_17, %c0_18] : memref<2x32xf32, #tpu.memory_space<vmem>>, vector<1x32xf32>
    %c0_19 = arith.constant 0 : index
    %c0_20 = arith.constant 0 : index
    %38 = vector.load %arg8[%c0_19, %c0_20] : memref<2x32xf32, #tpu.memory_space<vmem>>, vector<1x32xf32>
    %cst_21 = arith.constant dense<0.000000e+00> : vector<16xf32>
    %39 = vector.multi_reduction <add>, %30, %cst_21 [1] : vector<16x32xf32> to vector<16xf32>
    %40 = vector.shape_cast %39 : vector<16xf32> to vector<16x1xf32>
    %cst_22 = arith.constant 3.200000e+01 : f32
    %41 = vector.broadcast %cst_22 : f32 to vector<16x1xf32>
    %42 = arith.divf %40, %41 : vector<16x1xf32>
    %43 = vector.broadcast %42 : vector<16x1xf32> to vector<16x32xf32>
    %44 = arith.subf %30, %43 : vector<16x32xf32>
    %45 = arith.mulf %44, %44 : vector<16x32xf32>
    %cst_23 = arith.constant dense<0.000000e+00> : vector<16xf32>
    %46 = vector.multi_reduction <add>, %45, %cst_23 [1] : vector<16x32xf32> to vector<16xf32>
    %47 = vector.shape_cast %46 : vector<16xf32> to vector<16x1xf32>
    %cst_24 = arith.constant 3.200000e+01 : f32
    %48 = vector.broadcast %cst_24 : f32 to vector<16x1xf32>
    %49 = arith.divf %47, %48 : vector<16x1xf32>
    %50 = vector.broadcast %42 : vector<16x1xf32> to vector<16x32xf32>
    %51 = arith.subf %30, %50 : vector<16x32xf32>
    %cst_25 = arith.constant 9.99999974E-6 : f32
    %52 = vector.broadcast %cst_25 : f32 to vector<16x1xf32>
    %53 = arith.addf %49, %52 : vector<16x1xf32>
    %54 = math.rsqrt %53 : vector<16x1xf32>
    %55 = vector.broadcast %54 : vector<16x1xf32> to vector<16x32xf32>
    %56 = arith.mulf %51, %55 : vector<16x32xf32>
    %57 = vector.broadcast %37 : vector<1x32xf32> to vector<16x32xf32>
    %58 = arith.mulf %56, %57 : vector<16x32xf32>
    %59 = vector.broadcast %38 : vector<1x32xf32> to vector<16x32xf32>
    %60 = arith.addf %58, %59 : vector<16x32xf32>
    %c0_26 = arith.constant 0 : index
    %c0_27 = arith.constant 0 : index
    %c0_28 = arith.constant 0 : index
    %61 = vector.load %arg9[%c0_26, %c0_27, %c0_28] : memref<2x32x96xf32, #tpu.memory_space<vmem>>, vector<1x32x96xf32>
    %62 = vector.shape_cast %61 : vector<1x32x96xf32> to vector<32x96xf32>
    %cst_29 = arith.constant dense<0.000000e+00> : vector<16x96xf32>
    %63 = tpu.matmul %60, %62, %cst_29 {dimension_numbers = #tpu.dot_dimension_numbers<[1], [0], [0], [1], [0, 0, 1, 1], [], []>, precision = #tpu.contract_precision<fp32>} : vector<16x32xf32>, vector<32x96xf32>, vector<16x96xf32> -> vector<16x96xf32>
    %c0_30 = arith.constant 0 : index
    %c0_31 = arith.constant 0 : index
    %64 = vector.load %arg10[%c0_30, %c0_31] : memref<2x96xf32, #tpu.memory_space<vmem>>, vector<1x96xf32>
    %65 = vector.broadcast %64 : vector<1x96xf32> to vector<16x96xf32>
    %66 = arith.addf %63, %65 : vector<16x96xf32>
    %c0_32 = arith.constant 0 : index
    %c0_33 = arith.constant 0 : index
    %c0_34 = arith.constant 0 : index
    %67 = vector.load %arg11[%c0_32, %c0_33, %c0_34] : memref<2x32x32xf32, #tpu.memory_space<vmem>>, vector<1x32x32xf32>
    %68 = vector.shape_cast %67 : vector<1x32x32xf32> to vector<32x32xf32>
    %69 = vector.extract_strided_slice %66 {offsets = [0, 0], sizes = [8, 8], strides = [1, 1]} : vector<16x96xf32> to vector<8x8xf32>
    %70 = vector.extract_strided_slice %66 {offsets = [0, 32], sizes = [8, 8], strides = [1, 1]} : vector<16x96xf32> to vector<8x8xf32>
    %71 = vector.extract_strided_slice %66 {offsets = [0, 64], sizes = [8, 8], strides = [1, 1]} : vector<16x96xf32> to vector<8x8xf32>
    %cst_35 = arith.constant dense<0.000000e+00> : vector<8x8xf32>
    %72 = tpu.matmul %69, %70, %cst_35 {dimension_numbers = #tpu.dot_dimension_numbers<[1], [1], [0], [0], [0, 0, 1, 0], [], []>, precision = #tpu.contract_precision<fp32>} : vector<8x8xf32>, vector<8x8xf32>, vector<8x8xf32> -> vector<8x8xf32>
    %cst_36 = arith.constant 0.353553385 : f32
    %73 = vector.broadcast %cst_36 : f32 to vector<8x8xf32>
    %74 = arith.mulf %72, %73 : vector<8x8xf32>
    %75 = arith.addf %74, %36 : vector<8x8xf32>
    %76 = math.exp %75 : vector<8x8xf32>
    %cst_37 = arith.constant dense<0.000000e+00> : vector<8xf32>
    %77 = vector.multi_reduction <add>, %76, %cst_37 [1] : vector<8x8xf32> to vector<8xf32>
    %78 = vector.shape_cast %77 : vector<8xf32> to vector<8x1xf32>
    %cst_38 = arith.constant 1.000000e+00 : f32
    %79 = vector.broadcast %cst_38 : f32 to vector<8x1xf32>
    %80 = arith.divf %79, %78 : vector<8x1xf32>
    %81 = vector.broadcast %80 : vector<8x1xf32> to vector<8x8xf32>
    %82 = arith.mulf %76, %81 : vector<8x8xf32>
    %cst_39 = arith.constant dense<0.000000e+00> : vector<8x8xf32>
    %83 = tpu.matmul %82, %71, %cst_39 {dimension_numbers = #tpu.dot_dimension_numbers<[1], [0], [0], [1], [0, 0, 1, 1], [], []>, precision = #tpu.contract_precision<fp32>} : vector<8x8xf32>, vector<8x8xf32>, vector<8x8xf32> -> vector<8x8xf32>
    %84 = vector.extract_strided_slice %68 {offsets = [0, 0], sizes = [8, 32], strides = [1, 1]} : vector<32x32xf32> to vector<8x32xf32>
    %cst_40 = arith.constant dense<0.000000e+00> : vector<8x32xf32>
    %85 = tpu.matmul %83, %84, %cst_40 {dimension_numbers = #tpu.dot_dimension_numbers<[1], [0], [0], [1], [0, 0, 1, 1], [], []>, precision = #tpu.contract_precision<fp32>} : vector<8x8xf32>, vector<8x32xf32>, vector<8x32xf32> -> vector<8x32xf32>
    %86 = vector.extract_strided_slice %66 {offsets = [0, 8], sizes = [8, 8], strides = [1, 1]} : vector<16x96xf32> to vector<8x8xf32>
    %87 = vector.extract_strided_slice %66 {offsets = [0, 40], sizes = [8, 8], strides = [1, 1]} : vector<16x96xf32> to vector<8x8xf32>
    %88 = vector.extract_strided_slice %66 {offsets = [0, 72], sizes = [8, 8], strides = [1, 1]} : vector<16x96xf32> to vector<8x8xf32>
    %cst_41 = arith.constant dense<0.000000e+00> : vector<8x8xf32>
    %89 = tpu.matmul %86, %87, %cst_41 {dimension_numbers = #tpu.dot_dimension_numbers<[1], [1], [0], [0], [0, 0, 1, 0], [], []>, precision = #tpu.contract_precision<fp32>} : vector<8x8xf32>, vector<8x8xf32>, vector<8x8xf32> -> vector<8x8xf32>
    %cst_42 = arith.constant 0.353553385 : f32
    %90 = vector.broadcast %cst_42 : f32 to vector<8x8xf32>
    %91 = arith.mulf %89, %90 : vector<8x8xf32>
    %92 = arith.addf %91, %36 : vector<8x8xf32>
    %93 = math.exp %92 : vector<8x8xf32>
    %cst_43 = arith.constant dense<0.000000e+00> : vector<8xf32>
    %94 = vector.multi_reduction <add>, %93, %cst_43 [1] : vector<8x8xf32> to vector<8xf32>
    %95 = vector.shape_cast %94 : vector<8xf32> to vector<8x1xf32>
    %cst_44 = arith.constant 1.000000e+00 : f32
    %96 = vector.broadcast %cst_44 : f32 to vector<8x1xf32>
    %97 = arith.divf %96, %95 : vector<8x1xf32>
    %98 = vector.broadcast %97 : vector<8x1xf32> to vector<8x8xf32>
    %99 = arith.mulf %93, %98 : vector<8x8xf32>
    %cst_45 = arith.constant dense<0.000000e+00> : vector<8x8xf32>
    %100 = tpu.matmul %99, %88, %cst_45 {dimension_numbers = #tpu.dot_dimension_numbers<[1], [0], [0], [1], [0, 0, 1, 1], [], []>, precision = #tpu.contract_precision<fp32>} : vector<8x8xf32>, vector<8x8xf32>, vector<8x8xf32> -> vector<8x8xf32>
    %101 = vector.extract_strided_slice %68 {offsets = [8, 0], sizes = [8, 32], strides = [1, 1]} : vector<32x32xf32> to vector<8x32xf32>
    %cst_46 = arith.constant dense<0.000000e+00> : vector<8x32xf32>
    %102 = tpu.matmul %100, %101, %cst_46 {dimension_numbers = #tpu.dot_dimension_numbers<[1], [0], [0], [1], [0, 0, 1, 1], [], []>, precision = #tpu.contract_precision<fp32>} : vector<8x8xf32>, vector<8x32xf32>, vector<8x32xf32> -> vector<8x32xf32>
    %103 = arith.addf %85, %102 : vector<8x32xf32>
    %104 = vector.extract_strided_slice %66 {offsets = [0, 16], sizes = [8, 8], strides = [1, 1]} : vector<16x96xf32> to vector<8x8xf32>
    %105 = vector.extract_strided_slice %66 {offsets = [0, 48], sizes = [8, 8], strides = [1, 1]} : vector<16x96xf32> to vector<8x8xf32>
    %106 = vector.extract_strided_slice %66 {offsets = [0, 80], sizes = [8, 8], strides = [1, 1]} : vector<16x96xf32> to vector<8x8xf32>
    %cst_47 = arith.constant dense<0.000000e+00> : vector<8x8xf32>
    %107 = tpu.matmul %104, %105, %cst_47 {dimension_numbers = #tpu.dot_dimension_numbers<[1], [1], [0], [0], [0, 0, 1, 0], [], []>, precision = #tpu.contract_precision<fp32>} : vector<8x8xf32>, vector<8x8xf32>, vector<8x8xf32> -> vector<8x8xf32>
    %cst_48 = arith.constant 0.353553385 : f32
    %108 = vector.broadcast %cst_48 : f32 to vector<8x8xf32>
    %109 = arith.mulf %107, %108 : vector<8x8xf32>
    %110 = arith.addf %109, %36 : vector<8x8xf32>
    %111 = math.exp %110 : vector<8x8xf32>
    %cst_49 = arith.constant dense<0.000000e+00> : vector<8xf32>
    %112 = vector.multi_reduction <add>, %111, %cst_49 [1] : vector<8x8xf32> to vector<8xf32>
    %113 = vector.shape_cast %112 : vector<8xf32> to vector<8x1xf32>
    %cst_50 = arith.constant 1.000000e+00 : f32
    %114 = vector.broadcast %cst_50 : f32 to vector<8x1xf32>
    %115 = arith.divf %114, %113 : vector<8x1xf32>
    %116 = vector.broadcast %115 : vector<8x1xf32> to vector<8x8xf32>
    %117 = arith.mulf %111, %116 : vector<8x8xf32>
    %cst_51 = arith.constant dense<0.000000e+00> : vector<8x8xf32>
    %118 = tpu.matmul %117, %106, %cst_51 {dimension_numbers = #tpu.dot_dimension_numbers<[1], [0], [0], [1], [0, 0, 1, 1], [], []>, precision = #tpu.contract_precision<fp32>} : vector<8x8xf32>, vector<8x8xf32>, vector<8x8xf32> -> vector<8x8xf32>
    %119 = vector.extract_strided_slice %68 {offsets = [16, 0], sizes = [8, 32], strides = [1, 1]} : vector<32x32xf32> to vector<8x32xf32>
    %cst_52 = arith.constant dense<0.000000e+00> : vector<8x32xf32>
    %120 = tpu.matmul %118, %119, %cst_52 {dimension_numbers = #tpu.dot_dimension_numbers<[1], [0], [0], [1], [0, 0, 1, 1], [], []>, precision = #tpu.contract_precision<fp32>} : vector<8x8xf32>, vector<8x32xf32>, vector<8x32xf32> -> vector<8x32xf32>
    %121 = arith.addf %103, %120 : vector<8x32xf32>
    %122 = vector.extract_strided_slice %66 {offsets = [0, 24], sizes = [8, 8], strides = [1, 1]} : vector<16x96xf32> to vector<8x8xf32>
    %123 = vector.extract_strided_slice %66 {offsets = [0, 56], sizes = [8, 8], strides = [1, 1]} : vector<16x96xf32> to vector<8x8xf32>
    %124 = vector.extract_strided_slice %66 {offsets = [0, 88], sizes = [8, 8], strides = [1, 1]} : vector<16x96xf32> to vector<8x8xf32>
    %cst_53 = arith.constant dense<0.000000e+00> : vector<8x8xf32>
    %125 = tpu.matmul %122, %123, %cst_53 {dimension_numbers = #tpu.dot_dimension_numbers<[1], [1], [0], [0], [0, 0, 1, 0], [], []>, precision = #tpu.contract_precision<fp32>} : vector<8x8xf32>, vector<8x8xf32>, vector<8x8xf32> -> vector<8x8xf32>
    %cst_54 = arith.constant 0.353553385 : f32
    %126 = vector.broadcast %cst_54 : f32 to vector<8x8xf32>
    %127 = arith.mulf %125, %126 : vector<8x8xf32>
    %128 = arith.addf %127, %36 : vector<8x8xf32>
    %129 = math.exp %128 : vector<8x8xf32>
    %cst_55 = arith.constant dense<0.000000e+00> : vector<8xf32>
    %130 = vector.multi_reduction <add>, %129, %cst_55 [1] : vector<8x8xf32> to vector<8xf32>
    %131 = vector.shape_cast %130 : vector<8xf32> to vector<8x1xf32>
    %cst_56 = arith.constant 1.000000e+00 : f32
    %132 = vector.broadcast %cst_56 : f32 to vector<8x1xf32>
    %133 = arith.divf %132, %131 : vector<8x1xf32>
    %134 = vector.broadcast %133 : vector<8x1xf32> to vector<8x8xf32>
    %135 = arith.mulf %129, %134 : vector<8x8xf32>
    %cst_57 = arith.constant dense<0.000000e+00> : vector<8x8xf32>
    %136 = tpu.matmul %135, %124, %cst_57 {dimension_numbers = #tpu.dot_dimension_numbers<[1], [0], [0], [1], [0, 0, 1, 1], [], []>, precision = #tpu.contract_precision<fp32>} : vector<8x8xf32>, vector<8x8xf32>, vector<8x8xf32> -> vector<8x8xf32>
    %137 = vector.extract_strided_slice %68 {offsets = [24, 0], sizes = [8, 32], strides = [1, 1]} : vector<32x32xf32> to vector<8x32xf32>
    %cst_58 = arith.constant dense<0.000000e+00> : vector<8x32xf32>
    %138 = tpu.matmul %136, %137, %cst_58 {dimension_numbers = #tpu.dot_dimension_numbers<[1], [0], [0], [1], [0, 0, 1, 1], [], []>, precision = #tpu.contract_precision<fp32>} : vector<8x8xf32>, vector<8x32xf32>, vector<8x32xf32> -> vector<8x32xf32>
    %139 = arith.addf %121, %138 : vector<8x32xf32>
    %140 = vector.extract_strided_slice %66 {offsets = [8, 0], sizes = [8, 8], strides = [1, 1]} : vector<16x96xf32> to vector<8x8xf32>
    %141 = vector.extract_strided_slice %66 {offsets = [8, 32], sizes = [8, 8], strides = [1, 1]} : vector<16x96xf32> to vector<8x8xf32>
    %142 = vector.extract_strided_slice %66 {offsets = [8, 64], sizes = [8, 8], strides = [1, 1]} : vector<16x96xf32> to vector<8x8xf32>
    %cst_59 = arith.constant dense<0.000000e+00> : vector<8x8xf32>
    %143 = tpu.matmul %140, %141, %cst_59 {dimension_numbers = #tpu.dot_dimension_numbers<[1], [1], [0], [0], [0, 0, 1, 0], [], []>, precision = #tpu.contract_precision<fp32>} : vector<8x8xf32>, vector<8x8xf32>, vector<8x8xf32> -> vector<8x8xf32>
    %cst_60 = arith.constant 0.353553385 : f32
    %144 = vector.broadcast %cst_60 : f32 to vector<8x8xf32>
    %145 = arith.mulf %143, %144 : vector<8x8xf32>
    %146 = arith.addf %145, %36 : vector<8x8xf32>
    %147 = math.exp %146 : vector<8x8xf32>
    %cst_61 = arith.constant dense<0.000000e+00> : vector<8xf32>
    %148 = vector.multi_reduction <add>, %147, %cst_61 [1] : vector<8x8xf32> to vector<8xf32>
    %149 = vector.shape_cast %148 : vector<8xf32> to vector<8x1xf32>
    %cst_62 = arith.constant 1.000000e+00 : f32
    %150 = vector.broadcast %cst_62 : f32 to vector<8x1xf32>
    %151 = arith.divf %150, %149 : vector<8x1xf32>
    %152 = vector.broadcast %151 : vector<8x1xf32> to vector<8x8xf32>
    %153 = arith.mulf %147, %152 : vector<8x8xf32>
    %cst_63 = arith.constant dense<0.000000e+00> : vector<8x8xf32>
    %154 = tpu.matmul %153, %142, %cst_63 {dimension_numbers = #tpu.dot_dimension_numbers<[1], [0], [0], [1], [0, 0, 1, 1], [], []>, precision = #tpu.contract_precision<fp32>} : vector<8x8xf32>, vector<8x8xf32>, vector<8x8xf32> -> vector<8x8xf32>
    %155 = vector.extract_strided_slice %68 {offsets = [0, 0], sizes = [8, 32], strides = [1, 1]} : vector<32x32xf32> to vector<8x32xf32>
    %cst_64 = arith.constant dense<0.000000e+00> : vector<8x32xf32>
    %156 = tpu.matmul %154, %155, %cst_64 {dimension_numbers = #tpu.dot_dimension_numbers<[1], [0], [0], [1], [0, 0, 1, 1], [], []>, precision = #tpu.contract_precision<fp32>} : vector<8x8xf32>, vector<8x32xf32>, vector<8x32xf32> -> vector<8x32xf32>
    %157 = vector.extract_strided_slice %66 {offsets = [8, 8], sizes = [8, 8], strides = [1, 1]} : vector<16x96xf32> to vector<8x8xf32>
    %158 = vector.extract_strided_slice %66 {offsets = [8, 40], sizes = [8, 8], strides = [1, 1]} : vector<16x96xf32> to vector<8x8xf32>
    %159 = vector.extract_strided_slice %66 {offsets = [8, 72], sizes = [8, 8], strides = [1, 1]} : vector<16x96xf32> to vector<8x8xf32>
    %cst_65 = arith.constant dense<0.000000e+00> : vector<8x8xf32>
    %160 = tpu.matmul %157, %158, %cst_65 {dimension_numbers = #tpu.dot_dimension_numbers<[1], [1], [0], [0], [0, 0, 1, 0], [], []>, precision = #tpu.contract_precision<fp32>} : vector<8x8xf32>, vector<8x8xf32>, vector<8x8xf32> -> vector<8x8xf32>
    %cst_66 = arith.constant 0.353553385 : f32
    %161 = vector.broadcast %cst_66 : f32 to vector<8x8xf32>
    %162 = arith.mulf %160, %161 : vector<8x8xf32>
    %163 = arith.addf %162, %36 : vector<8x8xf32>
    %164 = math.exp %163 : vector<8x8xf32>
    %cst_67 = arith.constant dense<0.000000e+00> : vector<8xf32>
    %165 = vector.multi_reduction <add>, %164, %cst_67 [1] : vector<8x8xf32> to vector<8xf32>
    %166 = vector.shape_cast %165 : vector<8xf32> to vector<8x1xf32>
    %cst_68 = arith.constant 1.000000e+00 : f32
    %167 = vector.broadcast %cst_68 : f32 to vector<8x1xf32>
    %168 = arith.divf %167, %166 : vector<8x1xf32>
    %169 = vector.broadcast %168 : vector<8x1xf32> to vector<8x8xf32>
    %170 = arith.mulf %164, %169 : vector<8x8xf32>
    %cst_69 = arith.constant dense<0.000000e+00> : vector<8x8xf32>
    %171 = tpu.matmul %170, %159, %cst_69 {dimension_numbers = #tpu.dot_dimension_numbers<[1], [0], [0], [1], [0, 0, 1, 1], [], []>, precision = #tpu.contract_precision<fp32>} : vector<8x8xf32>, vector<8x8xf32>, vector<8x8xf32> -> vector<8x8xf32>
    %172 = vector.extract_strided_slice %68 {offsets = [8, 0], sizes = [8, 32], strides = [1, 1]} : vector<32x32xf32> to vector<8x32xf32>
    %cst_70 = arith.constant dense<0.000000e+00> : vector<8x32xf32>
    %173 = tpu.matmul %171, %172, %cst_70 {dimension_numbers = #tpu.dot_dimension_numbers<[1], [0], [0], [1], [0, 0, 1, 1], [], []>, precision = #tpu.contract_precision<fp32>} : vector<8x8xf32>, vector<8x32xf32>, vector<8x32xf32> -> vector<8x32xf32>
    %174 = arith.addf %156, %173 : vector<8x32xf32>
    %175 = vector.extract_strided_slice %66 {offsets = [8, 16], sizes = [8, 8], strides = [1, 1]} : vector<16x96xf32> to vector<8x8xf32>
    %176 = vector.extract_strided_slice %66 {offsets = [8, 48], sizes = [8, 8], strides = [1, 1]} : vector<16x96xf32> to vector<8x8xf32>
    %177 = vector.extract_strided_slice %66 {offsets = [8, 80], sizes = [8, 8], strides = [1, 1]} : vector<16x96xf32> to vector<8x8xf32>
    %cst_71 = arith.constant dense<0.000000e+00> : vector<8x8xf32>
    %178 = tpu.matmul %175, %176, %cst_71 {dimension_numbers = #tpu.dot_dimension_numbers<[1], [1], [0], [0], [0, 0, 1, 0], [], []>, precision = #tpu.contract_precision<fp32>} : vector<8x8xf32>, vector<8x8xf32>, vector<8x8xf32> -> vector<8x8xf32>
    %cst_72 = arith.constant 0.353553385 : f32
    %179 = vector.broadcast %cst_72 : f32 to vector<8x8xf32>
    %180 = arith.mulf %178, %179 : vector<8x8xf32>
    %181 = arith.addf %180, %36 : vector<8x8xf32>
    %182 = math.exp %181 : vector<8x8xf32>
    %cst_73 = arith.constant dense<0.000000e+00> : vector<8xf32>
    %183 = vector.multi_reduction <add>, %182, %cst_73 [1] : vector<8x8xf32> to vector<8xf32>
    %184 = vector.shape_cast %183 : vector<8xf32> to vector<8x1xf32>
    %cst_74 = arith.constant 1.000000e+00 : f32
    %185 = vector.broadcast %cst_74 : f32 to vector<8x1xf32>
    %186 = arith.divf %185, %184 : vector<8x1xf32>
    %187 = vector.broadcast %186 : vector<8x1xf32> to vector<8x8xf32>
    %188 = arith.mulf %182, %187 : vector<8x8xf32>
    %cst_75 = arith.constant dense<0.000000e+00> : vector<8x8xf32>
    %189 = tpu.matmul %188, %177, %cst_75 {dimension_numbers = #tpu.dot_dimension_numbers<[1], [0], [0], [1], [0, 0, 1, 1], [], []>, precision = #tpu.contract_precision<fp32>} : vector<8x8xf32>, vector<8x8xf32>, vector<8x8xf32> -> vector<8x8xf32>
    %190 = vector.extract_strided_slice %68 {offsets = [16, 0], sizes = [8, 32], strides = [1, 1]} : vector<32x32xf32> to vector<8x32xf32>
    %cst_76 = arith.constant dense<0.000000e+00> : vector<8x32xf32>
    %191 = tpu.matmul %189, %190, %cst_76 {dimension_numbers = #tpu.dot_dimension_numbers<[1], [0], [0], [1], [0, 0, 1, 1], [], []>, precision = #tpu.contract_precision<fp32>} : vector<8x8xf32>, vector<8x32xf32>, vector<8x32xf32> -> vector<8x32xf32>
    %192 = arith.addf %174, %191 : vector<8x32xf32>
    %193 = vector.extract_strided_slice %66 {offsets = [8, 24], sizes = [8, 8], strides = [1, 1]} : vector<16x96xf32> to vector<8x8xf32>
    %194 = vector.extract_strided_slice %66 {offsets = [8, 56], sizes = [8, 8], strides = [1, 1]} : vector<16x96xf32> to vector<8x8xf32>
    %195 = vector.extract_strided_slice %66 {offsets = [8, 88], sizes = [8, 8], strides = [1, 1]} : vector<16x96xf32> to vector<8x8xf32>
    %cst_77 = arith.constant dense<0.000000e+00> : vector<8x8xf32>
    %196 = tpu.matmul %193, %194, %cst_77 {dimension_numbers = #tpu.dot_dimension_numbers<[1], [1], [0], [0], [0, 0, 1, 0], [], []>, precision = #tpu.contract_precision<fp32>} : vector<8x8xf32>, vector<8x8xf32>, vector<8x8xf32> -> vector<8x8xf32>
    %cst_78 = arith.constant 0.353553385 : f32
    %197 = vector.broadcast %cst_78 : f32 to vector<8x8xf32>
    %198 = arith.mulf %196, %197 : vector<8x8xf32>
    %199 = arith.addf %198, %36 : vector<8x8xf32>
    %200 = math.exp %199 : vector<8x8xf32>
    %cst_79 = arith.constant dense<0.000000e+00> : vector<8xf32>
    %201 = vector.multi_reduction <add>, %200, %cst_79 [1] : vector<8x8xf32> to vector<8xf32>
    %202 = vector.shape_cast %201 : vector<8xf32> to vector<8x1xf32>
    %cst_80 = arith.constant 1.000000e+00 : f32
    %203 = vector.broadcast %cst_80 : f32 to vector<8x1xf32>
    %204 = arith.divf %203, %202 : vector<8x1xf32>
    %205 = vector.broadcast %204 : vector<8x1xf32> to vector<8x8xf32>
    %206 = arith.mulf %200, %205 : vector<8x8xf32>
    %cst_81 = arith.constant dense<0.000000e+00> : vector<8x8xf32>
    %207 = tpu.matmul %206, %195, %cst_81 {dimension_numbers = #tpu.dot_dimension_numbers<[1], [0], [0], [1], [0, 0, 1, 1], [], []>, precision = #tpu.contract_precision<fp32>} : vector<8x8xf32>, vector<8x8xf32>, vector<8x8xf32> -> vector<8x8xf32>
    %208 = vector.extract_strided_slice %68 {offsets = [24, 0], sizes = [8, 32], strides = [1, 1]} : vector<32x32xf32> to vector<8x32xf32>
    %cst_82 = arith.constant dense<0.000000e+00> : vector<8x32xf32>
    %209 = tpu.matmul %207, %208, %cst_82 {dimension_numbers = #tpu.dot_dimension_numbers<[1], [0], [0], [1], [0, 0, 1, 1], [], []>, precision = #tpu.contract_precision<fp32>} : vector<8x8xf32>, vector<8x32xf32>, vector<8x32xf32> -> vector<8x32xf32>
    %210 = arith.addf %192, %209 : vector<8x32xf32>
    %211 = tpu.concatenate %139, %210 in 0 : vector<8x32xf32>, vector<8x32xf32> -> vector<16x32xf32>
    %212 = arith.addf %30, %211 : vector<16x32xf32>
    %c0_83 = arith.constant 0 : index
    %c0_84 = arith.constant 0 : index
    %213 = vector.load %arg12[%c0_83, %c0_84] : memref<2x32xf32, #tpu.memory_space<vmem>>, vector<1x32xf32>
    %214 = vector.broadcast %213 : vector<1x32xf32> to vector<16x32xf32>
    %215 = arith.addf %212, %214 : vector<16x32xf32>
    %c0_85 = arith.constant 0 : index
    %c0_86 = arith.constant 0 : index
    %216 = vector.load %arg13[%c0_85, %c0_86] : memref<2x32xf32, #tpu.memory_space<vmem>>, vector<1x32xf32>
    %c0_87 = arith.constant 0 : index
    %c0_88 = arith.constant 0 : index
    %217 = vector.load %arg14[%c0_87, %c0_88] : memref<2x32xf32, #tpu.memory_space<vmem>>, vector<1x32xf32>
    %cst_89 = arith.constant dense<0.000000e+00> : vector<16xf32>
    %218 = vector.multi_reduction <add>, %215, %cst_89 [1] : vector<16x32xf32> to vector<16xf32>
    %219 = vector.shape_cast %218 : vector<16xf32> to vector<16x1xf32>
    %cst_90 = arith.constant 3.200000e+01 : f32
    %220 = vector.broadcast %cst_90 : f32 to vector<16x1xf32>
    %221 = arith.divf %219, %220 : vector<16x1xf32>
    %222 = vector.broadcast %221 : vector<16x1xf32> to vector<16x32xf32>
    %223 = arith.subf %215, %222 : vector<16x32xf32>
    %224 = arith.mulf %223, %223 : vector<16x32xf32>
    %cst_91 = arith.constant dense<0.000000e+00> : vector<16xf32>
    %225 = vector.multi_reduction <add>, %224, %cst_91 [1] : vector<16x32xf32> to vector<16xf32>
    %226 = vector.shape_cast %225 : vector<16xf32> to vector<16x1xf32>
    %cst_92 = arith.constant 3.200000e+01 : f32
    %227 = vector.broadcast %cst_92 : f32 to vector<16x1xf32>
    %228 = arith.divf %226, %227 : vector<16x1xf32>
    %229 = vector.broadcast %221 : vector<16x1xf32> to vector<16x32xf32>
    %230 = arith.subf %215, %229 : vector<16x32xf32>
    %cst_93 = arith.constant 9.99999974E-6 : f32
    %231 = vector.broadcast %cst_93 : f32 to vector<16x1xf32>
    %232 = arith.addf %228, %231 : vector<16x1xf32>
    %233 = math.rsqrt %232 : vector<16x1xf32>
    %234 = vector.broadcast %233 : vector<16x1xf32> to vector<16x32xf32>
    %235 = arith.mulf %230, %234 : vector<16x32xf32>
    %236 = vector.broadcast %216 : vector<1x32xf32> to vector<16x32xf32>
    %237 = arith.mulf %235, %236 : vector<16x32xf32>
    %238 = vector.broadcast %217 : vector<1x32xf32> to vector<16x32xf32>
    %239 = arith.addf %237, %238 : vector<16x32xf32>
    %c0_94 = arith.constant 0 : index
    %c0_95 = arith.constant 0 : index
    %c0_96 = arith.constant 0 : index
    %240 = vector.load %arg15[%c0_94, %c0_95, %c0_96] : memref<2x32x32xf32, #tpu.memory_space<vmem>>, vector<1x32x32xf32>
    %241 = vector.shape_cast %240 : vector<1x32x32xf32> to vector<32x32xf32>
    %cst_97 = arith.constant dense<0.000000e+00> : vector<16x32xf32>
    %242 = tpu.matmul %239, %241, %cst_97 {dimension_numbers = #tpu.dot_dimension_numbers<[1], [0], [0], [1], [0, 0, 1, 1], [], []>, precision = #tpu.contract_precision<fp32>} : vector<16x32xf32>, vector<32x32xf32>, vector<16x32xf32> -> vector<16x32xf32>
    %243 = arith.addf %215, %242 : vector<16x32xf32>
    %c0_98 = arith.constant 0 : index
    %c0_99 = arith.constant 0 : index
    %244 = vector.load %arg16[%c0_98, %c0_99] : memref<2x32xf32, #tpu.memory_space<vmem>>, vector<1x32xf32>
    %245 = vector.broadcast %244 : vector<1x32xf32> to vector<16x32xf32>
    %246 = arith.addf %243, %245 : vector<16x32xf32>
    %c1 = arith.constant 1 : index
    %c0_100 = arith.constant 0 : index
    %247 = vector.load %arg7[%c1, %c0_100] : memref<2x32xf32, #tpu.memory_space<vmem>>, vector<1x32xf32>
    %c1_101 = arith.constant 1 : index
    %c0_102 = arith.constant 0 : index
    %248 = vector.load %arg8[%c1_101, %c0_102] : memref<2x32xf32, #tpu.memory_space<vmem>>, vector<1x32xf32>
    %cst_103 = arith.constant dense<0.000000e+00> : vector<16xf32>
    %249 = vector.multi_reduction <add>, %246, %cst_103 [1] : vector<16x32xf32> to vector<16xf32>
    %250 = vector.shape_cast %249 : vector<16xf32> to vector<16x1xf32>
    %cst_104 = arith.constant 3.200000e+01 : f32
    %251 = vector.broadcast %cst_104 : f32 to vector<16x1xf32>
    %252 = arith.divf %250, %251 : vector<16x1xf32>
    %253 = vector.broadcast %252 : vector<16x1xf32> to vector<16x32xf32>
    %254 = arith.subf %246, %253 : vector<16x32xf32>
    %255 = arith.mulf %254, %254 : vector<16x32xf32>
    %cst_105 = arith.constant dense<0.000000e+00> : vector<16xf32>
    %256 = vector.multi_reduction <add>, %255, %cst_105 [1] : vector<16x32xf32> to vector<16xf32>
    %257 = vector.shape_cast %256 : vector<16xf32> to vector<16x1xf32>
    %cst_106 = arith.constant 3.200000e+01 : f32
    %258 = vector.broadcast %cst_106 : f32 to vector<16x1xf32>
    %259 = arith.divf %257, %258 : vector<16x1xf32>
    %260 = vector.broadcast %252 : vector<16x1xf32> to vector<16x32xf32>
    %261 = arith.subf %246, %260 : vector<16x32xf32>
    %cst_107 = arith.constant 9.99999974E-6 : f32
    %262 = vector.broadcast %cst_107 : f32 to vector<16x1xf32>
    %263 = arith.addf %259, %262 : vector<16x1xf32>
    %264 = math.rsqrt %263 : vector<16x1xf32>
    %265 = vector.broadcast %264 : vector<16x1xf32> to vector<16x32xf32>
    %266 = arith.mulf %261, %265 : vector<16x32xf32>
    %267 = vector.broadcast %247 : vector<1x32xf32> to vector<16x32xf32>
    %268 = arith.mulf %266, %267 : vector<16x32xf32>
    %269 = vector.broadcast %248 : vector<1x32xf32> to vector<16x32xf32>
    %270 = arith.addf %268, %269 : vector<16x32xf32>
    %c1_108 = arith.constant 1 : index
    %c0_109 = arith.constant 0 : index
    %c0_110 = arith.constant 0 : index
    %271 = vector.load %arg9[%c1_108, %c0_109, %c0_110] : memref<2x32x96xf32, #tpu.memory_space<vmem>>, vector<1x32x96xf32>
    %272 = vector.shape_cast %271 : vector<1x32x96xf32> to vector<32x96xf32>
    %cst_111 = arith.constant dense<0.000000e+00> : vector<16x96xf32>
    %273 = tpu.matmul %270, %272, %cst_111 {dimension_numbers = #tpu.dot_dimension_numbers<[1], [0], [0], [1], [0, 0, 1, 1], [], []>, precision = #tpu.contract_precision<fp32>} : vector<16x32xf32>, vector<32x96xf32>, vector<16x96xf32> -> vector<16x96xf32>
    %c1_112 = arith.constant 1 : index
    %c0_113 = arith.constant 0 : index
    %274 = vector.load %arg10[%c1_112, %c0_113] : memref<2x96xf32, #tpu.memory_space<vmem>>, vector<1x96xf32>
    %275 = vector.broadcast %274 : vector<1x96xf32> to vector<16x96xf32>
    %276 = arith.addf %273, %275 : vector<16x96xf32>
    %c1_114 = arith.constant 1 : index
    %c0_115 = arith.constant 0 : index
    %c0_116 = arith.constant 0 : index
    %277 = vector.load %arg11[%c1_114, %c0_115, %c0_116] : memref<2x32x32xf32, #tpu.memory_space<vmem>>, vector<1x32x32xf32>
    %278 = vector.shape_cast %277 : vector<1x32x32xf32> to vector<32x32xf32>
    %279 = vector.extract_strided_slice %276 {offsets = [0, 0], sizes = [8, 8], strides = [1, 1]} : vector<16x96xf32> to vector<8x8xf32>
    %280 = vector.extract_strided_slice %276 {offsets = [0, 32], sizes = [8, 8], strides = [1, 1]} : vector<16x96xf32> to vector<8x8xf32>
    %281 = vector.extract_strided_slice %276 {offsets = [0, 64], sizes = [8, 8], strides = [1, 1]} : vector<16x96xf32> to vector<8x8xf32>
    %cst_117 = arith.constant dense<0.000000e+00> : vector<8x8xf32>
    %282 = tpu.matmul %279, %280, %cst_117 {dimension_numbers = #tpu.dot_dimension_numbers<[1], [1], [0], [0], [0, 0, 1, 0], [], []>, precision = #tpu.contract_precision<fp32>} : vector<8x8xf32>, vector<8x8xf32>, vector<8x8xf32> -> vector<8x8xf32>
    %cst_118 = arith.constant 0.353553385 : f32
    %283 = vector.broadcast %cst_118 : f32 to vector<8x8xf32>
    %284 = arith.mulf %282, %283 : vector<8x8xf32>
    %285 = arith.addf %284, %36 : vector<8x8xf32>
    %286 = math.exp %285 : vector<8x8xf32>
    %cst_119 = arith.constant dense<0.000000e+00> : vector<8xf32>
    %287 = vector.multi_reduction <add>, %286, %cst_119 [1] : vector<8x8xf32> to vector<8xf32>
    %288 = vector.shape_cast %287 : vector<8xf32> to vector<8x1xf32>
    %cst_120 = arith.constant 1.000000e+00 : f32
    %289 = vector.broadcast %cst_120 : f32 to vector<8x1xf32>
    %290 = arith.divf %289, %288 : vector<8x1xf32>
    %291 = vector.broadcast %290 : vector<8x1xf32> to vector<8x8xf32>
    %292 = arith.mulf %286, %291 : vector<8x8xf32>
    %cst_121 = arith.constant dense<0.000000e+00> : vector<8x8xf32>
    %293 = tpu.matmul %292, %281, %cst_121 {dimension_numbers = #tpu.dot_dimension_numbers<[1], [0], [0], [1], [0, 0, 1, 1], [], []>, precision = #tpu.contract_precision<fp32>} : vector<8x8xf32>, vector<8x8xf32>, vector<8x8xf32> -> vector<8x8xf32>
    %294 = vector.extract_strided_slice %278 {offsets = [0, 0], sizes = [8, 32], strides = [1, 1]} : vector<32x32xf32> to vector<8x32xf32>
    %cst_122 = arith.constant dense<0.000000e+00> : vector<8x32xf32>
    %295 = tpu.matmul %293, %294, %cst_122 {dimension_numbers = #tpu.dot_dimension_numbers<[1], [0], [0], [1], [0, 0, 1, 1], [], []>, precision = #tpu.contract_precision<fp32>} : vector<8x8xf32>, vector<8x32xf32>, vector<8x32xf32> -> vector<8x32xf32>
    %296 = vector.extract_strided_slice %276 {offsets = [0, 8], sizes = [8, 8], strides = [1, 1]} : vector<16x96xf32> to vector<8x8xf32>
    %297 = vector.extract_strided_slice %276 {offsets = [0, 40], sizes = [8, 8], strides = [1, 1]} : vector<16x96xf32> to vector<8x8xf32>
    %298 = vector.extract_strided_slice %276 {offsets = [0, 72], sizes = [8, 8], strides = [1, 1]} : vector<16x96xf32> to vector<8x8xf32>
    %cst_123 = arith.constant dense<0.000000e+00> : vector<8x8xf32>
    %299 = tpu.matmul %296, %297, %cst_123 {dimension_numbers = #tpu.dot_dimension_numbers<[1], [1], [0], [0], [0, 0, 1, 0], [], []>, precision = #tpu.contract_precision<fp32>} : vector<8x8xf32>, vector<8x8xf32>, vector<8x8xf32> -> vector<8x8xf32>
    %cst_124 = arith.constant 0.353553385 : f32
    %300 = vector.broadcast %cst_124 : f32 to vector<8x8xf32>
    %301 = arith.mulf %299, %300 : vector<8x8xf32>
    %302 = arith.addf %301, %36 : vector<8x8xf32>
    %303 = math.exp %302 : vector<8x8xf32>
    %cst_125 = arith.constant dense<0.000000e+00> : vector<8xf32>
    %304 = vector.multi_reduction <add>, %303, %cst_125 [1] : vector<8x8xf32> to vector<8xf32>
    %305 = vector.shape_cast %304 : vector<8xf32> to vector<8x1xf32>
    %cst_126 = arith.constant 1.000000e+00 : f32
    %306 = vector.broadcast %cst_126 : f32 to vector<8x1xf32>
    %307 = arith.divf %306, %305 : vector<8x1xf32>
    %308 = vector.broadcast %307 : vector<8x1xf32> to vector<8x8xf32>
    %309 = arith.mulf %303, %308 : vector<8x8xf32>
    %cst_127 = arith.constant dense<0.000000e+00> : vector<8x8xf32>
    %310 = tpu.matmul %309, %298, %cst_127 {dimension_numbers = #tpu.dot_dimension_numbers<[1], [0], [0], [1], [0, 0, 1, 1], [], []>, precision = #tpu.contract_precision<fp32>} : vector<8x8xf32>, vector<8x8xf32>, vector<8x8xf32> -> vector<8x8xf32>
    %311 = vector.extract_strided_slice %278 {offsets = [8, 0], sizes = [8, 32], strides = [1, 1]} : vector<32x32xf32> to vector<8x32xf32>
    %cst_128 = arith.constant dense<0.000000e+00> : vector<8x32xf32>
    %312 = tpu.matmul %310, %311, %cst_128 {dimension_numbers = #tpu.dot_dimension_numbers<[1], [0], [0], [1], [0, 0, 1, 1], [], []>, precision = #tpu.contract_precision<fp32>} : vector<8x8xf32>, vector<8x32xf32>, vector<8x32xf32> -> vector<8x32xf32>
    %313 = arith.addf %295, %312 : vector<8x32xf32>
    %314 = vector.extract_strided_slice %276 {offsets = [0, 16], sizes = [8, 8], strides = [1, 1]} : vector<16x96xf32> to vector<8x8xf32>
    %315 = vector.extract_strided_slice %276 {offsets = [0, 48], sizes = [8, 8], strides = [1, 1]} : vector<16x96xf32> to vector<8x8xf32>
    %316 = vector.extract_strided_slice %276 {offsets = [0, 80], sizes = [8, 8], strides = [1, 1]} : vector<16x96xf32> to vector<8x8xf32>
    %cst_129 = arith.constant dense<0.000000e+00> : vector<8x8xf32>
    %317 = tpu.matmul %314, %315, %cst_129 {dimension_numbers = #tpu.dot_dimension_numbers<[1], [1], [0], [0], [0, 0, 1, 0], [], []>, precision = #tpu.contract_precision<fp32>} : vector<8x8xf32>, vector<8x8xf32>, vector<8x8xf32> -> vector<8x8xf32>
    %cst_130 = arith.constant 0.353553385 : f32
    %318 = vector.broadcast %cst_130 : f32 to vector<8x8xf32>
    %319 = arith.mulf %317, %318 : vector<8x8xf32>
    %320 = arith.addf %319, %36 : vector<8x8xf32>
    %321 = math.exp %320 : vector<8x8xf32>
    %cst_131 = arith.constant dense<0.000000e+00> : vector<8xf32>
    %322 = vector.multi_reduction <add>, %321, %cst_131 [1] : vector<8x8xf32> to vector<8xf32>
    %323 = vector.shape_cast %322 : vector<8xf32> to vector<8x1xf32>
    %cst_132 = arith.constant 1.000000e+00 : f32
    %324 = vector.broadcast %cst_132 : f32 to vector<8x1xf32>
    %325 = arith.divf %324, %323 : vector<8x1xf32>
    %326 = vector.broadcast %325 : vector<8x1xf32> to vector<8x8xf32>
    %327 = arith.mulf %321, %326 : vector<8x8xf32>
    %cst_133 = arith.constant dense<0.000000e+00> : vector<8x8xf32>
    %328 = tpu.matmul %327, %316, %cst_133 {dimension_numbers = #tpu.dot_dimension_numbers<[1], [0], [0], [1], [0, 0, 1, 1], [], []>, precision = #tpu.contract_precision<fp32>} : vector<8x8xf32>, vector<8x8xf32>, vector<8x8xf32> -> vector<8x8xf32>
    %329 = vector.extract_strided_slice %278 {offsets = [16, 0], sizes = [8, 32], strides = [1, 1]} : vector<32x32xf32> to vector<8x32xf32>
    %cst_134 = arith.constant dense<0.000000e+00> : vector<8x32xf32>
    %330 = tpu.matmul %328, %329, %cst_134 {dimension_numbers = #tpu.dot_dimension_numbers<[1], [0], [0], [1], [0, 0, 1, 1], [], []>, precision = #tpu.contract_precision<fp32>} : vector<8x8xf32>, vector<8x32xf32>, vector<8x32xf32> -> vector<8x32xf32>
    %331 = arith.addf %313, %330 : vector<8x32xf32>
    %332 = vector.extract_strided_slice %276 {offsets = [0, 24], sizes = [8, 8], strides = [1, 1]} : vector<16x96xf32> to vector<8x8xf32>
    %333 = vector.extract_strided_slice %276 {offsets = [0, 56], sizes = [8, 8], strides = [1, 1]} : vector<16x96xf32> to vector<8x8xf32>
    %334 = vector.extract_strided_slice %276 {offsets = [0, 88], sizes = [8, 8], strides = [1, 1]} : vector<16x96xf32> to vector<8x8xf32>
    %cst_135 = arith.constant dense<0.000000e+00> : vector<8x8xf32>
    %335 = tpu.matmul %332, %333, %cst_135 {dimension_numbers = #tpu.dot_dimension_numbers<[1], [1], [0], [0], [0, 0, 1, 0], [], []>, precision = #tpu.contract_precision<fp32>} : vector<8x8xf32>, vector<8x8xf32>, vector<8x8xf32> -> vector<8x8xf32>
    %cst_136 = arith.constant 0.353553385 : f32
    %336 = vector.broadcast %cst_136 : f32 to vector<8x8xf32>
    %337 = arith.mulf %335, %336 : vector<8x8xf32>
    %338 = arith.addf %337, %36 : vector<8x8xf32>
    %339 = math.exp %338 : vector<8x8xf32>
    %cst_137 = arith.constant dense<0.000000e+00> : vector<8xf32>
    %340 = vector.multi_reduction <add>, %339, %cst_137 [1] : vector<8x8xf32> to vector<8xf32>
    %341 = vector.shape_cast %340 : vector<8xf32> to vector<8x1xf32>
    %cst_138 = arith.constant 1.000000e+00 : f32
    %342 = vector.broadcast %cst_138 : f32 to vector<8x1xf32>
    %343 = arith.divf %342, %341 : vector<8x1xf32>
    %344 = vector.broadcast %343 : vector<8x1xf32> to vector<8x8xf32>
    %345 = arith.mulf %339, %344 : vector<8x8xf32>
    %cst_139 = arith.constant dense<0.000000e+00> : vector<8x8xf32>
    %346 = tpu.matmul %345, %334, %cst_139 {dimension_numbers = #tpu.dot_dimension_numbers<[1], [0], [0], [1], [0, 0, 1, 1], [], []>, precision = #tpu.contract_precision<fp32>} : vector<8x8xf32>, vector<8x8xf32>, vector<8x8xf32> -> vector<8x8xf32>
    %347 = vector.extract_strided_slice %278 {offsets = [24, 0], sizes = [8, 32], strides = [1, 1]} : vector<32x32xf32> to vector<8x32xf32>
    %cst_140 = arith.constant dense<0.000000e+00> : vector<8x32xf32>
    %348 = tpu.matmul %346, %347, %cst_140 {dimension_numbers = #tpu.dot_dimension_numbers<[1], [0], [0], [1], [0, 0, 1, 1], [], []>, precision = #tpu.contract_precision<fp32>} : vector<8x8xf32>, vector<8x32xf32>, vector<8x32xf32> -> vector<8x32xf32>
    %349 = arith.addf %331, %348 : vector<8x32xf32>
    %350 = vector.extract_strided_slice %276 {offsets = [8, 0], sizes = [8, 8], strides = [1, 1]} : vector<16x96xf32> to vector<8x8xf32>
    %351 = vector.extract_strided_slice %276 {offsets = [8, 32], sizes = [8, 8], strides = [1, 1]} : vector<16x96xf32> to vector<8x8xf32>
    %352 = vector.extract_strided_slice %276 {offsets = [8, 64], sizes = [8, 8], strides = [1, 1]} : vector<16x96xf32> to vector<8x8xf32>
    %cst_141 = arith.constant dense<0.000000e+00> : vector<8x8xf32>
    %353 = tpu.matmul %350, %351, %cst_141 {dimension_numbers = #tpu.dot_dimension_numbers<[1], [1], [0], [0], [0, 0, 1, 0], [], []>, precision = #tpu.contract_precision<fp32>} : vector<8x8xf32>, vector<8x8xf32>, vector<8x8xf32> -> vector<8x8xf32>
    %cst_142 = arith.constant 0.353553385 : f32
    %354 = vector.broadcast %cst_142 : f32 to vector<8x8xf32>
    %355 = arith.mulf %353, %354 : vector<8x8xf32>
    %356 = arith.addf %355, %36 : vector<8x8xf32>
    %357 = math.exp %356 : vector<8x8xf32>
    %cst_143 = arith.constant dense<0.000000e+00> : vector<8xf32>
    %358 = vector.multi_reduction <add>, %357, %cst_143 [1] : vector<8x8xf32> to vector<8xf32>
    %359 = vector.shape_cast %358 : vector<8xf32> to vector<8x1xf32>
    %cst_144 = arith.constant 1.000000e+00 : f32
    %360 = vector.broadcast %cst_144 : f32 to vector<8x1xf32>
    %361 = arith.divf %360, %359 : vector<8x1xf32>
    %362 = vector.broadcast %361 : vector<8x1xf32> to vector<8x8xf32>
    %363 = arith.mulf %357, %362 : vector<8x8xf32>
    %cst_145 = arith.constant dense<0.000000e+00> : vector<8x8xf32>
    %364 = tpu.matmul %363, %352, %cst_145 {dimension_numbers = #tpu.dot_dimension_numbers<[1], [0], [0], [1], [0, 0, 1, 1], [], []>, precision = #tpu.contract_precision<fp32>} : vector<8x8xf32>, vector<8x8xf32>, vector<8x8xf32> -> vector<8x8xf32>
    %365 = vector.extract_strided_slice %278 {offsets = [0, 0], sizes = [8, 32], strides = [1, 1]} : vector<32x32xf32> to vector<8x32xf32>
    %cst_146 = arith.constant dense<0.000000e+00> : vector<8x32xf32>
    %366 = tpu.matmul %364, %365, %cst_146 {dimension_numbers = #tpu.dot_dimension_numbers<[1], [0], [0], [1], [0, 0, 1, 1], [], []>, precision = #tpu.contract_precision<fp32>} : vector<8x8xf32>, vector<8x32xf32>, vector<8x32xf32> -> vector<8x32xf32>
    %367 = vector.extract_strided_slice %276 {offsets = [8, 8], sizes = [8, 8], strides = [1, 1]} : vector<16x96xf32> to vector<8x8xf32>
    %368 = vector.extract_strided_slice %276 {offsets = [8, 40], sizes = [8, 8], strides = [1, 1]} : vector<16x96xf32> to vector<8x8xf32>
    %369 = vector.extract_strided_slice %276 {offsets = [8, 72], sizes = [8, 8], strides = [1, 1]} : vector<16x96xf32> to vector<8x8xf32>
    %cst_147 = arith.constant dense<0.000000e+00> : vector<8x8xf32>
    %370 = tpu.matmul %367, %368, %cst_147 {dimension_numbers = #tpu.dot_dimension_numbers<[1], [1], [0], [0], [0, 0, 1, 0], [], []>, precision = #tpu.contract_precision<fp32>} : vector<8x8xf32>, vector<8x8xf32>, vector<8x8xf32> -> vector<8x8xf32>
    %cst_148 = arith.constant 0.353553385 : f32
    %371 = vector.broadcast %cst_148 : f32 to vector<8x8xf32>
    %372 = arith.mulf %370, %371 : vector<8x8xf32>
    %373 = arith.addf %372, %36 : vector<8x8xf32>
    %374 = math.exp %373 : vector<8x8xf32>
    %cst_149 = arith.constant dense<0.000000e+00> : vector<8xf32>
    %375 = vector.multi_reduction <add>, %374, %cst_149 [1] : vector<8x8xf32> to vector<8xf32>
    %376 = vector.shape_cast %375 : vector<8xf32> to vector<8x1xf32>
    %cst_150 = arith.constant 1.000000e+00 : f32
    %377 = vector.broadcast %cst_150 : f32 to vector<8x1xf32>
    %378 = arith.divf %377, %376 : vector<8x1xf32>
    %379 = vector.broadcast %378 : vector<8x1xf32> to vector<8x8xf32>
    %380 = arith.mulf %374, %379 : vector<8x8xf32>
    %cst_151 = arith.constant dense<0.000000e+00> : vector<8x8xf32>
    %381 = tpu.matmul %380, %369, %cst_151 {dimension_numbers = #tpu.dot_dimension_numbers<[1], [0], [0], [1], [0, 0, 1, 1], [], []>, precision = #tpu.contract_precision<fp32>} : vector<8x8xf32>, vector<8x8xf32>, vector<8x8xf32> -> vector<8x8xf32>
    %382 = vector.extract_strided_slice %278 {offsets = [8, 0], sizes = [8, 32], strides = [1, 1]} : vector<32x32xf32> to vector<8x32xf32>
    %cst_152 = arith.constant dense<0.000000e+00> : vector<8x32xf32>
    %383 = tpu.matmul %381, %382, %cst_152 {dimension_numbers = #tpu.dot_dimension_numbers<[1], [0], [0], [1], [0, 0, 1, 1], [], []>, precision = #tpu.contract_precision<fp32>} : vector<8x8xf32>, vector<8x32xf32>, vector<8x32xf32> -> vector<8x32xf32>
    %384 = arith.addf %366, %383 : vector<8x32xf32>
    %385 = vector.extract_strided_slice %276 {offsets = [8, 16], sizes = [8, 8], strides = [1, 1]} : vector<16x96xf32> to vector<8x8xf32>
    %386 = vector.extract_strided_slice %276 {offsets = [8, 48], sizes = [8, 8], strides = [1, 1]} : vector<16x96xf32> to vector<8x8xf32>
    %387 = vector.extract_strided_slice %276 {offsets = [8, 80], sizes = [8, 8], strides = [1, 1]} : vector<16x96xf32> to vector<8x8xf32>
    %cst_153 = arith.constant dense<0.000000e+00> : vector<8x8xf32>
    %388 = tpu.matmul %385, %386, %cst_153 {dimension_numbers = #tpu.dot_dimension_numbers<[1], [1], [0], [0], [0, 0, 1, 0], [], []>, precision = #tpu.contract_precision<fp32>} : vector<8x8xf32>, vector<8x8xf32>, vector<8x8xf32> -> vector<8x8xf32>
    %cst_154 = arith.constant 0.353553385 : f32
    %389 = vector.broadcast %cst_154 : f32 to vector<8x8xf32>
    %390 = arith.mulf %388, %389 : vector<8x8xf32>
    %391 = arith.addf %390, %36 : vector<8x8xf32>
    %392 = math.exp %391 : vector<8x8xf32>
    %cst_155 = arith.constant dense<0.000000e+00> : vector<8xf32>
    %393 = vector.multi_reduction <add>, %392, %cst_155 [1] : vector<8x8xf32> to vector<8xf32>
    %394 = vector.shape_cast %393 : vector<8xf32> to vector<8x1xf32>
    %cst_156 = arith.constant 1.000000e+00 : f32
    %395 = vector.broadcast %cst_156 : f32 to vector<8x1xf32>
    %396 = arith.divf %395, %394 : vector<8x1xf32>
    %397 = vector.broadcast %396 : vector<8x1xf32> to vector<8x8xf32>
    %398 = arith.mulf %392, %397 : vector<8x8xf32>
    %cst_157 = arith.constant dense<0.000000e+00> : vector<8x8xf32>
    %399 = tpu.matmul %398, %387, %cst_157 {dimension_numbers = #tpu.dot_dimension_numbers<[1], [0], [0], [1], [0, 0, 1, 1], [], []>, precision = #tpu.contract_precision<fp32>} : vector<8x8xf32>, vector<8x8xf32>, vector<8x8xf32> -> vector<8x8xf32>
    %400 = vector.extract_strided_slice %278 {offsets = [16, 0], sizes = [8, 32], strides = [1, 1]} : vector<32x32xf32> to vector<8x32xf32>
    %cst_158 = arith.constant dense<0.000000e+00> : vector<8x32xf32>
    %401 = tpu.matmul %399, %400, %cst_158 {dimension_numbers = #tpu.dot_dimension_numbers<[1], [0], [0], [1], [0, 0, 1, 1], [], []>, precision = #tpu.contract_precision<fp32>} : vector<8x8xf32>, vector<8x32xf32>, vector<8x32xf32> -> vector<8x32xf32>
    %402 = arith.addf %384, %401 : vector<8x32xf32>
    %403 = vector.extract_strided_slice %276 {offsets = [8, 24], sizes = [8, 8], strides = [1, 1]} : vector<16x96xf32> to vector<8x8xf32>
    %404 = vector.extract_strided_slice %276 {offsets = [8, 56], sizes = [8, 8], strides = [1, 1]} : vector<16x96xf32> to vector<8x8xf32>
    %405 = vector.extract_strided_slice %276 {offsets = [8, 88], sizes = [8, 8], strides = [1, 1]} : vector<16x96xf32> to vector<8x8xf32>
    %cst_159 = arith.constant dense<0.000000e+00> : vector<8x8xf32>
    %406 = tpu.matmul %403, %404, %cst_159 {dimension_numbers = #tpu.dot_dimension_numbers<[1], [1], [0], [0], [0, 0, 1, 0], [], []>, precision = #tpu.contract_precision<fp32>} : vector<8x8xf32>, vector<8x8xf32>, vector<8x8xf32> -> vector<8x8xf32>
    %cst_160 = arith.constant 0.353553385 : f32
    %407 = vector.broadcast %cst_160 : f32 to vector<8x8xf32>
    %408 = arith.mulf %406, %407 : vector<8x8xf32>
    %409 = arith.addf %408, %36 : vector<8x8xf32>
    %410 = math.exp %409 : vector<8x8xf32>
    %cst_161 = arith.constant dense<0.000000e+00> : vector<8xf32>
    %411 = vector.multi_reduction <add>, %410, %cst_161 [1] : vector<8x8xf32> to vector<8xf32>
    %412 = vector.shape_cast %411 : vector<8xf32> to vector<8x1xf32>
    %cst_162 = arith.constant 1.000000e+00 : f32
    %413 = vector.broadcast %cst_162 : f32 to vector<8x1xf32>
    %414 = arith.divf %413, %412 : vector<8x1xf32>
    %415 = vector.broadcast %414 : vector<8x1xf32> to vector<8x8xf32>
    %416 = arith.mulf %410, %415 : vector<8x8xf32>
    %cst_163 = arith.constant dense<0.000000e+00> : vector<8x8xf32>
    %417 = tpu.matmul %416, %405, %cst_163 {dimension_numbers = #tpu.dot_dimension_numbers<[1], [0], [0], [1], [0, 0, 1, 1], [], []>, precision = #tpu.contract_precision<fp32>} : vector<8x8xf32>, vector<8x8xf32>, vector<8x8xf32> -> vector<8x8xf32>
    %418 = vector.extract_strided_slice %278 {offsets = [24, 0], sizes = [8, 32], strides = [1, 1]} : vector<32x32xf32> to vector<8x32xf32>
    %cst_164 = arith.constant dense<0.000000e+00> : vector<8x32xf32>
    %419 = tpu.matmul %417, %418, %cst_164 {dimension_numbers = #tpu.dot_dimension_numbers<[1], [0], [0], [1], [0, 0, 1, 1], [], []>, precision = #tpu.contract_precision<fp32>} : vector<8x8xf32>, vector<8x32xf32>, vector<8x32xf32> -> vector<8x32xf32>
    %420 = arith.addf %402, %419 : vector<8x32xf32>
    %421 = tpu.concatenate %349, %420 in 0 : vector<8x32xf32>, vector<8x32xf32> -> vector<16x32xf32>
    %422 = arith.addf %246, %421 : vector<16x32xf32>
    %c1_165 = arith.constant 1 : index
    %c0_166 = arith.constant 0 : index
    %423 = vector.load %arg12[%c1_165, %c0_166] : memref<2x32xf32, #tpu.memory_space<vmem>>, vector<1x32xf32>
    %424 = vector.broadcast %423 : vector<1x32xf32> to vector<16x32xf32>
    %425 = arith.addf %422, %424 : vector<16x32xf32>
    %c1_167 = arith.constant 1 : index
    %c0_168 = arith.constant 0 : index
    %426 = vector.load %arg13[%c1_167, %c0_168] : memref<2x32xf32, #tpu.memory_space<vmem>>, vector<1x32xf32>
    %c1_169 = arith.constant 1 : index
    %c0_170 = arith.constant 0 : index
    %427 = vector.load %arg14[%c1_169, %c0_170] : memref<2x32xf32, #tpu.memory_space<vmem>>, vector<1x32xf32>
    %cst_171 = arith.constant dense<0.000000e+00> : vector<16xf32>
    %428 = vector.multi_reduction <add>, %425, %cst_171 [1] : vector<16x32xf32> to vector<16xf32>
    %429 = vector.shape_cast %428 : vector<16xf32> to vector<16x1xf32>
    %cst_172 = arith.constant 3.200000e+01 : f32
    %430 = vector.broadcast %cst_172 : f32 to vector<16x1xf32>
    %431 = arith.divf %429, %430 : vector<16x1xf32>
    %432 = vector.broadcast %431 : vector<16x1xf32> to vector<16x32xf32>
    %433 = arith.subf %425, %432 : vector<16x32xf32>
    %434 = arith.mulf %433, %433 : vector<16x32xf32>
    %cst_173 = arith.constant dense<0.000000e+00> : vector<16xf32>
    %435 = vector.multi_reduction <add>, %434, %cst_173 [1] : vector<16x32xf32> to vector<16xf32>
    %436 = vector.shape_cast %435 : vector<16xf32> to vector<16x1xf32>
    %cst_174 = arith.constant 3.200000e+01 : f32
    %437 = vector.broadcast %cst_174 : f32 to vector<16x1xf32>
    %438 = arith.divf %436, %437 : vector<16x1xf32>
    %439 = vector.broadcast %431 : vector<16x1xf32> to vector<16x32xf32>
    %440 = arith.subf %425, %439 : vector<16x32xf32>
    %cst_175 = arith.constant 9.99999974E-6 : f32
    %441 = vector.broadcast %cst_175 : f32 to vector<16x1xf32>
    %442 = arith.addf %438, %441 : vector<16x1xf32>
    %443 = math.rsqrt %442 : vector<16x1xf32>
    %444 = vector.broadcast %443 : vector<16x1xf32> to vector<16x32xf32>
    %445 = arith.mulf %440, %444 : vector<16x32xf32>
    %446 = vector.broadcast %426 : vector<1x32xf32> to vector<16x32xf32>
    %447 = arith.mulf %445, %446 : vector<16x32xf32>
    %448 = vector.broadcast %427 : vector<1x32xf32> to vector<16x32xf32>
    %449 = arith.addf %447, %448 : vector<16x32xf32>
    %c1_176 = arith.constant 1 : index
    %c0_177 = arith.constant 0 : index
    %c0_178 = arith.constant 0 : index
    %450 = vector.load %arg15[%c1_176, %c0_177, %c0_178] : memref<2x32x32xf32, #tpu.memory_space<vmem>>, vector<1x32x32xf32>
    %451 = vector.shape_cast %450 : vector<1x32x32xf32> to vector<32x32xf32>
    %cst_179 = arith.constant dense<0.000000e+00> : vector<16x32xf32>
    %452 = tpu.matmul %449, %451, %cst_179 {dimension_numbers = #tpu.dot_dimension_numbers<[1], [0], [0], [1], [0, 0, 1, 1], [], []>, precision = #tpu.contract_precision<fp32>} : vector<16x32xf32>, vector<32x32xf32>, vector<16x32xf32> -> vector<16x32xf32>
    %453 = arith.addf %425, %452 : vector<16x32xf32>
    %c1_180 = arith.constant 1 : index
    %c0_181 = arith.constant 0 : index
    %454 = vector.load %arg16[%c1_180, %c0_181] : memref<2x32xf32, #tpu.memory_space<vmem>>, vector<1x32xf32>
    %455 = vector.broadcast %454 : vector<1x32xf32> to vector<16x32xf32>
    %456 = arith.addf %453, %455 : vector<16x32xf32>
    %457 = vector.extract_strided_slice %456 {offsets = [0, 0], sizes = [8, 32], strides = [1, 1]} : vector<16x32xf32> to vector<8x32xf32>
    %cst_182 = arith.constant 0.000000e+00 : f32
    %458 = vector.shape_cast %10 : vector<8x1xi1> to vector<8x1xi1>
    %459 = vector.broadcast %458 : vector<8x1xi1> to vector<8x32xi1>
    %460 = vector.broadcast %cst_182 : f32 to vector<8x32xf32>
    %461 = arith.select %459, %457, %460 : vector<8x32xi1>, vector<8x32xf32>
    %cst_183 = arith.constant dense<0.000000e+00> : vector<32xf32>
    %462 = vector.multi_reduction <add>, %461, %cst_183 [0] : vector<8x32xf32> to vector<32xf32>
    %463 = vector.shape_cast %462 : vector<32xf32> to vector<1x32xf32>
    %464 = vector.extract_strided_slice %456 {offsets = [8, 0], sizes = [8, 32], strides = [1, 1]} : vector<16x32xf32> to vector<8x32xf32>
    %cst_184 = arith.constant 0.000000e+00 : f32
    %465 = vector.shape_cast %10 : vector<8x1xi1> to vector<8x1xi1>
    %466 = vector.broadcast %465 : vector<8x1xi1> to vector<8x32xi1>
    %467 = vector.broadcast %cst_184 : f32 to vector<8x32xf32>
    %468 = arith.select %466, %464, %467 : vector<8x32xi1>, vector<8x32xf32>
    %cst_185 = arith.constant dense<0.000000e+00> : vector<32xf32>
    %469 = vector.multi_reduction <add>, %468, %cst_185 [0] : vector<8x32xf32> to vector<32xf32>
    %470 = vector.shape_cast %469 : vector<32xf32> to vector<1x32xf32>
    %471 = tpu.concatenate %463, %470 in 0 : vector<1x32xf32>, vector<1x32xf32> -> vector<2x32xf32>
    %c0_186 = arith.constant 0 : index
    %c0_187 = arith.constant 0 : index
    %472 = vector.load %arg17[%c0_186, %c0_187] : memref<1x32xf32, #tpu.memory_space<vmem>>, vector<1x32xf32>
    %c0_188 = arith.constant 0 : index
    %c0_189 = arith.constant 0 : index
    %473 = vector.load %arg18[%c0_188, %c0_189] : memref<1x32xf32, #tpu.memory_space<vmem>>, vector<1x32xf32>
    %cst_190 = arith.constant dense<0.000000e+00> : vector<2xf32>
    %474 = vector.multi_reduction <add>, %471, %cst_190 [1] : vector<2x32xf32> to vector<2xf32>
    %475 = vector.shape_cast %474 : vector<2xf32> to vector<2x1xf32>
    %cst_191 = arith.constant 3.200000e+01 : f32
    %476 = vector.broadcast %cst_191 : f32 to vector<2x1xf32>
    %477 = arith.divf %475, %476 : vector<2x1xf32>
    %478 = vector.broadcast %477 : vector<2x1xf32> to vector<2x32xf32>
    %479 = arith.subf %471, %478 : vector<2x32xf32>
    %480 = arith.mulf %479, %479 : vector<2x32xf32>
    %cst_192 = arith.constant dense<0.000000e+00> : vector<2xf32>
    %481 = vector.multi_reduction <add>, %480, %cst_192 [1] : vector<2x32xf32> to vector<2xf32>
    %482 = vector.shape_cast %481 : vector<2xf32> to vector<2x1xf32>
    %cst_193 = arith.constant 3.200000e+01 : f32
    %483 = vector.broadcast %cst_193 : f32 to vector<2x1xf32>
    %484 = arith.divf %482, %483 : vector<2x1xf32>
    %485 = vector.broadcast %477 : vector<2x1xf32> to vector<2x32xf32>
    %486 = arith.subf %471, %485 : vector<2x32xf32>
    %cst_194 = arith.constant 9.99999974E-6 : f32
    %487 = vector.broadcast %cst_194 : f32 to vector<2x1xf32>
    %488 = arith.addf %484, %487 : vector<2x1xf32>
    %489 = math.rsqrt %488 : vector<2x1xf32>
    %490 = vector.broadcast %489 : vector<2x1xf32> to vector<2x32xf32>
    %491 = arith.mulf %486, %490 : vector<2x32xf32>
    %492 = vector.broadcast %472 : vector<1x32xf32> to vector<2x32xf32>
    %493 = arith.mulf %491, %492 : vector<2x32xf32>
    %494 = vector.broadcast %473 : vector<1x32xf32> to vector<2x32xf32>
    %495 = arith.addf %493, %494 : vector<2x32xf32>
    %c0_195 = arith.constant 0 : index
    %c0_196 = arith.constant 0 : index
    %496 = vector.load %arg19[%c0_195, %c0_196] : memref<32x9xf32, #tpu.memory_space<vmem>>, vector<32x9xf32>
    %cst_197 = arith.constant dense<0.000000e+00> : vector<2x9xf32>
    %497 = tpu.matmul %495, %496, %cst_197 {dimension_numbers = #tpu.dot_dimension_numbers<[1], [0], [0], [1], [0, 0, 1, 1], [], []>, precision = #tpu.contract_precision<fp32>} : vector<2x32xf32>, vector<32x9xf32>, vector<2x9xf32> -> vector<2x9xf32>
    %c0_198 = arith.constant 0 : index
    %c0_199 = arith.constant 0 : index
    %498 = vector.load %arg20[%c0_198, %c0_199] : memref<1x9xf32, #tpu.memory_space<vmem>>, vector<1x9xf32>
    %499 = vector.broadcast %498 : vector<1x9xf32> to vector<2x9xf32>
    %500 = arith.addf %497, %499 : vector<2x9xf32>
    %501 = math.tanh %500 : vector<2x9xf32>
    %c0_200 = arith.constant 0 : index
    %c0_201 = arith.constant 0 : index
    %c0_202 = arith.constant 0 : index
    %502 = vector.load %arg21[%c0_200, %c0_201, %c0_202] : memref<1x2x9xf32, #tpu.memory_space<vmem>>, vector<1x2x9xf32>
    %503 = vector.shape_cast %502 : vector<1x2x9xf32> to vector<2x9xf32>
    %504 = vector.shape_cast %501 : vector<2x9xf32> to vector<1x2x9xf32>
    tpu.vector_store %arg21[%c0_200, %c0_201, %c0_202], %504 {strides = array<i32>} : memref<1x2x9xf32, #tpu.memory_space<vmem>>, vector<1x2x9xf32>,
    %505 = vector.extract_strided_slice %501 {offsets = [0, 3], sizes = [2, 6], strides = [1, 1]} : vector<2x9xf32> to vector<2x6xf32>
    %c0_203 = arith.constant 0 : index
    %c0_204 = arith.constant 0 : index
    %506 = vector.load %arg5[%c0_203, %c0_204] : memref<6x32xf32, #tpu.memory_space<vmem>>, vector<6x32xf32>
    %cst_205 = arith.constant dense<0.000000e+00> : vector<2x32xf32>
    %507 = tpu.matmul %505, %506, %cst_205 {dimension_numbers = #tpu.dot_dimension_numbers<[1], [0], [0], [1], [0, 0, 1, 1], [], []>, precision = #tpu.contract_precision<fp32>} : vector<2x6xf32>, vector<6x32xf32>, vector<2x32xf32> -> vector<2x32xf32>
    %c0_206 = arith.constant 0 : index
    %c0_207 = arith.constant 0 : index
    %508 = vector.load %arg6[%c0_206, %c0_207] : memref<1x32xf32, #tpu.memory_space<vmem>>, vector<1x32xf32>
    %509 = vector.broadcast %508 : vector<1x32xf32> to vector<2x32xf32>
    %510 = arith.addf %507, %509 : vector<2x32xf32>
    %c0_208 = arith.constant 0 : index
    %c0_209 = arith.constant 0 : index
    %511 = vector.load %arg23[%c0_208, %c0_209] : memref<2x32xf32, #tpu.memory_space<vmem>>, vector<2x32xf32>
    tpu.vector_store %arg23[%c0_208, %c0_209], %510 {strides = array<i32>} : memref<2x32xf32, #tpu.memory_space<vmem>>, vector<2x32xf32>,
    return
  }
  func.func @transform_0(%arg0: i32) -> (i32, i32) {
    %c0_i32 = arith.constant 0 : i32
    %c0_i32_0 = arith.constant 0 : i32
    %c0_i32_1 = arith.constant 0 : i32
    return %c0_i32, %c0_i32_0 : i32, i32
  }
  func.func @transform_1(%arg0: i32) -> (i32, i32) {
    %c0_i32 = arith.constant 0 : i32
    %c0_i32_0 = arith.constant 0 : i32
    %c0_i32_1 = arith.constant 0 : i32
    return %c0_i32, %c0_i32_0 : i32, i32
  }
  func.func @transform_2(%arg0: i32) -> (i32, i32, i32) {
    %c0_i32 = arith.constant 0 : i32
    %c0_i32_0 = arith.constant 0 : i32
    %c0_i32_1 = arith.constant 0 : i32
    return %arg0, %c0_i32, %c0_i32_0 : i32, i32, i32
  }
  func.func @transform_3(%arg0: i32) -> (i32, i32) {
    %c0_i32 = arith.constant 0 : i32
    %c0_i32_0 = arith.constant 0 : i32
    %c0_i32_1 = arith.constant 0 : i32
    return %c0_i32, %c0_i32_0 : i32, i32
  }
  func.func @transform_4(%arg0: i32) -> (i32, i32) {
    %c0_i32 = arith.constant 0 : i32
    %c0_i32_0 = arith.constant 0 : i32
    %c0_i32_1 = arith.constant 0 : i32
    return %c0_i32, %c0_i32_0 : i32, i32
  }
  func.func @transform_5(%arg0: i32) -> (i32, i32) {
    %c0_i32 = arith.constant 0 : i32
    %c0_i32_0 = arith.constant 0 : i32
    %c0_i32_1 = arith.constant 0 : i32
    return %c0_i32, %c0_i32_0 : i32, i32
  }
  func.func @transform_6(%arg0: i32) -> (i32, i32) {
    %c0_i32 = arith.constant 0 : i32
    %c0_i32_0 = arith.constant 0 : i32
    %c0_i32_1 = arith.constant 0 : i32
    return %c0_i32, %c0_i32_0 : i32, i32
  }
  func.func @transform_7(%arg0: i32) -> (i32, i32) {
    %c0_i32 = arith.constant 0 : i32
    %c0_i32_0 = arith.constant 0 : i32
    %c0_i32_1 = arith.constant 0 : i32
    return %c0_i32, %c0_i32_0 : i32, i32
  }
  func.func @transform_8(%arg0: i32) -> (i32, i32, i32) {
    %c0_i32 = arith.constant 0 : i32
    %c0_i32_0 = arith.constant 0 : i32
    %c0_i32_1 = arith.constant 0 : i32
    %c0_i32_2 = arith.constant 0 : i32
    return %c0_i32, %c0_i32_0, %c0_i32_1 : i32, i32, i32
  }
  func.func @transform_9(%arg0: i32) -> (i32, i32) {
    %c0_i32 = arith.constant 0 : i32
    %c0_i32_0 = arith.constant 0 : i32
    %c0_i32_1 = arith.constant 0 : i32
    return %c0_i32, %c0_i32_0 : i32, i32
  }
  func.func @transform_10(%arg0: i32) -> (i32, i32, i32) {
    %c0_i32 = arith.constant 0 : i32
    %c0_i32_0 = arith.constant 0 : i32
    %c0_i32_1 = arith.constant 0 : i32
    %c0_i32_2 = arith.constant 0 : i32
    return %c0_i32, %c0_i32_0, %c0_i32_1 : i32, i32, i32
  }
  func.func @transform_11(%arg0: i32) -> (i32, i32) {
    %c0_i32 = arith.constant 0 : i32
    %c0_i32_0 = arith.constant 0 : i32
    %c0_i32_1 = arith.constant 0 : i32
    return %c0_i32, %c0_i32_0 : i32, i32
  }
  func.func @transform_12(%arg0: i32) -> (i32, i32) {
    %c0_i32 = arith.constant 0 : i32
    %c0_i32_0 = arith.constant 0 : i32
    %c0_i32_1 = arith.constant 0 : i32
    return %c0_i32, %c0_i32_0 : i32, i32
  }
  func.func @transform_13(%arg0: i32) -> (i32, i32) {
    %c0_i32 = arith.constant 0 : i32
    %c0_i32_0 = arith.constant 0 : i32
    %c0_i32_1 = arith.constant 0 : i32
    return %c0_i32, %c0_i32_0 : i32, i32
  }
  func.func @transform_14(%arg0: i32) -> (i32, i32, i32) {
    %c0_i32 = arith.constant 0 : i32
    %c0_i32_0 = arith.constant 0 : i32
    %c0_i32_1 = arith.constant 0 : i32
    %c0_i32_2 = arith.constant 0 : i32
    return %c0_i32, %c0_i32_0, %c0_i32_1 : i32, i32, i32
  }
  func.func @transform_15(%arg0: i32) -> (i32, i32) {
    %c0_i32 = arith.constant 0 : i32
    %c0_i32_0 = arith.constant 0 : i32
    %c0_i32_1 = arith.constant 0 : i32
    return %c0_i32, %c0_i32_0 : i32, i32
  }
  func.func @transform_16(%arg0: i32) -> (i32, i32) {
    %c0_i32 = arith.constant 0 : i32
    %c0_i32_0 = arith.constant 0 : i32
    %c0_i32_1 = arith.constant 0 : i32
    return %c0_i32, %c0_i32_0 : i32, i32
  }
  func.func @transform_17(%arg0: i32) -> (i32, i32) {
    %c0_i32 = arith.constant 0 : i32
    %c0_i32_0 = arith.constant 0 : i32
    %c0_i32_1 = arith.constant 0 : i32
    return %c0_i32, %c0_i32_0 : i32, i32
  }
  func.func @transform_18(%arg0: i32) -> (i32, i32) {
    %c0_i32 = arith.constant 0 : i32
    %c0_i32_0 = arith.constant 0 : i32
    %c0_i32_1 = arith.constant 0 : i32
    return %c0_i32, %c0_i32_0 : i32, i32
  }
  func.func @transform_19(%arg0: i32) -> (i32, i32) {
    %c0_i32 = arith.constant 0 : i32
    %c0_i32_0 = arith.constant 0 : i32
    %c0_i32_1 = arith.constant 0 : i32
    return %c0_i32, %c0_i32_0 : i32, i32
  }
  func.func @transform_20(%arg0: i32) -> (i32, i32, i32) {
    %c0_i32 = arith.constant 0 : i32
    %c0_i32_0 = arith.constant 0 : i32
    %c0_i32_1 = arith.constant 0 : i32
    return %arg0, %c0_i32, %c0_i32_0 : i32, i32, i32
  }
}

</mosaic_0001>

<bundles_post_ra>
// kernel: _forward_impl.1
= control target key start
LH: loop header
LB: loop body
LE: loop exit
PB: predicated region body
PF: predicated region fallthrough
CT: control target
= control target key end

     0   :  { %s32042_s0 = inlined_call_operand.vmem [shape: f32[16,32], index: 0, kind: input, shape index: {}]   ;;  %s32043_s1 = inlined_call_operand.vmem [shape: f32[2,32], index: 1, kind: input, shape index: {}]   ;;  %s32044_s2 = inlined_call_operand.vmem [shape: f32[4,2,32], index: 2, kind: input, shape index: {}]   ;;  %s32045_s3 = inlined_call_operand.vmem [shape: f32[16,32], index: 3, kind: input, shape index: {}]   ;;  %s32046_s4 = inlined_call_operand.vmem [shape: f32[6,32], index: 4, kind: input, shape index: {}]   ;;  %s32047_s5 = inlined_call_operand.vmem [shape: f32[1,32], index: 5, kind: input, shape index: {}]   ;;  %s32048_s6 = inlined_call_operand.hbm [shape: f32[2,32], index: 6, kind: input, shape index: {}]   ;;  %s32049_s7 = inlined_call_operand.hbm [shape: f32[2,32], index: 7, kind: input, shape index: {}]   ;;  %s32050_s8 = inlined_call_operand.vmem [shape: f32[2,32,96], index: 8, kind: input, shape index: {}]   ;;  %s32051_s9 = inlined_call_operand.hbm [shape: f32[2,96], index: 9, kind: input, shape index: {}]   ;;  %s32052_s10 = inlined_call_operand.vmem [shape: f32[2,32,32], index: 10, kind: input, shape index: {}]   ;;  %s32053_s11 = inlined_call_operand.hbm [shape: f32[2,32], index: 11, kind: input, shape index: {}]   ;;  %s32054_s12 = inlined_call_operand.hbm [shape: f32[2,32], index: 12, kind: input, shape index: {}]   ;;  %s32055_s13 = inlined_call_operand.hbm [shape: f32[2,32], index: 13, kind: input, shape index: {}]   ;;  %s32056_s14 = inlined_call_operand.vmem [shape: f32[2,32,32], index: 14, kind: input, shape index: {}]   ;;  %s32057_s15 = inlined_call_operand.hbm [shape: f32[2,32], index: 15, kind: input, shape index: {}]   ;;  %s32058_s16 = inlined_call_operand.vmem [shape: f32[1,32], index: 16, kind: input, shape index: {}]   ;;  %s32059_s17 = inlined_call_operand.hbm [shape: f32[1,32], index: 17, kind: input, shape index: {}]   ;;  %s32060_s18 = inlined_call_operand.vmem [shape: f32[32,9], index: 18, kind: input, shape index: {}]   ;;  %s32061_s19 = inlined_call_operand.hbm [shape: f32[1,9], index: 19, kind: input, shape index: {}]   ;;  %s32062_s20 = inlined_call_operand.vmem [shape: f32[4,2,9], index: 20, kind: output, shape index: {}]  }
   0x1   :  { %32078 = sst [smem:[#allocation24_spill]] %s32042_s0 }
   0x2   :  { %32079 = sst [smem:[#allocation25_spill]] %s32043_s1 }
   0x3   :  { %32080 = sst [smem:[#allocation26_spill]] %s32044_s2 }
   0x4   :  { %32081 = sst [smem:[#allocation27_spill]] %s32045_s3 }
   0x5   :  { %32082 = sst [smem:[#allocation28_spill]] %s32046_s4 }
   0x6   :  { %32083 = sst [smem:[#allocation29_spill]] %s32047_s5 }
   0x7   :  { %32084 = sst [smem:[#allocation30_spill]] %s32058_s16 }
   0x8   :  { %25 = vsyncpa [#allocation5], 0 }
   0x9   :  { %26 = vsyncpa [#allocation7], 0 }
   0xa   :  { %27 = vsyncpa [#allocation10], 0 }
   0xb   :  { %28 = vsyncpa [#allocation13], 0 }
   0xc   :  { %29 = vsyncpa [#allocation16], 0  ;;  %s30002_s1 = smov 0  }
   0xd LB: > { %32085 = sst [smem:[#allocation23_spill]] %s29871_s1  ;;  %s29873_s22 = smov [#allocation6]   ;;  %s29871_s1 = sphi %s30002_s1, %s35_s1  }
   0xe   : > { %s530_s23 = sshll.u32 %s29873_s22, 4  ;;  %s30008_s24 = sadd.s32 4294967295, %s29871_s1   ;;  %s30014_s23 = int_to_ptr.vmem [resolvable:$true] %s530_s23 }
   0xf   : > { %p26160_p0 = scmp.ge.s32.totalorder %s29871_s1, 1  ;;  %p491_p1 = scmp.lt.s32.totalorder %s29871_s1, 5 }
  0x10   : > { %p32066_p3 = scmp.eq.s32.totalorder %s30008_s24, 0  ;;  %s29874_s25 = smov [#allocation9]  }
  0x11   : > { %p30016_p4 = pnand %p26160_p0, %p491_p1  ;;  %s558_s3 = sshll.u32 %s29874_s25, 4  ;;  %s30022_s3 = int_to_ptr.vmem [resolvable:$true] %s558_s3 }
  0x12   : > { %s29875_s26 = smov [#allocation12]   ;;  %s29876_s4 = smov [#allocation15]  }
  0x13   : > { %s32086_s2 = scalar_select %p30016_p4, 1, 0 }
  0x14   : > { %p29427_p5 = pneg %p30016_p4  ;;  %s580_s27 = sshll.u32 %s29875_s26, 4  ;;  %s30030_s27 = int_to_ptr.vmem [resolvable:$true] %s580_s27 }
  0x15   : > { %s608_s29 = sshll.u32 %s29876_s4, 4  ;;  %s29593_s21 = scalar_lea.hbm %s32049_s7, 32  ;;  %s30032_s29 = int_to_ptr.vmem [resolvable:$true] %s608_s29 }
  0x16   : > { %p30026_p6 = pnand %p32066_p3, %p29427_p5  ;;  %p29594_p7 = scmp.ne.s32.totalorder %s32049_s7, %s29593_s21 }
  0x17   : > { %p29600_p11 = scmp.lt.u32.totalorder %s29593_s21, %s32049_s7 }
  0x18   : > { %p30042_p8 = pneg %p30026_p6 }
  0x1a   : > { %p29596_p9 = pnand %p30042_p8, %p29594_p7 }
  0x1c   : > { %p29597_p10 = pneg %p29596_p9 }
  0x1e   : > { %p29602_p12 = pnand %p29600_p11, %p29597_p10 }
  0x20   : > { %29605 = shalt.err (!%p29602_p12)
}
  0x21   : > { %s29606_s30 = scalar_lea.vmem %s30014_s23, 32  ;;  %p29614_p5 = scmp.lt.s32.totalorder %s30014_s23, %s30014_s23 }
  0x22   : > { %p29607_p13 = scmp.ne.s32.totalorder %s30014_s23, %s29606_s30  ;;  %p29615_p2 = scmp.lt.s32.totalorder %s29606_s30, %s29606_s30 }
  0x24   : > { %p29609_p0 = pnand %p29607_p13, %p30042_p8  ;;  %p29616_p7 = por %p29615_p2, %p29614_p5 }
  0x26   : > { %p29610_p1 = pneg %p29609_p0 }
  0x28   : > { %p29617_p9 = pnand %p29616_p7, %p29610_p1 }
  0x2a   : > { %29620 = shalt.err (!%p29617_p9)
}
  0x2b   : > { %29433 = dma.hbm_to_vmem [thread:$0]  (!%p30026_p6), %s32049_s7, 32, %s30014_s23, [#allocation7]  }
  0x2c   : > { %s29621_s25 = scalar_lea.hbm %s32053_s11, 32 }
  0x2d   : > { %p29622_p10 = scmp.ne.s32.totalorder %s32053_s11, %s29621_s25  ;;  %p29628_p12 = scmp.lt.u32.totalorder %s29621_s25, %s32053_s11 }
  0x2f   : > { %p29624_p2 = pnand %p29622_p10, %p30042_p8 }
  0x31   : > { %p29625_p11 = pneg %p29624_p2 }
  0x33   : > { %p29630_p13 = pnand %p29628_p12, %p29625_p11 }
  0x35   : > { %29633 = shalt.err (!%p29630_p13)
}
  0x36   : > { %s29634_s23 = scalar_lea.vmem %s30022_s3, 32  ;;  %p29642_p7 = scmp.lt.s32.totalorder %s30022_s3, %s30022_s3 }
  0x37   : > { %p29635_p0 = scmp.ne.s32.totalorder %s30022_s3, %s29634_s23  ;;  %p29643_p9 = scmp.lt.s32.totalorder %s29634_s23, %s29634_s23 }
  0x39   : > { %p29637_p1 = pnand %p29635_p0, %p30042_p8  ;;  %p29644_p10 = por %p29643_p9, %p29642_p7 }
  0x3b   : > { %p29638_p5 = pneg %p29637_p1 }
  0x3d   : > { %p29645_p2 = pnand %p29644_p10, %p29638_p5 }
  0x3f   : > { %29648 = shalt.err (!%p29645_p2)
}
  0x40   : > { %29439 = dma.hbm_to_vmem [thread:$0]  (!%p30026_p6), %s32053_s11, 32, %s30022_s3, [#allocation10]  }
  0x41   : > { %s29649_s21 = scalar_lea.hbm %s32055_s13, 32 }
  0x42   : > { %p29650_p11 = scmp.ne.s32.totalorder %s32055_s13, %s29649_s21  ;;  %p29656_p0 = scmp.lt.u32.totalorder %s29649_s21, %s32055_s13 }
  0x44   : > { %p29652_p12 = pnand %p29650_p11, %p30042_p8 }
  0x46   : > { %p29653_p13 = pneg %p29652_p12 }
  0x48   : > { %p29658_p1 = pnand %p29656_p0, %p29653_p13 }
  0x4a   : > { %29661 = shalt.err (!%p29658_p1)
}
  0x4b   : > { %s29662_s3 = scalar_lea.vmem %s30030_s27, 32  ;;  %p29670_p10 = scmp.lt.s32.totalorder %s30030_s27, %s30030_s27 }
  0x4c   : > { %p29663_p5 = scmp.ne.s32.totalorder %s30030_s27, %s29662_s3  ;;  %p29671_p2 = scmp.lt.s32.totalorder %s29662_s3, %s29662_s3 }
  0x4e   : > { %p29665_p7 = pnand %p29663_p5, %p30042_p8  ;;  %p29672_p11 = por %p29671_p2, %p29670_p10 }
  0x50   : > { %p29666_p9 = pneg %p29665_p7 }
  0x52   : > { %p29673_p12 = pnand %p29672_p11, %p29666_p9 }
  0x54   : > { %29676 = shalt.err (!%p29673_p12)
}
  0x55   : > { %29445 = dma.hbm_to_vmem [thread:$0]  (!%p30026_p6), %s32055_s13, 32, %s30030_s27, [#allocation13]  }
  0x56   : > { %s29677_s0 = scalar_lea.hbm %s32059_s17, 16 }
  0x57   : > { %p29678_p13 = scmp.ne.s32.totalorder %s32059_s17, %s29677_s0  ;;  %p29684_p5 = scmp.lt.u32.totalorder %s29677_s0, %s32059_s17 }
  0x59   : > { %p29680_p0 = pnand %p29678_p13, %p30042_p8 }
  0x5b   : > { %p29681_p1 = pneg %p29680_p0 }
  0x5d   : > { %p29686_p7 = pnand %p29684_p5, %p29681_p1 }
  0x5f   : > { %29689 = shalt.err (!%p29686_p7)
}
  0x60   : > { %s29690_s27 = scalar_lea.vmem %s30032_s29, 16  ;;  %s29697_s30 = scalar_lea.vmem %s30032_s29, 32 }
  0x61   : > { %p29691_p9 = scmp.ne.s32.totalorder %s30032_s29, %s29690_s27  ;;  %p29698_p11 = scmp.lt.s32.totalorder %s30032_s29, %s30032_s29 }
  0x62   : > { %p29699_p12 = scmp.lt.s32.totalorder %s29697_s30, %s29690_s27 }
  0x63   : > { %p29693_p10 = pnand %p29691_p9, %p30042_p8 }
  0x64   : > { %p29700_p13 = por %p29699_p12, %p29698_p11 }
  0x65   : > { %p29694_p2 = pneg %p29693_p10 }
  0x67   : > { %p29701_p0 = pnand %p29700_p13, %p29694_p2 }
  0x69   : > { %29704 = shalt.err (!%p29701_p0)
}
  0x6a   : > { %29451 = dma.hbm_to_vmem [thread:$0]  (!%p30026_p6), %s32059_s17, 16, %s30032_s29, [#allocation16]  }
  0x6b   : > { %s29877_s5 = smov [#allocation4]   ;;  %s29878_s1 = smov [#allocation8]  }
  0x6c   : > { %s519_s16 = sshll.u32 %s29877_s5, 4  ;;  %s544_s0 = sshll.u32 %s29878_s1, 4  ;;  %s520_s16 = int_to_ptr.vmem [resolvable:$true] %s519_s16  ;;  %s545_s0 = int_to_ptr.vmem [resolvable:$true] %s544_s0 }
  0x6d   : > { %s29705_s25 = scalar_lea.hbm %s32048_s6, 32 }
  0x6e   : > { %p29706_p1 = scmp.ne.s32.totalorder %s32048_s6, %s29705_s25  ;;  %p29712_p9 = scmp.lt.u32.totalorder %s29705_s25, %s32048_s6 }
  0x70   : > { %p29708_p5 = pnand %p29706_p1, %p30042_p8 }
  0x72   : > { %p29709_p7 = pneg %p29708_p5 }
  0x74   : > { %p29714_p10 = pnand %p29712_p9, %p29709_p7 }
  0x76   : > { %29717 = shalt.err (!%p29714_p10)
}
  0x77   : > { %s29718_s29 = scalar_lea.vmem %s520_s16, 32  ;;  %p29726_p13 = scmp.lt.s32.totalorder %s520_s16, %s520_s16 }
  0x78   : > { %p29719_p2 = scmp.ne.s32.totalorder %s520_s16, %s29718_s29  ;;  %p29727_p0 = scmp.lt.s32.totalorder %s29718_s29, %s29718_s29 }
  0x7a   : > { %p29721_p11 = pnand %p29719_p2, %p30042_p8  ;;  %p29728_p3 = por %p29727_p0, %p29726_p13 }
  0x7c   : > { %p29722_p12 = pneg %p29721_p11 }
  0x7e   : > { %p29729_p4 = pnand %p29728_p3, %p29722_p12 }
  0x80   : > { %29732 = shalt.err (!%p29729_p4)
}
  0x81   : > { %29430 = dma.hbm_to_vmem [thread:$0]  (!%p30026_p6), %s32048_s6, 32, %s520_s16, [#allocation5]  }
  0x82   : > { %s29733_s22 = scalar_lea.hbm %s32051_s9, 32 }
  0x83   : > { %p29734_p1 = scmp.ne.s32.totalorder %s32051_s9, %s29733_s22  ;;  %p29740_p4 = scmp.lt.u32.totalorder %s29733_s22, %s32051_s9 }
  0x85   : > { %p29736_p5 = pnand %p29734_p1, %p30042_p8 }
  0x87   : > { %p29737_p3 = pneg %p29736_p5 }
  0x89   : > { %p29742_p7 = pnand %p29740_p4, %p29737_p3 }
  0x8b   : > { %29745 = shalt.err (!%p29742_p7)
}
  0x8c   : > { %s29746_s3 = scalar_lea.vmem %s545_s0, 32  ;;  %p29754_p11 = scmp.lt.s32.totalorder %s545_s0, %s545_s0 }
  0x8d   : > { %p29747_p9 = scmp.ne.s32.totalorder %s545_s0, %s29746_s3  ;;  %p29755_p12 = scmp.lt.s32.totalorder %s29746_s3, %s29746_s3 }
  0x8f   : > { %p29749_p10 = pnand %p29747_p9, %p30042_p8  ;;  %p29756_p13 = por %p29755_p12, %p29754_p11 }
  0x91   : > { %p29750_p2 = pneg %p29749_p10 }
  0x93   : > { %p29757_p0 = pnand %p29756_p13, %p29750_p2 }
  0x95   : > { %29760 = shalt.err (!%p29757_p0)
}
  0x96   : > { %29436 = dma.hbm_to_vmem [thread:$0]  (!%p30026_p6), %s32051_s9, 32, %s545_s0, [#allocation7]  }
  0x97   : > { %s29879_s23 = smov [#allocation11]   ;;  %s29880_s1 = smov [#allocation14]  }
  0x98   : > { %s569_s5 = sshll.u32 %s29879_s23, 4  ;;  %s594_s21 = sshll.u32 %s29880_s1, 4  ;;  %s570_s5 = int_to_ptr.vmem [resolvable:$true] %s569_s5  ;;  %s595_s21 = int_to_ptr.vmem [resolvable:$true] %s594_s21 }
  0x99   : > { %s29761_s4 = scalar_lea.hbm %s32054_s12, 32 }
  0x9a   : > { %p29762_p1 = scmp.ne.s32.totalorder %s32054_s12, %s29761_s4  ;;  %p29768_p4 = scmp.lt.u32.totalorder %s29761_s4, %s32054_s12 }
  0x9c   : > { %p29764_p5 = pnand %p29762_p1, %p30042_p8 }
  0x9e   : > { %p29765_p3 = pneg %p29764_p5 }
  0xa0   : > { %p29770_p7 = pnand %p29768_p4, %p29765_p3 }
  0xa2   : > { %29773 = shalt.err (!%p29770_p7)
}
  0xa3   : > { %s29774_s0 = scalar_lea.vmem %s570_s5, 32  ;;  %p29782_p11 = scmp.lt.s32.totalorder %s570_s5, %s570_s5 }
  0xa4   : > { %p29775_p9 = scmp.ne.s32.totalorder %s570_s5, %s29774_s0  ;;  %p29783_p12 = scmp.lt.s32.totalorder %s29774_s0, %s29774_s0 }
  0xa6   : > { %p29777_p10 = pnand %p29775_p9, %p30042_p8  ;;  %p29784_p13 = por %p29783_p12, %p29782_p11 }
  0xa8   : > { %p29778_p2 = pneg %p29777_p10 }
  0xaa   : > { %p29785_p0 = pnand %p29784_p13, %p29778_p2 }
  0xac   : > { %29788 = shalt.err (!%p29785_p0)
}
  0xad   : > { %29442 = dma.hbm_to_vmem [thread:$0]  (!%p30026_p6), %s32054_s12, 32, %s570_s5, [#allocation10]  }
  0xae   : > { %s29789_s25 = scalar_lea.hbm %s32057_s15, 32 }
  0xaf   : > { %p29790_p1 = scmp.ne.s32.totalorder %s32057_s15, %s29789_s25  ;;  %p29796_p4 = scmp.lt.u32.totalorder %s29789_s25, %s32057_s15 }
  0xb1   : > { %p29792_p5 = pnand %p29790_p1, %p30042_p8 }
  0xb3   : > { %p29793_p3 = pneg %p29792_p5 }
  0xb5   : > { %p29798_p7 = pnand %p29796_p4, %p29793_p3 }
  0xb7   : > { %29801 = shalt.err (!%p29798_p7)
}
  0xb8   : > { %s29802_s16 = scalar_lea.vmem %s595_s21, 32  ;;  %p29810_p11 = scmp.lt.s32.totalorder %s595_s21, %s595_s21 }
  0xb9   : > { %p29803_p9 = scmp.ne.s32.totalorder %s595_s21, %s29802_s16  ;;  %p29811_p12 = scmp.lt.s32.totalorder %s29802_s16, %s29802_s16 }
  0xbb   : > { %p29805_p10 = pnand %p29803_p9, %p30042_p8  ;;  %p29812_p13 = por %p29811_p12, %p29810_p11 }
  0xbd   : > { %p29806_p2 = pneg %p29805_p10 }
  0xbf   : > { %p29813_p0 = pnand %p29812_p13, %p29806_p2 }
  0xc1   : > { %29816 = shalt.err (!%p29813_p0)
}
  0xc2   : > { %29448 = dma.hbm_to_vmem [thread:$0]  (!%p30026_p6), %s32057_s15, 32, %s595_s21, [#allocation13]  }
  0xc3   : > { %s29881_s29 = smov [#allocation17]   ;;  %s29817_s25 = scalar_lea.hbm %s32061_s19, 16 }
  0xc4   : > { %s622_s23 = sshll.u32 %s29881_s29, 4  ;;  %p29818_p1 = scmp.ne.s32.totalorder %s32061_s19, %s29817_s25  ;;  %s623_s23 = int_to_ptr.vmem [resolvable:$true] %s622_s23 }
  0xc5   : > { %p29824_p4 = scmp.lt.u32.totalorder %s29817_s25, %s32061_s19 }
  0xc6   : > { %p29820_p5 = pnand %p29818_p1, %p30042_p8 }
  0xc8   : > { %p29821_p3 = pneg %p29820_p5 }
  0xca   : > { %p29826_p7 = pnand %p29824_p4, %p29821_p3 }
  0xcc   : > { %29829 = shalt.err (!%p29826_p7)
}
  0xcd   : > { %s29830_s21 = scalar_lea.vmem %s623_s23, 16  ;;  %s29837_s16 = scalar_lea.vmem %s623_s23, 32 }
  0xce   : > { %p29831_p9 = scmp.ne.s32.totalorder %s623_s23, %s29830_s21  ;;  %p29838_p11 = scmp.lt.s32.totalorder %s623_s23, %s623_s23 }
  0xcf   : > { %p29839_p12 = scmp.lt.s32.totalorder %s29837_s16, %s29830_s21 }
  0xd0   : > { %p29833_p10 = pnand %p29831_p9, %p30042_p8 }
  0xd1   : > { %p29840_p13 = por %p29839_p12, %p29838_p11 }
  0xd2   : > { %p29834_p2 = pneg %p29833_p10 }
  0xd4   : > { %p29841_p0 = pnand %p29840_p13, %p29834_p2 }
  0xd6   : > { %29844 = shalt.err (!%p29841_p0)
}
  0xd7   : > { %29454 = dma.hbm_to_vmem [thread:$0]  (!%p30026_p6), %s32061_s19, 16, %s623_s23, [#allocation16]  }
  0xd8   : > { %p32089_p1 = scmp.ne.s32.totalorder %s32086_s2, 0 }
  0xd9   : > { %p32090_p5 = scmp.eq.s32.totalorder (!%p32089_p1), %s30008_s24, 0 }
  0xda   : > { %642 = sbr.rel (%p32089_p1) target bundleno = 13442 (0x3482), region = 100 }
  0xe1   : > { %29850 = dma.done.wait (%p32090_p5), [#allocation5], 32   ;;  %p32091_p8 = pmov %p32090_p5 }
  0xe2   : > { %p32092_p3 = pmov %p32090_p5 }
  0xe3   : > { %29852 = vsyncadd (%p32091_p8), [#allocation5], 4294967264 }
  0xe4   : > { %29854 = dma.done.wait (%p32092_p3), [#allocation7], 64   ;;  %p32093_p4 = pmov %p32092_p3 }
  0xe5   : > { %p32094_p7 = pmov %p32092_p3 }
  0xe6   : > { %29856 = vsyncadd (%p32093_p4), [#allocation7], 4294967232 }
  0xe7   : > { %29858 = dma.done.wait (%p32094_p7), [#allocation10], 64   ;;  %p32095_p6 = pmov %p32092_p3 }
  0xe8   : > { %p32096_p9 = pmov %p32092_p3 }
  0xe9   : > { %29860 = vsyncadd (%p32095_p6), [#allocation10], 4294967232 }
  0xea   : > { %29862 = dma.done.wait (%p32096_p9), [#allocation13], 64   ;;  %p32097_p10 = pmov %p32092_p3 }
  0xeb   : > { %p32098_p2 = pmov %p32092_p3 }
  0xec   : > { %29864 = vsyncadd (%p32097_p10), [#allocation13], 4294967232 }
  0xed   : > { %29866 = dma.done.wait (%p32098_p2), [#allocation16], 32   ;;  %p32099_p11 = pmov %p32098_p2 }
  0xee   : > { %p730_p12 = scmp.lt.s32.totalorder %s30008_s24, 3  ;;  %s738_s2 = sadd.s32 3, %s30008_s24 }
  0xef   : > { %29868 = vsyncadd (%p32099_p11), [#allocation16], 4294967264  ;;  %s32100_s1 = sld [smem:[#allocation26_spill]]  ;;  %p32101_p13 = scmp.ne.s32.totalorder %s30008_s24, 0 }
  0xf0   : > { %s731_s28 = scalar_select %p730_p12, %s30008_s24, 3 }
  0xf1   : > { %742 = sbr.rel (%p32101_p13) target bundleno = 250 (0xfa), region = 140  ;;  %s32102_s21 = sld [smem:[#allocation24_spill]] (!%p32101_p13)  ;;  %vm745_vm0 = vcmask (!%p32101_p13), 261120   ;;  %vm749_vm1 = vcmask (!%p32101_p13), 254976  }
  0xf2   : > { %s26181_s26 = sshll.u32 %s731_s28, 1  ;;  %s32103_s29 = sld [smem:[#allocation25_spill]] (!%p32101_p13) }
  0xf3   : > { %s30254_s27 = scalar_lea.vmem %s32062_s20, %s26181_s26 }
  0xf5   : > { %s733_s22 = scalar_lea.vmem %s32100_s1, %s26181_s26 }
  0xf7   : > { %v743_v0 = vld [vmem:[%s32102_s21] sm:$0xff] (!%p32101_p13)  ;;  %v744_v1 = vld [vmem:[%s32102_s21 + $0x8] sm:$0xff] (!%p32101_p13) }
  0xf8   : > { %v748_v2 = vld [vmem:[%s32103_s29] sm:$0x3]  ;;  %746 = vst.msk [vmem:[#allocation2] sm:$0xff] %vm745_vm0, %v743_v0  ;;  %747 = vst.msk [vmem:[#allocation2 + $0x8] sm:$0xff] %vm745_vm0, %v744_v1 }
  0xf9   : > { %750 = vst.msk [vmem:[#allocation3] sm:$0x3] %vm749_vm1, %v748_v2 }
  0xfa PF: > { %v752_v4 = vld [vmem:[%s733_s22] sm:$0x3]  ;;  %v754_v5 = vlaneseq  ;;  %v30270_v8 = vstv %s738_s2  ;;  %vm766_vm3 = vcmask 261120   ;;  %s32104_s26 = sld [smem:[#allocation27_spill]]  ;;  %v829_v38 = vld [vmem:[%s32050_s8 + $0x8] sm:$0xff]  ;;  %v830_v43 = vld [vmem:[%s32050_s8 + $0x10] sm:$0xff] }
  0xfb   : > { %v828_v37 = vld [vmem:[%s32050_s8] sm:$0xff]  ;;  %v847_v40 = vand.u32 4294901760, %v829_v38  ;;  %v831_v44 = vld [vmem:[%s32050_s8 + $0x18] sm:$0xff]  ;;  %v850_v47 = vand.u32 4294901760, %v830_v43  ;;  %vm29883_vm4 = vmmov 0   ;;  %s29884_s28 = smov 64  }
  0xfc   : > { %v30268_v7 = vshrl.u32 %v754_v5, 7  ;;  %v844_v39 = vand.u32 4294901760, %v828_v37  ;;  %v853_v48 = vand.u32 4294901760, %v831_v44  ;;  %s29885_s29 = smov 96   ;;  %s29886_s24 = smov 120   ;;  %vm1378_vm5 = vcmask 64512  }
  0xfd   : > { %v941_v42 = vsub.f32 %v829_v38, %v847_v40  ;;  %v948_v51 = vsub.f32 %v830_v43, %v850_v47  ;;  %v26186_v38 = vld [vmem:[#allocation8] ss:$0 sm:$0xff]  ;;  %s32076_s2 = smov 56   ;;  %s29888_s23 = smov 112   ;;  %vm25018_vm7 = vcmask 1040384   ;;  %vm25022_vm8 = vcmask 254976  }
  0xfe   : > { %v763_v9 = vsub.s32 0, %v30268_v7  ;;  %v771_v10 = vsub.s32 1, %v30268_v7  ;;  %vm757_vm2 = vcmp.eq.s32.totalorder %v30268_v7, %v30270_v8  ;;  %v934_v41 = vsub.f32 %v828_v37, %v844_v39  ;;  %s29889_s1 = smov 80   ;;  %s29890_s22 = smov 88  }
  0xff   : > { %v942_v46 = vand.u32 4294901760, %v941_v42  ;;  %v955_v52 = vsub.f32 %v831_v44, %v853_v48  ;;  %v949_v55 = vand.u32 4294901760, %v948_v51  ;;  %v30314_v60 = vpack.c.bf16 %v847_v40, %v844_v39  ;;  %s32074_s25 = smov 48   ;;  %s32070_s4 = smov 72  }
 0x100   : > { %v751_v3 = vld [vmem:[#allocation3] sm:$0x3]  ;;  %v779_v19 = vld [vmem:[%s32104_s26] sm:$0xff]  ;;  %v780_v20 = vld [vmem:[%s32104_s26 + $0x8] sm:$0xff]  ;;  %v935_v45 = vand.u32 4294901760, %v934_v41  ;;  %v30316_v61 = vpack.c.bf16 %v853_v48, %v850_v47  ;;  %v28794_v1 = vpack.c.bf16 %v941_v42, %v934_v41  ;;  %s32072_s0 = smov 104  }
 0x101   : > { %v753_v6 = vadd.f32 %v752_v4, %v751_v3  ;;  %v758_v11 = vld [vmem:[#allocation2] sm:$0xff]  ;;  %v768_v12 = vld [vmem:[#allocation2 + $0x8] sm:$0xff]  ;;  %v943_v50 = vsub.f32 %v941_v42, %v942_v46  ;;  %v956_v56 = vand.u32 4294901760, %v955_v52  ;;  %v950_v58 = vsub.f32 %v948_v51, %v949_v55  ;;  %28779 = vmatprep.subr.bf16.mxu1 %v30314_v60  ;;  %s32068_s30 = smov 40   ;;  %s32111_s5 = sld [smem:[#allocation28_spill]] }
 0x102   : > { %v936_v49 = vsub.f32 %v934_v41, %v935_v45  ;;  %28781 = vmatpush3.bf16.msra.mxu1 %v30314_v60  ;;  %v28798_v2 = vpack.c.bf16 %v955_v52, %v948_v51  ;;  %v28810_v3 = vpack.c.bf16 %v942_v46, %v935_v45  ;;  %v29882_v42 = vmov 0.0   ;;  %s29896_s3 = smov 125  }
 0x103   : > { %v764_v13 = vrot.slane %v753_v6, %v763_v9  ;;  %v772_v14 = vrot.slane %v753_v6, %v771_v10  ;;  %v944_v54 = vand.u32 4294901760, %v943_v50  ;;  %v957_v59 = vsub.f32 %v955_v52, %v956_v56  ;;  %28783 = vmatprep.subr.bf16.mxu1 %v30316_v61 }
 0x104   : > { %v937_v53 = vand.u32 4294901760, %v936_v49  ;;  %v951_v62 = vand.u32 4294901760, %v950_v58  ;;  %v28814_v4 = vpack.c.bf16 %v956_v56, %v949_v55  ;;  %vm25566_vm9 = vcmask 1045504  }
 0x105   : > { %v765_v15 = vsel %vm757_vm2, %v764_v13, %v758_v11  ;;  %v773_v16 = vsel %vm757_vm2, %v772_v14, %v768_v12  ;;  %v958_v63 = vand.u32 4294901760, %v957_v59  ;;  %vm25550_vm10 = vcmask 66560  }
 0x106   : > { %767 = vst.msk [vmem:[#allocation2] sm:$0xff] %vm766_vm3, %v765_v15  ;;  %774 = vst.msk [vmem:[#allocation2 + $0x8] sm:$0xff] %vm766_vm3, %v773_v16  ;;  %v28786_v57 = vpack.c.bf16 %v944_v54, %v937_v53  ;;  %28785 = vmatpush3.bf16.msra.mxu1 %v30316_v61  ;;  %v26184_v15 = vld [vmem:[#allocation4] ss:$0 sm:$0xff]  ;;  %vm25563_vm11 = vcmask 48128  }
 0x107   : > { %v28790_v0 = vpack.c.bf16 %v958_v63, %v951_v62  ;;  %27044 = vmatprep.subr.mxu1 %v29882_v42  ;;  %v784_v63 = vand.u32 127, %v754_v5 }
 0x108   : > { %28787 = vmatprep.subr.bf16.mxu0 %v28786_v57 }
 0x109   : > { %28789 = vmatpush3.bf16.msra.mxu0 %v28786_v57  ;;  %vm785_vm6 = vcmp.gt.s32.totalorder %v784_v63, %v30268_v7 }
 0x10a   : > { %28791 = vmatprep.subr.bf16.mxu0 %v28790_v0 }
 0x10d   : > { %v775_v17 = vld [vmem:[#allocation2] sm:$0xff]  ;;  %v776_v18 = vld [vmem:[#allocation2 + $0x8] sm:$0xff]  ;;  %28793 = vmatpush3.bf16.msra.mxu0 %v28790_v0  ;;  %v30382_v0 = vsel %vm785_vm6, -inf, %v29882_v42 }
 0x10e   : > { %29505 = vtanh.f32 %v775_v17  ;;  %28795 = vmatprep.subr.bf16.mxu0 %v28794_v1  ;;  %v26185_v17 = vld [vmem:[#allocation6] ss:$0 sm:$0xff] }
 0x10f   : > { %29507 = vtanh.f32 %v776_v18 }
 0x118   : > { %v29506_v21 = vpop.eup %29505 }
 0x119   : > { %v29508_v22 = vpop.eup %29507  ;;  %v30290_v23 = vadd.f32 %v29506_v21, %v779_v19 }
 0x11a   : > { %v30292_v24 = vadd.f32 %v29508_v22, %v780_v20 }
 0x11b   : > { %v789_v25 = vsel %vm766_vm3, %v30290_v23, 0.0 }
 0x11c   : > { %790 = vadd.xlane.f32.xlu0 %v789_v25  ;;  %v792_v26 = vsel %vm766_vm3, %v30292_v24, 0.0 }
 0x120   : > { %793 = vadd.xlane.f32.xlu0 %v792_v26 }
 0x1a9   : > { %v791_v27 = vpop.xlane.xlu0 %790 }
 0x1aa   : > { %v796_v28 = vmul.f32 0.03125, %v791_v27 }
 0x1ac   : > { %v798_v29 = vsub.f32 %v30290_v23, %v796_v28 }
 0x1ad   : > { %v794_v30 = vpop.xlane.xlu0 %793 }
 0x1ae   : > { %v797_v31 = vmul.f32 0.03125, %v794_v30  ;;  %v800_v32 = vmul.f32 %v798_v29, %v798_v29 }
 0x1b0   : > { %v799_v33 = vsub.f32 %v30292_v24, %v797_v31  ;;  %v802_v34 = vsel %vm766_vm3, %v800_v32, 0.0 }
 0x1b1   : > { %803 = vadd.xlane.f32.xlu1 %v802_v34 }
 0x1b2   : > { %v801_v35 = vmul.f32 %v799_v33, %v799_v33 }
 0x1b4   : > { %v805_v36 = vsel %vm766_vm3, %v801_v35, 0.0 }
 0x1b5   : > { %806 = vadd.xlane.f32.xlu1 %v805_v36 }
 0x23e   : > { %v804_v6 = vpop.xlane.xlu1 %803 }
 0x23f   : > { %v808_v9 = vmul.f32 0.03125, %v804_v6 }
 0x241   : > { %v810_v10 = vadd.f32 1e-05, %v808_v9 }
 0x242   : > { %v807_v11 = vpop.xlane.xlu1 %806 }
 0x243   : > { %29509 = vrsqrt.f32 %v810_v10  ;;  %v809_v12 = vmul.f32 0.03125, %v807_v11 }
 0x245   : > { %v811_v13 = vadd.f32 1e-05, %v809_v12 }
 0x247   : > { %29511 = vrsqrt.f32 %v811_v13 }
 0x24d   : > { %v29510_v14 = vpop.eup %29509 }
 0x24e   : > { %v814_v16 = vmul.f32 %v29510_v14, %v798_v29 }
 0x250   : > { %v820_v18 = vmul.f32 %v26184_v15, %v814_v16 }
 0x251   : > { %v29512_v19 = vpop.eup %29511 }
 0x252   : > { %v815_v20 = vmul.f32 %v29512_v19, %v799_v33  ;;  %v826_v21 = vadd.f32 %v26185_v17, %v820_v18 }
 0x254   : > { %v838_v22 = vsel %vm766_vm3, %v826_v21, 0  ;;  %v821_v25 = vmul.f32 %v26184_v15, %v815_v20 }
 0x255   : > { %v912_v26 = vand.u32 4294901760, %v838_v22 }
 0x256   : > { %v827_v27 = vadd.f32 %v26185_v17, %v821_v25 }
 0x257   : > { %26997 = vmatprep.mubr.f32.mxu0 %v912_v26  ;;  %v913_v28 = vsub.f32 %v838_v22, %v912_v26 }
 0x258   : > { %v841_v30 = vsel %vm766_vm3, %v827_v27, 0 }
 0x259   : > { %v922_v31 = vand.u32 4294901760, %v841_v30  ;;  %v914_v32 = vand.u32 4294901760, %v913_v28 }
 0x25b   : > { %26998 = vmatmul.mubr.f32.vlgmr.msra.gmra.mrb[0].mxu0 %v922_v31  ;;  %v915_v34 = vsub.f32 %v913_v28, %v914_v32  ;;  %v923_v35 = vsub.f32 %v841_v30, %v922_v31 }
 0x25c   : > { %28797 = vmatpush3.bf16.msra.mxu0 %v28794_v1  ;;  %27008 = vmatprep.mubr.f32.mxu0 %v913_v28 }
 0x25d   : > { %v916_v29 = vand.u32 4294901760, %v915_v34  ;;  %28799 = vmatprep.subr.bf16.mxu0 %v28798_v2  ;;  %v924_v33 = vand.u32 4294901760, %v923_v35 }
 0x25f   : > { %26986 = vmatprep.mubr.f32.mxu1 %v916_v29  ;;  %v925_v36 = vsub.f32 %v923_v35, %v924_v33 }
 0x260   : > { %28801 = vmatpush3.bf16.msra.mxu0 %v28798_v2 }
 0x261   : > { %v926_v37 = vand.u32 4294901760, %v925_v36  ;;  %28803 = vmatprep.subr.bf16.mxu0 %v30314_v60 }
 0x263   : > { %26987 = vmatmul.mubr.f32.vlgmr.msra.gmra.mrb[0].mxu1 %v926_v37  ;;  %27009 = vmatmul.mubr.f32.vlgmr.msra.gmra.mrb[0].mxu0 %v923_v35 }
 0x264   : > { %28805 = vmatpush3.bf16.msra.mxu0 %v30314_v60  ;;  %27019 = vmatprep.mubr.f32.mxu0 %v914_v32 }
 0x265   : > { %28807 = vmatprep.subr.bf16.mxu0 %v30316_v61  ;;  %27046 = vmatprep.mubr.msk.f32.mxu1 %vm29883_vm4, %v29882_v42 }
 0x268   : > { %28809 = vmatpush3.bf16.msra.mxu0 %v30316_v61 }
 0x269   : > { %28811 = vmatprep.subr.bf16.mxu0 %v28810_v3 }
 0x26b   : > { %27020 = vmatmul.mubr.f32.vlgmr.msra.gmra.mrb[0].mxu0 %v924_v33 }
 0x26c   : > { %28813 = vmatpush3.bf16.msra.mxu0 %v28810_v3  ;;  %27030 = vmatprep.mubr.f32.mxu0 %v912_v26 }
 0x26d   : > { %28815 = vmatprep.subr.bf16.mxu0 %v28814_v4 }
 0x270   : > { %28817 = vmatpush3.bf16.msra.mxu0 %v28814_v4 }
 0x271   : > { %28819 = vmatprep.subr.bf16.mxu0 %v30314_v60 }
 0x273   : > { %27031 = vmatmul.mubr.f32.vlgmr.msra.gmra.mrb[0].mxu0 %v922_v31 }
 0x274   : > { %28821 = vmatpush3.bf16.msra.mxu0 %v30314_v60  ;;  %27041 = vmatprep.mubr.f32.mxu0 %v912_v26 }
 0x275   : > { %28823 = vmatprep.subr.bf16.mxu0 %v30316_v61 }
 0x278   : > { %28825 = vmatpush3.bf16.msra.mxu0 %v30316_v61 }
 0x279   : > { %27109 = vmatprep.subr.mxu0 %v29882_v42 }
 0x27b   : > { %27042 = vmatmul.mubr.f32.vlgmr.msra.gmra.mrb[0].mxu0 %v922_v31 }
 0x27c   : > { %27111 = vmatprep.mubr.msk.f32.mxu0 %vm29883_vm4, %v29882_v42 }
 0x336   : > { %v26988_v39 = vpop.f32.mrb[0].mxu1 }
 0x337   : > { %v929_v40 = vadd.f32 %v26988_v39, %v26186_v38  ;;  %v918_v41 = vpop.f32.mrb[1].mxu1 }
 0x338   : > { %v919_v43 = vadd.f32 %v26186_v38, %v918_v41 }
 0x34e   : > { %v27043_v44 = vpop.f32.mrb[0].mxu0 }
 0x34f   : > { %v30338_v45 = vadd.f32 %v27043_v44, %v929_v40  ;;  %v1361_v46 = vpop.f32.mrb[1].mxu0 }
 0x350   : > { %v30340_v47 = vadd.f32 %v1361_v46, %v919_v43 }
 0x352   : > { %1839 = vrot.lane.b32.xlu1 %v30340_v47, %s29884_s28  ;;  %1376 = vrot.lane.b32.xlu0 %v30340_v47, %s29885_s29  ;;  %v1379_v48 = vsel %vm1378_vm5, %v30340_v47, 0 }
 0x353   : > { %v1449_v49 = vand.u32 4294901760, %v1379_v48 }
 0x355   : > { %v1450_v50 = vsub.f32 %v1379_v48, %v1449_v49 }
 0x356   : > { %2291 = vrot.lane.b32.xlu0 %v30340_v47, %s29886_s24 }
 0x357   : > { %v1451_v51 = vand.u32 4294901760, %v1450_v50 }
 0x359   : > { %v1452_v54 = vsub.f32 %v1450_v50, %v1451_v51 }
 0x35a   : > { %2755 = vrot.lane.b32.xlu0 %v30340_v47, %s32076_s2 }
 0x35b   : > { %v1453_v57 = vand.u32 4294901760, %v1452_v54 }
 0x35e   : > { %4105 = vrot.lane.b32.xlu0 %v30340_v47, %s29888_s23 }
 0x362   : > { %4107 = vrot.lane.b32.xlu0 %v30340_v47, %s29889_s1 }
 0x3c4   : > { %v1377_v52 = vpop.permute.xlu0 %1376  ;;  %v1840_v61 = vpop.permute.xlu1 %1839 }
 0x3c5   : > { %v1381_v53 = vsel %vm1378_vm5, %v1377_v52, 0  ;;  %v30373_v62 = vand.u32 4294901760, %v1840_v61 }
 0x3c6   : > { %v1384_v55 = vand.u32 4294901760, %v1381_v53 }
 0x3c7   : > { %v1923_v18 = vsub.f32 %v1840_v61, %v30373_v62 }
 0x3c8   : > { %v1461_v56 = vsub.f32 %v1381_v53, %v1384_v55  ;;  %27045 = vmatpush3.xpose.msra.mxu1 %v1384_v55  ;;  %v2292_v17 = vpop.permute.xlu0 %2291 }
 0x3c9   : > { %27049 = vmatprep.subr.mxu1 %v29882_v42  ;;  %v2295_v21 = vsel %vm1378_vm5, %v2292_v17, 0  ;;  %v1924_v27 = vand.u32 4294901760, %v1923_v18 }
 0x3ca   : > { %v1462_v58 = vand.u32 4294901760, %v1461_v56  ;;  %v2365_v28 = vand.u32 4294901760, %v2295_v21 }
 0x3cb   : > { %27047 = vmatmul.mubr.f32.vlgmr.msra.gmra.mrb[2].mxu1 %v1453_v57  ;;  %v1925_v32 = vsub.f32 %v1923_v18, %v1924_v27 }
 0x3cc   : > { %v1463_v59 = vsub.f32 %v1461_v56, %v1462_v58  ;;  %27051 = vmatprep.mubr.msk.f32.mxu1 %vm29883_vm4, %v29882_v42  ;;  %v2366_v33 = vsub.f32 %v2295_v21, %v2365_v28  ;;  %v2756_v38 = vpop.permute.xlu0 %2755 }
 0x3cd   : > { %v1926_v29 = vand.u32 4294901760, %v1925_v32  ;;  %v2762_v40 = vand.u32 4294901760, %v2756_v38 }
 0x3ce   : > { %v1464_v60 = vand.u32 4294901760, %v1463_v59  ;;  %v2367_v36 = vand.u32 4294901760, %v2366_v33 }
 0x3d0   : > { %27050 = vmatpush3.xpose.msra.mxu1 %v1464_v60  ;;  %v2368_v37 = vsub.f32 %v2366_v33, %v2367_v36 }
 0x3d1   : > { %27054 = vmatprep.subr.mxu1 %v29882_v42 }
 0x3d2   : > { %v2369_v39 = vand.u32 4294901760, %v2368_v37 }
 0x3d3   : > { %27052 = vmatmul.mubr.f32.vlgmr.msra.gmra.mrb[2].mxu1 %v1449_v49 }
 0x3d4   : > { %27055 = vmatpush3.xpose.msra.mxu1 %v1461_v56  ;;  %27056 = vmatprep.mubr.msk.f32.mxu1 %vm29883_vm4, %v29882_v42 }
 0x3d5   : > { %27059 = vmatprep.subr.mxu1 %v29882_v42 }
 0x3db   : > { %27057 = vmatmul.mubr.f32.vlgmr.msra.gmra.mrb[2].mxu1 %v1450_v50 }
 0x3dc   : > { %27060 = vmatpush3.xpose.msra.mxu1 %v1384_v55  ;;  %27061 = vmatprep.mubr.msk.f32.mxu1 %vm29883_vm4, %v29882_v42 }
 0x3dd   : > { %27064 = vmatprep.subr.mxu1 %v29882_v42 }
 0x3e3   : > { %27062 = vmatmul.mubr.f32.vlgmr.msra.gmra.mrb[2].mxu1 %v1451_v51 }
 0x3e4   : > { %27065 = vmatpush3.xpose.msra.mxu1 %v1462_v58  ;;  %27066 = vmatprep.mubr.msk.f32.mxu1 %vm29883_vm4, %v29882_v42  ;;  %v2839_v58 = vsub.f32 %v2756_v38, %v2762_v40 }
 0x3e5   : > { %27069 = vmatprep.subr.mxu1 %v29882_v42 }
 0x3eb   : > { %27067 = vmatmul.mubr.f32.vlgmr.msra.gmra.mrb[2].mxu1 %v1449_v49 }
 0x3ec   : > { %27070 = vmatpush3.xpose.msra.mxu1 %v1384_v55  ;;  %27071 = vmatprep.mubr.msk.f32.mxu1 %vm29883_vm4, %v29882_v42 }
 0x3ed   : > { %27074 = vmatprep.subr.mxu1 %v29882_v42 }
 0x3f3   : > { %27072 = vmatmul.mubr.f32.vlgmr.msra.gmra.mrb[2].mxu1 %v1449_v49 }
 0x3f4   : > { %27075 = vmatpush3.msra.mxu1 %v30373_v62  ;;  %27076 = vmatprep.mubr.msk.f32.mxu1 %vm29883_vm4, %v29882_v42 }
 0x3f5   : > { %27079 = vmatprep.subr.mxu1 %v29882_v42 }
 0x4c6   : > { %v1825_v1 = vpop.f32.mrb[2].mxu1 }
 0x4c7   : > { %v1829_v2 = vmul.f32 0.35355338, %v1825_v1  ;;  %v27073_v3 = vpop.f32.mrb[3].mxu1 }
 0x4c9   : > { %v1830_v4 = vadd.f32 %v1829_v2, %v30382_v0 }
 0x4cb   : > { %v1831_v6 = vmul.f32 1.442695, %v1830_v4 }
 0x4cd   : > { %29513 = vpow2.f32 %v1831_v6 }
 0x4d7   : > { %v29514_v9 = vpop.eup %29513 }
 0x4d8   : > { %v1833_v10 = vsel %vm1378_vm5, %v29514_v9, 0.0 }
 0x4d9   : > { %1834 = vadd.xlane.f32.xlu1 %v1833_v10 }
 0x4ea   : > { %2293 = vrot.lane.b32.xlu1 %v30340_v47, %s29890_s22 }
 0x566   : > { %v1835_v5 = vpop.xlane.xlu1 %1834 }
 0x567   : > { %29515 = vrcp.f32 %v1835_v5 }
 0x56a   : > { %v2294_v11 = vpop.permute.xlu1 %2293 }
 0x56b   : > { %v2297_v12 = vsel %vm1378_vm5, %v2294_v11, 0 }
 0x56c   : > { %v30389_v13 = vand.u32 4294901760, %v2297_v12 }
 0x56e   : > { %v2377_v14 = vsub.f32 %v2297_v12, %v30389_v13 }
 0x570   : > { %v2378_v15 = vand.u32 4294901760, %v2377_v14 }
 0x571   : > { %v29516_v16 = vpop.eup %29515 }
 0x572   : > { %v1838_v19 = vmul.f32 %v29516_v16, %v29514_v9  ;;  %v2379_v20 = vsub.f32 %v2377_v14, %v2378_v15  ;;  %v1372_v9 = vld [vmem:[%s32052_s10 + $0x8] sm:$0xff] }
 0x573   : > { %v30465_v10 = vand.u32 4294901760, %v1372_v9 }
 0x574   : > { %v2380_v22 = vand.u32 4294901760, %v2379_v20  ;;  %v1843_v25 = vsel %vm1378_vm5, %v1838_v19, 0 }
 0x575   : > { %v1911_v26 = vand.u32 4294901760, %v1843_v25  ;;  %v30468_v5 = vsub.f32 %v1372_v9, %v30465_v10 }
 0x576   : > { %27110 = vmatpush3.xpose.msra.mxu0 %v2380_v22 }
 0x577   : > { %27114 = vmatprep.subr.mxu0 %v29882_v42  ;;  %v1912_v30 = vsub.f32 %v1843_v25, %v1911_v26  ;;  %v30473_v11 = vand.u32 4294901760, %v30468_v5 }
 0x579   : > { %27112 = vmatmul.mubr.f32.vlgmr.msra.gmra.mrb[2].mxu0 %v2365_v28  ;;  %v1913_v31 = vand.u32 4294901760, %v1912_v30  ;;  %v3290_v12 = vsub.f32 %v30468_v5, %v30473_v11 }
 0x57a   : > { %27115 = vmatpush3.xpose.msra.mxu0 %v2377_v14  ;;  %27116 = vmatprep.mubr.msk.f32.mxu0 %vm29883_vm4, %v29882_v42  ;;  %v1371_v14 = vld [vmem:[%s32052_s10] sm:$0xff] }
 0x57b   : > { %v1914_v34 = vsub.f32 %v1912_v30, %v1913_v31  ;;  %27119 = vmatprep.subr.mxu0 %v29882_v42 }
 0x57d   : > { %v1915_v35 = vand.u32 4294901760, %v1914_v34 }
 0x57f   : > { %27077 = vmatmul.mubr.f32.vlgmr.msra.gmra.mrb[4].mxu1 %v1915_v35 }
 0x580   : > { %27080 = vmatpush3.msra.mxu1 %v1926_v29  ;;  %27081 = vmatprep.mubr.msk.f32.mxu1 %vm29883_vm4, %v29882_v42 }
 0x581   : > { %27117 = vmatmul.mubr.f32.vlgmr.msra.gmra.mrb[2].mxu0 %v2366_v33  ;;  %27084 = vmatprep.subr.mxu1 %v29882_v42 }
 0x582   : > { %27120 = vmatpush3.xpose.msra.mxu0 %v30389_v13  ;;  %27121 = vmatprep.mubr.msk.f32.mxu0 %vm29883_vm4, %v29882_v42 }
 0x583   : > { %27124 = vmatprep.subr.mxu0 %v29882_v42 }
 0x587   : > { %27082 = vmatmul.mubr.f32.vlgmr.msra.gmra.mrb[4].mxu1 %v1911_v26 }
 0x588   : > { %27085 = vmatpush3.msra.mxu1 %v1923_v18  ;;  %27086 = vmatprep.mubr.msk.f32.mxu1 %vm29883_vm4, %v29882_v42 }
 0x589   : > { %27122 = vmatmul.mubr.f32.vlgmr.msra.gmra.mrb[2].mxu0 %v2367_v36  ;;  %27089 = vmatprep.subr.mxu1 %v29882_v42 }
 0x58a   : > { %27125 = vmatpush3.xpose.msra.mxu0 %v2378_v15  ;;  %27126 = vmatprep.mubr.msk.f32.mxu0 %vm29883_vm4, %v29882_v42  ;;  %v30484_v15 = vand.u32 4294901760, %v1371_v14 }
 0x58b   : > { %27129 = vmatprep.subr.mxu0 %v29882_v42 }
 0x58c   : > { %v30487_v16 = vsub.f32 %v1371_v14, %v30484_v15 }
 0x58e   : > { %v30491_v21 = vand.u32 4294901760, %v30487_v16 }
 0x58f   : > { %27087 = vmatmul.mubr.f32.vlgmr.msra.gmra.mrb[4].mxu1 %v1912_v30 }
 0x590   : > { %27090 = vmatpush3.msra.mxu1 %v30373_v62  ;;  %27091 = vmatprep.mubr.msk.f32.mxu1 %vm29883_vm4, %v29882_v42 }
 0x591   : > { %27127 = vmatmul.mubr.f32.vlgmr.msra.gmra.mrb[2].mxu0 %v2365_v28  ;;  %27094 = vmatprep.subr.mxu1 %v29882_v42 }
 0x592   : > { %27130 = vmatpush3.xpose.msra.mxu0 %v30389_v13  ;;  %27131 = vmatprep.mubr.msk.f32.mxu0 %vm29883_vm4, %v29882_v42 }
 0x593   : > { %27164 = vmatprep.subr.mxu0 %v29882_v42 }
 0x597   : > { %27092 = vmatmul.mubr.f32.vlgmr.msra.gmra.mrb[4].mxu1 %v1913_v31  ;;  %v4106_v31 = vpop.permute.xlu0 %4105 }
 0x598   : > { %27095 = vmatpush3.msra.mxu1 %v1924_v27  ;;  %27096 = vmatprep.mubr.msk.f32.mxu1 %vm29883_vm4, %v29882_v42  ;;  %v4109_v36 = vsel %vm1378_vm5, %v4106_v31, 0 }
 0x599   : > { %27132 = vmatmul.mubr.f32.vlgmr.msra.gmra.mrb[2].mxu0 %v2365_v28  ;;  %27099 = vmatprep.subr.mxu1 %v29882_v42  ;;  %v3739_v28 = vsub.f32 %v30487_v16, %v30491_v21 }
 0x59a   : > { %27166 = vmatprep.mubr.msk.f32.mxu0 %vm29883_vm4, %v29882_v42  ;;  %27165 = vmatpush3.msra.mxu0 %v30465_v10 }
 0x59b   : > { %27174 = vmatprep.subr.mxu0 %v29882_v42  ;;  %v30505_v35 = vand.u32 4294901760, %v3739_v28  ;;  %v4108_v33 = vpop.permute.xlu0 %4107 }
 0x59c   : > { %v4111_v38 = vsel %vm1378_vm5, %v4108_v33, 0 }
 0x59f   : > { %27097 = vmatmul.mubr.f32.vlgmr.msra.gmra.mrb[4].mxu1 %v1911_v26 }
 0x5a0   : > { %27100 = vmatpush3.msra.mxu1 %v30373_v62  ;;  %27101 = vmatprep.mubr.msk.f32.mxu1 %vm29883_vm4, %v29882_v42  ;;  %v2840_v62 = vand.u32 4294901760, %v2839_v58 }
 0x5a1   : > { %27104 = vmatprep.subr.mxu1 %v29882_v42 }
 0x5a2   : > { %v2841_v2 = vsub.f32 %v2839_v58, %v2840_v62 }
 0x5a4   : > { %v2842_v6 = vand.u32 4294901760, %v2841_v2 }
 0x5a7   : > { %27102 = vmatmul.mubr.f32.vlgmr.msra.gmra.mrb[4].mxu1 %v1911_v26 }
 0x5a8   : > { %27105 = vmatpush3.xpose.msra.mxu1 %v30389_v13  ;;  %27106 = vmatprep.mubr.msk.f32.mxu1 %vm29883_vm4, %v29882_v42  ;;  %v30477_v13 = vand.u32 4294901760, %v3290_v12 }
 0x5a9   : > { %27134 = vmatprep.subr.mxu1 %v29882_v42 }
 0x5ab   : > { %27107 = vmatmul.mubr.f32.vlgmr.msra.gmra.mrb[6].mxu1 %v2369_v39 }
 0x5ac   : > { %27135 = vmatpush3.msra.mxu1 %v2762_v40  ;;  %27136 = vmatprep.mubr.msk.f32.mxu1 %vm29883_vm4, %v29882_v42 }
 0x5ad   : > { %27139 = vmatprep.subr.mxu1 %v29882_v42 }
 0x66c   : > { %v2741_v41 = vpop.f32.mrb[2].mxu0 }
 0x66d   : > { %v27133_v43 = vpop.f32.mrb[3].mxu0 }
 0x67a   : > { %v30436_v44 = vpop.f32.mrb[4].mxu1 }
 0x67b   : > { %v27103_v46 = vpop.f32.mrb[5].mxu1  ;;  %v3657_v22 = vsel %vm1378_vm5, %v30436_v44, 0 }
 0x67c   : > { %v3725_v26 = vand.u32 4294901760, %v3657_v22 }
 0x67e   : > { %v2371_v48 = vpop.f32.mrb[6].mxu1  ;;  %v3726_v32 = vsub.f32 %v3657_v22, %v3725_v26 }
 0x67f   : > { %v29010_v49 = vadd.f32 %v2741_v41, %v2371_v48  ;;  %v27108_v50 = vpop.f32.mrb[7].mxu1  ;;  %v4114_v41 = vand.u32 4294901760, %v4111_v38 }
 0x680   : > { %v3727_v29 = vand.u32 4294901760, %v3726_v32 }
 0x681   : > { %v2745_v51 = vmul.f32 0.35355338, %v29010_v49  ;;  %v4191_v48 = vsub.f32 %v4111_v38, %v4114_v41 }
 0x682   : > { %v3728_v37 = vsub.f32 %v3726_v32, %v3727_v29 }
 0x683   : > { %v2746_v52 = vadd.f32 %v2745_v51, %v30382_v0  ;;  %v4192_v50 = vand.u32 4294901760, %v4191_v48 }
 0x684   : > { %v3729_v43 = vand.u32 4294901760, %v3728_v37 }
 0x685   : > { %v2747_v53 = vmul.f32 1.442695, %v2746_v52  ;;  %v4193_v52 = vsub.f32 %v4191_v48, %v4192_v50 }
 0x687   : > { %29517 = vpow2.f32 %v2747_v53 }
 0x691   : > { %v29518_v54 = vpop.eup %29517 }
 0x692   : > { %v2749_v55 = vsel %vm1378_vm5, %v29518_v54, 0.0 }
 0x693   : > { %2750 = vadd.xlane.f32.xlu1 %v2749_v55 }
 0x6a4   : > { %4569 = vrot.lane.b32.xlu1 %v30340_v47, %s32074_s25 }
 0x6a8   : > { %5473 = vrot.lane.b32.xlu1 %v30340_v47, %s32070_s4 }
 0x720   : > { %v2751_v56 = vpop.xlane.xlu1 %2750 }
 0x721   : > { %29519 = vrcp.f32 %v2751_v56 }
 0x724   : > { %v30525_v39 = vpop.permute.xlu1 %4569 }
 0x725   : > { %v30534_v44 = vand.u32 4294901760, %v30525_v39 }
 0x72b   : > { %v29520_v57 = vpop.eup %29519 }
 0x72c   : > { %v2754_v59 = vmul.f32 %v29520_v57, %v29518_v54  ;;  %v4194_v54 = vand.u32 4294901760, %v4193_v52 }
 0x72e   : > { %v2759_v60 = vsel %vm1378_vm5, %v2754_v59, 0 }
 0x72f   : > { %v2827_v61 = vand.u32 4294901760, %v2759_v60 }
 0x731   : > { %v2828_v63 = vsub.f32 %v2759_v60, %v2827_v61 }
 0x733   : > { %v2829_v1 = vand.u32 4294901760, %v2828_v63 }
 0x735   : > { %v2830_v3 = vsub.f32 %v2828_v63, %v2829_v1 }
 0x737   : > { %v2831_v4 = vand.u32 4294901760, %v2830_v3 }
 0x739   : > { %27137 = vmatmul.mubr.f32.vlgmr.msra.gmra.mrb[8].mxu1 %v2831_v4 }
 0x73a   : > { %27140 = vmatpush3.msra.mxu1 %v2842_v6  ;;  %27141 = vmatprep.mubr.msk.f32.mxu1 %vm29883_vm4, %v29882_v42 }
 0x73b   : > { %27144 = vmatprep.subr.mxu1 %v29882_v42 }
 0x741   : > { %27142 = vmatmul.mubr.f32.vlgmr.msra.gmra.mrb[8].mxu1 %v2827_v61 }
 0x742   : > { %27145 = vmatpush3.msra.mxu1 %v2839_v58  ;;  %27146 = vmatprep.mubr.msk.f32.mxu1 %vm29883_vm4, %v29882_v42 }
 0x743   : > { %27149 = vmatprep.subr.mxu1 %v29882_v42 }
 0x749   : > { %27147 = vmatmul.mubr.f32.vlgmr.msra.gmra.mrb[8].mxu1 %v2828_v63 }
 0x74a   : > { %27150 = vmatpush3.msra.mxu1 %v2762_v40  ;;  %27151 = vmatprep.mubr.msk.f32.mxu1 %vm29883_vm4, %v29882_v42 }
 0x74b   : > { %27154 = vmatprep.subr.mxu1 %v29882_v42 }
 0x751   : > { %27152 = vmatmul.mubr.f32.vlgmr.msra.gmra.mrb[8].mxu1 %v2829_v1 }
 0x752   : > { %27155 = vmatpush3.msra.mxu1 %v2840_v62  ;;  %27156 = vmatprep.mubr.msk.f32.mxu1 %vm29883_vm4, %v29882_v42 }
 0x753   : > { %27159 = vmatprep.subr.mxu1 %v29882_v42 }
 0x759   : > { %27157 = vmatmul.mubr.f32.vlgmr.msra.gmra.mrb[8].mxu1 %v2827_v61 }
 0x75a   : > { %27160 = vmatpush3.msra.mxu1 %v2762_v40  ;;  %27161 = vmatprep.mubr.msk.f32.mxu1 %vm29883_vm4, %v29882_v42  ;;  %v4179_v40 = vand.u32 4294901760, %v4109_v36 }
 0x75b   : > { %27169 = vmatprep.subr.mxu1 %v29882_v42 }
 0x75c   : > { %v4180_v46 = vsub.f32 %v4109_v36, %v4179_v40 }
 0x75e   : > { %v4181_v49 = vand.u32 4294901760, %v4180_v46 }
 0x760   : > { %v4182_v51 = vsub.f32 %v4180_v46, %v4181_v49 }
 0x761   : > { %27162 = vmatmul.mubr.f32.vlgmr.msra.gmra.mrb[8].mxu1 %v2827_v61 }
 0x762   : > { %27171 = vmatprep.mubr.msk.f32.mxu1 %vm29883_vm4, %v29882_v42  ;;  %27170 = vmatpush3.msra.mxu1 %v30477_v13  ;;  %v4183_v53 = vand.u32 4294901760, %v4182_v51 }
 0x763   : > { %27179 = vmatprep.subr.mxu1 %v29882_v42 }
 0x834   : > { %v3203_v17 = vpop.f32.mrb[8].mxu1 }
 0x835   : > { %v3208_v18 = vsel %vm1378_vm5, %v3203_v17, 0  ;;  %v27163_v19 = vpop.f32.mrb[9].mxu1 }
 0x836   : > { %v3276_v20 = vand.u32 4294901760, %v3208_v18 }
 0x838   : > { %v3277_v25 = vsub.f32 %v3208_v18, %v3276_v20  ;;  %27172 = vmatmul.mubr.f32.vlgmr.msra.gmra.mrb[10].mxu1 %v3276_v20 }
 0x839   : > { %27180 = vmatpush3.msra.mxu1 %v30465_v10  ;;  %27181 = vmatprep.mubr.msk.f32.mxu1 %vm29883_vm4, %v29882_v42 }
 0x83a   : > { %v3278_v27 = vand.u32 4294901760, %v3277_v25  ;;  %27189 = vmatprep.subr.mxu1 %v29882_v42 }
 0x83c   : > { %v3279_v30 = vsub.f32 %v3277_v25, %v3278_v27  ;;  %27182 = vmatmul.mubr.f32.vlgmr.msra.gmra.mrb[12].mxu1 %v3278_v27 }
 0x83d   : > { %27190 = vmatpush3.msra.mxu1 %v30465_v10  ;;  %27191 = vmatprep.mubr.msk.f32.mxu1 %vm29883_vm4, %v29882_v42 }
 0x83e   : > { %v3280_v34 = vand.u32 4294901760, %v3279_v30  ;;  %27199 = vmatprep.subr.mxu1 %v29882_v42 }
 0x840   : > { %27167 = vmatmul.mubr.f32.vlgmr.msra.gmra.mrb[4].mxu0 %v3280_v34  ;;  %27192 = vmatmul.mubr.f32.vlgmr.msra.gmra.mrb[14].mxu1 %v3276_v20 }
 0x841   : > { %27175 = vmatpush3.msra.mxu0 %v30468_v5  ;;  %27176 = vmatprep.mubr.msk.f32.mxu0 %vm29883_vm4, %v29882_v42 }
 0x842   : > { %27200 = vmatpush3.msra.mxu1 %v30505_v35  ;;  %27201 = vmatprep.mubr.msk.f32.mxu1 %vm29883_vm4, %v29882_v42 }
 0x843   : > { %27184 = vmatprep.subr.mxu0 %v29882_v42  ;;  %27209 = vmatprep.subr.mxu1 %v29882_v42 }
 0x844   : > { %27177 = vmatmul.mubr.f32.vlgmr.msra.gmra.mrb[6].mxu0 %v3277_v25  ;;  %27202 = vmatmul.mubr.f32.vlgmr.msra.gmra.mrb[16].mxu1 %v3725_v26 }
 0x845   : > { %27185 = vmatpush3.msra.mxu0 %v30473_v11  ;;  %27186 = vmatprep.mubr.msk.f32.mxu0 %vm29883_vm4, %v29882_v42 }
 0x846   : > { %27210 = vmatpush3.msra.mxu1 %v30484_v15  ;;  %27211 = vmatprep.mubr.msk.f32.mxu1 %vm29883_vm4, %v29882_v42 }
 0x847   : > { %27219 = vmatprep.subr.mxu1 %v29882_v42  ;;  %27194 = vmatprep.subr.mxu0 %v29882_v42 }
 0x848   : > { %27187 = vmatmul.mubr.f32.vlgmr.msra.gmra.mrb[8].mxu0 %v3276_v20  ;;  %27212 = vmatmul.mubr.f32.vlgmr.msra.gmra.mrb[18].mxu1 %v3727_v29 }
 0x849   : > { %27220 = vmatpush3.msra.mxu1 %v30484_v15  ;;  %27195 = vmatpush3.msra.mxu0 %v30484_v15 }
 0x84a   : > { %27196 = vmatprep.mubr.msk.f32.mxu0 %vm29883_vm4, %v29882_v42  ;;  %27221 = vmatprep.mubr.msk.f32.mxu1 %vm29883_vm4, %v29882_v42 }
 0x84b   : > { %27254 = vmatprep.subr.mxu1 %v29882_v42  ;;  %27204 = vmatprep.subr.mxu0 %v29882_v42 }
 0x84c   : > { %27197 = vmatmul.mubr.f32.vlgmr.msra.gmra.mrb[10].mxu0 %v3729_v43  ;;  %27222 = vmatmul.mubr.f32.vlgmr.msra.gmra.mrb[20].mxu1 %v3725_v26 }
 0x84d   : > { %27255 = vmatpush3.msra.mxu1 %v30534_v44  ;;  %27205 = vmatpush3.msra.mxu0 %v30487_v16 }
 0x84e   : > { %27206 = vmatprep.mubr.msk.f32.mxu0 %vm29883_vm4, %v29882_v42  ;;  %27214 = vmatprep.subr.mxu0 %v29882_v42 }
 0x84f   : > { %27256 = vmatprep.mubr.msk.f32.mxu1 %vm29883_vm4, %v29882_v42  ;;  %27259 = vmatprep.subr.mxu1 %v29882_v42 }
 0x850   : > { %27207 = vmatmul.mubr.f32.vlgmr.msra.gmra.mrb[12].mxu0 %v3726_v32 }
 0x851   : > { %27215 = vmatpush3.msra.mxu0 %v30491_v21  ;;  %27216 = vmatprep.mubr.msk.f32.mxu0 %vm29883_vm4, %v29882_v42 }
 0x852   : > { %27224 = vmatprep.subr.mxu0 %v29882_v42 }
 0x854   : > { %27217 = vmatmul.mubr.f32.vlgmr.msra.gmra.mrb[14].mxu0 %v3725_v26 }
 0x855   : > { %27226 = vmatprep.mubr.msk.f32.mxu0 %vm29883_vm4, %v29882_v42 }
 0x858   : > { %27225 = vmatpush3.xpose.msra.mxu0 %v4114_v41 }
 0x859   : > { %27229 = vmatprep.subr.mxu0 %v29882_v42 }
 0x85b   : > { %27227 = vmatmul.mubr.f32.vlgmr.msra.gmra.mrb[16].mxu0 %v4183_v53  ;;  %v4653_v53 = vsub.f32 %v30525_v39, %v30534_v44  ;;  %v1373_v39 = vld [vmem:[%s32052_s10 + $0x10] sm:$0xff] }
 0x85c   : > { %27230 = vmatpush3.xpose.msra.mxu0 %v4194_v54  ;;  %27231 = vmatprep.mubr.msk.f32.mxu0 %vm29883_vm4, %v29882_v42 }
 0x85d   : > { %27234 = vmatprep.subr.mxu0 %v29882_v42 }
 0x863   : > { %27232 = vmatmul.mubr.f32.vlgmr.msra.gmra.mrb[16].mxu0 %v4179_v40 }
 0x864   : > { %27235 = vmatpush3.xpose.msra.mxu0 %v4191_v48  ;;  %27236 = vmatprep.mubr.msk.f32.mxu0 %vm29883_vm4, %v29882_v42 }
 0x865   : > { %27239 = vmatprep.subr.mxu0 %v29882_v42 }
 0x86b   : > { %27237 = vmatmul.mubr.f32.vlgmr.msra.gmra.mrb[16].mxu0 %v4180_v46 }
 0x86c   : > { %27240 = vmatpush3.xpose.msra.mxu0 %v4114_v41  ;;  %27241 = vmatprep.mubr.msk.f32.mxu0 %vm29883_vm4, %v29882_v42 }
 0x86d   : > { %27244 = vmatprep.subr.mxu0 %v29882_v42 }
 0x873   : > { %27242 = vmatmul.mubr.f32.vlgmr.msra.gmra.mrb[16].mxu0 %v4181_v49 }
 0x874   : > { %27245 = vmatpush3.xpose.msra.mxu0 %v4192_v50  ;;  %27246 = vmatprep.mubr.msk.f32.mxu0 %vm29883_vm4, %v29882_v42 }
 0x875   : > { %27249 = vmatprep.subr.mxu0 %v29882_v42 }
 0x87b   : > { %27247 = vmatmul.mubr.f32.vlgmr.msra.gmra.mrb[16].mxu0 %v4179_v40 }
 0x87c   : > { %27250 = vmatpush3.xpose.msra.mxu0 %v4114_v41  ;;  %27251 = vmatprep.mubr.msk.f32.mxu0 %vm29883_vm4, %v29882_v42 }
 0x87d   : > { %27284 = vmatprep.subr.mxu0 %v29882_v42 }
 0x883   : > { %27252 = vmatmul.mubr.f32.vlgmr.msra.gmra.mrb[16].mxu0 %v4179_v40 }
 0x884   : > { %27286 = vmatprep.mubr.msk.f32.mxu0 %vm29883_vm4, %v29882_v42 }
 0x90b   : > { %v3358_v55 = vpop.f32.mrb[10].mxu1 }
 0x90c   : > { %v27173_v56 = vpop.f32.mrb[11].mxu1 }
 0x90f   : > { %v3506_v57 = vpop.f32.mrb[12].mxu1 }
 0x910   : > { %v27183_v58 = vpop.f32.mrb[13].mxu1 }
 0x913   : > { %v3282_v59 = vpop.f32.mrb[4].mxu0  ;;  %v3652_v60 = vpop.f32.mrb[14].mxu1 }
 0x914   : > { %v3359_v61 = vadd.f32 %v3358_v55, %v3282_v59  ;;  %v27168_v62 = vpop.f32.mrb[5].mxu0  ;;  %v27193_v63 = vpop.f32.mrb[15].mxu1 }
 0x915   : > { %v30609_v63 = vand.u32 4294901760, %v1373_v39 }
 0x917   : > { %v3432_v1 = vpop.f32.mrb[6].mxu0  ;;  %v3807_v2 = vpop.f32.mrb[16].mxu1  ;;  %27285 = vmatpush3.msra.mxu0 %v30609_v63 }
 0x918   : > { %v3433_v3 = vadd.f32 %v3432_v1, %v3359_v61  ;;  %v27178_v4 = vpop.f32.mrb[7].mxu0  ;;  %v27203_v6 = vpop.f32.mrb[17].mxu1  ;;  %v30612_v1 = vsub.f32 %v1373_v39, %v30609_v63  ;;  %27294 = vmatprep.subr.mxu0 %v29882_v42 }
 0x91a   : > { %v3507_v9 = vadd.f32 %v3506_v57, %v3433_v3 }
 0x91b   : > { %v3580_v12 = vpop.f32.mrb[8].mxu0  ;;  %v3955_v14 = vpop.f32.mrb[18].mxu1 }
 0x91c   : > { %v3581_v17 = vadd.f32 %v3580_v12, %v3507_v9  ;;  %v27188_v18 = vpop.f32.mrb[9].mxu0  ;;  %v27213_v19 = vpop.f32.mrb[19].mxu1 }
 0x91e   : > { %v3653_v20 = vadd.f32 %v3652_v60, %v3581_v17  ;;  %v5474_v17 = vpop.permute.xlu1 %5473 }
 0x91f   : > { %v3731_v22 = vpop.f32.mrb[10].mxu0  ;;  %v4101_v25 = vpop.f32.mrb[20].mxu1 }
 0x920   : > { %v3732_v26 = vadd.f32 %v3731_v22, %v3653_v20  ;;  %v27198_v27 = vpop.f32.mrb[11].mxu0  ;;  %v27223_v28 = vpop.f32.mrb[21].mxu1  ;;  %v5477_v22 = vsel %vm1378_vm5, %v5474_v17, 0 }
 0x921   : > { %v5480_v28 = vand.u32 4294901760, %v5477_v22 }
 0x922   : > { %v3808_v30 = vadd.f32 %v3807_v2, %v3732_v26 }
 0x923   : > { %v3881_v31 = vpop.f32.mrb[12].mxu0 }
 0x924   : > { %v3882_v32 = vadd.f32 %v3881_v31, %v3808_v30  ;;  %v27208_v34 = vpop.f32.mrb[13].mxu0 }
 0x925   : > { %v5557_v34 = vsub.f32 %v5477_v22, %v5480_v28 }
 0x926   : > { %v3956_v29 = vadd.f32 %v3955_v14, %v3882_v32 }
 0x927   : > { %v4029_v33 = vpop.f32.mrb[14].mxu0 }
 0x928   : > { %v4030_v36 = vadd.f32 %v4029_v33, %v3956_v29  ;;  %v27218_v37 = vpop.f32.mrb[15].mxu0  ;;  %v5558_v33 = vand.u32 4294901760, %v5557_v34 }
 0x92a   : > { %v30570_v38 = vadd.f32 %v4101_v25, %v4030_v36  ;;  %v5559_v37 = vsub.f32 %v5557_v34, %v5558_v33 }
 0x956   : > { %v4555_v40 = vpop.f32.mrb[16].mxu0 }
 0x957   : > { %v4559_v41 = vmul.f32 0.35355338, %v4555_v40  ;;  %v27253_v43 = vpop.f32.mrb[17].mxu0 }
 0x959   : > { %v4560_v46 = vadd.f32 %v4559_v41, %v30382_v0  ;;  %v5560_v41 = vand.u32 4294901760, %v5559_v37 }
 0x95b   : > { %v4561_v48 = vmul.f32 1.442695, %v4560_v46 }
 0x95d   : > { %29521 = vpow2.f32 %v4561_v48 }
 0x967   : > { %v29522_v49 = vpop.eup %29521 }
 0x968   : > { %v4563_v50 = vsel %vm1378_vm5, %v29522_v49, 0.0 }
 0x969   : > { %4564 = vadd.xlane.f32.xlu0 %v4563_v50 }
 0x97f   : > { %5471 = vrot.lane.b32.xlu0 %v30340_v47, %s32072_s0 }
 0x983   : > { %5935 = vrot.lane.b32.xlu0 %v30340_v47, %s32068_s30  ;;  %v4654_v47 = vand.u32 4294901760, %v4653_v53 }
 0x985   : > { %v4655_v59 = vsub.f32 %v4653_v53, %v4654_v47 }
 0x987   : > { %6838 = vrot.lane.b32.xlu0 %v30338_v45, %s29885_s29  ;;  %v4656_v62 = vand.u32 4294901760, %v4655_v59 }
 0x98b   : > { %7752 = vrot.lane.b32.xlu0 %v30338_v45, %s29886_s24 }
 0x98f   : > { %7754 = vrot.lane.b32.xlu0 %v30338_v45, %s29890_s22 }
 0x9f6   : > { %v4565_v51 = vpop.xlane.xlu0 %4564 }
 0x9f7   : > { %29523 = vrcp.f32 %v4565_v51 }
 0x9fa   : > { %v5472_v12 = vpop.permute.xlu0 %5471 }
 0x9fb   : > { %v5475_v19 = vsel %vm1378_vm5, %v5472_v12, 0 }
 0x9fc   : > { %v5545_v27 = vand.u32 4294901760, %v5475_v19 }
 0x9fe   : > { %v30632_v25 = vpop.permute.xlu0 %5935  ;;  %v5546_v32 = vsub.f32 %v5475_v19, %v5545_v27 }
 0x9ff   : > { %v30639_v31 = vand.u32 4294901760, %v30632_v25 }
 0xa00   : > { %v5547_v29 = vand.u32 4294901760, %v5546_v32 }
 0xa01   : > { %v29524_v52 = vpop.eup %29523 }
 0xa02   : > { %v4568_v54 = vmul.f32 %v29524_v52, %v29522_v49  ;;  %v5548_v36 = vsub.f32 %v5546_v32, %v5547_v29 }
 0xa04   : > { %v4573_v55 = vsel %vm1378_vm5, %v4568_v54, 0  ;;  %v5549_v40 = vand.u32 4294901760, %v5548_v36 }
 0xa05   : > { %v4641_v56 = vand.u32 4294901760, %v4573_v55 }
 0xa07   : > { %v4642_v57 = vsub.f32 %v4573_v55, %v4641_v56 }
 0xa09   : > { %v4643_v58 = vand.u32 4294901760, %v4642_v57 }
 0xa0b   : > { %v4644_v60 = vsub.f32 %v4642_v57, %v4643_v58 }
 0xa0d   : > { %v4645_v61 = vand.u32 4294901760, %v4644_v60 }
 0xa0f   : > { %27257 = vmatmul.mubr.f32.vlgmr.msra.gmra.mrb[22].mxu1 %v4645_v61 }
 0xa10   : > { %27260 = vmatpush3.msra.mxu1 %v4656_v62  ;;  %27261 = vmatprep.mubr.msk.f32.mxu1 %vm29883_vm4, %v29882_v42 }
 0xa11   : > { %27264 = vmatprep.subr.mxu1 %v29882_v42 }
 0xa17   : > { %27262 = vmatmul.mubr.f32.vlgmr.msra.gmra.mrb[22].mxu1 %v4641_v56 }
 0xa18   : > { %27265 = vmatpush3.msra.mxu1 %v4653_v53  ;;  %27266 = vmatprep.mubr.msk.f32.mxu1 %vm29883_vm4, %v29882_v42 }
 0xa19   : > { %27269 = vmatprep.subr.mxu1 %v29882_v42 }
 0xa1f   : > { %27267 = vmatmul.mubr.f32.vlgmr.msra.gmra.mrb[22].mxu1 %v4642_v57 }
 0xa20   : > { %27270 = vmatpush3.msra.mxu1 %v30534_v44  ;;  %27271 = vmatprep.mubr.msk.f32.mxu1 %vm29883_vm4, %v29882_v42 }
 0xa21   : > { %27274 = vmatprep.subr.mxu1 %v29882_v42 }
 0xa27   : > { %27272 = vmatmul.mubr.f32.vlgmr.msra.gmra.mrb[22].mxu1 %v4643_v58 }
 0xa28   : > { %27275 = vmatpush3.msra.mxu1 %v4654_v47  ;;  %27276 = vmatprep.mubr.msk.f32.mxu1 %vm29883_vm4, %v29882_v42 }
 0xa29   : > { %27279 = vmatprep.subr.mxu1 %v29882_v42 }
 0xa2f   : > { %27277 = vmatmul.mubr.f32.vlgmr.msra.gmra.mrb[22].mxu1 %v4641_v56 }
 0xa30   : > { %27280 = vmatpush3.msra.mxu1 %v30534_v44  ;;  %27281 = vmatprep.mubr.msk.f32.mxu1 %vm29883_vm4, %v29882_v42  ;;  %v30617_v44 = vand.u32 4294901760, %v30612_v1 }
 0xa31   : > { %27289 = vmatprep.subr.mxu1 %v29882_v42 }
 0xa32   : > { %v5104_v2 = vsub.f32 %v30612_v1, %v30617_v44 }
 0xa34   : > { %v30621_v3 = vand.u32 4294901760, %v5104_v2 }
 0xa37   : > { %27282 = vmatmul.mubr.f32.vlgmr.msra.gmra.mrb[22].mxu1 %v4641_v56 }
 0xa38   : > { %27291 = vmatprep.mubr.msk.f32.mxu1 %vm29883_vm4, %v29882_v42  ;;  %27290 = vmatpush3.msra.mxu1 %v30621_v3 }
 0xa39   : > { %27299 = vmatprep.subr.mxu1 %v29882_v42 }
 0xb0a   : > { %v5017_v4 = vpop.f32.mrb[22].mxu1 }
 0xb0b   : > { %v5022_v6 = vsel %vm1378_vm5, %v5017_v4, 0  ;;  %v27283_v9 = vpop.f32.mrb[23].mxu1 }
 0xb0c   : > { %v5090_v14 = vand.u32 4294901760, %v5022_v6 }
 0xb0e   : > { %v5091_v18 = vsub.f32 %v5022_v6, %v5090_v14  ;;  %27292 = vmatmul.mubr.f32.vlgmr.msra.gmra.mrb[24].mxu1 %v5090_v14 }
 0xb0f   : > { %27300 = vmatpush3.msra.mxu1 %v30609_v63  ;;  %27301 = vmatprep.mubr.msk.f32.mxu1 %vm29883_vm4, %v29882_v42 }
 0xb10   : > { %v5092_v20 = vand.u32 4294901760, %v5091_v18  ;;  %27309 = vmatprep.subr.mxu1 %v29882_v42 }
 0xb12   : > { %v5093_v26 = vsub.f32 %v5091_v18, %v5092_v20  ;;  %27302 = vmatmul.mubr.f32.vlgmr.msra.gmra.mrb[26].mxu1 %v5092_v20 }
 0xb13   : > { %27310 = vmatpush3.msra.mxu1 %v30609_v63  ;;  %27311 = vmatprep.mubr.msk.f32.mxu1 %vm29883_vm4, %v29882_v42 }
 0xb14   : > { %v5094_v30 = vand.u32 4294901760, %v5093_v26  ;;  %27344 = vmatprep.subr.mxu1 %v29882_v42 }
 0xb16   : > { %27287 = vmatmul.mubr.f32.vlgmr.msra.gmra.mrb[18].mxu0 %v5094_v30  ;;  %27312 = vmatmul.mubr.f32.vlgmr.msra.gmra.mrb[28].mxu1 %v5090_v14 }
 0xb17   : > { %27345 = vmatpush3.msra.mxu1 %v30639_v31  ;;  %27295 = vmatpush3.msra.mxu0 %v30612_v1 }
 0xb18   : > { %27296 = vmatprep.mubr.msk.f32.mxu0 %vm29883_vm4, %v29882_v42  ;;  %27304 = vmatprep.subr.mxu0 %v29882_v42 }
 0xb19   : > { %27346 = vmatprep.mubr.msk.f32.mxu1 %vm29883_vm4, %v29882_v42  ;;  %27349 = vmatprep.subr.mxu1 %v29882_v42 }
 0xb1a   : > { %27297 = vmatmul.mubr.f32.vlgmr.msra.gmra.mrb[20].mxu0 %v5091_v18 }
 0xb1b   : > { %27305 = vmatpush3.msra.mxu0 %v30617_v44  ;;  %27306 = vmatprep.mubr.msk.f32.mxu0 %vm29883_vm4, %v29882_v42 }
 0xb1c   : > { %27314 = vmatprep.subr.mxu0 %v29882_v42 }
 0xb1e   : > { %27307 = vmatmul.mubr.f32.vlgmr.msra.gmra.mrb[22].mxu0 %v5090_v14 }
 0xb1f   : > { %27316 = vmatprep.mubr.msk.f32.mxu0 %vm29883_vm4, %v29882_v42 }
 0xb22   : > { %27315 = vmatpush3.xpose.msra.mxu0 %v5480_v28 }
 0xb23   : > { %27319 = vmatprep.subr.mxu0 %v29882_v42 }
 0xb25   : > { %27317 = vmatmul.mubr.f32.vlgmr.msra.gmra.mrb[24].mxu0 %v5549_v40 }
 0xb26   : > { %27320 = vmatpush3.xpose.msra.mxu0 %v5560_v41  ;;  %27321 = vmatprep.mubr.msk.f32.mxu0 %vm29883_vm4, %v29882_v42 }
 0xb27   : > { %27324 = vmatprep.subr.mxu0 %v29882_v42 }
 0xb2d   : > { %27322 = vmatmul.mubr.f32.vlgmr.msra.gmra.mrb[24].mxu0 %v5545_v27 }
 0xb2e   : > { %27325 = vmatpush3.xpose.msra.mxu0 %v5557_v34  ;;  %27326 = vmatprep.mubr.msk.f32.mxu0 %vm29883_vm4, %v29882_v42 }
 0xb2f   : > { %27329 = vmatprep.subr.mxu0 %v29882_v42 }
 0xb35   : > { %27327 = vmatmul.mubr.f32.vlgmr.msra.gmra.mrb[24].mxu0 %v5546_v32 }
 0xb36   : > { %27330 = vmatpush3.xpose.msra.mxu0 %v5480_v28  ;;  %27331 = vmatprep.mubr.msk.f32.mxu0 %vm29883_vm4, %v29882_v42 }
 0xb37   : > { %27334 = vmatprep.subr.mxu0 %v29882_v42 }
 0xb3d   : > { %27332 = vmatmul.mubr.f32.vlgmr.msra.gmra.mrb[24].mxu0 %v5547_v29 }
 0xb3e   : > { %27335 = vmatpush3.xpose.msra.mxu0 %v5558_v33  ;;  %27336 = vmatprep.mubr.msk.f32.mxu0 %vm29883_vm4, %v29882_v42 }
 0xb3f   : > { %27339 = vmatprep.subr.mxu0 %v29882_v42 }
 0xb45   : > { %27337 = vmatmul.mubr.f32.vlgmr.msra.gmra.mrb[24].mxu0 %v5545_v27 }
 0xb46   : > { %27340 = vmatpush3.xpose.msra.mxu0 %v5480_v28  ;;  %27341 = vmatprep.mubr.msk.f32.mxu0 %vm29883_vm4, %v29882_v42 }
 0xb47   : > { %27374 = vmatprep.subr.mxu0 %v29882_v42 }
 0xb4d   : > { %27342 = vmatmul.mubr.f32.vlgmr.msra.gmra.mrb[24].mxu0 %v5545_v27 }
 0xb4e   : > { %27376 = vmatprep.mubr.msk.f32.mxu0 %vm29883_vm4, %v29882_v42 }
 0xbe1   : > { %v5172_v43 = vpop.f32.mrb[24].mxu1 }
 0xbe2   : > { %v27293_v46 = vpop.f32.mrb[25].mxu1 }
 0xbe5   : > { %v5320_v48 = vpop.f32.mrb[26].mxu1 }
 0xbe6   : > { %v27303_v49 = vpop.f32.mrb[27].mxu1 }
 0xbe7   : > { %v6839_v49 = vpop.permute.xlu0 %6838 }
 0xbe9   : > { %v5096_v50 = vpop.f32.mrb[18].mxu0  ;;  %v5466_v51 = vpop.f32.mrb[28].mxu1 }
 0xbea   : > { %v5173_v52 = vadd.f32 %v5172_v43, %v5096_v50  ;;  %v27288_v53 = vpop.f32.mrb[19].mxu0  ;;  %v27313_v54 = vpop.f32.mrb[29].mxu1 }
 0xbeb   : > { %v6842_v53 = vsel %vm1378_vm5, %v6839_v49, 0 }
 0xbed   : > { %v5246_v55 = vpop.f32.mrb[20].mxu0 }
 0xbee   : > { %v5247_v56 = vadd.f32 %v5246_v55, %v5173_v52  ;;  %v27298_v47 = vpop.f32.mrb[21].mxu0  ;;  %v6840_v52 = vsel %vm1378_vm5, %v30338_v45, 0 }
 0xbef   : > { %v6845_v47 = vand.u32 4294901760, %v6842_v53 }
 0xbf0   : > { %v5321_v57 = vadd.f32 %v5320_v48, %v5247_v56  ;;  %v6910_v56 = vand.u32 4294901760, %v6840_v52 }
 0xbf1   : > { %v5394_v58 = vpop.f32.mrb[22].mxu0 }
 0xbf2   : > { %v5395_v59 = vadd.f32 %v5394_v58, %v5321_v57  ;;  %v27308_v60 = vpop.f32.mrb[23].mxu0 }
 0xbf3   : > { %v6922_v60 = vsub.f32 %v6842_v53, %v6845_v47 }
 0xbf4   : > { %v5467_v61 = vadd.f32 %v5466_v51, %v5395_v59  ;;  %v6911_v59 = vsub.f32 %v6840_v52, %v6910_v56 }
 0xbf6   : > { %v30674_v62 = vadd.f32 %v5467_v61, %v30570_v38  ;;  %v6019_v38 = vsub.f32 %v30632_v25, %v30639_v31  ;;  %v1374_v25 = vld [vmem:[%s32052_s10 + $0x18] sm:$0xff]  ;;  %v6912_v61 = vand.u32 4294901760, %v6911_v59 }
 0xbf7   : > { %v30705_v33 = vand.u32 4294901760, %v1374_v25 }
 0xbf8   : > { %v6020_v26 = vand.u32 4294901760, %v6019_v38 }
 0xbf9   : > { %v30708_v36 = vsub.f32 %v1374_v25, %v30705_v33  ;;  %27375 = vmatpush3.msra.mxu0 %v30705_v33 }
 0xbfa   : > { %v6021_v30 = vsub.f32 %v6019_v38, %v6020_v26  ;;  %27384 = vmatprep.subr.mxu0 %v29882_v42 }
 0xbfc   : > { %v6022_v29 = vand.u32 4294901760, %v6021_v30 }
 0xc20   : > { %v5921_v39 = vpop.f32.mrb[24].mxu0 }
 0xc21   : > { %v5925_v2 = vmul.f32 0.35355338, %v5921_v39  ;;  %v27343_v4 = vpop.f32.mrb[25].mxu0  ;;  %v6923_v39 = vand.u32 4294901760, %v6922_v60 }
 0xc23   : > { %v5926_v6 = vadd.f32 %v5925_v2, %v30382_v0  ;;  %v6913_v2 = vsub.f32 %v6911_v59, %v6912_v61  ;;  %v6924_v4 = vsub.f32 %v6922_v60, %v6923_v39 }
 0xc25   : > { %v5927_v9 = vmul.f32 1.442695, %v5926_v6  ;;  %v6914_v6 = vand.u32 4294901760, %v6913_v2 }
 0xc27   : > { %29525 = vpow2.f32 %v5927_v9  ;;  %v6925_v9 = vand.u32 4294901760, %v6924_v4 }
 0xc31   : > { %v29526_v12 = vpop.eup %29525 }
 0xc32   : > { %v5929_v14 = vsel %vm1378_vm5, %v29526_v12, 0.0 }
 0xc33   : > { %5930 = vadd.xlane.f32.xlu1 %v5929_v14 }
 0xc44   : > { %7300 = vrot.lane.b32.xlu1 %v30338_v45, %s29884_s28 }
 0xcc0   : > { %v5931_v17 = vpop.xlane.xlu1 %5930 }
 0xcc1   : > { %29527 = vrcp.f32 %v5931_v17 }
 0xcc4   : > { %v30729_v54 = vpop.permute.xlu1 %7300 }
 0xcc5   : > { %v30736_v58 = vand.u32 4294901760, %v30729_v54 }
 0xccb   : > { %v29528_v18 = vpop.eup %29527 }
 0xccc   : > { %v5934_v19 = vmul.f32 %v29528_v18, %v29526_v12  ;;  %v7753_v12 = vpop.permute.xlu0 %7752 }
 0xccd   : > { %v7756_v17 = vsel %vm1378_vm5, %v7753_v12, 0 }
 0xcce   : > { %v5939_v20 = vsel %vm1378_vm5, %v5934_v19, 0 }
 0xccf   : > { %v6007_v22 = vand.u32 4294901760, %v5939_v20 }
 0xcd0   : > { %v7755_v14 = vpop.permute.xlu0 %7754 }
 0xcd1   : > { %v6008_v27 = vsub.f32 %v5939_v20, %v6007_v22  ;;  %v7758_v18 = vsel %vm1378_vm5, %v7755_v14, 0 }
 0xcd2   : > { %v7761_v19 = vand.u32 4294901760, %v7758_v18 }
 0xcd3   : > { %v6009_v28 = vand.u32 4294901760, %v6008_v27 }
 0xcd5   : > { %v6010_v32 = vsub.f32 %v6008_v27, %v6009_v28 }
 0xcd7   : > { %v6011_v34 = vand.u32 4294901760, %v6010_v32 }
 0xcd9   : > { %27347 = vmatmul.mubr.f32.vlgmr.msra.gmra.mrb[30].mxu1 %v6011_v34 }
 0xcda   : > { %27350 = vmatpush3.msra.mxu1 %v6022_v29  ;;  %27351 = vmatprep.mubr.msk.f32.mxu1 %vm29883_vm4, %v29882_v42 }
 0xcdb   : > { %27354 = vmatprep.subr.mxu1 %v29882_v42 }
 0xce1   : > { %27352 = vmatmul.mubr.f32.vlgmr.msra.gmra.mrb[30].mxu1 %v6007_v22 }
 0xce2   : > { %27355 = vmatpush3.msra.mxu1 %v6019_v38  ;;  %27356 = vmatprep.mubr.msk.f32.mxu1 %vm29883_vm4, %v29882_v42  ;;  %v7826_v38 = vand.u32 4294901760, %v7756_v17 }
 0xce3   : > { %27359 = vmatprep.subr.mxu1 %v29882_v42 }
 0xce4   : > { %v7827_v20 = vsub.f32 %v7756_v17, %v7826_v38 }
 0xce9   : > { %27357 = vmatmul.mubr.f32.vlgmr.msra.gmra.mrb[30].mxu1 %v6008_v27 }
 0xcea   : > { %27360 = vmatpush3.msra.mxu1 %v30639_v31  ;;  %27361 = vmatprep.mubr.msk.f32.mxu1 %vm29883_vm4, %v29882_v42 }
 0xceb   : > { %27364 = vmatprep.subr.mxu1 %v29882_v42 }
 0xcf1   : > { %27362 = vmatmul.mubr.f32.vlgmr.msra.gmra.mrb[30].mxu1 %v6009_v28 }
 0xcf2   : > { %27365 = vmatpush3.msra.mxu1 %v6020_v26  ;;  %27366 = vmatprep.mubr.msk.f32.mxu1 %vm29883_vm4, %v29882_v42  ;;  %v7828_v26 = vand.u32 4294901760, %v7827_v20 }
 0xcf3   : > { %27369 = vmatprep.subr.mxu1 %v29882_v42 }
 0xcf4   : > { %v7829_v28 = vsub.f32 %v7827_v20, %v7828_v26 }
 0xcf6   : > { %v7830_v32 = vand.u32 4294901760, %v7829_v28 }
 0xcf9   : > { %27367 = vmatmul.mubr.f32.vlgmr.msra.gmra.mrb[30].mxu1 %v6007_v22 }
 0xcfa   : > { %27370 = vmatpush3.msra.mxu1 %v30639_v31  ;;  %27371 = vmatprep.mubr.msk.f32.mxu1 %vm29883_vm4, %v29882_v42  ;;  %v30713_v31 = vand.u32 4294901760, %v30708_v36 }
 0xcfb   : > { %27379 = vmatprep.subr.mxu1 %v29882_v42 }
 0xcfc   : > { %v6470_v37 = vsub.f32 %v30708_v36, %v30713_v31 }
 0xcfe   : > { %v30717_v40 = vand.u32 4294901760, %v6470_v37 }
 0xd01   : > { %27372 = vmatmul.mubr.f32.vlgmr.msra.gmra.mrb[30].mxu1 %v6007_v22  ;;  %v7838_v22 = vsub.f32 %v7758_v18, %v7761_v19 }
 0xd02   : > { %27381 = vmatprep.mubr.msk.f32.mxu1 %vm29883_vm4, %v29882_v42  ;;  %27380 = vmatpush3.msra.mxu1 %v30717_v40 }
 0xd03   : > { %27389 = vmatprep.subr.mxu1 %v29882_v42  ;;  %v7839_v27 = vand.u32 4294901760, %v7838_v22 }
 0xd05   : > { %v7840_v30 = vsub.f32 %v7838_v22, %v7839_v27 }
 0xd07   : > { %v7841_v34 = vand.u32 4294901760, %v7840_v30 }
 0xdd4   : > { %v6383_v41 = vpop.f32.mrb[30].mxu1 }
 0xdd5   : > { %v6388_v43 = vsel %vm1378_vm5, %v6383_v41, 0  ;;  %v27373_v46 = vpop.f32.mrb[31].mxu1 }
 0xdd6   : > { %v6456_v48 = vand.u32 4294901760, %v6388_v43 }
 0xdd8   : > { %v6457_v50 = vsub.f32 %v6388_v43, %v6456_v48  ;;  %27382 = vmatmul.mubr.f32.vlgmr.msra.gmra.mrb[32].mxu1 %v6456_v48 }
 0xdd9   : > { %27390 = vmatpush3.msra.mxu1 %v30705_v33  ;;  %27391 = vmatprep.mubr.msk.f32.mxu1 %vm29883_vm4, %v29882_v42 }
 0xdda   : > { %v6458_v51 = vand.u32 4294901760, %v6457_v50  ;;  %27399 = vmatprep.subr.mxu1 %v29882_v42 }
 0xddc   : > { %v6459_v55 = vsub.f32 %v6457_v50, %v6458_v51  ;;  %27392 = vmatmul.mubr.f32.vlgmr.msra.gmra.mrb[34].mxu1 %v6458_v51 }
 0xddd   : > { %27400 = vmatpush3.msra.mxu1 %v30705_v33  ;;  %27401 = vmatprep.mubr.msk.f32.mxu1 %vm29883_vm4, %v29882_v42 }
 0xdde   : > { %v6460_v57 = vand.u32 4294901760, %v6459_v55  ;;  %27434 = vmatprep.subr.mxu1 %v29882_v42 }
 0xde0   : > { %27377 = vmatmul.mubr.f32.vlgmr.msra.gmra.mrb[26].mxu0 %v6460_v57  ;;  %27402 = vmatmul.mubr.f32.vlgmr.msra.gmra.mrb[36].mxu1 %v6456_v48 }
 0xde1   : > { %27435 = vmatpush3.msra.mxu1 %v30736_v58  ;;  %27385 = vmatpush3.msra.mxu0 %v30708_v36 }
 0xde2   : > { %27386 = vmatprep.mubr.msk.f32.mxu0 %vm29883_vm4, %v29882_v42  ;;  %27394 = vmatprep.subr.mxu0 %v29882_v42 }
 0xde3   : > { %27436 = vmatprep.mubr.msk.f32.mxu1 %vm29883_vm4, %v29882_v42  ;;  %27439 = vmatprep.subr.mxu1 %v29882_v42 }
 0xde4   : > { %27387 = vmatmul.mubr.f32.vlgmr.msra.gmra.mrb[28].mxu0 %v6457_v50 }
 0xde5   : > { %27395 = vmatpush3.msra.mxu0 %v30713_v31  ;;  %27396 = vmatprep.mubr.msk.f32.mxu0 %vm29883_vm4, %v29882_v42 }
 0xde6   : > { %27404 = vmatprep.subr.mxu0 %v29882_v42 }
 0xde8   : > { %27397 = vmatmul.mubr.f32.vlgmr.msra.gmra.mrb[30].mxu0 %v6456_v48 }
 0xde9   : > { %27406 = vmatprep.mubr.msk.f32.mxu0 %vm29883_vm4, %v29882_v42 }
 0xdec   : > { %27405 = vmatpush3.xpose.msra.mxu0 %v6845_v47 }
 0xded   : > { %27409 = vmatprep.subr.mxu0 %v29882_v42 }
 0xdef   : > { %27407 = vmatmul.mubr.f32.vlgmr.msra.gmra.mrb[32].mxu0 %v6914_v6 }
 0xdf0   : > { %27410 = vmatpush3.xpose.msra.mxu0 %v6925_v9  ;;  %27411 = vmatprep.mubr.msk.f32.mxu0 %vm29883_vm4, %v29882_v42 }
 0xdf1   : > { %27414 = vmatprep.subr.mxu0 %v29882_v42 }
 0xdf7   : > { %27412 = vmatmul.mubr.f32.vlgmr.msra.gmra.mrb[32].mxu0 %v6910_v56 }
 0xdf8   : > { %27415 = vmatpush3.xpose.msra.mxu0 %v6922_v60  ;;  %27416 = vmatprep.mubr.msk.f32.mxu0 %vm29883_vm4, %v29882_v42 }
 0xdf9   : > { %27419 = vmatprep.subr.mxu0 %v29882_v42 }
 0xdff   : > { %27417 = vmatmul.mubr.f32.vlgmr.msra.gmra.mrb[32].mxu0 %v6911_v59 }
 0xe00   : > { %27420 = vmatpush3.xpose.msra.mxu0 %v6845_v47  ;;  %27421 = vmatprep.mubr.msk.f32.mxu0 %vm29883_vm4, %v29882_v42 }
 0xe01   : > { %27424 = vmatprep.subr.mxu0 %v29882_v42 }
 0xe07   : > { %27422 = vmatmul.mubr.f32.vlgmr.msra.gmra.mrb[32].mxu0 %v6912_v61 }
 0xe08   : > { %27425 = vmatpush3.xpose.msra.mxu0 %v6923_v39  ;;  %27426 = vmatprep.mubr.msk.f32.mxu0 %vm29883_vm4, %v29882_v42 }
 0xe09   : > { %27429 = vmatprep.subr.mxu0 %v29882_v42 }
 0xe0f   : > { %27427 = vmatmul.mubr.f32.vlgmr.msra.gmra.mrb[32].mxu0 %v6910_v56 }
 0xe10   : > { %27430 = vmatpush3.xpose.msra.mxu0 %v6845_v47  ;;  %27431 = vmatprep.mubr.msk.f32.mxu0 %vm29883_vm4, %v29882_v42 }
 0xe11   : > { %27464 = vmatprep.subr.mxu0 %v29882_v42 }
 0xe17   : > { %27432 = vmatmul.mubr.f32.vlgmr.msra.gmra.mrb[32].mxu0 %v6910_v56 }
 0xe18   : > { %27465 = vmatpush3.xpose.msra.mxu0 %v7761_v19  ;;  %27466 = vmatprep.mubr.msk.f32.mxu0 %vm29883_vm4, %v29882_v42 }
 0xe19   : > { %27469 = vmatprep.subr.mxu0 %v29882_v42 }
 0xe1b   : > { %27467 = vmatmul.mubr.f32.vlgmr.msra.gmra.mrb[34].mxu0 %v7830_v32 }
 0xe1c   : > { %27470 = vmatpush3.xpose.msra.mxu0 %v7841_v34  ;;  %27471 = vmatprep.mubr.msk.f32.mxu0 %vm29883_vm4, %v29882_v42 }
 0xe1d   : > { %27474 = vmatprep.subr.mxu0 %v29882_v42 }
 0xe23   : > { %27472 = vmatmul.mubr.f32.vlgmr.msra.gmra.mrb[34].mxu0 %v7826_v38 }
 0xe24   : > { %27475 = vmatpush3.xpose.msra.mxu0 %v7838_v22  ;;  %27476 = vmatprep.mubr.msk.f32.mxu0 %vm29883_vm4, %v29882_v42 }
 0xe25   : > { %27479 = vmatprep.subr.mxu0 %v29882_v42 }
 0xe2b   : > { %27477 = vmatmul.mubr.f32.vlgmr.msra.gmra.mrb[34].mxu0 %v7827_v20 }
 0xe2c   : > { %27480 = vmatpush3.xpose.msra.mxu0 %v7761_v19  ;;  %27481 = vmatprep.mubr.msk.f32.mxu0 %vm29883_vm4, %v29882_v42 }
 0xe2d   : > { %27484 = vmatprep.subr.mxu0 %v29882_v42 }
 0xe33   : > { %27482 = vmatmul.mubr.f32.vlgmr.msra.gmra.mrb[34].mxu0 %v7828_v26 }
 0xe34   : > { %27485 = vmatpush3.xpose.msra.mxu0 %v7839_v27  ;;  %27486 = vmatprep.mubr.msk.f32.mxu0 %vm29883_vm4, %v29882_v42  ;;  %v7384_v27 = vsub.f32 %v30729_v54, %v30736_v58 }
 0xe35   : > { %27489 = vmatprep.subr.mxu0 %v29882_v42 }
 0xe36   : > { %v7385_v34 = vand.u32 4294901760, %v7384_v27 }
 0xe3b   : > { %27487 = vmatmul.mubr.f32.vlgmr.msra.gmra.mrb[34].mxu0 %v7826_v38 }
 0xe3c   : > { %27490 = vmatpush3.xpose.msra.mxu0 %v7761_v19  ;;  %27491 = vmatprep.mubr.msk.f32.mxu0 %vm29883_vm4, %v29882_v42 }
 0xe3d   : > { %27524 = vmatprep.subr.mxu0 %v29882_v42 }
 0xe43   : > { %27492 = vmatmul.mubr.f32.vlgmr.msra.gmra.mrb[34].mxu0 %v7826_v38 }
 0xe44   : > { %27525 = vmatpush3.msra.mxu0 %v30465_v10  ;;  %27526 = vmatprep.mubr.msk.f32.mxu0 %vm29883_vm4, %v29882_v42 }
 0xe45   : > { %27534 = vmatprep.subr.mxu0 %v29882_v42 }
 0xeab   : > { %v6538_v29 = vpop.f32.mrb[32].mxu1 }
 0xeac   : > { %v27383_v25 = vpop.f32.mrb[33].mxu1 }
 0xeaf   : > { %v6686_v37 = vpop.f32.mrb[34].mxu1 }
 0xeb0   : > { %v27393_v41 = vpop.f32.mrb[35].mxu1 }
 0xeb3   : > { %v6462_v43 = vpop.f32.mrb[26].mxu0  ;;  %v6832_v46 = vpop.f32.mrb[36].mxu1 }
 0xeb4   : > { %v6539_v48 = vadd.f32 %v6538_v29, %v6462_v43  ;;  %v27378_v49 = vpop.f32.mrb[27].mxu0  ;;  %v27403_v50 = vpop.f32.mrb[37].mxu1 }
 0xeb7   : > { %v6612_v51 = vpop.f32.mrb[28].mxu0 }
 0xeb8   : > { %v6613_v52 = vadd.f32 %v6612_v51, %v6539_v48  ;;  %v27388_v53 = vpop.f32.mrb[29].mxu0 }
 0xeba   : > { %v6687_v55 = vadd.f32 %v6686_v37, %v6613_v52  ;;  %v7386_v37 = vsub.f32 %v7384_v27, %v7385_v34 }
 0xebb   : > { %v6760_v56 = vpop.f32.mrb[30].mxu0 }
 0xebc   : > { %v6761_v47 = vadd.f32 %v6760_v56, %v6687_v55  ;;  %v27398_v57 = vpop.f32.mrb[31].mxu0 }
 0xebe   : > { %v6833_v59 = vadd.f32 %v6832_v46, %v6761_v47  ;;  %v7387_v46 = vand.u32 4294901760, %v7386_v37 }
 0xec0   : > { %v30793_v60 = vadd.f32 %v6833_v59, %v30674_v62 }
 0xeea   : > { %v7286_v61 = vpop.f32.mrb[32].mxu0 }
 0xeeb   : > { %v7290_v39 = vmul.f32 0.35355338, %v7286_v61  ;;  %v27433_v2 = vpop.f32.mrb[33].mxu0 }
 0xeed   : > { %v7291_v4 = vadd.f32 %v7290_v39, %v30382_v0 }
 0xeef   : > { %v7292_v6 = vmul.f32 1.442695, %v7291_v4 }
 0xef1   : > { %29529 = vpow2.f32 %v7292_v6 }
 0xefb   : > { %v29530_v9 = vpop.eup %29529 }
 0xefc   : > { %v7294_v12 = vsel %vm1378_vm5, %v29530_v9, 0.0 }
 0xefd   : > { %7295 = vadd.xlane.f32.xlu0 %v7294_v12 }
 0xf13   : > { %8216 = vrot.lane.b32.xlu0 %v30338_v45, %s32076_s2  ;;  %s32105_s2 = smov 56  }
 0xf16   : > { %v8202_v14 = vpop.f32.mrb[34].mxu0 }
 0xf17   : > { %v8206_v17 = vmul.f32 0.35355338, %v8202_v14  ;;  %9566 = vrot.lane.b32.xlu0 %v30338_v45, %s29888_s23  ;;  %v27493_v62 = vpop.f32.mrb[35].mxu0 }
 0xf19   : > { %v8207_v18 = vadd.f32 %v8206_v17, %v30382_v0 }
 0xf1b   : > { %v8208_v38 = vmul.f32 1.442695, %v8207_v18  ;;  %9568 = vrot.lane.b32.xlu0 %v30338_v45, %s29889_s1 }
 0xf1d   : > { %29531 = vpow2.f32 %v8208_v38 }
 0xf27   : > { %v29532_v19 = vpop.eup %29531 }
 0xf28   : > { %v8210_v20 = vsel %vm1378_vm5, %v29532_v19, 0.0 }
 0xf29   : > { %8211 = vadd.xlane.f32.xlu1 %v8210_v20 }
 0xf3a   : > { %10030 = vrot.lane.b32.xlu1 %v30338_v45, %s32074_s25  ;;  %s32106_s25 = smov 48  }
 0xf3e   : > { %10932 = vrot.lane.b32.xlu1 %v30338_v45, %s32072_s0  ;;  %s32108_s0 = smov 72  }
 0xf42   : > { %10934 = vrot.lane.b32.xlu1 %v30338_v45, %s32070_s4  ;;  %s32107_s4 = smov 104  }
 0xf8a   : > { %v7296_v22 = vpop.xlane.xlu0 %7295 }
 0xf8b   : > { %29533 = vrcp.f32 %v7296_v22 }
 0xf8e   : > { %v8217_v48 = vpop.permute.xlu0 %8216 }
 0xf8f   : > { %v8223_v49 = vand.u32 4294901760, %v8217_v48 }
 0xf91   : > { %v8300_v51 = vsub.f32 %v8217_v48, %v8223_v49 }
 0xf93   : > { %v8301_v56 = vand.u32 4294901760, %v8300_v51 }
 0xf95   : > { %v29534_v26 = vpop.eup %29533  ;;  %v8302_v59 = vsub.f32 %v8300_v51, %v8301_v56 }
 0xf96   : > { %v7299_v28 = vmul.f32 %v29534_v26, %v29530_v9 }
 0xf97   : > { %v8303_v39 = vand.u32 4294901760, %v8302_v59 }
 0xf98   : > { %v7304_v30 = vsel %vm1378_vm5, %v7299_v28, 0 }
 0xf99   : > { %v7372_v32 = vand.u32 4294901760, %v7304_v30 }
 0xf9b   : > { %v7373_v29 = vsub.f32 %v7304_v30, %v7372_v32 }
 0xf9d   : > { %v7374_v25 = vand.u32 4294901760, %v7373_v29 }
 0xf9f   : > { %v7375_v41 = vsub.f32 %v7373_v29, %v7374_v25 }
 0xfa1   : > { %v7376_v43 = vand.u32 4294901760, %v7375_v41 }
 0xfa3   : > { %27437 = vmatmul.mubr.f32.vlgmr.msra.gmra.mrb[38].mxu1 %v7376_v43 }
 0xfa4   : > { %27440 = vmatpush3.msra.mxu1 %v7387_v46  ;;  %27441 = vmatprep.mubr.msk.f32.mxu1 %vm29883_vm4, %v29882_v42 }
 0xfa5   : > { %27444 = vmatprep.subr.mxu1 %v29882_v42 }
 0xfab   : > { %27442 = vmatmul.mubr.f32.vlgmr.msra.gmra.mrb[38].mxu1 %v7372_v32 }
 0xfac   : > { %27445 = vmatpush3.msra.mxu1 %v7384_v27  ;;  %27446 = vmatprep.mubr.msk.f32.mxu1 %vm29883_vm4, %v29882_v42 }
 0xfad   : > { %27449 = vmatprep.subr.mxu1 %v29882_v42 }
 0xfb3   : > { %27447 = vmatmul.mubr.f32.vlgmr.msra.gmra.mrb[38].mxu1 %v7373_v29 }
 0xfb4   : > { %27450 = vmatpush3.msra.mxu1 %v30736_v58  ;;  %27451 = vmatprep.mubr.msk.f32.mxu1 %vm29883_vm4, %v29882_v42 }
 0xfb5   : > { %27454 = vmatprep.subr.mxu1 %v29882_v42 }
 0xfb6   : > { %v8212_v54 = vpop.xlane.xlu1 %8211 }
 0xfb7   : > { %29535 = vrcp.f32 %v8212_v54 }
 0xfba   : > { %v30882_v28 = vpop.permute.xlu1 %10030 }
 0xfbb   : > { %27452 = vmatmul.mubr.f32.vlgmr.msra.gmra.mrb[38].mxu1 %v7374_v25 }
 0xfbc   : > { %27455 = vmatpush3.msra.mxu1 %v7385_v34  ;;  %27456 = vmatprep.mubr.msk.f32.mxu1 %vm29883_vm4, %v29882_v42  ;;  %v30891_v34 = vand.u32 4294901760, %v30882_v28 }
 0xfbd   : > { %27459 = vmatprep.subr.mxu1 %v29882_v42 }
 0xfc1   : > { %v29536_v50 = vpop.eup %29535 }
 0xfc2   : > { %v8215_v52 = vmul.f32 %v29536_v50, %v29532_v19  ;;  %v9567_v19 = vpop.permute.xlu0 %9566 }
 0xfc3   : > { %27457 = vmatmul.mubr.f32.vlgmr.msra.gmra.mrb[38].mxu1 %v7372_v32 }
 0xfc4   : > { %27460 = vmatpush3.msra.mxu1 %v30736_v58  ;;  %27461 = vmatprep.mubr.msk.f32.mxu1 %vm29883_vm4, %v29882_v42  ;;  %v8220_v53 = vsel %vm1378_vm5, %v8215_v52, 0 }
 0xfc5   : > { %27494 = vmatprep.subr.mxu1 %v29882_v42  ;;  %v8288_v55 = vand.u32 4294901760, %v8220_v53 }
 0xfc7   : > { %v8289_v47 = vsub.f32 %v8220_v53, %v8288_v55 }
 0xfc9   : > { %v8290_v57 = vand.u32 4294901760, %v8289_v47 }
 0xfcb   : > { %27462 = vmatmul.mubr.f32.vlgmr.msra.gmra.mrb[38].mxu1 %v7372_v32  ;;  %v8291_v61 = vsub.f32 %v8289_v47, %v8290_v57 }
 0xfcc   : > { %27495 = vmatpush3.msra.mxu1 %v8223_v49  ;;  %27496 = vmatprep.mubr.msk.f32.mxu1 %vm29883_vm4, %v29882_v42 }
 0xfcd   : > { %27499 = vmatprep.subr.mxu1 %v29882_v42  ;;  %v8292_v58 = vand.u32 4294901760, %v8291_v61 }
 0xfcf   : > { %27497 = vmatmul.mubr.f32.vlgmr.msra.gmra.mrb[40].mxu1 %v8292_v58 }
 0xfd0   : > { %27500 = vmatpush3.msra.mxu1 %v8303_v39  ;;  %27501 = vmatprep.mubr.msk.f32.mxu1 %vm29883_vm4, %v29882_v42 }
 0xfd1   : > { %27504 = vmatprep.subr.mxu1 %v29882_v42 }
 0xfd7   : > { %27502 = vmatmul.mubr.f32.vlgmr.msra.gmra.mrb[40].mxu1 %v8288_v55 }
 0xfd8   : > { %27505 = vmatpush3.msra.mxu1 %v8300_v51  ;;  %27506 = vmatprep.mubr.msk.f32.mxu1 %vm29883_vm4, %v29882_v42 }
 0xfd9   : > { %27509 = vmatprep.subr.mxu1 %v29882_v42 }
 0xfdf   : > { %27507 = vmatmul.mubr.f32.vlgmr.msra.gmra.mrb[40].mxu1 %v8289_v47 }
 0xfe0   : > { %27510 = vmatpush3.msra.mxu1 %v8223_v49  ;;  %27511 = vmatprep.mubr.msk.f32.mxu1 %vm29883_vm4, %v29882_v42 }
 0xfe1   : > { %27514 = vmatprep.subr.mxu1 %v29882_v42 }
 0xfe7   : > { %27512 = vmatmul.mubr.f32.vlgmr.msra.gmra.mrb[40].mxu1 %v8290_v57 }
 0xfe8   : > { %27515 = vmatpush3.msra.mxu1 %v8301_v56  ;;  %27516 = vmatprep.mubr.msk.f32.mxu1 %vm29883_vm4, %v29882_v42 }
 0xfe9   : > { %27519 = vmatprep.subr.mxu1 %v29882_v42 }
 0xfef   : > { %27517 = vmatmul.mubr.f32.vlgmr.msra.gmra.mrb[40].mxu1 %v8288_v55 }
 0xff0   : > { %27520 = vmatpush3.msra.mxu1 %v8223_v49  ;;  %27521 = vmatprep.mubr.msk.f32.mxu1 %vm29883_vm4, %v29882_v42 }
 0xff1   : > { %27529 = vmatprep.subr.mxu1 %v29882_v42 }
 0xff7   : > { %27522 = vmatmul.mubr.f32.vlgmr.msra.gmra.mrb[40].mxu1 %v8288_v55 }
 0xff8   : > { %27530 = vmatpush3.msra.mxu1 %v30477_v13  ;;  %27531 = vmatprep.mubr.msk.f32.mxu1 %vm29883_vm4, %v29882_v42 }
 0xff9   : > { %27539 = vmatprep.subr.mxu1 %v29882_v42 }
0x109e   : > { %v7748_v2 = vpop.f32.mrb[38].mxu1 }
0x109f   : > { %v27463_v4 = vpop.f32.mrb[39].mxu1  ;;  %v9118_v17 = vsel %vm1378_vm5, %v7748_v2, 0 }
0x10a0   : > { %v9186_v13 = vand.u32 4294901760, %v9118_v17 }
0x10a2   : > { %v9187_v20 = vsub.f32 %v9118_v17, %v9186_v13 }
0x10a4   : > { %v9188_v26 = vand.u32 4294901760, %v9187_v20 }
0x10a6   : > { %v9189_v27 = vsub.f32 %v9187_v20, %v9188_v26 }
0x10a8   : > { %v9190_v32 = vand.u32 4294901760, %v9189_v27 }
0x10ca   : > { %v8664_v6 = vpop.f32.mrb[40].mxu1 }
0x10cb   : > { %v8669_v9 = vsel %vm1378_vm5, %v8664_v6, 0  ;;  %v27523_v12 = vpop.f32.mrb[41].mxu1 }
0x10cc   : > { %v8737_v14 = vand.u32 4294901760, %v8669_v9 }
0x10ce   : > { %v8738_v62 = vsub.f32 %v8669_v9, %v8737_v14  ;;  %27532 = vmatmul.mubr.f32.vlgmr.msra.gmra.mrb[42].mxu1 %v8737_v14 }
0x10cf   : > { %27540 = vmatpush3.msra.mxu1 %v30465_v10  ;;  %27541 = vmatprep.mubr.msk.f32.mxu1 %vm29883_vm4, %v29882_v42 }
0x10d0   : > { %v8739_v18 = vand.u32 4294901760, %v8738_v62  ;;  %27549 = vmatprep.subr.mxu1 %v29882_v42 }
0x10d2   : > { %v8740_v38 = vsub.f32 %v8738_v62, %v8739_v18  ;;  %27542 = vmatmul.mubr.f32.vlgmr.msra.gmra.mrb[44].mxu1 %v8739_v18 }
0x10d3   : > { %27550 = vmatpush3.msra.mxu1 %v30465_v10  ;;  %27551 = vmatprep.mubr.msk.f32.mxu1 %vm29883_vm4, %v29882_v42  ;;  %v9569_v10 = vpop.permute.xlu0 %9568 }
0x10d4   : > { %v8741_v22 = vand.u32 4294901760, %v8740_v38  ;;  %27559 = vmatprep.subr.mxu1 %v29882_v42 }
0x10d6   : > { %27527 = vmatmul.mubr.f32.vlgmr.msra.gmra.mrb[36].mxu0 %v8741_v22  ;;  %27552 = vmatmul.mubr.f32.vlgmr.msra.gmra.mrb[46].mxu1 %v8737_v14 }
0x10d7   : > { %27535 = vmatpush3.msra.mxu0 %v30468_v5  ;;  %27536 = vmatprep.mubr.msk.f32.mxu0 %vm29883_vm4, %v29882_v42  ;;  %v9570_v5 = vsel %vm1378_vm5, %v9567_v19, 0 }
0x10d8   : > { %27560 = vmatpush3.msra.mxu1 %v30505_v35  ;;  %27561 = vmatprep.mubr.msk.f32.mxu1 %vm29883_vm4, %v29882_v42  ;;  %v9572_v35 = vsel %vm1378_vm5, %v9569_v10, 0 }
0x10d9   : > { %27544 = vmatprep.subr.mxu0 %v29882_v42  ;;  %27569 = vmatprep.subr.mxu1 %v29882_v42  ;;  %v9575_v30 = vand.u32 4294901760, %v9572_v35 }
0x10da   : > { %27537 = vmatmul.mubr.f32.vlgmr.msra.gmra.mrb[38].mxu0 %v8738_v62  ;;  %27562 = vmatmul.mubr.f32.vlgmr.msra.gmra.mrb[48].mxu1 %v9186_v13 }
0x10db   : > { %27545 = vmatpush3.msra.mxu0 %v30473_v11  ;;  %27546 = vmatprep.mubr.msk.f32.mxu0 %vm29883_vm4, %v29882_v42  ;;  %v9640_v11 = vand.u32 4294901760, %v9570_v5 }
0x10dc   : > { %27570 = vmatpush3.msra.mxu1 %v30484_v15  ;;  %27571 = vmatprep.mubr.msk.f32.mxu1 %vm29883_vm4, %v29882_v42 }
0x10dd   : > { %27579 = vmatprep.subr.mxu1 %v29882_v42  ;;  %27554 = vmatprep.subr.mxu0 %v29882_v42  ;;  %v9641_v29 = vsub.f32 %v9570_v5, %v9640_v11 }
0x10de   : > { %27547 = vmatmul.mubr.f32.vlgmr.msra.gmra.mrb[40].mxu0 %v8737_v14  ;;  %27572 = vmatmul.mubr.f32.vlgmr.msra.gmra.mrb[50].mxu1 %v9188_v26 }
0x10df   : > { %27580 = vmatpush3.msra.mxu1 %v30484_v15  ;;  %27555 = vmatpush3.msra.mxu0 %v30484_v15  ;;  %v9652_v15 = vsub.f32 %v9572_v35, %v9575_v30  ;;  %v9642_v25 = vand.u32 4294901760, %v9641_v29 }
0x10e0   : > { %27556 = vmatprep.mubr.msk.f32.mxu0 %vm29883_vm4, %v29882_v42  ;;  %27581 = vmatprep.mubr.msk.f32.mxu1 %vm29883_vm4, %v29882_v42 }
0x10e1   : > { %27614 = vmatprep.subr.mxu1 %v29882_v42  ;;  %27564 = vmatprep.subr.mxu0 %v29882_v42  ;;  %v9653_v37 = vand.u32 4294901760, %v9652_v15 }
0x10e2   : > { %27557 = vmatmul.mubr.f32.vlgmr.msra.gmra.mrb[42].mxu0 %v9190_v32  ;;  %27582 = vmatmul.mubr.f32.vlgmr.msra.gmra.mrb[52].mxu1 %v9186_v13 }
0x10e3   : > { %27615 = vmatpush3.msra.mxu1 %v30891_v34  ;;  %27565 = vmatpush3.msra.mxu0 %v30487_v16  ;;  %v9643_v16 = vsub.f32 %v9641_v29, %v9642_v25  ;;  %v9654_v41 = vsub.f32 %v9652_v15, %v9653_v37 }
0x10e4   : > { %27566 = vmatprep.mubr.msk.f32.mxu0 %vm29883_vm4, %v29882_v42  ;;  %27574 = vmatprep.subr.mxu0 %v29882_v42 }
0x10e5   : > { %27616 = vmatprep.mubr.msk.f32.mxu1 %vm29883_vm4, %v29882_v42  ;;  %27619 = vmatprep.subr.mxu1 %v29882_v42  ;;  %v9644_v43 = vand.u32 4294901760, %v9643_v16  ;;  %v9655_v46 = vand.u32 4294901760, %v9654_v41  ;;  %v12298_v16 = vadd.f32 %v30793_v60, %v30290_v23  ;;  %v30937_v41 = vld [vmem:[#allocation9] ss:$0 sm:$0xff] }
0x10e6   : > { %27567 = vmatmul.mubr.f32.vlgmr.msra.gmra.mrb[44].mxu0 %v9187_v20 }
0x10e7   : > { %27575 = vmatpush3.msra.mxu0 %v30491_v21  ;;  %27576 = vmatprep.mubr.msk.f32.mxu0 %vm29883_vm4, %v29882_v42 }
0x10e8   : > { %27584 = vmatprep.subr.mxu0 %v29882_v42 }
0x10ea   : > { %27577 = vmatmul.mubr.f32.vlgmr.msra.gmra.mrb[46].mxu0 %v9186_v13 }
0x10eb   : > { %27586 = vmatprep.mubr.msk.f32.mxu0 %vm29883_vm4, %v29882_v42 }
0x10ee   : > { %27585 = vmatpush3.xpose.msra.mxu0 %v9575_v30 }
0x10ef   : > { %27589 = vmatprep.subr.mxu0 %v29882_v42 }
0x10f1   : > { %27587 = vmatmul.mubr.f32.vlgmr.msra.gmra.mrb[48].mxu0 %v9644_v43  ;;  %v30940_v43 = vadd.f32 %v30937_v41, %v12298_v16 }
0x10f2   : > { %27590 = vmatpush3.xpose.msra.mxu0 %v9655_v46  ;;  %27591 = vmatprep.mubr.msk.f32.mxu0 %vm29883_vm4, %v29882_v42 }
0x10f3   : > { %27594 = vmatprep.subr.mxu0 %v29882_v42  ;;  %v12309_v46 = vsel %vm766_vm3, %v30940_v43, 0.0 }
0x10f9   : > { %27592 = vmatmul.mubr.f32.vlgmr.msra.gmra.mrb[48].mxu0 %v9640_v11 }
0x10fa   : > { %27595 = vmatpush3.xpose.msra.mxu0 %v9652_v15  ;;  %27596 = vmatprep.mubr.msk.f32.mxu0 %vm29883_vm4, %v29882_v42 }
0x10fb   : > { %27599 = vmatprep.subr.mxu0 %v29882_v42 }
0x1101   : > { %27597 = vmatmul.mubr.f32.vlgmr.msra.gmra.mrb[48].mxu0 %v9641_v29 }
0x1102   : > { %27600 = vmatpush3.xpose.msra.mxu0 %v9575_v30  ;;  %27601 = vmatprep.mubr.msk.f32.mxu0 %vm29883_vm4, %v29882_v42 }
0x1103   : > { %27604 = vmatprep.subr.mxu0 %v29882_v42 }
0x1109   : > { %27602 = vmatmul.mubr.f32.vlgmr.msra.gmra.mrb[48].mxu0 %v9642_v25 }
0x110a   : > { %27605 = vmatpush3.xpose.msra.mxu0 %v9653_v37  ;;  %27606 = vmatprep.mubr.msk.f32.mxu0 %vm29883_vm4, %v29882_v42 }
0x110b   : > { %27609 = vmatprep.subr.mxu0 %v29882_v42 }
0x1111   : > { %27607 = vmatmul.mubr.f32.vlgmr.msra.gmra.mrb[48].mxu0 %v9640_v11 }
0x1112   : > { %27610 = vmatpush3.xpose.msra.mxu0 %v9575_v30  ;;  %27611 = vmatprep.mubr.msk.f32.mxu0 %vm29883_vm4, %v29882_v42 }
0x1113   : > { %27644 = vmatprep.subr.mxu0 %v29882_v42 }
0x1119   : > { %27612 = vmatmul.mubr.f32.vlgmr.msra.gmra.mrb[48].mxu0 %v9640_v11 }
0x111a   : > { %27645 = vmatpush3.msra.mxu0 %v30609_v63  ;;  %27646 = vmatprep.mubr.msk.f32.mxu0 %vm29883_vm4, %v29882_v42 }
0x111b   : > { %27654 = vmatprep.subr.mxu0 %v29882_v42 }
0x11a1   : > { %v8819_v21 = vpop.f32.mrb[42].mxu1 }
0x11a2   : > { %v27533_v54 = vpop.f32.mrb[43].mxu1 }
0x11a5   : > { %v8967_v48 = vpop.f32.mrb[44].mxu1 }
0x11a6   : > { %v27543_v49 = vpop.f32.mrb[45].mxu1 }
0x11a9   : > { %v8743_v50 = vpop.f32.mrb[36].mxu0  ;;  %v9113_v51 = vpop.f32.mrb[46].mxu1 }
0x11aa   : > { %v8820_v52 = vadd.f32 %v8819_v21, %v8743_v50  ;;  %v27528_v53 = vpop.f32.mrb[37].mxu0  ;;  %v27553_v55 = vpop.f32.mrb[47].mxu1 }
0x11ad   : > { %v8893_v56 = vpop.f32.mrb[38].mxu0  ;;  %v9268_v47 = vpop.f32.mrb[48].mxu1 }
0x11ae   : > { %v8894_v57 = vadd.f32 %v8893_v56, %v8820_v52  ;;  %v27538_v59 = vpop.f32.mrb[39].mxu0  ;;  %v27563_v61 = vpop.f32.mrb[49].mxu1 }
0x11b0   : > { %v8968_v58 = vadd.f32 %v8967_v48, %v8894_v57  ;;  %v10114_v48 = vsub.f32 %v30882_v28, %v30891_v34  ;;  %v10933_v28 = vpop.permute.xlu1 %10932 }
0x11b1   : > { %v9041_v39 = vpop.f32.mrb[40].mxu0  ;;  %v9416_v2 = vpop.f32.mrb[50].mxu1 }
0x11b2   : > { %v9042_v4 = vadd.f32 %v9041_v39, %v8968_v58  ;;  %v27548_v6 = vpop.f32.mrb[41].mxu0  ;;  %v27573_v9 = vpop.f32.mrb[51].mxu1  ;;  %v10115_v23 = vand.u32 4294901760, %v10114_v48 }
0x11b4   : > { %v9114_v12 = vadd.f32 %v9113_v51, %v9042_v4  ;;  %v10116_v52 = vsub.f32 %v10114_v48, %v10115_v23 }
0x11b5   : > { %v9192_v14 = vpop.f32.mrb[42].mxu0  ;;  %v9562_v17 = vpop.f32.mrb[52].mxu1 }
0x11b6   : > { %v9193_v62 = vadd.f32 %v9192_v14, %v9114_v12  ;;  %v27558_v13 = vpop.f32.mrb[43].mxu0  ;;  %v27583_v18 = vpop.f32.mrb[53].mxu1  ;;  %v10117_v56 = vand.u32 4294901760, %v10116_v52 }
0x11b8   : > { %v9269_v38 = vadd.f32 %v9268_v47, %v9193_v62 }
0x11b9   : > { %v9342_v19 = vpop.f32.mrb[44].mxu0 }
0x11ba   : > { %v9343_v20 = vadd.f32 %v9342_v19, %v9269_v38  ;;  %v27568_v22 = vpop.f32.mrb[45].mxu0 }
0x11bc   : > { %v9417_v26 = vadd.f32 %v9416_v2, %v9343_v20 }
0x11bd   : > { %v9490_v10 = vpop.f32.mrb[46].mxu0 }
0x11be   : > { %v9491_v5 = vadd.f32 %v9490_v10, %v9417_v26  ;;  %v27578_v27 = vpop.f32.mrb[47].mxu0 }
0x11c0   : > { %v30929_v35 = vadd.f32 %v9562_v17, %v9491_v5 }
0x11ec   : > { %v10016_v11 = vpop.f32.mrb[48].mxu0 }
0x11ed   : > { %v10020_v30 = vmul.f32 0.35355338, %v10016_v11  ;;  %v27613_v32 = vpop.f32.mrb[49].mxu0 }
0x11ef   : > { %v10021_v29 = vadd.f32 %v10020_v30, %v30382_v0 }
0x11f1   : > { %v10022_v15 = vmul.f32 1.442695, %v10021_v29 }
0x11f3   : > { %29537 = vpow2.f32 %v10022_v15 }
0x11fd   : > { %v29538_v25 = vpop.eup %29537 }
0x11fe   : > { %v10024_v37 = vsel %vm1378_vm5, %v29538_v25, 0.0 }
0x11ff   : > { %10025 = vadd.xlane.f32.xlu0 %v10024_v37 }
0x1215   : > { %11396 = vrot.lane.b32.xlu0 %v30338_v45, %s32068_s30  ;;  %s32109_s30 = smov 40  }
0x1234   : > { %12310 = vadd.xlane.f32.xlu0 %v12309_v46 }
0x128c   : > { %v10026_v21 = vpop.xlane.xlu0 %10025 }
0x128d   : > { %29539 = vrcp.f32 %v10026_v21 }
0x1290   : > { %v30975_v4 = vpop.permute.xlu0 %11396 }
0x1291   : > { %v30982_v17 = vand.u32 4294901760, %v30975_v4 }
0x1297   : > { %v29540_v54 = vpop.eup %29539 }
0x1298   : > { %v10029_v49 = vmul.f32 %v29540_v54, %v29538_v25 }
0x129a   : > { %v10034_v45 = vsel %vm1378_vm5, %v10029_v49, 0 }
0x129b   : > { %v10102_v50 = vand.u32 4294901760, %v10034_v45 }
0x129d   : > { %v10103_v60 = vsub.f32 %v10034_v45, %v10102_v50 }
0x129f   : > { %v10104_v51 = vand.u32 4294901760, %v10103_v60 }
0x12a1   : > { %v10105_v53 = vsub.f32 %v10103_v60, %v10104_v51 }
0x12a3   : > { %v10106_v55 = vand.u32 4294901760, %v10105_v53 }
0x12a5   : > { %27617 = vmatmul.mubr.f32.vlgmr.msra.gmra.mrb[54].mxu1 %v10106_v55 }
0x12a6   : > { %27620 = vmatpush3.msra.mxu1 %v10117_v56  ;;  %27621 = vmatprep.mubr.msk.f32.mxu1 %vm29883_vm4, %v29882_v42  ;;  %v11480_v56 = vsub.f32 %v30975_v4, %v30982_v17 }
0x12a7   : > { %27624 = vmatprep.subr.mxu1 %v29882_v42 }
0x12ad   : > { %27622 = vmatmul.mubr.f32.vlgmr.msra.gmra.mrb[54].mxu1 %v10102_v50 }
0x12ae   : > { %27625 = vmatpush3.msra.mxu1 %v10114_v48  ;;  %27626 = vmatprep.mubr.msk.f32.mxu1 %vm29883_vm4, %v29882_v42 }
0x12af   : > { %27629 = vmatprep.subr.mxu1 %v29882_v42 }
0x12b5   : > { %27627 = vmatmul.mubr.f32.vlgmr.msra.gmra.mrb[54].mxu1 %v10103_v60 }
0x12b6   : > { %27630 = vmatpush3.msra.mxu1 %v30891_v34  ;;  %27631 = vmatprep.mubr.msk.f32.mxu1 %vm29883_vm4, %v29882_v42 }
0x12b7   : > { %27634 = vmatprep.subr.mxu1 %v29882_v42 }
0x12bd   : > { %27632 = vmatmul.mubr.f32.vlgmr.msra.gmra.mrb[54].mxu1 %v10104_v51 }
0x12be   : > { %27635 = vmatpush3.msra.mxu1 %v10115_v23  ;;  %27636 = vmatprep.mubr.msk.f32.mxu1 %vm29883_vm4, %v29882_v42 }
0x12bf   : > { %27639 = vmatprep.subr.mxu1 %v29882_v42 }
0x12c5   : > { %27637 = vmatmul.mubr.f32.vlgmr.msra.gmra.mrb[54].mxu1 %v10102_v50 }
0x12c6   : > { %27640 = vmatpush3.msra.mxu1 %v30891_v34  ;;  %27641 = vmatprep.mubr.msk.f32.mxu1 %vm29883_vm4, %v29882_v42  ;;  %v10935_v34 = vpop.permute.xlu1 %10934 }
0x12c7   : > { %27649 = vmatprep.subr.mxu1 %v29882_v42  ;;  %v10938_v2 = vsel %vm1378_vm5, %v10935_v34, 0 }
0x12c8   : > { %v10941_v12 = vand.u32 4294901760, %v10938_v2 }
0x12ca   : > { %v11018_v13 = vsub.f32 %v10938_v2, %v10941_v12 }
0x12cc   : > { %v11019_v18 = vand.u32 4294901760, %v11018_v13 }
0x12cd   : > { %27642 = vmatmul.mubr.f32.vlgmr.msra.gmra.mrb[54].mxu1 %v10102_v50 }
0x12ce   : > { %27650 = vmatpush3.msra.mxu1 %v30621_v3  ;;  %27651 = vmatprep.mubr.msk.f32.mxu1 %vm29883_vm4, %v29882_v42  ;;  %v10936_v3 = vsel %vm1378_vm5, %v10933_v28, 0  ;;  %v11020_v38 = vsub.f32 %v11018_v13, %v11019_v18 }
0x12cf   : > { %27659 = vmatprep.subr.mxu1 %v29882_v42  ;;  %v11006_v9 = vand.u32 4294901760, %v10936_v3 }
0x12d0   : > { %v11021_v20 = vand.u32 4294901760, %v11020_v38 }
0x12d1   : > { %v11007_v62 = vsub.f32 %v10936_v3, %v11006_v9 }
0x13a0   : > { %v10478_v47 = vpop.f32.mrb[54].mxu1 }
0x13a1   : > { %v10483_v57 = vsel %vm1378_vm5, %v10478_v47, 0  ;;  %v27643_v59 = vpop.f32.mrb[55].mxu1 }
0x13a2   : > { %v10551_v61 = vand.u32 4294901760, %v10483_v57 }
0x13a4   : > { %v10552_v58 = vsub.f32 %v10483_v57, %v10551_v61  ;;  %27652 = vmatmul.mubr.f32.vlgmr.msra.gmra.mrb[56].mxu1 %v10551_v61  ;;  %v11481_v57 = vand.u32 4294901760, %v11480_v56 }
0x13a5   : > { %27660 = vmatpush3.msra.mxu1 %v30609_v63  ;;  %27661 = vmatprep.mubr.msk.f32.mxu1 %vm29883_vm4, %v29882_v42 }
0x13a6   : > { %v10553_v39 = vand.u32 4294901760, %v10552_v58  ;;  %27669 = vmatprep.subr.mxu1 %v29882_v42  ;;  %v11482_v34 = vsub.f32 %v11480_v56, %v11481_v57 }
0x13a8   : > { %v10554_v6 = vsub.f32 %v10552_v58, %v10553_v39  ;;  %27662 = vmatmul.mubr.f32.vlgmr.msra.gmra.mrb[58].mxu1 %v10553_v39  ;;  %v11483_v39 = vand.u32 4294901760, %v11482_v34  ;;  %v12348_v34 = vld [vmem:[%s32056_s14 + $0x8] sm:$0xff] }
0x13a9   : > { %27670 = vmatpush3.msra.mxu1 %v30609_v63  ;;  %27671 = vmatprep.mubr.msk.f32.mxu1 %vm29883_vm4, %v29882_v42  ;;  %v11008_v63 = vand.u32 4294901760, %v11007_v62 }
0x13aa   : > { %v10555_v14 = vand.u32 4294901760, %v10554_v6  ;;  %27704 = vmatprep.subr.mxu1 %v29882_v42 }
0x13ac   : > { %27647 = vmatmul.mubr.f32.vlgmr.msra.gmra.mrb[50].mxu0 %v10555_v14  ;;  %27672 = vmatmul.mubr.f32.vlgmr.msra.gmra.mrb[60].mxu1 %v10551_v61 }
0x13ad   : > { %27705 = vmatpush3.msra.mxu1 %v30982_v17  ;;  %27655 = vmatpush3.msra.mxu0 %v30612_v1  ;;  %v11009_v1 = vsub.f32 %v11007_v62, %v11008_v63 }
0x13ae   : > { %27656 = vmatprep.mubr.msk.f32.mxu0 %vm29883_vm4, %v29882_v42  ;;  %27664 = vmatprep.subr.mxu0 %v29882_v42 }
0x13af   : > { %27706 = vmatprep.mubr.msk.f32.mxu1 %vm29883_vm4, %v29882_v42  ;;  %27709 = vmatprep.subr.mxu1 %v29882_v42  ;;  %v11010_v19 = vand.u32 4294901760, %v11009_v1 }
0x13b0   : > { %27657 = vmatmul.mubr.f32.vlgmr.msra.gmra.mrb[52].mxu0 %v10552_v58 }
0x13b1   : > { %27665 = vmatpush3.msra.mxu0 %v30617_v44  ;;  %27666 = vmatprep.mubr.msk.f32.mxu0 %vm29883_vm4, %v29882_v42 }
0x13b2   : > { %27674 = vmatprep.subr.mxu0 %v29882_v42 }
0x13b4   : > { %27667 = vmatmul.mubr.f32.vlgmr.msra.gmra.mrb[54].mxu0 %v10551_v61 }
0x13b5   : > { %27676 = vmatprep.mubr.msk.f32.mxu0 %vm29883_vm4, %v29882_v42 }
0x13b8   : > { %27675 = vmatpush3.xpose.msra.mxu0 %v10941_v12 }
0x13b9   : > { %27679 = vmatprep.subr.mxu0 %v29882_v42 }
0x13bb   : > { %27677 = vmatmul.mubr.f32.vlgmr.msra.gmra.mrb[56].mxu0 %v11010_v19 }
0x13bc   : > { %27680 = vmatpush3.xpose.msra.mxu0 %v11021_v20  ;;  %27681 = vmatprep.mubr.msk.f32.mxu0 %vm29883_vm4, %v29882_v42 }
0x13bd   : > { %27684 = vmatprep.subr.mxu0 %v29882_v42 }
0x13c3   : > { %27682 = vmatmul.mubr.f32.vlgmr.msra.gmra.mrb[56].mxu0 %v11006_v9 }
0x13c4   : > { %27685 = vmatpush3.xpose.msra.mxu0 %v11018_v13  ;;  %27686 = vmatprep.mubr.msk.f32.mxu0 %vm29883_vm4, %v29882_v42 }
0x13c5   : > { %27689 = vmatprep.subr.mxu0 %v29882_v42 }
0x13cb   : > { %27687 = vmatmul.mubr.f32.vlgmr.msra.gmra.mrb[56].mxu0 %v11007_v62 }
0x13cc   : > { %27690 = vmatpush3.xpose.msra.mxu0 %v10941_v12  ;;  %27691 = vmatprep.mubr.msk.f32.mxu0 %vm29883_vm4, %v29882_v42 }
0x13cd   : > { %27694 = vmatprep.subr.mxu0 %v29882_v42 }
0x13d3   : > { %27692 = vmatmul.mubr.f32.vlgmr.msra.gmra.mrb[56].mxu0 %v11008_v63 }
0x13d4   : > { %27695 = vmatpush3.xpose.msra.mxu0 %v11019_v18  ;;  %27696 = vmatprep.mubr.msk.f32.mxu0 %vm29883_vm4, %v29882_v42 }
0x13d5   : > { %27699 = vmatprep.subr.mxu0 %v29882_v42 }
0x13db   : > { %27697 = vmatmul.mubr.f32.vlgmr.msra.gmra.mrb[56].mxu0 %v11006_v9 }
0x13dc   : > { %27700 = vmatpush3.xpose.msra.mxu0 %v10941_v12  ;;  %27701 = vmatprep.mubr.msk.f32.mxu0 %vm29883_vm4, %v29882_v42 }
0x13dd   : > { %27734 = vmatprep.subr.mxu0 %v29882_v42 }
0x13e3   : > { %27702 = vmatmul.mubr.f32.vlgmr.msra.gmra.mrb[56].mxu0 %v11006_v9 }
0x13e4   : > { %27735 = vmatpush3.msra.mxu0 %v30705_v33  ;;  %27736 = vmatprep.mubr.msk.f32.mxu0 %vm29883_vm4, %v29882_v42 }
0x13e5   : > { %27744 = vmatprep.subr.mxu0 %v29882_v42 }
0x1477   : > { %v10633_v44 = vpop.f32.mrb[56].mxu1 }
0x1478   : > { %v27653_v22 = vpop.f32.mrb[57].mxu1 }
0x147b   : > { %v10781_v26 = vpop.f32.mrb[58].mxu1 }
0x147c   : > { %v27663_v10 = vpop.f32.mrb[59].mxu1 }
0x147d   : > { %v12311_v10 = vpop.xlane.xlu0 %12310 }
0x147f   : > { %v10557_v5 = vpop.f32.mrb[50].mxu0  ;;  %v10927_v27 = vpop.f32.mrb[60].mxu1 }
0x1480   : > { %v10634_v11 = vadd.f32 %v10633_v44, %v10557_v5  ;;  %v27648_v30 = vpop.f32.mrb[51].mxu0  ;;  %v27673_v32 = vpop.f32.mrb[61].mxu1 }
0x1483   : > { %v10707_v29 = vpop.f32.mrb[52].mxu0 }
0x1484   : > { %v10708_v15 = vadd.f32 %v10707_v29, %v10634_v11  ;;  %v27658_v25 = vpop.f32.mrb[53].mxu0  ;;  %v12315_v11 = vmul.f32 0.03125, %v12311_v10 }
0x1486   : > { %v10782_v37 = vadd.f32 %v10781_v26, %v10708_v15  ;;  %v12317_v29 = vsub.f32 %v30940_v43, %v12315_v11 }
0x1487   : > { %v10855_v16 = vpop.f32.mrb[54].mxu0 }
0x1488   : > { %v10856_v46 = vadd.f32 %v10855_v16, %v10782_v37  ;;  %v27668_v21 = vpop.f32.mrb[55].mxu0  ;;  %v12319_v16 = vmul.f32 %v12317_v29, %v12317_v29 }
0x148a   : > { %v10928_v54 = vadd.f32 %v10927_v27, %v10856_v46  ;;  %v12321_v46 = vsel %vm766_vm3, %v12319_v16, 0.0 }
0x148c   : > { %v31019_v48 = vadd.f32 %v10928_v54, %v30929_v35 }
0x14b6   : > { %v11382_v49 = vpop.f32.mrb[56].mxu0 }
0x14b7   : > { %v11386_v45 = vmul.f32 0.35355338, %v11382_v49  ;;  %v27703_v50 = vpop.f32.mrb[57].mxu0 }
0x14b9   : > { %v11387_v23 = vadd.f32 %v11386_v45, %v30382_v0 }
0x14bb   : > { %v11388_v60 = vmul.f32 1.442695, %v11387_v23 }
0x14bd   : > { %29541 = vpow2.f32 %v11388_v60  ;;  %v26188_v60 = vld [vmem:[#allocation11] ss:$0 sm:$0xff] }
0x14c7   : > { %v29542_v51 = vpop.eup %29541 }
0x14c8   : > { %v11390_v52 = vsel %vm1378_vm5, %v29542_v51, 0.0 }
0x14c9   : > { %11391 = vadd.xlane.f32.xlu1 %v11390_v52  ;;  %v26189_v52 = vld [vmem:[#allocation12] ss:$0 sm:$0xff] }
0x1556   : > { %v11392_v53 = vpop.xlane.xlu1 %11391 }
0x1557   : > { %29543 = vrcp.f32 %v11392_v53 }
0x1561   : > { %v29544_v55 = vpop.eup %29543 }
0x1562   : > { %v11395_v28 = vmul.f32 %v29544_v55, %v29542_v51 }
0x1564   : > { %v11400_v35 = vsel %vm1378_vm5, %v11395_v28, 0 }
0x1565   : > { %v11468_v47 = vand.u32 4294901760, %v11400_v35 }
0x1567   : > { %v11469_v59 = vsub.f32 %v11400_v35, %v11468_v47 }
0x1569   : > { %v11470_v61 = vand.u32 4294901760, %v11469_v59 }
0x156b   : > { %v11471_v58 = vsub.f32 %v11469_v59, %v11470_v61 }
0x156d   : > { %v11472_v3 = vand.u32 4294901760, %v11471_v58  ;;  %v12349_v58 = vld [vmem:[%s32056_s14 + $0x10] sm:$0xff] }
0x156f   : > { %27707 = vmatmul.mubr.f32.vlgmr.msra.gmra.mrb[62].mxu1 %v11472_v3 }
0x1570   : > { %27710 = vmatpush3.msra.mxu1 %v11483_v39  ;;  %27711 = vmatprep.mubr.msk.f32.mxu1 %vm29883_vm4, %v29882_v42  ;;  %v12361_v39 = vand.u32 4294901760, %v12348_v34 }
0x1571   : > { %27714 = vmatprep.subr.mxu1 %v29882_v42 }
0x1577   : > { %27712 = vmatmul.mubr.f32.vlgmr.msra.gmra.mrb[62].mxu1 %v11468_v47 }
0x1578   : > { %27715 = vmatpush3.msra.mxu1 %v11480_v56  ;;  %27716 = vmatprep.mubr.msk.f32.mxu1 %vm29883_vm4, %v29882_v42 }
0x1579   : > { %27719 = vmatprep.subr.mxu1 %v29882_v42 }
0x157f   : > { %27717 = vmatmul.mubr.f32.vlgmr.msra.gmra.mrb[62].mxu1 %v11469_v59 }
0x1580   : > { %27720 = vmatpush3.msra.mxu1 %v30982_v17  ;;  %27721 = vmatprep.mubr.msk.f32.mxu1 %vm29883_vm4, %v29882_v42 }
0x1581   : > { %27724 = vmatprep.subr.mxu1 %v29882_v42 }
0x1587   : > { %27722 = vmatmul.mubr.f32.vlgmr.msra.gmra.mrb[62].mxu1 %v11470_v61  ;;  %v12347_v61 = vld [vmem:[%s32056_s14] sm:$0xff] }
0x1588   : > { %27725 = vmatpush3.msra.mxu1 %v11481_v57  ;;  %27726 = vmatprep.mubr.msk.f32.mxu1 %vm29883_vm4, %v29882_v42  ;;  %v12358_v3 = vand.u32 4294901760, %v12347_v61 }
0x1589   : > { %27729 = vmatprep.subr.mxu1 %v29882_v42 }
0x158f   : > { %27727 = vmatmul.mubr.f32.vlgmr.msra.gmra.mrb[62].mxu1 %v11468_v47 }
0x1590   : > { %27730 = vmatpush3.msra.mxu1 %v30982_v17  ;;  %27731 = vmatprep.mubr.msk.f32.mxu1 %vm29883_vm4, %v29882_v42 }
0x1591   : > { %27739 = vmatprep.subr.mxu1 %v29882_v42 }
0x1597   : > { %27732 = vmatmul.mubr.f32.vlgmr.msra.gmra.mrb[62].mxu1 %v11468_v47 }
0x1598   : > { %27740 = vmatpush3.msra.mxu1 %v30717_v40  ;;  %27741 = vmatprep.mubr.msk.f32.mxu1 %vm29883_vm4, %v29882_v42 }
0x1599   : > { %27749 = vmatprep.subr.mxu1 %v29882_v42 }
0x166a   : > { %v11844_v2 = vpop.f32.mrb[62].mxu1 }
0x166b   : > { %v11849_v4 = vsel %vm1378_vm5, %v11844_v2, 0  ;;  %v27733_v6 = vpop.f32.mrb[63].mxu1  ;;  %v12350_v2 = vld [vmem:[%s32056_s14 + $0x18] sm:$0xff] }
0x166c   : > { %v11917_v9 = vand.u32 4294901760, %v11849_v4  ;;  %v12367_v6 = vand.u32 4294901760, %v12350_v2 }
0x166e   : > { %v11918_v12 = vsub.f32 %v11849_v4, %v11917_v9  ;;  %27742 = vmatmul.mubr.f32.vlgmr.msra.gmra.mrb[64].mxu1 %v11917_v9  ;;  %v12364_v4 = vand.u32 4294901760, %v12349_v58 }
0x166f   : > { %27750 = vmatpush3.msra.mxu1 %v30705_v33  ;;  %27751 = vmatprep.mubr.msk.f32.mxu1 %vm29883_vm4, %v29882_v42 }
0x1670   : > { %v11919_v14 = vand.u32 4294901760, %v11918_v12  ;;  %27759 = vmatprep.subr.mxu1 %v29882_v42 }
0x1672   : > { %v11920_v40 = vsub.f32 %v11918_v12, %v11919_v14  ;;  %27752 = vmatmul.mubr.f32.vlgmr.msra.gmra.mrb[66].mxu1 %v11919_v14  ;;  %v12448_v14 = vsub.f32 %v12347_v61, %v12358_v3 }
0x1673   : > { %27760 = vmatpush3.msra.mxu1 %v30705_v33  ;;  %27761 = vmatprep.mubr.msk.f32.mxu1 %vm29883_vm4, %v29882_v42 }
0x1674   : > { %v11921_v17 = vand.u32 4294901760, %v11920_v40  ;;  %v12455_v40 = vsub.f32 %v12348_v34, %v12361_v39 }
0x1676   : > { %27737 = vmatmul.mubr.f32.vlgmr.msra.gmra.mrb[58].mxu0 %v11921_v17  ;;  %27762 = vmatmul.mubr.f32.vlgmr.msra.gmra.mrb[68].mxu1 %v11917_v9  ;;  %v12449_v17 = vand.u32 4294901760, %v12448_v14 }
0x1677   : > { %27745 = vmatpush3.msra.mxu0 %v30708_v36  ;;  %27746 = vmatprep.mubr.msk.f32.mxu0 %vm29883_vm4, %v29882_v42 }
0x1678   : > { %27754 = vmatprep.subr.mxu0 %v29882_v42 }
0x167a   : > { %27747 = vmatmul.mubr.f32.vlgmr.msra.gmra.mrb[60].mxu0 %v11918_v12  ;;  %v31101_v12 = vpack.c.bf16 %v12367_v6, %v12364_v4 }
0x167b   : > { %27755 = vmatpush3.msra.mxu0 %v30713_v31  ;;  %27756 = vmatprep.mubr.msk.f32.mxu0 %vm29883_vm4, %v29882_v42 }
0x167e   : > { %27757 = vmatmul.mubr.f32.vlgmr.msra.gmra.mrb[62].mxu0 %v11917_v9  ;;  %v31099_v9 = vpack.c.bf16 %v12361_v39, %v12358_v3  ;;  %v26193_v39 = vld [vmem:[%s32050_s8 + $0x20] sm:$0xff] }
0x1680   : > { %28827 = vmatprep.subr.bf16.mxu0 %v31099_v9 }
0x1681   : > { %28829 = vmatpush3.bf16.msra.mxu0 %v31099_v9 }
0x1682   : > { %28831 = vmatprep.subr.bf16.mxu0 %v31101_v12 }
0x1685   : > { %28833 = vmatpush3.bf16.msra.mxu0 %v31101_v12 }
0x1741   : > { %v11999_v33 = vpop.f32.mrb[64].mxu1 }
0x1742   : > { %v27743_v62 = vpop.f32.mrb[65].mxu1 }
0x1743   : > { %v12450_v62 = vsub.f32 %v12448_v14, %v12449_v17 }
0x1745   : > { %v12147_v13 = vpop.f32.mrb[66].mxu1 }
0x1746   : > { %v27753_v63 = vpop.f32.mrb[67].mxu1 }
0x1747   : > { %v12462_v63 = vsub.f32 %v12349_v58, %v12364_v4  ;;  %v26195_v4 = vld [vmem:[%s32050_s8 + $0x30] sm:$0xff] }
0x1749   : > { %v11923_v18 = vpop.f32.mrb[58].mxu0  ;;  %v12293_v1 = vpop.f32.mrb[68].mxu1 }
0x174a   : > { %v12000_v38 = vadd.f32 %v11999_v33, %v11923_v18  ;;  %v27738_v36 = vpop.f32.mrb[59].mxu0  ;;  %v27763_v19 = vpop.f32.mrb[69].mxu1  ;;  %v12456_v33 = vand.u32 4294901760, %v12455_v40  ;;  %v12469_v18 = vsub.f32 %v12350_v2, %v12367_v6  ;;  %v26194_v2 = vld [vmem:[%s32050_s8 + $0x28] sm:$0xff]  ;;  %v12951_v6 = vand.u32 4294901760, %v26193_v39 }
0x174b   : > { %v12463_v36 = vand.u32 4294901760, %v12462_v63 }
0x174c   : > { %v12470_v19 = vand.u32 4294901760, %v12469_v18  ;;  %v28858_v11 = vpack.c.bf16 %v12456_v33, %v12449_v17 }
0x174d   : > { %v12073_v20 = vpop.f32.mrb[60].mxu0 }
0x174e   : > { %v12074_v44 = vadd.f32 %v12073_v20, %v12000_v38  ;;  %v27748_v22 = vpop.f32.mrb[61].mxu0 }
0x174f   : > { %v12471_v22 = vsub.f32 %v12469_v18, %v12470_v19 }
0x1750   : > { %v12148_v26 = vadd.f32 %v12147_v13, %v12074_v44  ;;  %v12457_v13 = vsub.f32 %v12455_v40, %v12456_v33  ;;  %v12464_v44 = vsub.f32 %v12462_v63, %v12463_v36 }
0x1751   : > { %v12221_v5 = vpop.f32.mrb[62].mxu0  ;;  %v12472_v10 = vand.u32 4294901760, %v12471_v22 }
0x1752   : > { %v12222_v31 = vadd.f32 %v12221_v5, %v12148_v26  ;;  %v27758_v27 = vpop.f32.mrb[63].mxu0  ;;  %v12458_v38 = vand.u32 4294901760, %v12457_v13  ;;  %v12465_v26 = vand.u32 4294901760, %v12464_v44 }
0x1753   : > { %v28846_v27 = vpack.c.bf16 %v12469_v18, %v12462_v63 }
0x1754   : > { %v12294_v30 = vadd.f32 %v12293_v1, %v12222_v31  ;;  %v12451_v1 = vand.u32 4294901760, %v12450_v62  ;;  %v28838_v5 = vpack.c.bf16 %v12472_v10, %v12465_v26  ;;  %v28842_v31 = vpack.c.bf16 %v12455_v40, %v12448_v14 }
0x1755   : > { %v12957_v14 = vand.u32 4294901760, %v26195_v4  ;;  %v13041_v62 = vsub.f32 %v26193_v39, %v12951_v6 }
0x1756   : > { %v12297_v32 = vadd.f32 %v12294_v30, %v31019_v48  ;;  %v28834_v20 = vpack.c.bf16 %v12458_v38, %v12451_v1  ;;  %v28862_v30 = vpack.c.bf16 %v12470_v19, %v12463_v36 }
0x1757   : > { %v13042_v63 = vand.u32 4294901760, %v13041_v62  ;;  %v13055_v36 = vsub.f32 %v26195_v4, %v12957_v14 }
0x1758   : > { %v12299_v15 = vadd.f32 %v12297_v32, %v30292_v24  ;;  %28835 = vmatprep.subr.bf16.mxu0 %v28834_v20 }
0x1759   : > { %v13043_v1 = vsub.f32 %v13041_v62, %v13042_v63  ;;  %v13056_v22 = vand.u32 4294901760, %v13055_v36 }
0x175a   : > { %v31066_v25 = vadd.f32 %v30937_v41, %v12299_v15 }
0x175c   : > { %v12312_v37 = vsel %vm766_vm3, %v31066_v25, 0.0 }
0x175d   : > { %12313 = vadd.xlane.f32.xlu1 %v12312_v37 }
0x1761   : > { %12322 = vadd.xlane.f32.xlu1 %v12321_v46 }
0x17ea   : > { %v12314_v21 = vpop.xlane.xlu1 %12313 }
0x17eb   : > { %v12316_v54 = vmul.f32 0.03125, %v12314_v21 }
0x17ed   : > { %v31072_v49 = vsub.f32 %v31066_v25, %v12316_v54 }
0x17ee   : > { %v12323_v48 = vpop.xlane.xlu1 %12322 }
0x17ef   : > { %v12327_v45 = vmul.f32 0.03125, %v12323_v48  ;;  %v12320_v24 = vmul.f32 %v31072_v49, %v31072_v49 }
0x17f1   : > { %v12329_v41 = vadd.f32 1e-05, %v12327_v45  ;;  %v12324_v50 = vsel %vm766_vm3, %v12320_v24, 0.0 }
0x17f2   : > { %12325 = vadd.xlane.f32.xlu1 %v12324_v50 }
0x17f3   : > { %29545 = vrsqrt.f32 %v12329_v41 }
0x17fd   : > { %v29546_v23 = vpop.eup %29545 }
0x17fe   : > { %v12333_v51 = vmul.f32 %v29546_v23, %v12317_v29  ;;  %v26190_v23 = vld [vmem:[#allocation14] ss:$0 sm:$0xff] }
0x1800   : > { %v12339_v53 = vmul.f32 %v26188_v60, %v12333_v51 }
0x1802   : > { %v12345_v55 = vadd.f32 %v26189_v52, %v12339_v53 }
0x1804   : > { %v12352_v56 = vsel %vm766_vm3, %v12345_v55, 0 }
0x1805   : > { %v31078_v28 = vand.u32 4294901760, %v12352_v56 }
0x1807   : > { %v31081_v35 = vsub.f32 %v12352_v56, %v31078_v28 }
0x1809   : > { %v12428_v47 = vand.u32 4294901760, %v31081_v35 }
0x180b   : > { %v12429_v57 = vsub.f32 %v31081_v35, %v12428_v47 }
0x180d   : > { %v12430_v59 = vand.u32 4294901760, %v12429_v57 }
0x180f   : > { %27772 = vmatprep.mubr.f32.mxu0 %v12430_v59 }
0x187f   : > { %v12326_v32 = vpop.xlane.xlu1 %12325 }
0x1880   : > { %v12328_v29 = vmul.f32 0.03125, %v12326_v32 }
0x1882   : > { %v12330_v15 = vadd.f32 1e-05, %v12328_v29 }
0x1884   : > { %29547 = vrsqrt.f32 %v12330_v15 }
0x188e   : > { %v29548_v37 = vpop.eup %29547 }
0x188f   : > { %v12334_v16 = vmul.f32 %v29548_v37, %v31072_v49 }
0x1891   : > { %v12340_v46 = vmul.f32 %v26188_v60, %v12334_v16 }
0x1893   : > { %v12346_v21 = vadd.f32 %v26189_v52, %v12340_v46 }
0x1895   : > { %v12355_v54 = vsel %vm766_vm3, %v12346_v21, 0 }
0x1896   : > { %v12436_v48 = vand.u32 4294901760, %v12355_v54 }
0x1898   : > { %v12437_v45 = vsub.f32 %v12355_v54, %v12436_v48 }
0x189a   : > { %v12438_v24 = vand.u32 4294901760, %v12437_v45 }
0x189c   : > { %v12439_v41 = vsub.f32 %v12437_v45, %v12438_v24 }
0x189e   : > { %v12440_v50 = vand.u32 4294901760, %v12439_v41  ;;  %v26191_v41 = vld [vmem:[#allocation4 + $0x1] ss:$0 sm:$0xff] }
0x18a0   : > { %27773 = vmatmul.mubr.f32.vlgmr.msra.gmra.mrb[64].mxu0 %v12440_v50 }
0x18a1   : > { %28837 = vmatpush3.bf16.msra.mxu0 %v28834_v20  ;;  %27783 = vmatprep.mubr.f32.mxu0 %v31078_v28  ;;  %v13044_v20 = vand.u32 4294901760, %v13043_v1 }
0x18a2   : > { %28839 = vmatprep.subr.bf16.mxu0 %v28838_v5 }
0x18a5   : > { %28841 = vmatpush3.bf16.msra.mxu0 %v28838_v5  ;;  %v13057_v5 = vsub.f32 %v13055_v36, %v13056_v22 }
0x18a6   : > { %28843 = vmatprep.subr.bf16.mxu0 %v28842_v31 }
0x18a8   : > { %27784 = vmatmul.mubr.f32.vlgmr.msra.gmra.mrb[64].mxu0 %v12436_v48 }
0x18a9   : > { %28845 = vmatpush3.bf16.msra.mxu0 %v28842_v31  ;;  %27794 = vmatprep.mubr.f32.mxu0 %v31081_v35 }
0x18aa   : > { %28847 = vmatprep.subr.bf16.mxu0 %v28846_v27 }
0x18ad   : > { %28849 = vmatpush3.bf16.msra.mxu0 %v28846_v27  ;;  %v13058_v27 = vand.u32 4294901760, %v13057_v5 }
0x18ae   : > { %28851 = vmatprep.subr.bf16.mxu0 %v31099_v9 }
0x18b0   : > { %27795 = vmatmul.mubr.f32.vlgmr.msra.gmra.mrb[64].mxu0 %v12437_v45 }
0x18b1   : > { %28853 = vmatpush3.bf16.msra.mxu0 %v31099_v9  ;;  %27805 = vmatprep.mubr.f32.mxu0 %v12428_v47 }
0x18b2   : > { %28855 = vmatprep.subr.bf16.mxu0 %v31101_v12 }
0x18b5   : > { %28857 = vmatpush3.bf16.msra.mxu0 %v31101_v12 }
0x18b6   : > { %28859 = vmatprep.subr.bf16.mxu0 %v28858_v11 }
0x18b8   : > { %27806 = vmatmul.mubr.f32.vlgmr.msra.gmra.mrb[64].mxu0 %v12438_v24 }
0x18b9   : > { %28861 = vmatpush3.bf16.msra.mxu0 %v28858_v11  ;;  %27816 = vmatprep.mubr.f32.mxu0 %v31078_v28 }
0x18ba   : > { %28863 = vmatprep.subr.bf16.mxu0 %v28862_v30 }
0x18bd   : > { %28865 = vmatpush3.bf16.msra.mxu0 %v28862_v30 }
0x18be   : > { %28867 = vmatprep.subr.bf16.mxu0 %v31099_v9 }
0x18c0   : > { %27817 = vmatmul.mubr.f32.vlgmr.msra.gmra.mrb[64].mxu0 %v12436_v48 }
0x18c1   : > { %28869 = vmatpush3.bf16.msra.mxu0 %v31099_v9  ;;  %27827 = vmatprep.mubr.f32.mxu0 %v31078_v28  ;;  %v12954_v9 = vand.u32 4294901760, %v26194_v2 }
0x18c2   : > { %28871 = vmatprep.subr.bf16.mxu0 %v31101_v12 }
0x18c3   : > { %v31152_v17 = vpack.c.bf16 %v12954_v9, %v12951_v6  ;;  %v13048_v13 = vsub.f32 %v26194_v2, %v12954_v9 }
0x18c5   : > { %28873 = vmatpush3.bf16.msra.mxu0 %v31101_v12  ;;  %v26196_v12 = vld [vmem:[%s32050_s8 + $0x38] sm:$0xff]  ;;  %28875 = vmatprep.subr.bf16.mxu1 %v31152_v17  ;;  %v13049_v18 = vand.u32 4294901760, %v13048_v13  ;;  %v28890_v32 = vpack.c.bf16 %v13048_v13, %v13041_v62 }
0x18c6   : > { %27896 = vmatprep.subr.mxu0 %v29882_v42  ;;  %v12960_v40 = vand.u32 4294901760, %v26196_v12  ;;  %28877 = vmatpush3.bf16.msra.mxu1 %v31152_v17 }
0x18c7   : > { %v13050_v38 = vsub.f32 %v13048_v13, %v13049_v18  ;;  %v28906_v15 = vpack.c.bf16 %v13049_v18, %v13042_v63 }
0x18c8   : > { %27828 = vmatmul.mubr.f32.vlgmr.msra.gmra.mrb[64].mxu0 %v12436_v48  ;;  %v31154_v33 = vpack.c.bf16 %v12960_v40, %v12957_v14  ;;  %v13062_v19 = vsub.f32 %v26196_v12, %v12960_v40 }
0x18c9   : > { %27898 = vmatprep.mubr.msk.f32.mxu0 %vm29883_vm4, %v29882_v42  ;;  %v13051_v44 = vand.u32 4294901760, %v13050_v38 }
0x18ca   : > { %28879 = vmatprep.subr.bf16.mxu1 %v31154_v33  ;;  %v13063_v26 = vand.u32 4294901760, %v13062_v19  ;;  %v28894_v29 = vpack.c.bf16 %v13062_v19, %v13055_v36 }
0x18cb   : > { %28881 = vmatpush3.bf16.msra.mxu1 %v31154_v33  ;;  %v28882_v10 = vpack.c.bf16 %v13051_v44, %v13044_v20 }
0x18cc   : > { %v13064_v31 = vsub.f32 %v13062_v19, %v13063_v26  ;;  %v28910_v37 = vpack.c.bf16 %v13063_v26, %v13056_v22 }
0x18cd   : > { %28883 = vmatprep.subr.bf16.mxu1 %v28882_v10 }
0x18ce   : > { %v13065_v11 = vand.u32 4294901760, %v13064_v31 }
0x18d0   : > { %v28886_v30 = vpack.c.bf16 %v13065_v11, %v13058_v27 }
0x199b   : > { %v27829_v49 = vpop.f32.mrb[64].mxu0 }
0x199c   : > { %v12875_v60 = vpop.f32.mrb[65].mxu0  ;;  %v12886_v51 = vadd.f32 %v27829_v49, %v31066_v25  ;;  %v26192_v49 = vld [vmem:[#allocation6 + $0x1] ss:$0 sm:$0xff] }
0x199d   : > { %v12885_v52 = vadd.f32 %v12875_v60, %v30940_v43 }
0x199e   : > { %v31130_v55 = vadd.f32 %v26190_v23, %v12886_v51 }
0x199f   : > { %v31128_v53 = vadd.f32 %v26190_v23, %v12885_v52 }
0x19a0   : > { %v12899_v28 = vsel %vm766_vm3, %v31130_v55, 0.0 }
0x19a1   : > { %v12896_v56 = vsel %vm766_vm3, %v31128_v53, 0.0 }
0x19a2   : > { %12897 = vadd.xlane.f32.xlu1 %v12896_v56 }
0x19a6   : > { %12900 = vadd.xlane.f32.xlu1 %v12899_v28 }
0x1a2f   : > { %v12898_v35 = vpop.xlane.xlu1 %12897 }
0x1a30   : > { %v12902_v47 = vmul.f32 0.03125, %v12898_v35 }
0x1a32   : > { %v12904_v57 = vsub.f32 %v31128_v53, %v12902_v47 }
0x1a33   : > { %v12901_v59 = vpop.xlane.xlu1 %12900 }
0x1a34   : > { %v12903_v25 = vmul.f32 0.03125, %v12901_v59  ;;  %v12906_v61 = vmul.f32 %v12904_v57, %v12904_v57 }
0x1a36   : > { %v12905_v43 = vsub.f32 %v31130_v55, %v12903_v25  ;;  %v12908_v34 = vsel %vm766_vm3, %v12906_v61, 0.0 }
0x1a37   : > { %12909 = vadd.xlane.f32.xlu0 %v12908_v34 }
0x1a38   : > { %v12907_v58 = vmul.f32 %v12905_v43, %v12905_v43 }
0x1a3a   : > { %v12911_v3 = vsel %vm766_vm3, %v12907_v58, 0.0 }
0x1a3b   : > { %12912 = vadd.xlane.f32.xlu1 %v12911_v3 }
0x1ac4   : > { %v12910_v16 = vpop.xlane.xlu0 %12909 }
0x1ac5   : > { %v12914_v46 = vmul.f32 0.03125, %v12910_v16 }
0x1ac7   : > { %v12916_v21 = vadd.f32 1e-05, %v12914_v46 }
0x1ac8   : > { %v12913_v54 = vpop.xlane.xlu1 %12912 }
0x1ac9   : > { %29549 = vrsqrt.f32 %v12916_v21  ;;  %v12915_v48 = vmul.f32 0.03125, %v12913_v54 }
0x1acb   : > { %v12917_v45 = vadd.f32 1e-05, %v12915_v48 }
0x1acd   : > { %29551 = vrsqrt.f32 %v12917_v45 }
0x1ad3   : > { %v29550_v24 = vpop.eup %29549 }
0x1ad4   : > { %v12920_v50 = vmul.f32 %v29550_v24, %v12904_v57 }
0x1ad6   : > { %v12926_v23 = vmul.f32 %v26191_v41, %v12920_v50 }
0x1ad7   : > { %v29552_v60 = vpop.eup %29551 }
0x1ad8   : > { %v12921_v51 = vmul.f32 %v29552_v60, %v12905_v43  ;;  %v12932_v52 = vadd.f32 %v26192_v49, %v12926_v23  ;;  %v26197_v43 = vld [vmem:[#allocation8 + $0x1] ss:$0 sm:$0xff] }
0x1ada   : > { %v12927_v56 = vmul.f32 %v26191_v41, %v12921_v51  ;;  %v12945_v28 = vsel %vm766_vm3, %v12932_v52, 0 }
0x1adb   : > { %v13019_v35 = vand.u32 4294901760, %v12945_v28 }
0x1adc   : > { %v12933_v47 = vadd.f32 %v26192_v49, %v12927_v56 }
0x1add   : > { %v13020_v59 = vsub.f32 %v12945_v28, %v13019_v35 }
0x1ade   : > { %v12948_v25 = vsel %vm766_vm3, %v12933_v47, 0 }
0x1adf   : > { %v13021_v61 = vand.u32 4294901760, %v13020_v59  ;;  %v13029_v34 = vand.u32 4294901760, %v12948_v25 }
0x1ae1   : > { %v13022_v58 = vsub.f32 %v13020_v59, %v13021_v61  ;;  %v13030_v3 = vsub.f32 %v12948_v25, %v13029_v34 }
0x1ae3   : > { %v13023_v39 = vand.u32 4294901760, %v13022_v58  ;;  %v13031_v2 = vand.u32 4294901760, %v13030_v3 }
0x1ae5   : > { %27838 = vmatprep.mubr.f32.mxu1 %v13023_v39  ;;  %v13032_v57 = vsub.f32 %v13030_v3, %v13031_v2 }
0x1ae7   : > { %v13033_v4 = vand.u32 4294901760, %v13032_v57 }
0x1ae9   : > { %27839 = vmatmul.mubr.f32.vlgmr.msra.gmra.mrb[70].mxu1 %v13033_v4 }
0x1aea   : > { %28885 = vmatpush3.bf16.msra.mxu1 %v28882_v10  ;;  %27849 = vmatprep.mubr.f32.mxu1 %v13019_v35 }
0x1aeb   : > { %28887 = vmatprep.subr.bf16.mxu1 %v28886_v30 }
0x1aee   : > { %28889 = vmatpush3.bf16.msra.mxu1 %v28886_v30 }
0x1aef   : > { %28891 = vmatprep.subr.bf16.mxu1 %v28890_v32 }
0x1af1   : > { %27850 = vmatmul.mubr.f32.vlgmr.msra.gmra.mrb[70].mxu1 %v13029_v34 }
0x1af2   : > { %28893 = vmatpush3.bf16.msra.mxu1 %v28890_v32  ;;  %27860 = vmatprep.mubr.f32.mxu1 %v13020_v59 }
0x1af3   : > { %28895 = vmatprep.subr.bf16.mxu1 %v28894_v29 }
0x1af6   : > { %28897 = vmatpush3.bf16.msra.mxu1 %v28894_v29 }
0x1af7   : > { %28899 = vmatprep.subr.bf16.mxu1 %v31152_v17 }
0x1af9   : > { %27861 = vmatmul.mubr.f32.vlgmr.msra.gmra.mrb[70].mxu1 %v13030_v3 }
0x1afa   : > { %28901 = vmatpush3.bf16.msra.mxu1 %v31152_v17  ;;  %27871 = vmatprep.mubr.f32.mxu1 %v13021_v61 }
0x1afb   : > { %28903 = vmatprep.subr.bf16.mxu1 %v31154_v33 }
0x1afe   : > { %28905 = vmatpush3.bf16.msra.mxu1 %v31154_v33 }
0x1aff   : > { %28907 = vmatprep.subr.bf16.mxu1 %v28906_v15 }
0x1b01   : > { %27872 = vmatmul.mubr.f32.vlgmr.msra.gmra.mrb[70].mxu1 %v13031_v2 }
0x1b02   : > { %28909 = vmatpush3.bf16.msra.mxu1 %v28906_v15  ;;  %27882 = vmatprep.mubr.f32.mxu1 %v13019_v35 }
0x1b03   : > { %28911 = vmatprep.subr.bf16.mxu1 %v28910_v37 }
0x1b06   : > { %28913 = vmatpush3.bf16.msra.mxu1 %v28910_v37 }
0x1b07   : > { %28915 = vmatprep.subr.bf16.mxu1 %v31152_v17 }
0x1b09   : > { %27883 = vmatmul.mubr.f32.vlgmr.msra.gmra.mrb[70].mxu1 %v13029_v34 }
0x1b0a   : > { %28917 = vmatpush3.bf16.msra.mxu1 %v31152_v17  ;;  %27893 = vmatprep.mubr.f32.mxu1 %v13019_v35 }
0x1b0b   : > { %28919 = vmatprep.subr.bf16.mxu1 %v31154_v33 }
0x1b0e   : > { %28921 = vmatpush3.bf16.msra.mxu1 %v31154_v33 }
0x1b0f   : > { %27926 = vmatprep.subr.mxu1 %v29882_v42 }
0x1b11   : > { %27894 = vmatmul.mubr.f32.vlgmr.msra.gmra.mrb[70].mxu1 %v13029_v34 }
0x1b12   : > { %27928 = vmatprep.mubr.msk.f32.mxu1 %vm29883_vm4, %v29882_v42 }
0x1be4   : > { %v27895_v6 = vpop.f32.mrb[70].mxu1 }
0x1be5   : > { %v31173_v9 = vadd.f32 %v27895_v6, %v26197_v43  ;;  %v13468_v12 = vpop.f32.mrb[71].mxu1 }
0x1be6   : > { %v31175_v14 = vadd.f32 %v26197_v43, %v13468_v12 }
0x1be8   : > { %14398 = vrot.lane.b32.xlu1 %v31175_v14, %s29886_s24  ;;  %13484 = vrot.lane.b32.xlu0 %v31175_v14, %s29885_s29  ;;  %v13486_v40 = vsel %vm1378_vm5, %v31175_v14, 0 }
0x1be9   : > { %v13556_v17 = vand.u32 4294901760, %v13486_v40 }
0x1beb   : > { %v13557_v33 = vsub.f32 %v13486_v40, %v13556_v17 }
0x1bec   : > { %14400 = vrot.lane.b32.xlu1 %v31175_v14, %s29890_s22  ;;  %13946 = vrot.lane.b32.xlu0 %v31175_v14, %s29884_s28 }
0x1bed   : > { %v13558_v62 = vand.u32 4294901760, %v13557_v33 }
0x1bef   : > { %v13559_v18 = vsub.f32 %v13557_v33, %v13558_v62 }
0x1bf1   : > { %v13560_v20 = vand.u32 4294901760, %v13559_v18 }
0x1c5a   : > { %v13485_v13 = vpop.permute.xlu0 %13484  ;;  %v14399_v10 = vpop.permute.xlu1 %14398 }
0x1c5b   : > { %v13488_v63 = vsel %vm1378_vm5, %v13485_v13, 0  ;;  %v14402_v31 = vsel %vm1378_vm5, %v14399_v10, 0  ;;  %v26199_v10 = vld [vmem:[%s32052_s10 + $0x28] sm:$0xff] }
0x1c5c   : > { %v13491_v1 = vand.u32 4294901760, %v13488_v63  ;;  %v14472_v11 = vand.u32 4294901760, %v14402_v31 }
0x1c5e   : > { %v13568_v38 = vsub.f32 %v13488_v63, %v13491_v1  ;;  %27897 = vmatpush3.xpose.msra.mxu0 %v13491_v1  ;;  %v31188_v36 = vpop.permute.xlu0 %13946  ;;  %v14401_v5 = vpop.permute.xlu1 %14400  ;;  %v14473_v32 = vsub.f32 %v14402_v31, %v14472_v11 }
0x1c5f   : > { %v31191_v19 = vand.u32 4294901760, %v31188_v36  ;;  %27901 = vmatprep.subr.mxu0 %v29882_v42  ;;  %v14404_v27 = vsel %vm1378_vm5, %v14401_v5, 0  ;;  %v31293_v5 = vand.u32 4294901760, %v26199_v10 }
0x1c60   : > { %v13569_v44 = vand.u32 4294901760, %v13568_v38  ;;  %v14407_v30 = vand.u32 4294901760, %v14404_v27  ;;  %v14474_v15 = vand.u32 4294901760, %v14473_v32 }
0x1c61   : > { %27899 = vmatmul.mubr.f32.vlgmr.msra.gmra.mrb[66].mxu0 %v13560_v20  ;;  %27927 = vmatpush3.msra.mxu1 %v31191_v19  ;;  %v14030_v61 = vsub.f32 %v31188_v36, %v31191_v19  ;;  %v31296_v31 = vsub.f32 %v26199_v10, %v31293_v5 }
0x1c62   : > { %v13570_v22 = vsub.f32 %v13568_v38, %v13569_v44  ;;  %27903 = vmatprep.mubr.msk.f32.mxu0 %vm29883_vm4, %v29882_v42  ;;  %27931 = vmatprep.subr.mxu1 %v29882_v42  ;;  %v14484_v29 = vsub.f32 %v14404_v27, %v14407_v30  ;;  %v14475_v16 = vsub.f32 %v14473_v32, %v14474_v15 }
0x1c63   : > { %v14031_v39 = vand.u32 4294901760, %v14030_v61  ;;  %v31301_v27 = vand.u32 4294901760, %v31296_v31 }
0x1c64   : > { %v13571_v26 = vand.u32 4294901760, %v13570_v22  ;;  %v14485_v37 = vand.u32 4294901760, %v14484_v29  ;;  %v14476_v21 = vand.u32 4294901760, %v14475_v16 }
0x1c65   : > { %v14032_v4 = vsub.f32 %v14030_v61, %v14031_v39 }
0x1c66   : > { %27902 = vmatpush3.xpose.msra.mxu0 %v13571_v26  ;;  %v14486_v46 = vsub.f32 %v14484_v29, %v14485_v37 }
0x1c67   : > { %27906 = vmatprep.subr.mxu0 %v29882_v42  ;;  %v14033_v12 = vand.u32 4294901760, %v14032_v4 }
0x1c68   : > { %v14487_v54 = vand.u32 4294901760, %v14486_v46 }
0x1c69   : > { %27904 = vmatmul.mubr.f32.vlgmr.msra.gmra.mrb[66].mxu0 %v13556_v17 }
0x1c6a   : > { %27907 = vmatpush3.xpose.msra.mxu0 %v13568_v38  ;;  %27908 = vmatprep.mubr.msk.f32.mxu0 %vm29883_vm4, %v29882_v42 }
0x1c6b   : > { %27911 = vmatprep.subr.mxu0 %v29882_v42 }
0x1c71   : > { %27909 = vmatmul.mubr.f32.vlgmr.msra.gmra.mrb[66].mxu0 %v13557_v33 }
0x1c72   : > { %27912 = vmatpush3.xpose.msra.mxu0 %v13491_v1  ;;  %27913 = vmatprep.mubr.msk.f32.mxu0 %vm29883_vm4, %v29882_v42 }
0x1c73   : > { %27916 = vmatprep.subr.mxu0 %v29882_v42 }
0x1c79   : > { %27914 = vmatmul.mubr.f32.vlgmr.msra.gmra.mrb[66].mxu0 %v13558_v62 }
0x1c7a   : > { %27917 = vmatpush3.xpose.msra.mxu0 %v13569_v44  ;;  %27918 = vmatprep.mubr.msk.f32.mxu0 %vm29883_vm4, %v29882_v42 }
0x1c7b   : > { %27921 = vmatprep.subr.mxu0 %v29882_v42 }
0x1c81   : > { %27919 = vmatmul.mubr.f32.vlgmr.msra.gmra.mrb[66].mxu0 %v13556_v17 }
0x1c82   : > { %27922 = vmatpush3.xpose.msra.mxu0 %v13491_v1  ;;  %27923 = vmatprep.mubr.msk.f32.mxu0 %vm29883_vm4, %v29882_v42 }
0x1c83   : > { %27956 = vmatprep.subr.mxu0 %v29882_v42 }
0x1c89   : > { %27924 = vmatmul.mubr.f32.vlgmr.msra.gmra.mrb[66].mxu0 %v13556_v17 }
0x1c8a   : > { %27957 = vmatpush3.xpose.msra.mxu0 %v14407_v30  ;;  %27958 = vmatprep.mubr.msk.f32.mxu0 %vm29883_vm4, %v29882_v42 }
0x1c8b   : > { %27961 = vmatprep.subr.mxu0 %v29882_v42 }
0x1c8d   : > { %27959 = vmatmul.mubr.f32.vlgmr.msra.gmra.mrb[68].mxu0 %v14476_v21 }
0x1c8e   : > { %27962 = vmatpush3.xpose.msra.mxu0 %v14487_v54  ;;  %27963 = vmatprep.mubr.msk.f32.mxu0 %vm29883_vm4, %v29882_v42 }
0x1c8f   : > { %27966 = vmatprep.subr.mxu0 %v29882_v42 }
0x1c95   : > { %27964 = vmatmul.mubr.f32.vlgmr.msra.gmra.mrb[68].mxu0 %v14472_v11 }
0x1c96   : > { %27967 = vmatpush3.xpose.msra.mxu0 %v14484_v29  ;;  %27968 = vmatprep.mubr.msk.f32.mxu0 %vm29883_vm4, %v29882_v42 }
0x1c97   : > { %27971 = vmatprep.subr.mxu0 %v29882_v42 }
0x1c9d   : > { %27969 = vmatmul.mubr.f32.vlgmr.msra.gmra.mrb[68].mxu0 %v14473_v32 }
0x1c9e   : > { %27972 = vmatpush3.xpose.msra.mxu0 %v14407_v30  ;;  %27973 = vmatprep.mubr.msk.f32.mxu0 %vm29883_vm4, %v29882_v42 }
0x1c9f   : > { %27976 = vmatprep.subr.mxu0 %v29882_v42 }
0x1ca5   : > { %27974 = vmatmul.mubr.f32.vlgmr.msra.gmra.mrb[68].mxu0 %v14474_v15  ;;  %v26198_v15 = vld [vmem:[%s32052_s10 + $0x20] sm:$0xff] }
0x1ca6   : > { %27977 = vmatpush3.xpose.msra.mxu0 %v14485_v37  ;;  %27978 = vmatprep.mubr.msk.f32.mxu0 %vm29883_vm4, %v29882_v42  ;;  %v31312_v37 = vand.u32 4294901760, %v26198_v15 }
0x1ca7   : > { %27981 = vmatprep.subr.mxu0 %v29882_v42 }
0x1ca8   : > { %v31315_v16 = vsub.f32 %v26198_v15, %v31312_v37 }
0x1cad   : > { %27979 = vmatmul.mubr.f32.vlgmr.msra.gmra.mrb[68].mxu0 %v14472_v11 }
0x1cae   : > { %27982 = vmatpush3.xpose.msra.mxu0 %v14407_v30  ;;  %27983 = vmatprep.mubr.msk.f32.mxu0 %vm29883_vm4, %v29882_v42 }
0x1caf   : > { %28016 = vmatprep.subr.mxu0 %v29882_v42 }
0x1cb5   : > { %27984 = vmatmul.mubr.f32.vlgmr.msra.gmra.mrb[68].mxu0 %v14472_v11  ;;  %v15397_v11 = vsub.f32 %v31296_v31, %v31301_v27 }
0x1cb6   : > { %28018 = vmatprep.mubr.msk.f32.mxu0 %vm29883_vm4, %v29882_v42  ;;  %28017 = vmatpush3.msra.mxu0 %v31293_v5 }
0x1cb7   : > { %28026 = vmatprep.subr.mxu0 %v29882_v42  ;;  %v31305_v30 = vand.u32 4294901760, %v15397_v11 }
0x1d5c   : > { %v13932_v48 = vpop.f32.mrb[66].mxu0 }
0x1d5d   : > { %v13936_v45 = vmul.f32 0.35355338, %v13932_v48  ;;  %v27925_v24 = vpop.f32.mrb[67].mxu0 }
0x1d5f   : > { %v13937_v41 = vadd.f32 %v13936_v45, %v30382_v0  ;;  %v31319_v45 = vand.u32 4294901760, %v31315_v16 }
0x1d61   : > { %v13938_v50 = vmul.f32 1.442695, %v13937_v41 }
0x1d63   : > { %29553 = vpow2.f32 %v13938_v50 }
0x1d6d   : > { %v29554_v49 = vpop.eup %29553 }
0x1d6e   : > { %v13940_v23 = vsel %vm1378_vm5, %v29554_v49, 0.0 }
0x1d6f   : > { %13941 = vadd.xlane.f32.xlu1 %v13940_v23  ;;  %v15846_v23 = vsub.f32 %v31315_v16, %v31319_v45 }
0x1d80   : > { %16212 = vrot.lane.b32.xlu1 %v31175_v14, %s29888_s23 }
0x1d84   : > { %16214 = vrot.lane.b32.xlu1 %v31175_v14, %s29889_s1 }
0x1d88   : > { %v14848_v60 = vpop.f32.mrb[68].mxu0 }
0x1d89   : > { %v14852_v51 = vmul.f32 0.35355338, %v14848_v60  ;;  %v27985_v52 = vpop.f32.mrb[69].mxu0 }
0x1d8b   : > { %v14853_v56 = vadd.f32 %v14852_v51, %v30382_v0 }
0x1d8d   : > { %v14854_v28 = vmul.f32 1.442695, %v14853_v56 }
0x1d8f   : > { %29555 = vpow2.f32 %v14854_v28  ;;  %v31332_v28 = vand.u32 4294901760, %v15846_v23 }
0x1d99   : > { %v29556_v35 = vpop.eup %29555 }
0x1d9a   : > { %v14856_v47 = vsel %vm1378_vm5, %v29556_v35, 0.0 }
0x1d9b   : > { %14857 = vadd.xlane.f32.xlu0 %v14856_v47 }
0x1db1   : > { %14862 = vrot.lane.b32.xlu0 %v31175_v14, %s32105_s2 }
0x1db5   : > { %16676 = vrot.lane.b32.xlu0 %v31175_v14, %s32106_s25 }
0x1db9   : > { %17578 = vrot.lane.b32.xlu0 %v31175_v14, %s32107_s4 }
0x1dbd   : > { %17580 = vrot.lane.b32.xlu0 %v31175_v14, %s32108_s0 }
0x1dfc   : > { %v13942_v59 = vpop.xlane.xlu1 %13941 }
0x1dfd   : > { %29557 = vrcp.f32 %v13942_v59 }
0x1e00   : > { %v16213_v51 = vpop.permute.xlu1 %16212 }
0x1e01   : > { %v16216_v59 = vsel %vm1378_vm5, %v16213_v51, 0 }
0x1e04   : > { %v16215_v47 = vpop.permute.xlu1 %16214 }
0x1e07   : > { %v29558_v25 = vpop.eup %29557 }
0x1e08   : > { %v13945_v34 = vmul.f32 %v29558_v25, %v29554_v49 }
0x1e0a   : > { %v13950_v58 = vsel %vm1378_vm5, %v13945_v34, 0 }
0x1e0b   : > { %v14018_v3 = vand.u32 4294901760, %v13950_v58 }
0x1e0d   : > { %v14019_v2 = vsub.f32 %v13950_v58, %v14018_v3  ;;  %v16286_v58 = vand.u32 4294901760, %v16216_v59 }
0x1e0f   : > { %v14020_v57 = vand.u32 4294901760, %v14019_v2 }
0x1e11   : > { %v14021_v43 = vsub.f32 %v14019_v2, %v14020_v57 }
0x1e13   : > { %v14022_v6 = vand.u32 4294901760, %v14021_v43 }
0x1e15   : > { %27929 = vmatmul.mubr.f32.vlgmr.msra.gmra.mrb[72].mxu1 %v14022_v6 }
0x1e16   : > { %27932 = vmatpush3.msra.mxu1 %v14033_v12  ;;  %27933 = vmatprep.mubr.msk.f32.mxu1 %vm29883_vm4, %v29882_v42 }
0x1e17   : > { %27936 = vmatprep.subr.mxu1 %v29882_v42 }
0x1e1d   : > { %27934 = vmatmul.mubr.f32.vlgmr.msra.gmra.mrb[72].mxu1 %v14018_v3 }
0x1e1e   : > { %27937 = vmatpush3.msra.mxu1 %v14030_v61  ;;  %27938 = vmatprep.mubr.msk.f32.mxu1 %vm29883_vm4, %v29882_v42  ;;  %v16218_v61 = vsel %vm1378_vm5, %v16215_v47, 0 }
0x1e1f   : > { %27941 = vmatprep.subr.mxu1 %v29882_v42 }
0x1e25   : > { %27939 = vmatmul.mubr.f32.vlgmr.msra.gmra.mrb[72].mxu1 %v14019_v2 }
0x1e26   : > { %27942 = vmatpush3.msra.mxu1 %v31191_v19  ;;  %27943 = vmatprep.mubr.msk.f32.mxu1 %vm29883_vm4, %v29882_v42 }
0x1e27   : > { %27946 = vmatprep.subr.mxu1 %v29882_v42 }
0x1e28   : > { %v14858_v40 = vpop.xlane.xlu0 %14857 }
0x1e29   : > { %29559 = vrcp.f32 %v14858_v40 }
0x1e2c   : > { %v14863_v17 = vpop.permute.xlu0 %14862 }
0x1e2d   : > { %27944 = vmatmul.mubr.f32.vlgmr.msra.gmra.mrb[72].mxu1 %v14020_v57  ;;  %v14869_v33 = vand.u32 4294901760, %v14863_v17  ;;  %v16287_v57 = vsub.f32 %v16216_v59, %v16286_v58 }
0x1e2e   : > { %27947 = vmatpush3.msra.mxu1 %v14031_v39  ;;  %27948 = vmatprep.mubr.msk.f32.mxu1 %vm29883_vm4, %v29882_v42 }
0x1e2f   : > { %27951 = vmatprep.subr.mxu1 %v29882_v42  ;;  %v14946_v63 = vsub.f32 %v14863_v17, %v14869_v33  ;;  %v16288_v43 = vand.u32 4294901760, %v16287_v57 }
0x1e30   : > { %v31352_v34 = vpop.permute.xlu0 %16676 }
0x1e31   : > { %v14947_v38 = vand.u32 4294901760, %v14946_v63  ;;  %v31361_v2 = vand.u32 4294901760, %v31352_v34  ;;  %v16289_v12 = vsub.f32 %v16287_v57, %v16288_v43 }
0x1e33   : > { %v29560_v62 = vpop.eup %29559  ;;  %v14948_v44 = vsub.f32 %v14946_v63, %v14947_v38  ;;  %v16290_v17 = vand.u32 4294901760, %v16289_v12 }
0x1e34   : > { %v14861_v13 = vmul.f32 %v29560_v62, %v29556_v35 }
0x1e35   : > { %27949 = vmatmul.mubr.f32.vlgmr.msra.gmra.mrb[72].mxu1 %v14018_v3  ;;  %v14949_v26 = vand.u32 4294901760, %v14948_v44 }
0x1e36   : > { %27952 = vmatpush3.msra.mxu1 %v31191_v19  ;;  %27953 = vmatprep.mubr.msk.f32.mxu1 %vm29883_vm4, %v29882_v42  ;;  %v14866_v18 = vsel %vm1378_vm5, %v14861_v13, 0 }
0x1e37   : > { %27986 = vmatprep.subr.mxu1 %v29882_v42  ;;  %v14934_v1 = vand.u32 4294901760, %v14866_v18 }
0x1e39   : > { %v14935_v36 = vsub.f32 %v14866_v18, %v14934_v1 }
0x1e3b   : > { %v14936_v20 = vand.u32 4294901760, %v14935_v36 }
0x1e3d   : > { %27954 = vmatmul.mubr.f32.vlgmr.msra.gmra.mrb[72].mxu1 %v14018_v3  ;;  %v14937_v22 = vsub.f32 %v14935_v36, %v14936_v20  ;;  %v16221_v3 = vand.u32 4294901760, %v16218_v61 }
0x1e3e   : > { %27987 = vmatpush3.msra.mxu1 %v14869_v33  ;;  %27988 = vmatprep.mubr.msk.f32.mxu1 %vm29883_vm4, %v29882_v42 }
0x1e3f   : > { %27991 = vmatprep.subr.mxu1 %v29882_v42  ;;  %v14938_v19 = vand.u32 4294901760, %v14937_v22  ;;  %v16298_v4 = vsub.f32 %v16218_v61, %v16221_v3 }
0x1e41   : > { %27989 = vmatmul.mubr.f32.vlgmr.msra.gmra.mrb[74].mxu1 %v14938_v19  ;;  %v16299_v6 = vand.u32 4294901760, %v16298_v4 }
0x1e42   : > { %27992 = vmatpush3.msra.mxu1 %v14949_v26  ;;  %27993 = vmatprep.mubr.msk.f32.mxu1 %vm29883_vm4, %v29882_v42 }
0x1e43   : > { %27996 = vmatprep.subr.mxu1 %v29882_v42  ;;  %v16300_v40 = vsub.f32 %v16298_v4, %v16299_v6 }
0x1e49   : > { %27994 = vmatmul.mubr.f32.vlgmr.msra.gmra.mrb[74].mxu1 %v14934_v1 }
0x1e4a   : > { %27997 = vmatpush3.msra.mxu1 %v14946_v63  ;;  %27998 = vmatprep.mubr.msk.f32.mxu1 %vm29883_vm4, %v29882_v42 }
0x1e4b   : > { %28001 = vmatprep.subr.mxu1 %v29882_v42 }
0x1e51   : > { %27999 = vmatmul.mubr.f32.vlgmr.msra.gmra.mrb[74].mxu1 %v14935_v36 }
0x1e52   : > { %28002 = vmatpush3.msra.mxu1 %v14869_v33  ;;  %28003 = vmatprep.mubr.msk.f32.mxu1 %vm29883_vm4, %v29882_v42 }
0x1e53   : > { %28006 = vmatprep.subr.mxu1 %v29882_v42 }
0x1e59   : > { %28004 = vmatmul.mubr.f32.vlgmr.msra.gmra.mrb[74].mxu1 %v14936_v20 }
0x1e5a   : > { %28007 = vmatpush3.msra.mxu1 %v14947_v38  ;;  %28008 = vmatprep.mubr.msk.f32.mxu1 %vm29883_vm4, %v29882_v42 }
0x1e5b   : > { %28011 = vmatprep.subr.mxu1 %v29882_v42 }
0x1e61   : > { %28009 = vmatmul.mubr.f32.vlgmr.msra.gmra.mrb[74].mxu1 %v14934_v1 }
0x1e62   : > { %28012 = vmatpush3.msra.mxu1 %v14869_v33  ;;  %28013 = vmatprep.mubr.msk.f32.mxu1 %vm29883_vm4, %v29882_v42  ;;  %v16301_v33 = vand.u32 4294901760, %v16300_v40 }
0x1e63   : > { %28021 = vmatprep.subr.mxu1 %v29882_v42 }
0x1e69   : > { %28014 = vmatmul.mubr.f32.vlgmr.msra.gmra.mrb[74].mxu1 %v14934_v1 }
0x1e6a   : > { %28023 = vmatprep.mubr.msk.f32.mxu1 %vm29883_vm4, %v29882_v42  ;;  %28022 = vmatpush3.msra.mxu1 %v31305_v30 }
0x1e6b   : > { %28031 = vmatprep.subr.mxu1 %v29882_v42 }
0x1f10   : > { %v14394_v32 = vpop.f32.mrb[72].mxu1 }
0x1f11   : > { %v27955_v29 = vpop.f32.mrb[73].mxu1  ;;  %v15764_v24 = vsel %vm1378_vm5, %v14394_v32, 0 }
0x1f12   : > { %v15832_v50 = vand.u32 4294901760, %v15764_v24 }
0x1f14   : > { %v15833_v52 = vsub.f32 %v15764_v24, %v15832_v50 }
0x1f16   : > { %v15834_v35 = vand.u32 4294901760, %v15833_v52 }
0x1f18   : > { %v15835_v25 = vsub.f32 %v15833_v52, %v15834_v35 }
0x1f1a   : > { %v15836_v39 = vand.u32 4294901760, %v15835_v25 }
0x1f3c   : > { %v15310_v46 = vpop.f32.mrb[74].mxu1 }
0x1f3d   : > { %v15315_v21 = vsel %vm1378_vm5, %v15310_v46, 0  ;;  %v28015_v54 = vpop.f32.mrb[75].mxu1 }
0x1f3e   : > { %v15383_v48 = vand.u32 4294901760, %v15315_v21 }
0x1f40   : > { %v15384_v41 = vsub.f32 %v15315_v21, %v15383_v48  ;;  %28024 = vmatmul.mubr.f32.vlgmr.msra.gmra.mrb[76].mxu1 %v15383_v48 }
0x1f41   : > { %28032 = vmatpush3.msra.mxu1 %v31293_v5  ;;  %28033 = vmatprep.mubr.msk.f32.mxu1 %vm29883_vm4, %v29882_v42 }
0x1f42   : > { %v15385_v49 = vand.u32 4294901760, %v15384_v41  ;;  %28041 = vmatprep.subr.mxu1 %v29882_v42 }
0x1f44   : > { %v15386_v60 = vsub.f32 %v15384_v41, %v15385_v49  ;;  %28034 = vmatmul.mubr.f32.vlgmr.msra.gmra.mrb[78].mxu1 %v15385_v49 }
0x1f45   : > { %28042 = vmatpush3.msra.mxu1 %v31293_v5  ;;  %28043 = vmatprep.mubr.msk.f32.mxu1 %vm29883_vm4, %v29882_v42 }
0x1f46   : > { %v15387_v56 = vand.u32 4294901760, %v15386_v60  ;;  %28051 = vmatprep.subr.mxu1 %v29882_v42 }
0x1f48   : > { %28019 = vmatmul.mubr.f32.vlgmr.msra.gmra.mrb[70].mxu0 %v15387_v56  ;;  %28044 = vmatmul.mubr.f32.vlgmr.msra.gmra.mrb[80].mxu1 %v15383_v48 }
0x1f49   : > { %28027 = vmatpush3.msra.mxu0 %v31296_v31  ;;  %28028 = vmatprep.mubr.msk.f32.mxu0 %vm29883_vm4, %v29882_v42 }
0x1f4a   : > { %28052 = vmatpush3.msra.mxu1 %v31332_v28  ;;  %28053 = vmatprep.mubr.msk.f32.mxu1 %vm29883_vm4, %v29882_v42 }
0x1f4b   : > { %28036 = vmatprep.subr.mxu0 %v29882_v42  ;;  %28061 = vmatprep.subr.mxu1 %v29882_v42 }
0x1f4c   : > { %28029 = vmatmul.mubr.f32.vlgmr.msra.gmra.mrb[72].mxu0 %v15384_v41  ;;  %28054 = vmatmul.mubr.f32.vlgmr.msra.gmra.mrb[82].mxu1 %v15832_v50 }
0x1f4d   : > { %28037 = vmatpush3.msra.mxu0 %v31301_v27  ;;  %28038 = vmatprep.mubr.msk.f32.mxu0 %vm29883_vm4, %v29882_v42 }
0x1f4e   : > { %28062 = vmatpush3.msra.mxu1 %v31312_v37  ;;  %28063 = vmatprep.mubr.msk.f32.mxu1 %vm29883_vm4, %v29882_v42 }
0x1f4f   : > { %28071 = vmatprep.subr.mxu1 %v29882_v42  ;;  %28046 = vmatprep.subr.mxu0 %v29882_v42 }
0x1f50   : > { %28039 = vmatmul.mubr.f32.vlgmr.msra.gmra.mrb[74].mxu0 %v15383_v48  ;;  %28064 = vmatmul.mubr.f32.vlgmr.msra.gmra.mrb[84].mxu1 %v15834_v35 }
0x1f51   : > { %28072 = vmatpush3.msra.mxu1 %v31312_v37  ;;  %28047 = vmatpush3.msra.mxu0 %v31312_v37 }
0x1f52   : > { %28048 = vmatprep.mubr.msk.f32.mxu0 %vm29883_vm4, %v29882_v42  ;;  %28073 = vmatprep.mubr.msk.f32.mxu1 %vm29883_vm4, %v29882_v42 }
0x1f53   : > { %28106 = vmatprep.subr.mxu1 %v29882_v42  ;;  %28056 = vmatprep.subr.mxu0 %v29882_v42 }
0x1f54   : > { %28049 = vmatmul.mubr.f32.vlgmr.msra.gmra.mrb[76].mxu0 %v15836_v39  ;;  %28074 = vmatmul.mubr.f32.vlgmr.msra.gmra.mrb[86].mxu1 %v15832_v50 }
0x1f55   : > { %28107 = vmatpush3.msra.mxu1 %v31361_v2  ;;  %28057 = vmatpush3.msra.mxu0 %v31315_v16 }
0x1f56   : > { %28058 = vmatprep.mubr.msk.f32.mxu0 %vm29883_vm4, %v29882_v42  ;;  %28066 = vmatprep.subr.mxu0 %v29882_v42 }
0x1f57   : > { %28108 = vmatprep.mubr.msk.f32.mxu1 %vm29883_vm4, %v29882_v42  ;;  %28111 = vmatprep.subr.mxu1 %v29882_v42 }
0x1f58   : > { %28059 = vmatmul.mubr.f32.vlgmr.msra.gmra.mrb[78].mxu0 %v15833_v52 }
0x1f59   : > { %28067 = vmatpush3.msra.mxu0 %v31319_v45  ;;  %28068 = vmatprep.mubr.msk.f32.mxu0 %vm29883_vm4, %v29882_v42 }
0x1f5a   : > { %28076 = vmatprep.subr.mxu0 %v29882_v42 }
0x1f5c   : > { %28069 = vmatmul.mubr.f32.vlgmr.msra.gmra.mrb[80].mxu0 %v15832_v50 }
0x1f5d   : > { %28078 = vmatprep.mubr.msk.f32.mxu0 %vm29883_vm4, %v29882_v42 }
0x1f60   : > { %28077 = vmatpush3.xpose.msra.mxu0 %v16221_v3 }
0x1f61   : > { %28081 = vmatprep.subr.mxu0 %v29882_v42 }
0x1f63   : > { %28079 = vmatmul.mubr.f32.vlgmr.msra.gmra.mrb[82].mxu0 %v16290_v17  ;;  %v16760_v17 = vsub.f32 %v31352_v34, %v31361_v2  ;;  %v26200_v34 = vld [vmem:[%s32052_s10 + $0x30] sm:$0xff] }
0x1f64   : > { %28082 = vmatpush3.xpose.msra.mxu0 %v16301_v33  ;;  %28083 = vmatprep.mubr.msk.f32.mxu0 %vm29883_vm4, %v29882_v42 }
0x1f65   : > { %28086 = vmatprep.subr.mxu0 %v29882_v42 }
0x1f6b   : > { %28084 = vmatmul.mubr.f32.vlgmr.msra.gmra.mrb[82].mxu0 %v16286_v58 }
0x1f6c   : > { %28087 = vmatpush3.xpose.msra.mxu0 %v16298_v4  ;;  %28088 = vmatprep.mubr.msk.f32.mxu0 %vm29883_vm4, %v29882_v42 }
0x1f6d   : > { %28091 = vmatprep.subr.mxu0 %v29882_v42 }
0x1f73   : > { %28089 = vmatmul.mubr.f32.vlgmr.msra.gmra.mrb[82].mxu0 %v16287_v57 }
0x1f74   : > { %28092 = vmatpush3.xpose.msra.mxu0 %v16221_v3  ;;  %28093 = vmatprep.mubr.msk.f32.mxu0 %vm29883_vm4, %v29882_v42 }
0x1f75   : > { %28096 = vmatprep.subr.mxu0 %v29882_v42 }
0x1f7b   : > { %28094 = vmatmul.mubr.f32.vlgmr.msra.gmra.mrb[82].mxu0 %v16288_v43 }
0x1f7c   : > { %28097 = vmatpush3.xpose.msra.mxu0 %v16299_v6  ;;  %28098 = vmatprep.mubr.msk.f32.mxu0 %vm29883_vm4, %v29882_v42 }
0x1f7d   : > { %28101 = vmatprep.subr.mxu0 %v29882_v42 }
0x1f83   : > { %28099 = vmatmul.mubr.f32.vlgmr.msra.gmra.mrb[82].mxu0 %v16286_v58 }
0x1f84   : > { %28102 = vmatpush3.xpose.msra.mxu0 %v16221_v3  ;;  %28103 = vmatprep.mubr.msk.f32.mxu0 %vm29883_vm4, %v29882_v42 }
0x1f85   : > { %28136 = vmatprep.subr.mxu0 %v29882_v42 }
0x1f8b   : > { %28104 = vmatmul.mubr.f32.vlgmr.msra.gmra.mrb[82].mxu0 %v16286_v58 }
0x1f8c   : > { %28138 = vmatprep.mubr.msk.f32.mxu0 %vm29883_vm4, %v29882_v42 }
0x2013   : > { %v15465_v62 = vpop.f32.mrb[76].mxu1 }
0x2014   : > { %v28025_v13 = vpop.f32.mrb[77].mxu1 }
0x2017   : > { %v15613_v63 = vpop.f32.mrb[78].mxu1 }
0x2018   : > { %v28035_v18 = vpop.f32.mrb[79].mxu1 }
0x201b   : > { %v15389_v1 = vpop.f32.mrb[70].mxu0  ;;  %v15759_v38 = vpop.f32.mrb[80].mxu1 }
0x201c   : > { %v15466_v36 = vadd.f32 %v15465_v62, %v15389_v1  ;;  %v28020_v20 = vpop.f32.mrb[71].mxu0  ;;  %v28045_v44 = vpop.f32.mrb[81].mxu1 }
0x201d   : > { %v31432_v44 = vand.u32 4294901760, %v26200_v34 }
0x201f   : > { %v15539_v22 = vpop.f32.mrb[72].mxu0  ;;  %v15914_v19 = vpop.f32.mrb[82].mxu1  ;;  %28137 = vmatpush3.msra.mxu0 %v31432_v44 }
0x2020   : > { %v15540_v26 = vadd.f32 %v15539_v22, %v15466_v36  ;;  %v28030_v10 = vpop.f32.mrb[73].mxu0  ;;  %v28055_v11 = vpop.f32.mrb[83].mxu1  ;;  %v31435_v22 = vsub.f32 %v26200_v34, %v31432_v44  ;;  %28146 = vmatprep.subr.mxu0 %v29882_v42 }
0x2021   : > { %v17579_v10 = vpop.permute.xlu0 %17578 }
0x2022   : > { %v15614_v32 = vadd.f32 %v15613_v63, %v15540_v26  ;;  %v16761_v63 = vand.u32 4294901760, %v16760_v17 }
0x2023   : > { %v15687_v29 = vpop.f32.mrb[74].mxu0  ;;  %v16062_v15 = vpop.f32.mrb[84].mxu1 }
0x2024   : > { %v15688_v46 = vadd.f32 %v15687_v29, %v15614_v32  ;;  %v28040_v21 = vpop.f32.mrb[75].mxu0  ;;  %v28065_v54 = vpop.f32.mrb[85].mxu1 }
0x2025   : > { %v17582_v54 = vsel %vm1378_vm5, %v17579_v10, 0 }
0x2026   : > { %v15760_v48 = vadd.f32 %v15759_v38, %v15688_v46  ;;  %v17581_v46 = vpop.permute.xlu0 %17580 }
0x2027   : > { %v15838_v24 = vpop.f32.mrb[76].mxu0  ;;  %v16208_v41 = vpop.f32.mrb[86].mxu1 }
0x2028   : > { %v15839_v50 = vadd.f32 %v15838_v24, %v15760_v48  ;;  %v28050_v49 = vpop.f32.mrb[77].mxu0  ;;  %v28075_v23 = vpop.f32.mrb[87].mxu1  ;;  %v17584_v24 = vsel %vm1378_vm5, %v17581_v46, 0 }
0x2029   : > { %v17652_v49 = vand.u32 4294901760, %v17582_v54  ;;  %v17587_v23 = vand.u32 4294901760, %v17584_v24 }
0x202a   : > { %v15915_v60 = vadd.f32 %v15914_v19, %v15839_v50 }
0x202b   : > { %v15988_v51 = vpop.f32.mrb[78].mxu0 }
0x202c   : > { %v15989_v52 = vadd.f32 %v15988_v51, %v15915_v60  ;;  %v28060_v56 = vpop.f32.mrb[79].mxu0 }
0x202d   : > { %v17664_v56 = vsub.f32 %v17584_v24, %v17587_v23 }
0x202e   : > { %v16063_v35 = vadd.f32 %v16062_v15, %v15989_v52  ;;  %v17653_v52 = vsub.f32 %v17582_v54, %v17652_v49 }
0x202f   : > { %v16136_v47 = vpop.f32.mrb[80].mxu0 }
0x2030   : > { %v16137_v59 = vadd.f32 %v16136_v47, %v16063_v35  ;;  %v28070_v25 = vpop.f32.mrb[81].mxu0  ;;  %v17654_v35 = vand.u32 4294901760, %v17653_v52  ;;  %v17665_v47 = vand.u32 4294901760, %v17664_v56 }
0x2032   : > { %v31397_v61 = vadd.f32 %v16208_v41, %v16137_v59  ;;  %v17655_v59 = vsub.f32 %v17653_v52, %v17654_v35  ;;  %v17666_v25 = vsub.f32 %v17664_v56, %v17665_v47 }
0x205e   : > { %v16662_v58 = vpop.f32.mrb[82].mxu0 }
0x205f   : > { %v16666_v3 = vmul.f32 0.35355338, %v16662_v58  ;;  %v28105_v39 = vpop.f32.mrb[83].mxu0  ;;  %v17656_v58 = vand.u32 4294901760, %v17655_v59 }
0x2061   : > { %v16667_v57 = vadd.f32 %v16666_v3, %v30382_v0  ;;  %v17667_v3 = vand.u32 4294901760, %v17666_v25 }
0x2063   : > { %v16668_v4 = vmul.f32 1.442695, %v16667_v57 }
0x2065   : > { %29561 = vpow2.f32 %v16668_v4 }
0x206f   : > { %v29562_v43 = vpop.eup %29561 }
0x2070   : > { %v16670_v6 = vsel %vm1378_vm5, %v29562_v43, 0.0 }
0x2071   : > { %16671 = vadd.xlane.f32.xlu1 %v16670_v6 }
0x2082   : > { %18042 = vrot.lane.b32.xlu1 %v31175_v14, %s32109_s30  ;;  %v16762_v14 = vsub.f32 %v16760_v17, %v16761_v63 }
0x2084   : > { %v16763_v20 = vand.u32 4294901760, %v16762_v14 }
0x2086   : > { %19859 = vrot.lane.b32.xlu1 %v31173_v9, %s29886_s24  ;;  %s32112_s24 = sld [smem:[#allocation29_spill]] }
0x208a   : > { %19861 = vrot.lane.b32.xlu1 %v31173_v9, %s29890_s22 }
0x20fe   : > { %v16672_v12 = vpop.xlane.xlu1 %16671 }
0x20ff   : > { %29563 = vrcp.f32 %v16672_v12 }
0x2102   : > { %v31455_v41 = vpop.permute.xlu1 %18042 }
0x2103   : > { %v31462_v51 = vand.u32 4294901760, %v31455_v41 }
0x2109   : > { %v29564_v40 = vpop.eup %29563 }
0x210a   : > { %v16675_v33 = vmul.f32 %v29564_v40, %v29562_v43 }
0x210c   : > { %v16680_v62 = vsel %vm1378_vm5, %v16675_v33, 0 }
0x210d   : > { %v16748_v13 = vand.u32 4294901760, %v16680_v62 }
0x210f   : > { %v16749_v18 = vsub.f32 %v16680_v62, %v16748_v13 }
0x2111   : > { %v16750_v1 = vand.u32 4294901760, %v16749_v18 }
0x2113   : > { %v16751_v38 = vsub.f32 %v16749_v18, %v16750_v1 }
0x2115   : > { %v16752_v36 = vand.u32 4294901760, %v16751_v38 }
0x2117   : > { %28109 = vmatmul.mubr.f32.vlgmr.msra.gmra.mrb[88].mxu1 %v16752_v36 }
0x2118   : > { %28112 = vmatpush3.msra.mxu1 %v16763_v20  ;;  %28113 = vmatprep.mubr.msk.f32.mxu1 %vm29883_vm4, %v29882_v42 }
0x2119   : > { %28116 = vmatprep.subr.mxu1 %v29882_v42 }
0x211f   : > { %28114 = vmatmul.mubr.f32.vlgmr.msra.gmra.mrb[88].mxu1 %v16748_v13 }
0x2120   : > { %28117 = vmatpush3.msra.mxu1 %v16760_v17  ;;  %28118 = vmatprep.mubr.msk.f32.mxu1 %vm29883_vm4, %v29882_v42 }
0x2121   : > { %28121 = vmatprep.subr.mxu1 %v29882_v42 }
0x2127   : > { %28119 = vmatmul.mubr.f32.vlgmr.msra.gmra.mrb[88].mxu1 %v16749_v18 }
0x2128   : > { %28122 = vmatpush3.msra.mxu1 %v31361_v2  ;;  %28123 = vmatprep.mubr.msk.f32.mxu1 %vm29883_vm4, %v29882_v42 }
0x2129   : > { %28126 = vmatprep.subr.mxu1 %v29882_v42 }
0x212f   : > { %28124 = vmatmul.mubr.f32.vlgmr.msra.gmra.mrb[88].mxu1 %v16750_v1 }
0x2130   : > { %28127 = vmatpush3.msra.mxu1 %v16761_v63  ;;  %28128 = vmatprep.mubr.msk.f32.mxu1 %vm29883_vm4, %v29882_v42 }
0x2131   : > { %28131 = vmatprep.subr.mxu1 %v29882_v42 }
0x2137   : > { %28129 = vmatmul.mubr.f32.vlgmr.msra.gmra.mrb[88].mxu1 %v16748_v13 }
0x2138   : > { %28132 = vmatpush3.msra.mxu1 %v31361_v2  ;;  %28133 = vmatprep.mubr.msk.f32.mxu1 %vm29883_vm4, %v29882_v42  ;;  %v31440_v2 = vand.u32 4294901760, %v31435_v22 }
0x2139   : > { %28141 = vmatprep.subr.mxu1 %v29882_v42 }
0x213a   : > { %v17211_v19 = vsub.f32 %v31435_v22, %v31440_v2 }
0x213c   : > { %v31444_v26 = vand.u32 4294901760, %v17211_v19 }
0x213f   : > { %28134 = vmatmul.mubr.f32.vlgmr.msra.gmra.mrb[88].mxu1 %v16748_v13 }
0x2140   : > { %28143 = vmatprep.mubr.msk.f32.mxu1 %vm29883_vm4, %v29882_v42  ;;  %28142 = vmatpush3.msra.mxu1 %v31444_v26 }
0x2141   : > { %28151 = vmatprep.subr.mxu1 %v29882_v42 }
0x2212   : > { %v17124_v11 = vpop.f32.mrb[88].mxu1 }
0x2213   : > { %v17129_v32 = vsel %vm1378_vm5, %v17124_v11, 0  ;;  %v28135_v29 = vpop.f32.mrb[89].mxu1 }
0x2214   : > { %v17197_v15 = vand.u32 4294901760, %v17129_v32 }
0x2216   : > { %v17198_v21 = vsub.f32 %v17129_v32, %v17197_v15  ;;  %28144 = vmatmul.mubr.f32.vlgmr.msra.gmra.mrb[90].mxu1 %v17197_v15 }
0x2217   : > { %28152 = vmatpush3.msra.mxu1 %v31432_v44  ;;  %28153 = vmatprep.mubr.msk.f32.mxu1 %vm29883_vm4, %v29882_v42 }
0x2218   : > { %v17199_v48 = vand.u32 4294901760, %v17198_v21  ;;  %28161 = vmatprep.subr.mxu1 %v29882_v42 }
0x221a   : > { %v17200_v50 = vsub.f32 %v17198_v21, %v17199_v48  ;;  %28154 = vmatmul.mubr.f32.vlgmr.msra.gmra.mrb[92].mxu1 %v17199_v48 }
0x221b   : > { %28162 = vmatpush3.msra.mxu1 %v31432_v44  ;;  %28163 = vmatprep.mubr.msk.f32.mxu1 %vm29883_vm4, %v29882_v42 }
0x221c   : > { %v17201_v60 = vand.u32 4294901760, %v17200_v50  ;;  %28196 = vmatprep.subr.mxu1 %v29882_v42 }
0x221e   : > { %28139 = vmatmul.mubr.f32.vlgmr.msra.gmra.mrb[84].mxu0 %v17201_v60  ;;  %28164 = vmatmul.mubr.f32.vlgmr.msra.gmra.mrb[94].mxu1 %v17197_v15 }
0x221f   : > { %28197 = vmatpush3.msra.mxu1 %v31462_v51  ;;  %28147 = vmatpush3.msra.mxu0 %v31435_v22 }
0x2220   : > { %28148 = vmatprep.mubr.msk.f32.mxu0 %vm29883_vm4, %v29882_v42  ;;  %28156 = vmatprep.subr.mxu0 %v29882_v42 }
0x2221   : > { %28198 = vmatprep.mubr.msk.f32.mxu1 %vm29883_vm4, %v29882_v42  ;;  %28201 = vmatprep.subr.mxu1 %v29882_v42 }
0x2222   : > { %28149 = vmatmul.mubr.f32.vlgmr.msra.gmra.mrb[86].mxu0 %v17198_v21  ;;  %v18126_v21 = vsub.f32 %v31455_v41, %v31462_v51  ;;  %v26201_v41 = vld [vmem:[%s32052_s10 + $0x38] sm:$0xff] }
0x2223   : > { %28157 = vmatpush3.msra.mxu0 %v31440_v2  ;;  %28158 = vmatprep.mubr.msk.f32.mxu0 %vm29883_vm4, %v29882_v42 }
0x2224   : > { %28166 = vmatprep.subr.mxu0 %v29882_v42  ;;  %v18127_v50 = vand.u32 4294901760, %v18126_v21 }
0x2226   : > { %28159 = vmatmul.mubr.f32.vlgmr.msra.gmra.mrb[88].mxu0 %v17197_v15  ;;  %v18128_v60 = vsub.f32 %v18126_v21, %v18127_v50 }
0x2227   : > { %28168 = vmatprep.mubr.msk.f32.mxu0 %vm29883_vm4, %v29882_v42 }
0x222a   : > { %28167 = vmatpush3.xpose.msra.mxu0 %v17587_v23 }
0x222b   : > { %28171 = vmatprep.subr.mxu0 %v29882_v42 }
0x222d   : > { %28169 = vmatmul.mubr.f32.vlgmr.msra.gmra.mrb[90].mxu0 %v17656_v58 }
0x222e   : > { %28172 = vmatpush3.xpose.msra.mxu0 %v17667_v3  ;;  %28173 = vmatprep.mubr.msk.f32.mxu0 %vm29883_vm4, %v29882_v42 }
0x222f   : > { %28176 = vmatprep.subr.mxu0 %v29882_v42 }
0x2235   : > { %28174 = vmatmul.mubr.f32.vlgmr.msra.gmra.mrb[90].mxu0 %v17652_v49 }
0x2236   : > { %28177 = vmatpush3.xpose.msra.mxu0 %v17664_v56  ;;  %28178 = vmatprep.mubr.msk.f32.mxu0 %vm29883_vm4, %v29882_v42 }
0x2237   : > { %28181 = vmatprep.subr.mxu0 %v29882_v42 }
0x223d   : > { %28179 = vmatmul.mubr.f32.vlgmr.msra.gmra.mrb[90].mxu0 %v17653_v52 }
0x223e   : > { %28182 = vmatpush3.xpose.msra.mxu0 %v17587_v23  ;;  %28183 = vmatprep.mubr.msk.f32.mxu0 %vm29883_vm4, %v29882_v42 }
0x223f   : > { %28186 = vmatprep.subr.mxu0 %v29882_v42 }
0x2245   : > { %28184 = vmatmul.mubr.f32.vlgmr.msra.gmra.mrb[90].mxu0 %v17654_v35  ;;  %v18129_v35 = vand.u32 4294901760, %v18128_v60 }
0x2246   : > { %28187 = vmatpush3.xpose.msra.mxu0 %v17665_v47  ;;  %28188 = vmatprep.mubr.msk.f32.mxu0 %vm29883_vm4, %v29882_v42  ;;  %v31530_v47 = vand.u32 4294901760, %v26201_v41 }
0x2247   : > { %28191 = vmatprep.subr.mxu0 %v29882_v42 }
0x2248   : > { %v31533_v59 = vsub.f32 %v26201_v41, %v31530_v47 }
0x224d   : > { %28189 = vmatmul.mubr.f32.vlgmr.msra.gmra.mrb[90].mxu0 %v17652_v49 }
0x224e   : > { %28192 = vmatpush3.xpose.msra.mxu0 %v17587_v23  ;;  %28193 = vmatprep.mubr.msk.f32.mxu0 %vm29883_vm4, %v29882_v42 }
0x224f   : > { %28226 = vmatprep.subr.mxu0 %v29882_v42 }
0x2255   : > { %28194 = vmatmul.mubr.f32.vlgmr.msra.gmra.mrb[90].mxu0 %v17652_v49 }
0x2256   : > { %28228 = vmatprep.mubr.msk.f32.mxu0 %vm29883_vm4, %v29882_v42  ;;  %28227 = vmatpush3.msra.mxu0 %v31530_v47 }
0x2257   : > { %28236 = vmatprep.subr.mxu0 %v29882_v42 }
0x22e9   : > { %v17279_v39 = vpop.f32.mrb[90].mxu1 }
0x22ea   : > { %v28145_v57 = vpop.f32.mrb[91].mxu1 }
0x22ed   : > { %v17427_v4 = vpop.f32.mrb[92].mxu1 }
0x22ee   : > { %v28155_v43 = vpop.f32.mrb[93].mxu1 }
0x22f1   : > { %v17203_v6 = vpop.f32.mrb[84].mxu0  ;;  %v17573_v12 = vpop.f32.mrb[94].mxu1 }
0x22f2   : > { %v17280_v40 = vadd.f32 %v17279_v39, %v17203_v6  ;;  %v28140_v17 = vpop.f32.mrb[85].mxu0  ;;  %v28165_v33 = vpop.f32.mrb[95].mxu1 }
0x22f5   : > { %v17353_v62 = vpop.f32.mrb[86].mxu0 }
0x22f6   : > { %v17354_v13 = vadd.f32 %v17353_v62, %v17280_v40  ;;  %v28150_v63 = vpop.f32.mrb[87].mxu0  ;;  %v18947_v40 = vsel %vm1378_vm5, %v31173_v9, 0 }
0x22f8   : > { %v17428_v18 = vadd.f32 %v17427_v4, %v17354_v13  ;;  %v19017_v13 = vand.u32 4294901760, %v18947_v40 }
0x22f9   : > { %v17501_v1 = vpop.f32.mrb[88].mxu0 }
0x22fa   : > { %v17502_v14 = vadd.f32 %v17501_v1, %v17428_v18  ;;  %v28160_v38 = vpop.f32.mrb[89].mxu0 }
0x22fc   : > { %v17574_v36 = vadd.f32 %v17573_v12, %v17502_v14  ;;  %v19018_v14 = vsub.f32 %v18947_v40, %v19017_v13 }
0x22fe   : > { %v31497_v20 = vadd.f32 %v17574_v36, %v31397_v61  ;;  %v19019_v36 = vand.u32 4294901760, %v19018_v14 }
0x2328   : > { %v18028_v34 = vpop.f32.mrb[90].mxu0 }
0x2329   : > { %v18032_v19 = vmul.f32 0.35355338, %v18028_v34  ;;  %v28195_v10 = vpop.f32.mrb[91].mxu0 }
0x232b   : > { %v18033_v11 = vadd.f32 %v18032_v19, %v30382_v0  ;;  %v19020_v19 = vsub.f32 %v19018_v14, %v19019_v36 }
0x232d   : > { %v18034_v32 = vmul.f32 1.442695, %v18033_v11  ;;  %v19021_v11 = vand.u32 4294901760, %v19020_v19 }
0x232f   : > { %29565 = vpow2.f32 %v18034_v32 }
0x2339   : > { %v29566_v29 = vpop.eup %29565 }
0x233a   : > { %v18036_v15 = vsel %vm1378_vm5, %v29566_v29, 0.0 }
0x233b   : > { %18037 = vadd.xlane.f32.xlu0 %v18036_v15 }
0x2351   : > { %18945 = vrot.lane.b32.xlu0 %v31173_v9, %s29885_s29 }
0x2355   : > { %19407 = vrot.lane.b32.xlu0 %v31173_v9, %s29884_s28 }
0x23c8   : > { %v18038_v46 = vpop.xlane.xlu0 %18037 }
0x23c9   : > { %29567 = vrcp.f32 %v18038_v46 }
0x23cc   : > { %v18946_v4 = vpop.permute.xlu0 %18945 }
0x23cd   : > { %v18949_v17 = vsel %vm1378_vm5, %v18946_v4, 0 }
0x23ce   : > { %v18952_v63 = vand.u32 4294901760, %v18949_v17 }
0x23d0   : > { %v31554_v33 = vpop.permute.xlu0 %19407  ;;  %v19029_v38 = vsub.f32 %v18949_v17, %v18952_v63 }
0x23d1   : > { %v31561_v1 = vand.u32 4294901760, %v31554_v33 }
0x23d2   : > { %v19030_v34 = vand.u32 4294901760, %v19029_v38 }
0x23d3   : > { %v29568_v61 = vpop.eup %29567 }
0x23d4   : > { %v18041_v54 = vmul.f32 %v29568_v61, %v29566_v29  ;;  %v19031_v10 = vsub.f32 %v19029_v38, %v19030_v34  ;;  %v19860_v29 = vpop.permute.xlu1 %19859 }
0x23d5   : > { %v19863_v46 = vsel %vm1378_vm5, %v19860_v29, 0 }
0x23d6   : > { %v18046_v48 = vsel %vm1378_vm5, %v18041_v54, 0  ;;  %v19032_v32 = vand.u32 4294901760, %v19031_v10 }
0x23d7   : > { %v18114_v24 = vand.u32 4294901760, %v18046_v48 }
0x23d8   : > { %v19862_v15 = vpop.permute.xlu1 %19861 }
0x23d9   : > { %v18115_v49 = vsub.f32 %v18046_v48, %v18114_v24  ;;  %v19865_v61 = vsel %vm1378_vm5, %v19862_v15, 0 }
0x23da   : > { %v19868_v54 = vand.u32 4294901760, %v19865_v61 }
0x23db   : > { %v18116_v23 = vand.u32 4294901760, %v18115_v49 }
0x23dd   : > { %v18117_v52 = vsub.f32 %v18115_v49, %v18116_v23 }
0x23df   : > { %v18118_v56 = vand.u32 4294901760, %v18117_v52 }
0x23e1   : > { %28199 = vmatmul.mubr.f32.vlgmr.msra.gmra.mrb[96].mxu1 %v18118_v56 }
0x23e2   : > { %28202 = vmatpush3.msra.mxu1 %v18129_v35  ;;  %28203 = vmatprep.mubr.msk.f32.mxu1 %vm29883_vm4, %v29882_v42 }
0x23e3   : > { %28206 = vmatprep.subr.mxu1 %v29882_v42 }
0x23e9   : > { %28204 = vmatmul.mubr.f32.vlgmr.msra.gmra.mrb[96].mxu1 %v18114_v24 }
0x23ea   : > { %28207 = vmatpush3.msra.mxu1 %v18126_v21  ;;  %28208 = vmatprep.mubr.msk.f32.mxu1 %vm29883_vm4, %v29882_v42  ;;  %v19933_v21 = vand.u32 4294901760, %v19863_v46 }
0x23eb   : > { %28211 = vmatprep.subr.mxu1 %v29882_v42 }
0x23ec   : > { %v19934_v48 = vsub.f32 %v19863_v46, %v19933_v21 }
0x23f1   : > { %28209 = vmatmul.mubr.f32.vlgmr.msra.gmra.mrb[96].mxu1 %v18115_v49 }
0x23f2   : > { %28212 = vmatpush3.msra.mxu1 %v31462_v51  ;;  %28213 = vmatprep.mubr.msk.f32.mxu1 %vm29883_vm4, %v29882_v42 }
0x23f3   : > { %28216 = vmatprep.subr.mxu1 %v29882_v42 }
0x23f9   : > { %28214 = vmatmul.mubr.f32.vlgmr.msra.gmra.mrb[96].mxu1 %v18116_v23 }
0x23fa   : > { %28217 = vmatpush3.msra.mxu1 %v18127_v50  ;;  %28218 = vmatprep.mubr.msk.f32.mxu1 %vm29883_vm4, %v29882_v42  ;;  %v19935_v50 = vand.u32 4294901760, %v19934_v48 }
0x23fb   : > { %28221 = vmatprep.subr.mxu1 %v29882_v42 }
0x23fc   : > { %v19936_v23 = vsub.f32 %v19934_v48, %v19935_v50 }
0x23fe   : > { %v19937_v52 = vand.u32 4294901760, %v19936_v23 }
0x2401   : > { %28219 = vmatmul.mubr.f32.vlgmr.msra.gmra.mrb[96].mxu1 %v18114_v24 }
0x2402   : > { %28222 = vmatpush3.msra.mxu1 %v31462_v51  ;;  %28223 = vmatprep.mubr.msk.f32.mxu1 %vm29883_vm4, %v29882_v42  ;;  %v31538_v51 = vand.u32 4294901760, %v31533_v59 }
0x2403   : > { %28231 = vmatprep.subr.mxu1 %v29882_v42 }
0x2404   : > { %v18577_v25 = vsub.f32 %v31533_v59, %v31538_v51 }
0x2406   : > { %v31542_v58 = vand.u32 4294901760, %v18577_v25 }
0x2409   : > { %28224 = vmatmul.mubr.f32.vlgmr.msra.gmra.mrb[96].mxu1 %v18114_v24  ;;  %v19945_v24 = vsub.f32 %v19865_v61, %v19868_v54 }
0x240a   : > { %28233 = vmatprep.mubr.msk.f32.mxu1 %vm29883_vm4, %v29882_v42  ;;  %28232 = vmatpush3.msra.mxu1 %v31542_v58 }
0x240b   : > { %28241 = vmatprep.subr.mxu1 %v29882_v42  ;;  %v19946_v49 = vand.u32 4294901760, %v19945_v24 }
0x240d   : > { %v19947_v60 = vsub.f32 %v19945_v24, %v19946_v49 }
0x240f   : > { %v19948_v56 = vand.u32 4294901760, %v19947_v60 }
0x24dc   : > { %v18490_v3 = vpop.f32.mrb[96].mxu1 }
0x24dd   : > { %v18495_v39 = vsel %vm1378_vm5, %v18490_v3, 0  ;;  %v28225_v57 = vpop.f32.mrb[97].mxu1 }
0x24de   : > { %v18563_v43 = vand.u32 4294901760, %v18495_v39 }
0x24e0   : > { %v18564_v6 = vsub.f32 %v18495_v39, %v18563_v43  ;;  %28234 = vmatmul.mubr.f32.vlgmr.msra.gmra.mrb[98].mxu1 %v18563_v43 }
0x24e1   : > { %28242 = vmatpush3.msra.mxu1 %v31530_v47  ;;  %28243 = vmatprep.mubr.msk.f32.mxu1 %vm29883_vm4, %v29882_v42 }
0x24e2   : > { %v18565_v12 = vand.u32 4294901760, %v18564_v6  ;;  %28251 = vmatprep.subr.mxu1 %v29882_v42 }
0x24e4   : > { %v18566_v62 = vsub.f32 %v18564_v6, %v18565_v12  ;;  %28244 = vmatmul.mubr.f32.vlgmr.msra.gmra.mrb[100].mxu1 %v18565_v12 }
0x24e5   : > { %28252 = vmatpush3.msra.mxu1 %v31530_v47  ;;  %28253 = vmatprep.mubr.msk.f32.mxu1 %vm29883_vm4, %v29882_v42 }
0x24e6   : > { %v18567_v18 = vand.u32 4294901760, %v18566_v62  ;;  %28286 = vmatprep.subr.mxu1 %v29882_v42 }
0x24e8   : > { %28229 = vmatmul.mubr.f32.vlgmr.msra.gmra.mrb[92].mxu0 %v18567_v18  ;;  %28254 = vmatmul.mubr.f32.vlgmr.msra.gmra.mrb[102].mxu1 %v18563_v43 }
0x24e9   : > { %28287 = vmatpush3.msra.mxu1 %v31561_v1  ;;  %28237 = vmatpush3.msra.mxu0 %v31533_v59 }
0x24ea   : > { %28238 = vmatprep.mubr.msk.f32.mxu0 %vm29883_vm4, %v29882_v42  ;;  %28246 = vmatprep.subr.mxu0 %v29882_v42 }
0x24eb   : > { %28288 = vmatprep.mubr.msk.f32.mxu1 %vm29883_vm4, %v29882_v42  ;;  %28291 = vmatprep.subr.mxu1 %v29882_v42 }
0x24ec   : > { %28239 = vmatmul.mubr.f32.vlgmr.msra.gmra.mrb[94].mxu0 %v18564_v6 }
0x24ed   : > { %28247 = vmatpush3.msra.mxu0 %v31538_v51  ;;  %28248 = vmatprep.mubr.msk.f32.mxu0 %vm29883_vm4, %v29882_v42 }
0x24ee   : > { %28256 = vmatprep.subr.mxu0 %v29882_v42 }
0x24f0   : > { %28249 = vmatmul.mubr.f32.vlgmr.msra.gmra.mrb[96].mxu0 %v18563_v43 }
0x24f1   : > { %28258 = vmatprep.mubr.msk.f32.mxu0 %vm29883_vm4, %v29882_v42 }
0x24f4   : > { %28257 = vmatpush3.xpose.msra.mxu0 %v18952_v63 }
0x24f5   : > { %28261 = vmatprep.subr.mxu0 %v29882_v42 }
0x24f7   : > { %28259 = vmatmul.mubr.f32.vlgmr.msra.gmra.mrb[98].mxu0 %v19021_v11 }
0x24f8   : > { %28262 = vmatpush3.xpose.msra.mxu0 %v19032_v32  ;;  %28263 = vmatprep.mubr.msk.f32.mxu0 %vm29883_vm4, %v29882_v42 }
0x24f9   : > { %28266 = vmatprep.subr.mxu0 %v29882_v42 }
0x24ff   : > { %28264 = vmatmul.mubr.f32.vlgmr.msra.gmra.mrb[98].mxu0 %v19017_v13 }
0x2500   : > { %28267 = vmatpush3.xpose.msra.mxu0 %v19029_v38  ;;  %28268 = vmatprep.mubr.msk.f32.mxu0 %vm29883_vm4, %v29882_v42 }
0x2501   : > { %28271 = vmatprep.subr.mxu0 %v29882_v42 }
0x2507   : > { %28269 = vmatmul.mubr.f32.vlgmr.msra.gmra.mrb[98].mxu0 %v19018_v14 }
0x2508   : > { %28272 = vmatpush3.xpose.msra.mxu0 %v18952_v63  ;;  %28273 = vmatprep.mubr.msk.f32.mxu0 %vm29883_vm4, %v29882_v42 }
0x2509   : > { %28276 = vmatprep.subr.mxu0 %v29882_v42 }
0x250f   : > { %28274 = vmatmul.mubr.f32.vlgmr.msra.gmra.mrb[98].mxu0 %v19019_v36 }
0x2510   : > { %28277 = vmatpush3.xpose.msra.mxu0 %v19030_v34  ;;  %28278 = vmatprep.mubr.msk.f32.mxu0 %vm29883_vm4, %v29882_v42 }
0x2511   : > { %28281 = vmatprep.subr.mxu0 %v29882_v42 }
0x2517   : > { %28279 = vmatmul.mubr.f32.vlgmr.msra.gmra.mrb[98].mxu0 %v19017_v13 }
0x2518   : > { %28282 = vmatpush3.xpose.msra.mxu0 %v18952_v63  ;;  %28283 = vmatprep.mubr.msk.f32.mxu0 %vm29883_vm4, %v29882_v42 }
0x2519   : > { %28316 = vmatprep.subr.mxu0 %v29882_v42 }
0x251f   : > { %28284 = vmatmul.mubr.f32.vlgmr.msra.gmra.mrb[98].mxu0 %v19017_v13 }
0x2520   : > { %28317 = vmatpush3.xpose.msra.mxu0 %v19868_v54  ;;  %28318 = vmatprep.mubr.msk.f32.mxu0 %vm29883_vm4, %v29882_v42 }
0x2521   : > { %28321 = vmatprep.subr.mxu0 %v29882_v42 }
0x2523   : > { %28319 = vmatmul.mubr.f32.vlgmr.msra.gmra.mrb[100].mxu0 %v19937_v52 }
0x2524   : > { %28322 = vmatpush3.xpose.msra.mxu0 %v19948_v56  ;;  %28323 = vmatprep.mubr.msk.f32.mxu0 %vm29883_vm4, %v29882_v42 }
0x2525   : > { %28326 = vmatprep.subr.mxu0 %v29882_v42 }
0x252b   : > { %28324 = vmatmul.mubr.f32.vlgmr.msra.gmra.mrb[100].mxu0 %v19933_v21 }
0x252c   : > { %28327 = vmatpush3.xpose.msra.mxu0 %v19945_v24  ;;  %28328 = vmatprep.mubr.msk.f32.mxu0 %vm29883_vm4, %v29882_v42 }
0x252d   : > { %28331 = vmatprep.subr.mxu0 %v29882_v42 }
0x2533   : > { %28329 = vmatmul.mubr.f32.vlgmr.msra.gmra.mrb[100].mxu0 %v19934_v48 }
0x2534   : > { %28332 = vmatpush3.xpose.msra.mxu0 %v19868_v54  ;;  %28333 = vmatprep.mubr.msk.f32.mxu0 %vm29883_vm4, %v29882_v42 }
0x2535   : > { %28336 = vmatprep.subr.mxu0 %v29882_v42 }
0x253b   : > { %28334 = vmatmul.mubr.f32.vlgmr.msra.gmra.mrb[100].mxu0 %v19935_v50 }
0x253c   : > { %28337 = vmatpush3.xpose.msra.mxu0 %v19946_v49  ;;  %28338 = vmatprep.mubr.msk.f32.mxu0 %vm29883_vm4, %v29882_v42  ;;  %v19491_v49 = vsub.f32 %v31554_v33, %v31561_v1 }
0x253d   : > { %28341 = vmatprep.subr.mxu0 %v29882_v42 }
0x253e   : > { %v19492_v56 = vand.u32 4294901760, %v19491_v49 }
0x2543   : > { %28339 = vmatmul.mubr.f32.vlgmr.msra.gmra.mrb[100].mxu0 %v19933_v21 }
0x2544   : > { %28342 = vmatpush3.xpose.msra.mxu0 %v19868_v54  ;;  %28343 = vmatprep.mubr.msk.f32.mxu0 %vm29883_vm4, %v29882_v42 }
0x2545   : > { %28376 = vmatprep.subr.mxu0 %v29882_v42 }
0x254b   : > { %28344 = vmatmul.mubr.f32.vlgmr.msra.gmra.mrb[100].mxu0 %v19933_v21 }
0x254c   : > { %28377 = vmatpush3.msra.mxu0 %v31293_v5  ;;  %28378 = vmatprep.mubr.msk.f32.mxu0 %vm29883_vm4, %v29882_v42 }
0x254d   : > { %28386 = vmatprep.subr.mxu0 %v29882_v42 }
0x25b3   : > { %v18645_v35 = vpop.f32.mrb[98].mxu1 }
0x25b4   : > { %v28235_v41 = vpop.f32.mrb[99].mxu1 }
0x25b7   : > { %v18793_v25 = vpop.f32.mrb[100].mxu1 }
0x25b8   : > { %v28245_v3 = vpop.f32.mrb[101].mxu1 }
0x25bb   : > { %v18569_v39 = vpop.f32.mrb[92].mxu0  ;;  %v18939_v57 = vpop.f32.mrb[102].mxu1 }
0x25bc   : > { %v18646_v4 = vadd.f32 %v18645_v35, %v18569_v39  ;;  %v28230_v43 = vpop.f32.mrb[93].mxu0  ;;  %v28255_v6 = vpop.f32.mrb[103].mxu1 }
0x25bf   : > { %v18719_v12 = vpop.f32.mrb[94].mxu0 }
0x25c0   : > { %v18720_v40 = vadd.f32 %v18719_v12, %v18646_v4  ;;  %v28240_v17 = vpop.f32.mrb[95].mxu0 }
0x25c2   : > { %v18794_v62 = vadd.f32 %v18793_v25, %v18720_v40  ;;  %v19493_v25 = vsub.f32 %v19491_v49, %v19492_v56 }
0x25c3   : > { %v18867_v13 = vpop.f32.mrb[96].mxu0 }
0x25c4   : > { %v18868_v63 = vadd.f32 %v18867_v13, %v18794_v62  ;;  %v28250_v18 = vpop.f32.mrb[97].mxu0 }
0x25c6   : > { %v18940_v14 = vadd.f32 %v18939_v57, %v18868_v63  ;;  %v19494_v57 = vand.u32 4294901760, %v19493_v25 }
0x25c8   : > { %v31618_v38 = vadd.f32 %v18940_v14, %v31497_v20 }
0x25f2   : > { %v19393_v36 = vpop.f32.mrb[98].mxu0 }
0x25f3   : > { %v19397_v34 = vmul.f32 0.35355338, %v19393_v36  ;;  %v28285_v19 = vpop.f32.mrb[99].mxu0 }
0x25f5   : > { %v19398_v10 = vadd.f32 %v19397_v34, %v30382_v0 }
0x25f7   : > { %v19399_v11 = vmul.f32 1.442695, %v19398_v10 }
0x25f9   : > { %29569 = vpow2.f32 %v19399_v11 }
0x2603   : > { %v29570_v32 = vpop.eup %29569 }
0x2604   : > { %v19401_v29 = vsel %vm1378_vm5, %v29570_v32, 0.0 }
0x2605   : > { %19402 = vadd.xlane.f32.xlu1 %v19401_v29 }
0x2616   : > { %20323 = vrot.lane.b32.xlu1 %v31173_v9, %s32105_s2 }
0x261a   : > { %21675 = vrot.lane.b32.xlu1 %v31173_v9, %s29889_s1 }
0x261e   : > { %v20309_v15 = vpop.f32.mrb[100].mxu0 }
0x261f   : > { %v20313_v20 = vmul.f32 0.35355338, %v20309_v15  ;;  %v28345_v46 = vpop.f32.mrb[101].mxu0 }
0x2621   : > { %v20314_v61 = vadd.f32 %v20313_v20, %v30382_v0 }
0x2623   : > { %v20315_v21 = vmul.f32 1.442695, %v20314_v61 }
0x2625   : > { %29571 = vpow2.f32 %v20315_v21 }
0x262f   : > { %v29572_v54 = vpop.eup %29571 }
0x2630   : > { %v20317_v48 = vsel %vm1378_vm5, %v29572_v54, 0.0 }
0x2631   : > { %20318 = vadd.xlane.f32.xlu0 %v20317_v48 }
0x2647   : > { %21673 = vrot.lane.b32.xlu0 %v31173_v9, %s29888_s23 }
0x264b   : > { %22137 = vrot.lane.b32.xlu0 %v31173_v9, %s32106_s25 }
0x264f   : > { %23039 = vrot.lane.b32.xlu0 %v31173_v9, %s32107_s4  ;;  %s32110_s4 = sld [smem:[#allocation30_spill]] }
0x2653   : > { %23041 = vrot.lane.b32.xlu0 %v31173_v9, %s32108_s0 }
0x2692   : > { %v19403_v24 = vpop.xlane.xlu1 %19402 }
0x2693   : > { %29573 = vrcp.f32 %v19403_v24 }
0x2696   : > { %v20324_v4 = vpop.permute.xlu1 %20323 }
0x2697   : > { %v20330_v43 = vand.u32 4294901760, %v20324_v4 }
0x2699   : > { %v20407_v12 = vsub.f32 %v20324_v4, %v20330_v43 }
0x269b   : > { %v20408_v13 = vand.u32 4294901760, %v20407_v12 }
0x269d   : > { %v29574_v50 = vpop.eup %29573  ;;  %v20409_v14 = vsub.f32 %v20407_v12, %v20408_v13 }
0x269e   : > { %v19406_v23 = vmul.f32 %v29574_v50, %v29570_v32 }
0x269f   : > { %v20410_v34 = vand.u32 4294901760, %v20409_v14 }
0x26a0   : > { %v19411_v60 = vsel %vm1378_vm5, %v19406_v23, 0 }
0x26a1   : > { %v19479_v52 = vand.u32 4294901760, %v19411_v60 }
0x26a3   : > { %v19480_v35 = vsub.f32 %v19411_v60, %v19479_v52 }
0x26a5   : > { %v19481_v41 = vand.u32 4294901760, %v19480_v35 }
0x26a7   : > { %v19482_v3 = vsub.f32 %v19480_v35, %v19481_v41 }
0x26a9   : > { %v19483_v39 = vand.u32 4294901760, %v19482_v3 }
0x26ab   : > { %28289 = vmatmul.mubr.f32.vlgmr.msra.gmra.mrb[104].mxu1 %v19483_v39 }
0x26ac   : > { %28292 = vmatpush3.msra.mxu1 %v19494_v57  ;;  %28293 = vmatprep.mubr.msk.f32.mxu1 %vm29883_vm4, %v29882_v42 }
0x26ad   : > { %28296 = vmatprep.subr.mxu1 %v29882_v42 }
0x26b3   : > { %28294 = vmatmul.mubr.f32.vlgmr.msra.gmra.mrb[104].mxu1 %v19479_v52 }
0x26b4   : > { %28297 = vmatpush3.msra.mxu1 %v19491_v49  ;;  %28298 = vmatprep.mubr.msk.f32.mxu1 %vm29883_vm4, %v29882_v42 }
0x26b5   : > { %28301 = vmatprep.subr.mxu1 %v29882_v42 }
0x26bb   : > { %28299 = vmatmul.mubr.f32.vlgmr.msra.gmra.mrb[104].mxu1 %v19480_v35 }
0x26bc   : > { %28302 = vmatpush3.msra.mxu1 %v31561_v1  ;;  %28303 = vmatprep.mubr.msk.f32.mxu1 %vm29883_vm4, %v29882_v42 }
0x26bd   : > { %28306 = vmatprep.subr.mxu1 %v29882_v42 }
0x26be   : > { %v20319_v33 = vpop.xlane.xlu0 %20318 }
0x26bf   : > { %29575 = vrcp.f32 %v20319_v33 }
0x26c2   : > { %v21674_v24 = vpop.permute.xlu0 %21673 }
0x26c3   : > { %28304 = vmatmul.mubr.f32.vlgmr.msra.gmra.mrb[104].mxu1 %v19481_v41 }
0x26c4   : > { %28307 = vmatpush3.msra.mxu1 %v19492_v56  ;;  %28308 = vmatprep.mubr.msk.f32.mxu1 %vm29883_vm4, %v29882_v42 }
0x26c5   : > { %28311 = vmatprep.subr.mxu1 %v29882_v42 }
0x26c6   : > { %v31707_v23 = vpop.permute.xlu0 %22137 }
0x26c7   : > { %v31716_v56 = vand.u32 4294901760, %v31707_v23 }
0x26c9   : > { %v29576_v6 = vpop.eup %29575 }
0x26ca   : > { %v20322_v40 = vmul.f32 %v29576_v6, %v29572_v54 }
0x26cb   : > { %28309 = vmatmul.mubr.f32.vlgmr.msra.gmra.mrb[104].mxu1 %v19479_v52 }
0x26cc   : > { %28312 = vmatpush3.msra.mxu1 %v31561_v1  ;;  %28313 = vmatprep.mubr.msk.f32.mxu1 %vm29883_vm4, %v29882_v42  ;;  %v20327_v17 = vsel %vm1378_vm5, %v20322_v40, 0 }
0x26cd   : > { %28346 = vmatprep.subr.mxu1 %v29882_v42  ;;  %v20395_v62 = vand.u32 4294901760, %v20327_v17 }
0x26cf   : > { %v20396_v63 = vsub.f32 %v20327_v17, %v20395_v62 }
0x26d1   : > { %v20397_v18 = vand.u32 4294901760, %v20396_v63 }
0x26d3   : > { %28314 = vmatmul.mubr.f32.vlgmr.msra.gmra.mrb[104].mxu1 %v19479_v52  ;;  %v20398_v36 = vsub.f32 %v20396_v63, %v20397_v18 }
0x26d4   : > { %28347 = vmatpush3.msra.mxu1 %v20330_v43  ;;  %28348 = vmatprep.mubr.msk.f32.mxu1 %vm29883_vm4, %v29882_v42 }
0x26d5   : > { %28351 = vmatprep.subr.mxu1 %v29882_v42  ;;  %v20399_v1 = vand.u32 4294901760, %v20398_v36 }
0x26d7   : > { %28349 = vmatmul.mubr.f32.vlgmr.msra.gmra.mrb[106].mxu1 %v20399_v1 }
0x26d8   : > { %28352 = vmatpush3.msra.mxu1 %v20410_v34  ;;  %28353 = vmatprep.mubr.msk.f32.mxu1 %vm29883_vm4, %v29882_v42 }
0x26d9   : > { %28356 = vmatprep.subr.mxu1 %v29882_v42 }
0x26df   : > { %28354 = vmatmul.mubr.f32.vlgmr.msra.gmra.mrb[106].mxu1 %v20395_v62 }
0x26e0   : > { %28357 = vmatpush3.msra.mxu1 %v20407_v12  ;;  %28358 = vmatprep.mubr.msk.f32.mxu1 %vm29883_vm4, %v29882_v42 }
0x26e1   : > { %28361 = vmatprep.subr.mxu1 %v29882_v42 }
0x26e7   : > { %28359 = vmatmul.mubr.f32.vlgmr.msra.gmra.mrb[106].mxu1 %v20396_v63 }
0x26e8   : > { %28362 = vmatpush3.msra.mxu1 %v20330_v43  ;;  %28363 = vmatprep.mubr.msk.f32.mxu1 %vm29883_vm4, %v29882_v42 }
0x26e9   : > { %28366 = vmatprep.subr.mxu1 %v29882_v42 }
0x26ef   : > { %28364 = vmatmul.mubr.f32.vlgmr.msra.gmra.mrb[106].mxu1 %v20397_v18 }
0x26f0   : > { %28367 = vmatpush3.msra.mxu1 %v20408_v13  ;;  %28368 = vmatprep.mubr.msk.f32.mxu1 %vm29883_vm4, %v29882_v42 }
0x26f1   : > { %28371 = vmatprep.subr.mxu1 %v29882_v42 }
0x26f7   : > { %28369 = vmatmul.mubr.f32.vlgmr.msra.gmra.mrb[106].mxu1 %v20395_v62 }
0x26f8   : > { %28372 = vmatpush3.msra.mxu1 %v20330_v43  ;;  %28373 = vmatprep.mubr.msk.f32.mxu1 %vm29883_vm4, %v29882_v42 }
0x26f9   : > { %28381 = vmatprep.subr.mxu1 %v29882_v42 }
0x26ff   : > { %28374 = vmatmul.mubr.f32.vlgmr.msra.gmra.mrb[106].mxu1 %v20395_v62 }
0x2700   : > { %28382 = vmatpush3.msra.mxu1 %v31305_v30  ;;  %28383 = vmatprep.mubr.msk.f32.mxu1 %vm29883_vm4, %v29882_v42 }
0x2701   : > { %28391 = vmatprep.subr.mxu1 %v29882_v42 }
0x27a6   : > { %v19855_v19 = vpop.f32.mrb[104].mxu1 }
0x27a7   : > { %v28315_v10 = vpop.f32.mrb[105].mxu1  ;;  %v21225_v20 = vsel %vm1378_vm5, %v19855_v19, 0 }
0x27a8   : > { %v21293_v30 = vand.u32 4294901760, %v21225_v20 }
0x27aa   : > { %v21294_v54 = vsub.f32 %v21225_v20, %v21293_v30 }
0x27ac   : > { %v21295_v50 = vand.u32 4294901760, %v21294_v54 }
0x27ae   : > { %v21296_v49 = vsub.f32 %v21294_v54, %v21295_v50 }
0x27b0   : > { %v21297_v52 = vand.u32 4294901760, %v21296_v49 }
0x27d2   : > { %v20771_v11 = vpop.f32.mrb[106].mxu1 }
0x27d3   : > { %v20776_v32 = vsel %vm1378_vm5, %v20771_v11, 0  ;;  %v28375_v29 = vpop.f32.mrb[107].mxu1 }
0x27d4   : > { %v20844_v15 = vand.u32 4294901760, %v20776_v32 }
0x27d6   : > { %v20845_v46 = vsub.f32 %v20776_v32, %v20844_v15  ;;  %28384 = vmatmul.mubr.f32.vlgmr.msra.gmra.mrb[108].mxu1 %v20844_v15 }
0x27d7   : > { %28392 = vmatpush3.msra.mxu1 %v31293_v5  ;;  %28393 = vmatprep.mubr.msk.f32.mxu1 %vm29883_vm4, %v29882_v42 }
0x27d8   : > { %v20846_v61 = vand.u32 4294901760, %v20845_v46  ;;  %28401 = vmatprep.subr.mxu1 %v29882_v42 }
0x27da   : > { %v20847_v21 = vsub.f32 %v20845_v46, %v20846_v61  ;;  %28394 = vmatmul.mubr.f32.vlgmr.msra.gmra.mrb[110].mxu1 %v20846_v61 }
0x27db   : > { %28402 = vmatpush3.msra.mxu1 %v31293_v5  ;;  %28403 = vmatprep.mubr.msk.f32.mxu1 %vm29883_vm4, %v29882_v42  ;;  %v21676_v5 = vpop.permute.xlu1 %21675 }
0x27dc   : > { %v20848_v48 = vand.u32 4294901760, %v20847_v21  ;;  %28411 = vmatprep.subr.mxu1 %v29882_v42 }
0x27de   : > { %28379 = vmatmul.mubr.f32.vlgmr.msra.gmra.mrb[102].mxu0 %v20848_v48  ;;  %28404 = vmatmul.mubr.f32.vlgmr.msra.gmra.mrb[112].mxu1 %v20844_v15 }
0x27df   : > { %28387 = vmatpush3.msra.mxu0 %v31296_v31  ;;  %28388 = vmatprep.mubr.msk.f32.mxu0 %vm29883_vm4, %v29882_v42  ;;  %v21677_v31 = vsel %vm1378_vm5, %v21674_v24, 0 }
0x27e0   : > { %28412 = vmatpush3.msra.mxu1 %v31332_v28  ;;  %28413 = vmatprep.mubr.msk.f32.mxu1 %vm29883_vm4, %v29882_v42  ;;  %v21679_v28 = vsel %vm1378_vm5, %v21676_v5, 0 }
0x27e1   : > { %28396 = vmatprep.subr.mxu0 %v29882_v42  ;;  %28421 = vmatprep.subr.mxu1 %v29882_v42  ;;  %v21682_v60 = vand.u32 4294901760, %v21679_v28 }
0x27e2   : > { %28389 = vmatmul.mubr.f32.vlgmr.msra.gmra.mrb[104].mxu0 %v20845_v46  ;;  %28414 = vmatmul.mubr.f32.vlgmr.msra.gmra.mrb[114].mxu1 %v21293_v30 }
0x27e3   : > { %28397 = vmatpush3.msra.mxu0 %v31301_v27  ;;  %28398 = vmatprep.mubr.msk.f32.mxu0 %vm29883_vm4, %v29882_v42  ;;  %v21747_v27 = vand.u32 4294901760, %v21677_v31 }
0x27e4   : > { %28422 = vmatpush3.msra.mxu1 %v31312_v37  ;;  %28423 = vmatprep.mubr.msk.f32.mxu1 %vm29883_vm4, %v29882_v42 }
0x27e5   : > { %28431 = vmatprep.subr.mxu1 %v29882_v42  ;;  %28406 = vmatprep.subr.mxu0 %v29882_v42  ;;  %v21748_v35 = vsub.f32 %v21677_v31, %v21747_v27 }
0x27e6   : > { %28399 = vmatmul.mubr.f32.vlgmr.msra.gmra.mrb[106].mxu0 %v20844_v15  ;;  %28424 = vmatmul.mubr.f32.vlgmr.msra.gmra.mrb[116].mxu1 %v21295_v50 }
0x27e7   : > { %28432 = vmatpush3.msra.mxu1 %v31312_v37  ;;  %28407 = vmatpush3.msra.mxu0 %v31312_v37  ;;  %v21759_v37 = vsub.f32 %v21679_v28, %v21682_v60  ;;  %v21749_v41 = vand.u32 4294901760, %v21748_v35 }
0x27e8   : > { %28408 = vmatprep.mubr.msk.f32.mxu0 %vm29883_vm4, %v29882_v42  ;;  %28433 = vmatprep.mubr.msk.f32.mxu1 %vm29883_vm4, %v29882_v42 }
0x27e9   : > { %28466 = vmatprep.subr.mxu1 %v29882_v42  ;;  %28416 = vmatprep.subr.mxu0 %v29882_v42  ;;  %v21760_v25 = vand.u32 4294901760, %v21759_v37 }
0x27ea   : > { %28409 = vmatmul.mubr.f32.vlgmr.msra.gmra.mrb[108].mxu0 %v21297_v52  ;;  %28434 = vmatmul.mubr.f32.vlgmr.msra.gmra.mrb[118].mxu1 %v21293_v30 }
0x27eb   : > { %28467 = vmatpush3.msra.mxu1 %v31716_v56  ;;  %28417 = vmatpush3.msra.mxu0 %v31315_v16  ;;  %v21750_v16 = vsub.f32 %v21748_v35, %v21749_v41  ;;  %v21761_v3 = vsub.f32 %v21759_v37, %v21760_v25 }
0x27ec   : > { %28418 = vmatprep.mubr.msk.f32.mxu0 %vm29883_vm4, %v29882_v42  ;;  %28426 = vmatprep.subr.mxu0 %v29882_v42 }
0x27ed   : > { %28468 = vmatprep.mubr.msk.f32.mxu1 %vm29883_vm4, %v29882_v42  ;;  %28471 = vmatprep.subr.mxu1 %v29882_v42  ;;  %v21751_v39 = vand.u32 4294901760, %v21750_v16  ;;  %v21762_v57 = vand.u32 4294901760, %v21761_v3 }
0x27ee   : > { %28419 = vmatmul.mubr.f32.vlgmr.msra.gmra.mrb[110].mxu0 %v21294_v54 }
0x27ef   : > { %28427 = vmatpush3.msra.mxu0 %v31319_v45  ;;  %28428 = vmatprep.mubr.msk.f32.mxu0 %vm29883_vm4, %v29882_v42 }
0x27f0   : > { %28436 = vmatprep.subr.mxu0 %v29882_v42 }
0x27f2   : > { %28429 = vmatmul.mubr.f32.vlgmr.msra.gmra.mrb[112].mxu0 %v21293_v30 }
0x27f3   : > { %28438 = vmatprep.mubr.msk.f32.mxu0 %vm29883_vm4, %v29882_v42 }
0x27f6   : > { %28437 = vmatpush3.xpose.msra.mxu0 %v21682_v60 }
0x27f7   : > { %28441 = vmatprep.subr.mxu0 %v29882_v42 }
0x27f9   : > { %28439 = vmatmul.mubr.f32.vlgmr.msra.gmra.mrb[114].mxu0 %v21751_v39  ;;  %v22221_v39 = vsub.f32 %v31707_v23, %v31716_v56 }
0x27fa   : > { %28442 = vmatpush3.xpose.msra.mxu0 %v21762_v57  ;;  %28443 = vmatprep.mubr.msk.f32.mxu0 %vm29883_vm4, %v29882_v42 }
0x27fb   : > { %28446 = vmatprep.subr.mxu0 %v29882_v42 }
0x2801   : > { %28444 = vmatmul.mubr.f32.vlgmr.msra.gmra.mrb[114].mxu0 %v21747_v27 }
0x2802   : > { %28447 = vmatpush3.xpose.msra.mxu0 %v21759_v37  ;;  %28448 = vmatprep.mubr.msk.f32.mxu0 %vm29883_vm4, %v29882_v42 }
0x2803   : > { %28451 = vmatprep.subr.mxu0 %v29882_v42 }
0x2809   : > { %28449 = vmatmul.mubr.f32.vlgmr.msra.gmra.mrb[114].mxu0 %v21748_v35 }
0x280a   : > { %28452 = vmatpush3.xpose.msra.mxu0 %v21682_v60  ;;  %28453 = vmatprep.mubr.msk.f32.mxu0 %vm29883_vm4, %v29882_v42 }
0x280b   : > { %28456 = vmatprep.subr.mxu0 %v29882_v42 }
0x2811   : > { %28454 = vmatmul.mubr.f32.vlgmr.msra.gmra.mrb[114].mxu0 %v21749_v41 }
0x2812   : > { %28457 = vmatpush3.xpose.msra.mxu0 %v21760_v25  ;;  %28458 = vmatprep.mubr.msk.f32.mxu0 %vm29883_vm4, %v29882_v42 }
0x2813   : > { %28461 = vmatprep.subr.mxu0 %v29882_v42 }
0x2819   : > { %28459 = vmatmul.mubr.f32.vlgmr.msra.gmra.mrb[114].mxu0 %v21747_v27 }
0x281a   : > { %28462 = vmatpush3.xpose.msra.mxu0 %v21682_v60  ;;  %28463 = vmatprep.mubr.msk.f32.mxu0 %vm29883_vm4, %v29882_v42 }
0x281b   : > { %28496 = vmatprep.subr.mxu0 %v29882_v42 }
0x2821   : > { %28464 = vmatmul.mubr.f32.vlgmr.msra.gmra.mrb[114].mxu0 %v21747_v27 }
0x2822   : > { %28497 = vmatpush3.msra.mxu0 %v31432_v44  ;;  %28498 = vmatprep.mubr.msk.f32.mxu0 %vm29883_vm4, %v29882_v42 }
0x2823   : > { %28506 = vmatprep.subr.mxu0 %v29882_v42 }
0x28a9   : > { %v20926_v45 = vpop.f32.mrb[108].mxu1 }
0x28aa   : > { %v28385_v33 = vpop.f32.mrb[109].mxu1 }
0x28ad   : > { %v21074_v4 = vpop.f32.mrb[110].mxu1 }
0x28ae   : > { %v28395_v43 = vpop.f32.mrb[111].mxu1 }
0x28b1   : > { %v20850_v6 = vpop.f32.mrb[102].mxu0  ;;  %v21220_v12 = vpop.f32.mrb[112].mxu1 }
0x28b2   : > { %v20927_v40 = vadd.f32 %v20926_v45, %v20850_v6  ;;  %v28380_v17 = vpop.f32.mrb[103].mxu0  ;;  %v28405_v62 = vpop.f32.mrb[113].mxu1 }
0x28b5   : > { %v21000_v13 = vpop.f32.mrb[104].mxu0  ;;  %v21375_v63 = vpop.f32.mrb[114].mxu1 }
0x28b6   : > { %v21001_v18 = vadd.f32 %v21000_v13, %v20927_v40  ;;  %v28390_v14 = vpop.f32.mrb[105].mxu0  ;;  %v28415_v36 = vpop.f32.mrb[115].mxu1 }
0x28b8   : > { %v21075_v1 = vadd.f32 %v21074_v4, %v21001_v18  ;;  %v22222_v4 = vand.u32 4294901760, %v22221_v39 }
0x28b9   : > { %v21148_v34 = vpop.f32.mrb[106].mxu0  ;;  %v21523_v19 = vpop.f32.mrb[116].mxu1 }
0x28ba   : > { %v21149_v10 = vadd.f32 %v21148_v34, %v21075_v1  ;;  %v28400_v11 = vpop.f32.mrb[107].mxu0  ;;  %v28425_v32 = vpop.f32.mrb[117].mxu1 }
0x28bc   : > { %v21221_v29 = vadd.f32 %v21220_v12, %v21149_v10  ;;  %v22223_v12 = vsub.f32 %v22221_v39, %v22222_v4 }
0x28bd   : > { %v21299_v15 = vpop.f32.mrb[108].mxu0  ;;  %v21669_v20 = vpop.f32.mrb[118].mxu1 }
0x28be   : > { %v21300_v46 = vadd.f32 %v21299_v15, %v21221_v29  ;;  %v28410_v30 = vpop.f32.mrb[109].mxu0  ;;  %v28435_v61 = vpop.f32.mrb[119].mxu1  ;;  %v22224_v62 = vand.u32 4294901760, %v22223_v12  ;;  %v31840_v12 = vld [vmem:[#allocation9 + $0x1] ss:$0 sm:$0xff] }
0x28c0   : > { %v21376_v21 = vadd.f32 %v21375_v63, %v21300_v46 }
0x28c1   : > { %v21449_v54 = vpop.f32.mrb[110].mxu0 }
0x28c2   : > { %v21450_v48 = vadd.f32 %v21449_v54, %v21376_v21  ;;  %v28420_v24 = vpop.f32.mrb[111].mxu0 }
0x28c4   : > { %v21524_v50 = vadd.f32 %v21523_v19, %v21450_v48 }
0x28c5   : > { %v21597_v5 = vpop.f32.mrb[112].mxu0 }
0x28c6   : > { %v21598_v31 = vadd.f32 %v21597_v5, %v21524_v50  ;;  %v28430_v49 = vpop.f32.mrb[113].mxu0 }
0x28c8   : > { %v31754_v28 = vadd.f32 %v21669_v20, %v21598_v31 }
0x28f4   : > { %v22123_v27 = vpop.f32.mrb[114].mxu0 }
0x28f5   : > { %v22127_v60 = vmul.f32 0.35355338, %v22123_v27  ;;  %v28465_v52 = vpop.f32.mrb[115].mxu0 }
0x28f7   : > { %v22128_v35 = vadd.f32 %v22127_v60, %v30382_v0 }
0x28f9   : > { %v22129_v37 = vmul.f32 1.442695, %v22128_v35 }
0x28fb   : > { %29577 = vpow2.f32 %v22129_v37 }
0x2905   : > { %v29578_v41 = vpop.eup %29577 }
0x2906   : > { %v22131_v25 = vsel %vm1378_vm5, %v29578_v41, 0.0 }
0x2907   : > { %22132 = vadd.xlane.f32.xlu1 %v22131_v25 }
0x2918   : > { %23503 = vrot.lane.b32.xlu1 %v31173_v9, %s32109_s30  ;;  %v23040_v9 = vpop.permute.xlu0 %23039 }
0x2994   : > { %v22133_v16 = vpop.xlane.xlu1 %22132 }
0x2995   : > { %29579 = vrcp.f32 %v22133_v16 }
0x2998   : > { %v31791_v34 = vpop.permute.xlu1 %23503 }
0x2999   : > { %v31798_v29 = vand.u32 4294901760, %v31791_v34 }
0x299f   : > { %v29580_v3 = vpop.eup %29579 }
0x29a0   : > { %v22136_v57 = vmul.f32 %v29580_v3, %v29578_v41 }
0x29a2   : > { %v22141_v45 = vsel %vm1378_vm5, %v22136_v57, 0 }
0x29a3   : > { %v22209_v33 = vand.u32 4294901760, %v22141_v45 }
0x29a5   : > { %v22210_v43 = vsub.f32 %v22141_v45, %v22209_v33 }
0x29a7   : > { %v22211_v6 = vand.u32 4294901760, %v22210_v43 }
0x29a9   : > { %v22212_v40 = vsub.f32 %v22210_v43, %v22211_v6 }
0x29ab   : > { %v22213_v17 = vand.u32 4294901760, %v22212_v40 }
0x29ad   : > { %28469 = vmatmul.mubr.f32.vlgmr.msra.gmra.mrb[120].mxu1 %v22213_v17 }
0x29ae   : > { %28472 = vmatpush3.msra.mxu1 %v22224_v62  ;;  %28473 = vmatprep.mubr.msk.f32.mxu1 %vm29883_vm4, %v29882_v42 }
0x29af   : > { %28476 = vmatprep.subr.mxu1 %v29882_v42 }
0x29b5   : > { %28474 = vmatmul.mubr.f32.vlgmr.msra.gmra.mrb[120].mxu1 %v22209_v33 }
0x29b6   : > { %28477 = vmatpush3.msra.mxu1 %v22221_v39  ;;  %28478 = vmatprep.mubr.msk.f32.mxu1 %vm29883_vm4, %v29882_v42 }
0x29b7   : > { %28481 = vmatprep.subr.mxu1 %v29882_v42 }
0x29bd   : > { %28479 = vmatmul.mubr.f32.vlgmr.msra.gmra.mrb[120].mxu1 %v22210_v43 }
0x29be   : > { %28482 = vmatpush3.msra.mxu1 %v31716_v56  ;;  %28483 = vmatprep.mubr.msk.f32.mxu1 %vm29883_vm4, %v29882_v42 }
0x29bf   : > { %28486 = vmatprep.subr.mxu1 %v29882_v42 }
0x29c5   : > { %28484 = vmatmul.mubr.f32.vlgmr.msra.gmra.mrb[120].mxu1 %v22211_v6  ;;  %v24405_v6 = vadd.f32 %v31618_v38, %v31128_v53 }
0x29c6   : > { %28487 = vmatpush3.msra.mxu1 %v22222_v4  ;;  %28488 = vmatprep.mubr.msk.f32.mxu1 %vm29883_vm4, %v29882_v42 }
0x29c7   : > { %28491 = vmatprep.subr.mxu1 %v29882_v42  ;;  %v31844_v62 = vadd.f32 %v31840_v12, %v24405_v6 }
0x29cd   : > { %28489 = vmatmul.mubr.f32.vlgmr.msra.gmra.mrb[120].mxu1 %v22209_v33 }
0x29ce   : > { %28492 = vmatpush3.msra.mxu1 %v31716_v56  ;;  %28493 = vmatprep.mubr.msk.f32.mxu1 %vm29883_vm4, %v29882_v42  ;;  %v23042_v56 = vpop.permute.xlu0 %23041 }
0x29cf   : > { %28501 = vmatprep.subr.mxu1 %v29882_v42  ;;  %v23045_v1 = vsel %vm1378_vm5, %v23042_v56, 0 }
0x29d0   : > { %v23048_v11 = vand.u32 4294901760, %v23045_v1 }
0x29d2   : > { %v23125_v20 = vsub.f32 %v23045_v1, %v23048_v11 }
0x29d4   : > { %v23126_v46 = vand.u32 4294901760, %v23125_v20 }
0x29d5   : > { %28494 = vmatmul.mubr.f32.vlgmr.msra.gmra.mrb[120].mxu1 %v22209_v33 }
0x29d6   : > { %28502 = vmatpush3.msra.mxu1 %v31444_v26  ;;  %28503 = vmatprep.mubr.msk.f32.mxu1 %vm29883_vm4, %v29882_v42  ;;  %v23043_v26 = vsel %vm1378_vm5, %v23040_v9, 0  ;;  %v23127_v30 = vsub.f32 %v23125_v20, %v23126_v46 }
0x29d7   : > { %28511 = vmatprep.subr.mxu1 %v29882_v42  ;;  %v23113_v10 = vand.u32 4294901760, %v23043_v26 }
0x29d8   : > { %v23128_v21 = vand.u32 4294901760, %v23127_v30 }
0x29d9   : > { %v23114_v15 = vsub.f32 %v23043_v26, %v23113_v10 }
0x2aa8   : > { %v22585_v23 = vpop.f32.mrb[120].mxu1 }
0x2aa9   : > { %v22590_v13 = vsel %vm1378_vm5, %v22585_v23, 0  ;;  %v28495_v63 = vpop.f32.mrb[121].mxu1 }
0x2aaa   : > { %v22658_v18 = vand.u32 4294901760, %v22590_v13 }
0x2aac   : > { %v22659_v14 = vsub.f32 %v22590_v13, %v22658_v18  ;;  %28504 = vmatmul.mubr.f32.vlgmr.msra.gmra.mrb[122].mxu1 %v22658_v18 }
0x2aad   : > { %28512 = vmatpush3.msra.mxu1 %v31432_v44  ;;  %28513 = vmatprep.mubr.msk.f32.mxu1 %vm29883_vm4, %v29882_v42 }
0x2aae   : > { %v22660_v36 = vand.u32 4294901760, %v22659_v14  ;;  %28521 = vmatprep.subr.mxu1 %v29882_v42 }
0x2ab0   : > { %v22661_v19 = vsub.f32 %v22659_v14, %v22660_v36  ;;  %28514 = vmatmul.mubr.f32.vlgmr.msra.gmra.mrb[124].mxu1 %v22660_v36 }
0x2ab1   : > { %28522 = vmatpush3.msra.mxu1 %v31432_v44  ;;  %28523 = vmatprep.mubr.msk.f32.mxu1 %vm29883_vm4, %v29882_v42  ;;  %v23115_v44 = vand.u32 4294901760, %v23114_v15 }
0x2ab2   : > { %v22662_v32 = vand.u32 4294901760, %v22661_v19  ;;  %28556 = vmatprep.subr.mxu1 %v29882_v42 }
0x2ab4   : > { %28499 = vmatmul.mubr.f32.vlgmr.msra.gmra.mrb[116].mxu0 %v22662_v32  ;;  %28524 = vmatmul.mubr.f32.vlgmr.msra.gmra.mrb[126].mxu1 %v22658_v18 }
0x2ab5   : > { %28557 = vmatpush3.msra.mxu1 %v31798_v29  ;;  %28507 = vmatpush3.msra.mxu0 %v31435_v22  ;;  %v23116_v22 = vsub.f32 %v23114_v15, %v23115_v44 }
0x2ab6   : > { %28508 = vmatprep.mubr.msk.f32.mxu0 %vm29883_vm4, %v29882_v42  ;;  %28516 = vmatprep.subr.mxu0 %v29882_v42 }
0x2ab7   : > { %28558 = vmatprep.mubr.msk.f32.mxu1 %vm29883_vm4, %v29882_v42  ;;  %28561 = vmatprep.subr.mxu1 %v29882_v42  ;;  %v23117_v61 = vand.u32 4294901760, %v23116_v22 }
0x2ab8   : > { %28509 = vmatmul.mubr.f32.vlgmr.msra.gmra.mrb[118].mxu0 %v22659_v14 }
0x2ab9   : > { %28517 = vmatpush3.msra.mxu0 %v31440_v2  ;;  %28518 = vmatprep.mubr.msk.f32.mxu0 %vm29883_vm4, %v29882_v42 }
0x2aba   : > { %28526 = vmatprep.subr.mxu0 %v29882_v42 }
0x2abc   : > { %28519 = vmatmul.mubr.f32.vlgmr.msra.gmra.mrb[120].mxu0 %v22658_v18  ;;  %v23587_v18 = vsub.f32 %v31791_v34, %v31798_v29 }
0x2abd   : > { %28528 = vmatprep.mubr.msk.f32.mxu0 %vm29883_vm4, %v29882_v42 }
0x2abe   : > { %v23588_v36 = vand.u32 4294901760, %v23587_v18 }
0x2ac0   : > { %28527 = vmatpush3.xpose.msra.mxu0 %v23048_v11 }
0x2ac1   : > { %28531 = vmatprep.subr.mxu0 %v29882_v42 }
0x2ac3   : > { %28529 = vmatmul.mubr.f32.vlgmr.msra.gmra.mrb[122].mxu0 %v23117_v61  ;;  %v31877_v61 = vld [vmem:[#allocation12 + $0x1] ss:$0 sm:$0xff] }
0x2ac4   : > { %28532 = vmatpush3.xpose.msra.mxu0 %v23128_v21  ;;  %28533 = vmatprep.mubr.msk.f32.mxu0 %vm29883_vm4, %v29882_v42 }
0x2ac5   : > { %28536 = vmatprep.subr.mxu0 %v29882_v42 }
0x2acb   : > { %28534 = vmatmul.mubr.f32.vlgmr.msra.gmra.mrb[122].mxu0 %v23113_v10 }
0x2acc   : > { %28537 = vmatpush3.xpose.msra.mxu0 %v23125_v20  ;;  %28538 = vmatprep.mubr.msk.f32.mxu0 %vm29883_vm4, %v29882_v42 }
0x2acd   : > { %28541 = vmatprep.subr.mxu0 %v29882_v42 }
0x2ad3   : > { %28539 = vmatmul.mubr.f32.vlgmr.msra.gmra.mrb[122].mxu0 %v23114_v15 }
0x2ad4   : > { %28542 = vmatpush3.xpose.msra.mxu0 %v23048_v11  ;;  %28543 = vmatprep.mubr.msk.f32.mxu0 %vm29883_vm4, %v29882_v42 }
0x2ad5   : > { %28546 = vmatprep.subr.mxu0 %v29882_v42 }
0x2adb   : > { %28544 = vmatmul.mubr.f32.vlgmr.msra.gmra.mrb[122].mxu0 %v23115_v44 }
0x2adc   : > { %28547 = vmatpush3.xpose.msra.mxu0 %v23126_v46  ;;  %28548 = vmatprep.mubr.msk.f32.mxu0 %vm29883_vm4, %v29882_v42 }
0x2add   : > { %28551 = vmatprep.subr.mxu0 %v29882_v42 }
0x2ae3   : > { %28549 = vmatmul.mubr.f32.vlgmr.msra.gmra.mrb[122].mxu0 %v23113_v10 }
0x2ae4   : > { %28552 = vmatpush3.xpose.msra.mxu0 %v23048_v11  ;;  %28553 = vmatprep.mubr.msk.f32.mxu0 %vm29883_vm4, %v29882_v42 }
0x2ae5   : > { %28586 = vmatprep.subr.mxu0 %v29882_v42 }
0x2aeb   : > { %28554 = vmatmul.mubr.f32.vlgmr.msra.gmra.mrb[122].mxu0 %v23113_v10  ;;  %v23589_v10 = vsub.f32 %v23587_v18, %v23588_v36 }
0x2aec   : > { %28587 = vmatpush3.msra.mxu0 %v31530_v47  ;;  %28588 = vmatprep.mubr.msk.f32.mxu0 %vm29883_vm4, %v29882_v42 }
0x2aed   : > { %28596 = vmatprep.subr.mxu0 %v29882_v42  ;;  %v23590_v15 = vand.u32 4294901760, %v23589_v10 }
0x2b7f   : > { %v22740_v2 = vpop.f32.mrb[122].mxu1 }
0x2b80   : > { %v28505_v54 = vpop.f32.mrb[123].mxu1 }
0x2b83   : > { %v22888_v48 = vpop.f32.mrb[124].mxu1 }
0x2b84   : > { %v28515_v24 = vpop.f32.mrb[125].mxu1 }
0x2b87   : > { %v22664_v50 = vpop.f32.mrb[116].mxu0  ;;  %v23034_v5 = vpop.f32.mrb[126].mxu1 }
0x2b88   : > { %v22741_v31 = vadd.f32 %v22740_v2, %v22664_v50  ;;  %v28500_v49 = vpop.f32.mrb[117].mxu0  ;;  %v28525_v27 = vpop.f32.mrb[127].mxu1 }
0x2b8b   : > { %v22814_v60 = vpop.f32.mrb[118].mxu0 }
0x2b8c   : > { %v22815_v52 = vadd.f32 %v22814_v60, %v22741_v31  ;;  %v28510_v35 = vpop.f32.mrb[119].mxu0 }
0x2b8e   : > { %v22889_v37 = vadd.f32 %v22888_v48, %v22815_v52 }
0x2b8f   : > { %v22962_v41 = vpop.f32.mrb[120].mxu0 }
0x2b90   : > { %v22963_v25 = vadd.f32 %v22962_v41, %v22889_v37  ;;  %v28520_v16 = vpop.f32.mrb[121].mxu0 }
0x2b92   : > { %v23035_v3 = vadd.f32 %v23034_v5, %v22963_v25 }
0x2b94   : > { %v31835_v39 = vadd.f32 %v23035_v3, %v31754_v28  ;;  %v24416_v28 = vsel %vm766_vm3, %v31844_v62, 0.0 }
0x2bbe   : > { %v23489_v57 = vpop.f32.mrb[122].mxu0 }
0x2bbf   : > { %v23493_v45 = vmul.f32 0.35355338, %v23489_v57  ;;  %v28555_v33 = vpop.f32.mrb[123].mxu0 }
0x2bc1   : > { %v23494_v4 = vadd.f32 %v23493_v45, %v30382_v0 }
0x2bc3   : > { %v23495_v43 = vmul.f32 1.442695, %v23494_v4 }
0x2bc5   : > { %29581 = vpow2.f32 %v23495_v43 }
0x2bcf   : > { %v29582_v40 = vpop.eup %29581 }
0x2bd0   : > { %v23497_v17 = vsel %vm1378_vm5, %v29582_v40, 0.0 }
0x2bd1   : > { %23498 = vadd.xlane.f32.xlu0 %v23497_v17 }
0x2bd5   : > { %24417 = vadd.xlane.f32.xlu0 %v24416_v28 }
0x2c5e   : > { %v23499_v9 = vpop.xlane.xlu0 %23498 }
0x2c5f   : > { %29583 = vrcp.f32 %v23499_v9 }
0x2c62   : > { %v24418_v0 = vpop.xlane.xlu0 %24417 }
0x2c63   : > { %v24422_v23 = vmul.f32 0.03125, %v24418_v0 }
0x2c65   : > { %v24424_v13 = vsub.f32 %v31844_v62, %v24422_v23 }
0x2c67   : > { %v24426_v53 = vmul.f32 %v24424_v13, %v24424_v13 }
0x2c69   : > { %v29584_v38 = vpop.eup %29583  ;;  %v24428_v63 = vsel %vm766_vm3, %v24426_v53, 0.0 }
0x2c6a   : > { %v23502_v56 = vmul.f32 %v29584_v38, %v29582_v40  ;;  %24429 = vadd.xlane.f32.xlu1 %v24428_v63 }
0x2c6c   : > { %v23507_v14 = vsel %vm1378_vm5, %v23502_v56, 0 }
0x2c6d   : > { %v23575_v26 = vand.u32 4294901760, %v23507_v14 }
0x2c6f   : > { %v23576_v1 = vsub.f32 %v23507_v14, %v23575_v26 }
0x2c71   : > { %v23577_v19 = vand.u32 4294901760, %v23576_v1 }
0x2c73   : > { %v23578_v11 = vsub.f32 %v23576_v1, %v23577_v19 }
0x2c75   : > { %v23579_v32 = vand.u32 4294901760, %v23578_v11 }
0x2c77   : > { %28559 = vmatmul.mubr.f32.vlgmr.msra.gmra.mrb[128].mxu1 %v23579_v32 }
0x2c78   : > { %28562 = vmatpush3.msra.mxu1 %v23590_v15  ;;  %28563 = vmatprep.mubr.msk.f32.mxu1 %vm29883_vm4, %v29882_v42 }
0x2c79   : > { %28566 = vmatprep.subr.mxu1 %v29882_v42 }
0x2c7f   : > { %28564 = vmatmul.mubr.f32.vlgmr.msra.gmra.mrb[128].mxu1 %v23575_v26 }
0x2c80   : > { %28567 = vmatpush3.msra.mxu1 %v23587_v18  ;;  %28568 = vmatprep.mubr.msk.f32.mxu1 %vm29883_vm4, %v29882_v42 }
0x2c81   : > { %28571 = vmatprep.subr.mxu1 %v29882_v42 }
0x2c87   : > { %28569 = vmatmul.mubr.f32.vlgmr.msra.gmra.mrb[128].mxu1 %v23576_v1  ;;  %v26208_v1 = vld [vmem:[%s32056_s14 + $0x38] sm:$0xff] }
0x2c88   : > { %28572 = vmatpush3.msra.mxu1 %v31798_v29  ;;  %28573 = vmatprep.mubr.msk.f32.mxu1 %vm29883_vm4, %v29882_v42  ;;  %v24475_v10 = vand.u32 4294901760, %v26208_v1 }
0x2c89   : > { %28576 = vmatprep.subr.mxu1 %v29882_v42 }
0x2c8f   : > { %28574 = vmatmul.mubr.f32.vlgmr.msra.gmra.mrb[128].mxu1 %v23577_v19 }
0x2c90   : > { %28577 = vmatpush3.msra.mxu1 %v23588_v36  ;;  %28578 = vmatprep.mubr.msk.f32.mxu1 %vm29883_vm4, %v29882_v42 }
0x2c91   : > { %28581 = vmatprep.subr.mxu1 %v29882_v42 }
0x2c97   : > { %28579 = vmatmul.mubr.f32.vlgmr.msra.gmra.mrb[128].mxu1 %v23575_v26 }
0x2c98   : > { %28582 = vmatpush3.msra.mxu1 %v31798_v29  ;;  %28583 = vmatprep.mubr.msk.f32.mxu1 %vm29883_vm4, %v29882_v42  ;;  %v31874_v29 = vld [vmem:[#allocation11 + $0x1] ss:$0 sm:$0xff] }
0x2c99   : > { %28591 = vmatprep.subr.mxu1 %v29882_v42 }
0x2c9f   : > { %28584 = vmatmul.mubr.f32.vlgmr.msra.gmra.mrb[128].mxu1 %v23575_v26 }
0x2ca0   : > { %28592 = vmatpush3.msra.mxu1 %v31542_v58  ;;  %28593 = vmatprep.mubr.msk.f32.mxu1 %vm29883_vm4, %v29882_v42 }
0x2ca1   : > { %28601 = vmatprep.subr.mxu1 %v29882_v42 }
0x2cf7   : > { %v24430_v34 = vpop.xlane.xlu1 %24429 }
0x2cf8   : > { %v24434_v20 = vmul.f32 0.03125, %v24430_v34 }
0x2cfa   : > { %v24436_v44 = vadd.f32 1e-05, %v24434_v20 }
0x2cfc   : > { %29585 = vrsqrt.f32 %v24436_v44 }
0x2d06   : > { %v29586_v46 = vpop.eup %29585 }
0x2d07   : > { %v24440_v22 = vmul.f32 %v29586_v46, %v24424_v13 }
0x2d09   : > { %v24446_v30 = vmul.f32 %v31874_v29, %v24440_v22 }
0x2d0b   : > { %v24452_v21 = vadd.f32 %v31877_v61, %v24446_v30 }
0x2d0d   : > { %v24460_v2 = vsel %vm766_vm3, %v24452_v21, 0  ;;  %v24577_v21 = vsub.f32 %v26208_v1, %v24475_v10 }
0x2d0e   : > { %v31882_v50 = vand.u32 4294901760, %v24460_v2 }
0x2d10   : > { %v31889_v49 = vsub.f32 %v24460_v2, %v31882_v50 }
0x2d12   : > { %v24536_v52 = vand.u32 4294901760, %v31889_v49 }
0x2d72   : > { %v23951_v58 = vpop.f32.mrb[128].mxu1 }
0x2d73   : > { %v23956_v54 = vsel %vm1378_vm5, %v23951_v58, 0  ;;  %v28585_v48 = vpop.f32.mrb[129].mxu1 }
0x2d74   : > { %v24024_v24 = vand.u32 4294901760, %v23956_v54  ;;  %v24578_v48 = vand.u32 4294901760, %v24577_v21 }
0x2d76   : > { %v24025_v5 = vsub.f32 %v23956_v54, %v24024_v24  ;;  %28594 = vmatmul.mubr.f32.vlgmr.msra.gmra.mrb[130].mxu1 %v24024_v24 }
0x2d77   : > { %28602 = vmatpush3.msra.mxu1 %v31530_v47  ;;  %28603 = vmatprep.mubr.msk.f32.mxu1 %vm29883_vm4, %v29882_v42 }
0x2d78   : > { %v24026_v31 = vand.u32 4294901760, %v24025_v5  ;;  %28611 = vmatprep.subr.mxu1 %v29882_v42 }
0x2d7a   : > { %v24027_v27 = vsub.f32 %v24025_v5, %v24026_v31  ;;  %28604 = vmatmul.mubr.f32.vlgmr.msra.gmra.mrb[132].mxu1 %v24026_v31  ;;  %v24579_v31 = vsub.f32 %v24577_v21, %v24578_v48 }
0x2d7b   : > { %28612 = vmatpush3.msra.mxu1 %v31530_v47  ;;  %28613 = vmatprep.mubr.msk.f32.mxu1 %vm29883_vm4, %v29882_v42  ;;  %v24537_v47 = vsub.f32 %v31889_v49, %v24536_v52 }
0x2d7c   : > { %v24028_v60 = vand.u32 4294901760, %v24027_v27 }
0x2d7d   : > { %v24538_v35 = vand.u32 4294901760, %v24537_v47 }
0x2d7e   : > { %28589 = vmatmul.mubr.f32.vlgmr.msra.gmra.mrb[124].mxu0 %v24028_v60  ;;  %28614 = vmatmul.mubr.f32.vlgmr.msra.gmra.mrb[134].mxu1 %v24024_v24  ;;  %v24580_v60 = vand.u32 4294901760, %v24579_v31 }
0x2d7f   : > { %28597 = vmatpush3.msra.mxu0 %v31533_v59  ;;  %28598 = vmatprep.mubr.msk.f32.mxu0 %vm29883_vm4, %v29882_v42 }
0x2d80   : > { %28606 = vmatprep.subr.mxu0 %v29882_v42  ;;  %28690 = vmatprep.mubr.msk.f32.mxu1 %vm29883_vm4, %v29882_v42 }
0x2d82   : > { %28599 = vmatmul.mubr.f32.vlgmr.msra.gmra.mrb[126].mxu0 %v24025_v5 }
0x2d83   : > { %28607 = vmatpush3.msra.mxu0 %v31538_v51  ;;  %28608 = vmatprep.mubr.msk.f32.mxu0 %vm29883_vm4, %v29882_v42 }
0x2d86   : > { %28609 = vmatmul.mubr.f32.vlgmr.msra.gmra.mrb[128].mxu0 %v24024_v24 }
0x2d87   : > { %28624 = vmatprep.mubr.f32.mxu0 %v24538_v35 }
0x2e49   : > { %v24106_v59 = vpop.f32.mrb[130].mxu1 }
0x2e4a   : > { %v28595_v37 = vpop.f32.mrb[131].mxu1 }
0x2e4d   : > { %v24254_v41 = vpop.f32.mrb[132].mxu1 }
0x2e4e   : > { %v28605_v25 = vpop.f32.mrb[133].mxu1 }
0x2e51   : > { %v24030_v16 = vpop.f32.mrb[124].mxu0  ;;  %v24400_v3 = vpop.f32.mrb[134].mxu1 }
0x2e52   : > { %v24107_v57 = vadd.f32 %v24106_v59, %v24030_v16  ;;  %v28590_v45 = vpop.f32.mrb[125].mxu0  ;;  %v28615_v33 = vpop.f32.mrb[135].mxu1 }
0x2e55   : > { %v24180_v4 = vpop.f32.mrb[126].mxu0 }
0x2e56   : > { %v24181_v43 = vadd.f32 %v24180_v4, %v24107_v57  ;;  %v28600_v6 = vpop.f32.mrb[127].mxu0 }
0x2e58   : > { %v24255_v40 = vadd.f32 %v24254_v41, %v24181_v43 }
0x2e59   : > { %v24328_v51 = vpop.f32.mrb[128].mxu0 }
0x2e5a   : > { %v24329_v17 = vadd.f32 %v24328_v51, %v24255_v40  ;;  %v28610_v28 = vpop.f32.mrb[129].mxu0 }
0x2e5c   : > { %v24401_v9 = vadd.f32 %v24400_v3, %v24329_v17 }
0x2e5e   : > { %v24404_v0 = vadd.f32 %v24401_v9, %v31835_v39  ;;  %v26205_v39 = vld [vmem:[%s32056_s14 + $0x20] sm:$0xff] }
0x2e5f   : > { %v24466_v26 = vand.u32 4294901760, %v26205_v39 }
0x2e60   : > { %v24406_v23 = vadd.f32 %v24404_v0, %v31130_v55  ;;  %v26206_v55 = vld [vmem:[%s32056_s14 + $0x28] sm:$0xff] }
0x2e61   : > { %v24469_v36 = vand.u32 4294901760, %v26206_v55  ;;  %v24556_v15 = vsub.f32 %v26205_v39, %v24466_v26 }
0x2e62   : > { %v31910_v13 = vadd.f32 %v31840_v12, %v24406_v23  ;;  %v26207_v12 = vld [vmem:[%s32056_s14 + $0x30] sm:$0xff] }
0x2e63   : > { %v24472_v19 = vand.u32 4294901760, %v26207_v12  ;;  %v31928_v11 = vpack.c.bf16 %v24469_v36, %v24466_v26  ;;  %v24563_v34 = vsub.f32 %v26206_v55, %v24469_v36  ;;  %v24557_v20 = vand.u32 4294901760, %v24556_v15 }
0x2e64   : > { %v24419_v53 = vsel %vm766_vm3, %v31910_v13, 0.0 }
0x2e65   : > { %24420 = vadd.xlane.f32.xlu0 %v24419_v53  ;;  %v31930_v32 = vpack.c.bf16 %v24475_v10, %v24472_v19  ;;  %28923 = vmatprep.subr.bf16.mxu0 %v31928_v11  ;;  %v24564_v44 = vand.u32 4294901760, %v24563_v34  ;;  %v24558_v46 = vsub.f32 %v24556_v15, %v24557_v20  ;;  %v24570_v30 = vsub.f32 %v26207_v12, %v24472_v19 }
0x2e66   : > { %28925 = vmatpush3.bf16.msra.mxu0 %v31928_v11  ;;  %v28938_v35 = vpack.c.bf16 %v24563_v34, %v24556_v15 }
0x2e67   : > { %28927 = vmatprep.subr.bf16.mxu0 %v31930_v32  ;;  %v24565_v22 = vsub.f32 %v24563_v34, %v24564_v44  ;;  %v24559_v58 = vand.u32 4294901760, %v24558_v46  ;;  %v24571_v54 = vand.u32 4294901760, %v24570_v30  ;;  %v28942_v59 = vpack.c.bf16 %v24577_v21, %v24570_v30  ;;  %v25052_v46 = vld [vmem:[%s32060_s18 + $0x10] sm:$0xff] }
0x2e68   : > { %v28954_v37 = vpack.c.bf16 %v24564_v44, %v24557_v20  ;;  %v25050_v20 = vld [vmem:[%s32060_s18] sm:$0xff]  ;;  %v25051_v44 = vld [vmem:[%s32060_s18 + $0x8] sm:$0xff] }
0x2e69   : > { %v24566_v2 = vand.u32 4294901760, %v24565_v22  ;;  %v24572_v5 = vsub.f32 %v24570_v30, %v24571_v54  ;;  %v28958_v41 = vpack.c.bf16 %v24578_v48, %v24571_v54  ;;  %v29895_v22 = vmov 0.0|0.0  }
0x2e6a   : > { %28929 = vmatpush3.bf16.msra.mxu0 %v31930_v32  ;;  %28970 = vmatprep.subr.bf16.mxu1 %v29895_v22  ;;  %v25065_v30 = vand.u32 4294901760, %v25050_v20  ;;  %v25068_v21 = vand.u32 4294901760, %v25051_v44 }
0x2e6b   : > { %v28930_v24 = vpack.c.bf16 %v24566_v2, %v24559_v58  ;;  %v24573_v27 = vand.u32 4294901760, %v24572_v5  ;;  %v25053_v58 = vld [vmem:[%s32060_s18 + $0x18] sm:$0xff]  ;;  %v25071_v2 = vand.u32 4294901760, %v25052_v46 }
0x2e6c   : > { %v25074_v54 = vand.u32 4294901760, %v25053_v58  ;;  %v31981_v48 = vpack.c.bf16 %v25068_v21, %v25065_v30  ;;  %v25152_v5 = vsub.f32 %v25051_v44, %v25068_v21 }
0x2e6d   : > { %28931 = vmatprep.subr.bf16.mxu0 %v28930_v24  ;;  %v28934_v47 = vpack.c.bf16 %v24580_v60, %v24573_v27  ;;  %v25159_v31 = vsub.f32 %v25052_v46, %v25071_v2 }
0x2e6e   : > { %v25166_v27 = vsub.f32 %v25053_v58, %v25074_v54  ;;  %28972 = vmatpush3.bf16.msra.mxu1 %v31981_v48  ;;  %v31984_v60 = vpack.c.bf16 %v25074_v54, %v25071_v2 }
0x2e6f   : > { %28973 = vmatprep.subr.bf16.mxu1 %v29895_v22 }
0x2e72   : > { %28975 = vmatpush3.bf16.msra.mxu1 %v31984_v60 }
0x2e73   : > { %28976 = vmatprep.subr.bf16.mxu1 %v29895_v22 }
0x2ef2   : > { %v24421_v38 = vpop.xlane.xlu0 %24420 }
0x2ef3   : > { %v24423_v63 = vmul.f32 0.03125, %v24421_v38 }
0x2ef5   : > { %v24425_v18 = vsub.f32 %v31910_v13, %v24423_v63 }
0x2ef7   : > { %v24427_v56 = vmul.f32 %v24425_v18, %v24425_v18 }
0x2ef9   : > { %v24431_v14 = vsel %vm766_vm3, %v24427_v56, 0.0 }
0x2efa   : > { %24432 = vadd.xlane.f32.xlu0 %v24431_v14 }
0x2f87   : > { %v24433_v25 = vpop.xlane.xlu0 %24432 }
0x2f88   : > { %v24435_v16 = vmul.f32 0.03125, %v24433_v25 }
0x2f8a   : > { %v24437_v3 = vadd.f32 1e-05, %v24435_v16  ;;  %v25160_v16 = vand.u32 4294901760, %v25159_v31 }
0x2f8c   : > { %29587 = vrsqrt.f32 %v24437_v3  ;;  %v25167_v3 = vand.u32 4294901760, %v25166_v27 }
0x2f96   : > { %v29588_v57 = vpop.eup %29587 }
0x2f97   : > { %v24441_v45 = vmul.f32 %v29588_v57, %v24425_v18 }
0x2f99   : > { %v24447_v33 = vmul.f32 %v31874_v29, %v24441_v45  ;;  %v25161_v45 = vsub.f32 %v25159_v31, %v25160_v16 }
0x2f9b   : > { %v24453_v4 = vadd.f32 %v31877_v61, %v24447_v33  ;;  %v26209_v61 = vld [vmem:[#allocation14 + $0x1] ss:$0 sm:$0xff]  ;;  %v25168_v33 = vsub.f32 %v25166_v27, %v25167_v3 }
0x2f9d   : > { %v24463_v43 = vsel %vm766_vm3, %v24453_v4, 0  ;;  %v25162_v4 = vand.u32 4294901760, %v25161_v45 }
0x2f9e   : > { %v24544_v6 = vand.u32 4294901760, %v24463_v43 }
0x2fa0   : > { %v24545_v40 = vsub.f32 %v24463_v43, %v24544_v6  ;;  %v25169_v43 = vand.u32 4294901760, %v25168_v33 }
0x2fa2   : > { %v24546_v51 = vand.u32 4294901760, %v24545_v40 }
0x2fa4   : > { %v24547_v17 = vsub.f32 %v24545_v40, %v24546_v51 }
0x2fa6   : > { %v24548_v28 = vand.u32 4294901760, %v24547_v17 }
0x2fa8   : > { %28625 = vmatmul.mubr.f32.vlgmr.msra.gmra.mrb[130].mxu0 %v24548_v28  ;;  %v28998_v28 = vpack.c.bf16 %v25167_v3, %v25160_v16 }
0x2fa9   : > { %28933 = vmatpush3.bf16.msra.mxu0 %v28930_v24  ;;  %28635 = vmatprep.mubr.f32.mxu0 %v31882_v50  ;;  %v25145_v24 = vsub.f32 %v25050_v20, %v25065_v30  ;;  %v26213_v30 = vld [vmem:[%s32112_s24] ss:$0 sm:$0xff] }
0x2faa   : > { %28935 = vmatprep.subr.bf16.mxu0 %v28934_v47 }
0x2fad   : > { %28937 = vmatpush3.bf16.msra.mxu0 %v28934_v47  ;;  %v25146_v47 = vand.u32 4294901760, %v25145_v24 }
0x2fae   : > { %28939 = vmatprep.subr.bf16.mxu0 %v28938_v35 }
0x2fb0   : > { %28636 = vmatmul.mubr.f32.vlgmr.msra.gmra.mrb[130].mxu0 %v24544_v6 }
0x2fb1   : > { %28941 = vmatpush3.bf16.msra.mxu0 %v28938_v35  ;;  %28646 = vmatprep.mubr.f32.mxu0 %v31889_v49  ;;  %v25153_v35 = vand.u32 4294901760, %v25152_v5 }
0x2fb2   : > { %28943 = vmatprep.subr.bf16.mxu0 %v28942_v59 }
0x2fb3   : > { %v28995_v17 = vpack.c.bf16 %v25153_v35, %v25146_v47 }
0x2fb5   : > { %28945 = vmatpush3.bf16.msra.mxu0 %v28942_v59  ;;  %v25147_v59 = vsub.f32 %v25145_v24, %v25146_v47 }
0x2fb6   : > { %28947 = vmatprep.subr.bf16.mxu0 %v31928_v11 }
0x2fb8   : > { %28647 = vmatmul.mubr.f32.vlgmr.msra.gmra.mrb[130].mxu0 %v24545_v40  ;;  %v28983_v40 = vpack.c.bf16 %v25152_v5, %v25145_v24 }
0x2fb9   : > { %28949 = vmatpush3.bf16.msra.mxu0 %v31928_v11  ;;  %28657 = vmatprep.mubr.f32.mxu0 %v24536_v52 }
0x2fba   : > { %28951 = vmatprep.subr.bf16.mxu0 %v31930_v32 }
0x2fbd   : > { %28953 = vmatpush3.bf16.msra.mxu0 %v31930_v32 }
0x2fbe   : > { %28955 = vmatprep.subr.bf16.mxu0 %v28954_v37 }
0x2fc0   : > { %28658 = vmatmul.mubr.f32.vlgmr.msra.gmra.mrb[130].mxu0 %v24546_v51  ;;  %v28986_v51 = vpack.c.bf16 %v25166_v27, %v25159_v31 }
0x2fc1   : > { %28957 = vmatpush3.bf16.msra.mxu0 %v28954_v37  ;;  %28668 = vmatprep.mubr.f32.mxu0 %v31882_v50  ;;  %v25154_v37 = vsub.f32 %v25152_v5, %v25153_v35 }
0x2fc2   : > { %28959 = vmatprep.subr.bf16.mxu0 %v28958_v41 }
0x2fc3   : > { %v25155_v25 = vand.u32 4294901760, %v25154_v37 }
0x2fc5   : > { %28961 = vmatpush3.bf16.msra.mxu0 %v28958_v41  ;;  %v25148_v41 = vand.u32 4294901760, %v25147_v59 }
0x2fc6   : > { %28963 = vmatprep.subr.bf16.mxu0 %v31928_v11 }
0x2fc7   : > { %v28977_v57 = vpack.c.bf16 %v25155_v25, %v25148_v41 }
0x2fc8   : > { %28669 = vmatmul.mubr.f32.vlgmr.msra.gmra.mrb[130].mxu0 %v24544_v6 }
0x2fc9   : > { %28965 = vmatpush3.bf16.msra.mxu0 %v31928_v11  ;;  %28679 = vmatprep.mubr.f32.mxu0 %v31882_v50 }
0x2fca   : > { %28967 = vmatprep.subr.bf16.mxu0 %v31930_v32 }
0x2fcd   : > { %28969 = vmatpush3.bf16.msra.mxu0 %v31930_v32 }
0x2fce   : > { %28748 = vmatprep.subr.mxu0 %v29882_v42 }
0x2fd0   : > { %28680 = vmatmul.mubr.f32.vlgmr.msra.gmra.mrb[130].mxu0 %v24544_v6  ;;  %v28980_v6 = vpack.c.bf16 %v25169_v43, %v25162_v4 }
0x2fd1   : > { %28750 = vmatprep.mubr.msk.f32.mxu0 %vm29883_vm4, %v29882_v42 }
0x30a3   : > { %v28681_v29 = vpop.f32.mrb[130].mxu0 }
0x30a4   : > { %v24994_v49 = vadd.f32 %v28681_v29, %v31910_v13  ;;  %v24983_v52 = vpop.f32.mrb[131].mxu0 }
0x30a5   : > { %v24993_v9 = vadd.f32 %v24983_v52, %v31844_v62 }
0x30a6   : > { %v25001_v0 = vadd.f32 %v26209_v61, %v24994_v49 }
0x30a7   : > { %v25000_v23 = vadd.f32 %v26209_v61, %v24993_v9  ;;  %v26210_v9 = vld [vmem:[%s32110_s4] ss:$0 sm:$0xff] }
0x30a8   : > { %v25010_v50 = vsel %vm757_vm2, %v25001_v0, 0.0 }
0x30a9   : > { %v25011_v53 = vsel %vm766_vm3, %v25010_v50, 0.0  ;;  %v25002_v38 = vsel %vm757_vm2, %v25000_v23, 0.0  ;;  %v26211_v23 = vld [vmem:[#allocation15] ss:$0 sm:$0xff] }
0x30aa   : > { %v25012_v63 = vrot.slane %v25011_v53, 4  ;;  %v25003_v18 = vsel %vm766_vm3, %v25002_v38, 0.0 }
0x30ab   : > { %v25004_v56 = vrot.slane %v25003_v18, 4 }
0x30ac   : > { %v25013_v13 = vadd.f32 %v25012_v63, %v25011_v53 }
0x30ad   : > { %v25005_v14 = vadd.f32 %v25004_v56, %v25003_v18 }
0x30ae   : > { %v25014_v39 = vrot.slane %v25013_v13, 2 }
0x30af   : > { %v25006_v62 = vrot.slane %v25005_v14, 2 }
0x30b0   : > { %v25015_v55 = vadd.f32 %v25014_v39, %v25013_v13  ;;  %v26212_v39 = vld [vmem:[#allocation17] ss:$0 sm:$0xff] }
0x30b1   : > { %v25007_v12 = vadd.f32 %v25006_v62, %v25005_v14 }
0x30b2   : > { %v25016_v26 = vrot.slane %v25015_v55, 1 }
0x30b3   : > { %v25008_v36 = vrot.slane %v25007_v12, 1 }
0x30b4   : > { %v25017_v1 = vadd.f32 %v25016_v26, %v25015_v55  ;;  %v25552_v26 = vld [vmem:[%s32111_s5] sm:$0x3f] }
0x30b5   : > { %v25009_v19 = vadd.f32 %v25008_v36, %v25007_v12  ;;  %v25568_v36 = vsel %vm25566_vm9, %v25552_v26, 0 }
0x30b7   : > { %v25019_v10 = vsel %vm25018_vm7, %v25009_v19, %v25017_v1  ;;  %v25571_v1 = vand.u32 4294901760, %v25568_v36 }
0x30b8   : > { %v25023_v7 = vsel %vm25022_vm8, %v25019_v10, 0.0 }
0x30b9   : > { %25024 = vadd.xlane.f32.xlu0 %v25023_v7  ;;  %28749 = vmatpush3.msra.mxu0 %v25571_v1 }
0x30ba   : > { %28753 = vmatprep.subr.mxu0 %v29882_v42 }
0x3146   : > { %v25025_v8 = vpop.xlane.xlu0 %25024 }
0x3147   : > { %v25026_v11 = vmul.f32 0.03125, %v25025_v8 }
0x3149   : > { %v25027_v32 = vsub.f32 %v25019_v10, %v25026_v11  ;;  %v25648_v10 = vsub.f32 %v25568_v36, %v25571_v1 }
0x314b   : > { %v25028_v15 = vmul.f32 %v25027_v32, %v25027_v32  ;;  %v25649_v11 = vand.u32 4294901760, %v25648_v10 }
0x314d   : > { %v25029_v34 = vsel %vm25022_vm8, %v25028_v15, 0.0 }
0x314e   : > { %25030 = vadd.xlane.f32.xlu0 %v25029_v34  ;;  %v25650_v34 = vsub.f32 %v25648_v10, %v25649_v11 }
0x3150   : > { %v25651_v46 = vand.u32 4294901760, %v25650_v34 }
0x31db   : > { %v25031_v29 = vpop.xlane.xlu0 %25030 }
0x31dc   : > { %v25032_v61 = vmul.f32 0.03125, %v25031_v29 }
0x31de   : > { %v25033_v49 = vadd.f32 1e-05, %v25032_v61 }
0x31e0   : > { %29589 = vrsqrt.f32 %v25033_v49 }
0x31ea   : > { %v29590_v52 = vpop.eup %29589 }
0x31eb   : > { %v25035_v0 = vmul.f32 %v29590_v52, %v25027_v32 }
0x31ed   : > { %v25042_v50 = vmul.f32 %v26210_v9, %v25035_v0 }
0x31ef   : > { %v25049_v53 = vadd.f32 %v26211_v23, %v25042_v50 }
0x31f1   : > { %v25062_v38 = vsel %vm766_vm3, %v25049_v53, 0 }
0x31f2   : > { %v25133_v63 = vand.u32 4294901760, %v25062_v38 }
0x31f4   : > { %v25134_v18 = vsub.f32 %v25062_v38, %v25133_v63 }
0x31f6   : > { %v25135_v56 = vand.u32 4294901760, %v25134_v18 }
0x31f8   : > { %v25136_v13 = vsub.f32 %v25134_v18, %v25135_v56 }
0x31fa   : > { %v25137_v14 = vand.u32 4294901760, %v25136_v13 }
0x31fc   : > { %28691 = vmatmul.mubr.f32.vlgmr.msra.gmra.mrb[136].mxu1 %v25137_v14 }
0x31fd   : > { %28978 = vmatpush3.bf16.msra.mxu1 %v28977_v57  ;;  %28701 = vmatprep.mubr.msk.f32.mxu1 %vm29883_vm4, %v29882_v42 }
0x31fe   : > { %28979 = vmatprep.subr.bf16.mxu1 %v29895_v22 }
0x3201   : > { %28981 = vmatpush3.bf16.msra.mxu1 %v28980_v6 }
0x3202   : > { %28982 = vmatprep.subr.bf16.mxu1 %v29895_v22 }
0x3204   : > { %28702 = vmatmul.mubr.f32.vlgmr.msra.gmra.mrb[136].mxu1 %v25133_v63 }
0x3205   : > { %28984 = vmatpush3.bf16.msra.mxu1 %v28983_v40  ;;  %28712 = vmatprep.mubr.msk.f32.mxu1 %vm29883_vm4, %v29882_v42 }
0x3206   : > { %28985 = vmatprep.subr.bf16.mxu1 %v29895_v22 }
0x3209   : > { %28987 = vmatpush3.bf16.msra.mxu1 %v28986_v51 }
0x320a   : > { %28988 = vmatprep.subr.bf16.mxu1 %v29895_v22 }
0x320c   : > { %28713 = vmatmul.mubr.f32.vlgmr.msra.gmra.mrb[136].mxu1 %v25134_v18 }
0x320d   : > { %28990 = vmatpush3.bf16.msra.mxu1 %v31981_v48  ;;  %28723 = vmatprep.mubr.msk.f32.mxu1 %vm29883_vm4, %v29882_v42 }
0x320e   : > { %28991 = vmatprep.subr.bf16.mxu1 %v29895_v22 }
0x3211   : > { %28993 = vmatpush3.bf16.msra.mxu1 %v31984_v60 }
0x3212   : > { %28994 = vmatprep.subr.bf16.mxu1 %v29895_v22 }
0x3214   : > { %28724 = vmatmul.mubr.f32.vlgmr.msra.gmra.mrb[136].mxu1 %v25135_v56 }
0x3215   : > { %28996 = vmatpush3.bf16.msra.mxu1 %v28995_v17  ;;  %28734 = vmatprep.mubr.msk.f32.mxu1 %vm29883_vm4, %v29882_v42 }
0x3216   : > { %28997 = vmatprep.subr.bf16.mxu1 %v29895_v22 }
0x3219   : > { %28999 = vmatpush3.bf16.msra.mxu1 %v28998_v28 }
0x321a   : > { %29000 = vmatprep.subr.bf16.mxu1 %v29895_v22 }
0x321c   : > { %28735 = vmatmul.mubr.f32.vlgmr.msra.gmra.mrb[136].mxu1 %v25133_v63 }
0x321d   : > { %29002 = vmatpush3.bf16.msra.mxu1 %v31981_v48  ;;  %28745 = vmatprep.mubr.msk.f32.mxu1 %vm29883_vm4, %v29882_v42 }
0x321e   : > { %29003 = vmatprep.subr.bf16.mxu1 %v29895_v22 }
0x3221   : > { %29005 = vmatpush3.bf16.msra.mxu1 %v31984_v60 }
0x3224   : > { %28746 = vmatmul.mubr.f32.vlgmr.msra.gmra.mrb[136].mxu1 %v25133_v63 }
0x32f7   : > { %v25545_v62 = vpop.f32.mrb[136].mxu1 }
0x32f8   : > { %v29013_v55 = vadd.f32 %v26212_v39, %v25545_v62  ;;  %v28747_v12 = vpop.f32.mrb[137].mxu1 }
0x32fa   : > { %29591 = vtanh.f32 %v29013_v55 }
0x3304   : > { %v29592_v19 = vpop.eup %29591 }
0x3305   : > { %25551 = vst.msk [vmem:[%s30254_s27] sm:$0x3] %vm25550_vm10, %v29592_v19  ;;  %25561 = vrot.lane.b32.xlu0 %v29592_v19, %s29896_s3 }
0x3377   : > { %v25562_v7 = vpop.permute.xlu0 %25561 }
0x3378   : > { %v25564_v8 = vsel %vm25563_vm11, %v25562_v7, 0 }
0x3379   : > { %v25636_v32 = vand.u32 4294901760, %v25564_v8 }
0x337b   : > { %v25637_v15 = vsub.f32 %v25564_v8, %v25636_v32 }
0x337d   : > { %v25638_v20 = vand.u32 4294901760, %v25637_v15 }
0x337f   : > { %v25639_v44 = vsub.f32 %v25637_v15, %v25638_v20 }
0x3381   : > { %v25640_v22 = vand.u32 4294901760, %v25639_v44 }
0x3383   : > { %28751 = vmatmul.mubr.f32.vlgmr.msra.gmra.mrb[132].mxu0 %v25640_v22 }
0x3384   : > { %28754 = vmatpush3.msra.mxu0 %v25651_v46  ;;  %28755 = vmatprep.mubr.msk.f32.mxu0 %vm29883_vm4, %v29882_v42 }
0x3385   : > { %28758 = vmatprep.subr.mxu0 %v29882_v42 }
0x338b   : > { %28756 = vmatmul.mubr.f32.vlgmr.msra.gmra.mrb[132].mxu0 %v25636_v32 }
0x338c   : > { %28759 = vmatpush3.msra.mxu0 %v25648_v10  ;;  %28760 = vmatprep.mubr.msk.f32.mxu0 %vm29883_vm4, %v29882_v42 }
0x338d   : > { %28763 = vmatprep.subr.mxu0 %v29882_v42 }
0x3393   : > { %28761 = vmatmul.mubr.f32.vlgmr.msra.gmra.mrb[132].mxu0 %v25637_v15 }
0x3394   : > { %28764 = vmatpush3.msra.mxu0 %v25571_v1  ;;  %28765 = vmatprep.mubr.msk.f32.mxu0 %vm29883_vm4, %v29882_v42 }
0x3395   : > { %28768 = vmatprep.subr.mxu0 %v29882_v42 }
0x339b   : > { %28766 = vmatmul.mubr.f32.vlgmr.msra.gmra.mrb[132].mxu0 %v25638_v20 }
0x339c   : > { %28769 = vmatpush3.msra.mxu0 %v25649_v11  ;;  %28770 = vmatprep.mubr.msk.f32.mxu0 %vm29883_vm4, %v29882_v42 }
0x339d   : > { %28773 = vmatprep.subr.mxu0 %v29882_v42 }
0x33a3   : > { %28771 = vmatmul.mubr.f32.vlgmr.msra.gmra.mrb[132].mxu0 %v25636_v32 }
0x33a4   : > { %28774 = vmatpush3.msra.mxu0 %v25571_v1  ;;  %28775 = vmatprep.mubr.msk.f32.mxu0 %vm29883_vm4, %v29882_v42 }
0x33ab   : > { %28776 = vmatmul.mubr.f32.vlgmr.msra.gmra.mrb[132].mxu0 %v25636_v32 }
0x347e   : > { %v26012_v21 = vpop.f32.mrb[132].mxu0 }
0x347f   : > { %v29014_v58 = vadd.f32 %v26213_v30, %v26012_v21  ;;  %v28777_v2 = vpop.f32.mrb[133].mxu0 }
0x3481   : > { %26016 = vst.msk [vmem:[#allocation3] sm:$0x3] %vm25022_vm8, %v29014_v58 }
0x3482 PF: > { %s32113_s22 = sld [smem:[#allocation23_spill]] }
0x3488   : > { %s35_s1 = sadd.s32 1, %s32113_s22  }
0x3489   : > { %p32_p0 = scmp.ge.s32.totalorder %s35_s1, 6  }
0x348b   :  { %34 = sbr.rel (!%p32_p0) target bundleno = 13 (0xd), region = 174 }
0x3492   :  { %26036 = vsyncpa [#allocation5], 1 }
0x3493   :  { %26038 = vsyncpa [#allocation5 + $0x1], 1 }
0x3494   :  { %26039 = vsyncpa [#allocation7], 1 }
0x3495   :  { %26040 = vsyncpa [#allocation10], 1 }
0x3496   :  { %26041 = vsyncpa [#allocation13], 1 }
0x3497   :  { %26042 = vsyncpa [#allocation16], 1 }

</bundles_post_ra>
